<compile_context>
chip_gen: v7x
topology: tpu7x:2x2x1
jax: 0.10.0
libtpu: 0.0.40
codegen_flags: <defaults>
</compile_context>

<pallas_src>
import functools

import jax
import jax.numpy as jnp
from jax import lax
from jax.experimental import pallas as pl
from jax.experimental.pallas import tpu as pltpu


def _leaky_relu(x, slope=0.01):
    # nn.LeakyReLU default negative_slope=0.01
    return jnp.maximum(x, slope * x)


def _mm(a, w):
    # Cast the activation operand to the (possibly bf16) weight dtype so the MXU runs
    # in the weights' precision; always accumulate in f32.
    return jnp.dot(a.astype(w.dtype), w, preferred_element_type=jnp.float32)


def _gcn_kernel(*refs, n_conv, n_hidden, tb, n_atoms):
    out_ref = refs[-1]
    it = iter(refs[:-1])
    node_ref = next(it)            # (TB, N, V)   f32 or bf16
    adj_ref = next(it)             # (TB, N, N)   f32
    w_init_ref = next(it)          # (V, F)
    b_init_ref = next(it)          # (1, F)       f32
    if n_conv > 0:
        w_conv_ref = next(it)      # (n_conv, F, F)
        b_conv_ref = next(it)      # (n_conv, F)  f32
    w_fc0_ref = next(it)           # (F, H)
    b_fc0_ref = next(it)           # (1, H)       f32
    if n_hidden > 1:
        w_fch_ref = next(it)       # (n_hidden-1, H, H)
        b_fch_ref = next(it)       # (n_hidden-1, H) f32
    w_out_t_ref = next(it)         # (O, H)  pre-transposed output weight
    b_out_ref = next(it)           # (O, 1)  f32

    tbn = tb * n_atoms
    x = node_ref[...]                                     # (TB, N, V)
    adj = adj_ref[...]                                    # (TB, N, N) f32

    # ---- init transform: one flattened (TB*N, V) @ (V, F) MXU matmul ----
    h2 = _mm(x.reshape(tbn, x.shape[-1]), w_init_ref[...]) + b_init_ref[...]
    h2 = _leaky_relu(h2)                                  # (TB*N, F) f32
    feat = h2.shape[-1]
    # N is a multiple of 8 -> layout-preserving reshape (no VMEM relayout copy).
    h = h2.reshape(tb, n_atoms, feat)                     # kept 3-D across conv layers

    # ---- degree normalization: diag(1/clamp(deg,1)) @ adj == row-scale (f32 VPU) ----
    deg = jnp.sum(adj, axis=-1, keepdims=True)            # (TB, N, 1)
    norm_adj = adj * (1.0 / jnp.maximum(deg, 1.0))        # (TB, N, N)
    # TODO(synk): store adjacency host-side as (B, N*N) for 256-lane-dense DMA rows if
    # adjacency DMA ever shows up as a bottleneck.

    # ---- graph convolution layers (statically unrolled) ----
    # Aggregation on the VPU: unrolled accumulate over the N neighbor index instead of
    # TB independent 16x16x32 MXU matmuls (each of which would waste a full 128/256-wide
    # MXU pass).
    for i in range(n_conv):
        msg = norm_adj[:, :, 0:1] * h[:, 0:1, :]          # (TB, N, F)
        for m in range(1, n_atoms):
            msg = msg + norm_adj[:, :, m:m + 1] * h[:, m:m + 1, :]
        lin = _mm(msg.reshape(tbn, feat), w_conv_ref[i]) + b_conv_ref[i][None, :]
        h = _leaky_relu(lin).reshape(tb, n_atoms, feat)

    # ---- mean pooling over atoms ----
    g = jnp.mean(h, axis=1)                               # (TB, F) f32

    # ---- fully-connected head (dropout p=0 -> identity) ----
    g = _leaky_relu(_mm(g, w_fc0_ref[...]) + b_fc0_ref[...])
    if n_hidden > 1:
        for j in range(n_hidden - 1):
            g = _leaky_relu(_mm(g, w_fch_ref[j]) + b_fch_ref[j][None, :])

    # ---- output layer, emitted lane-dense as (O, TB) ----
    # (O,H) x (TB,H) contracted on H (same pattern as attention's QK^T): gives the
    # transposed (O, TB) result directly, so the store is lane-dense and no in-kernel
    # transpose is needed.
    out_t = lax.dot_general(
        w_out_t_ref[...], g.astype(w_out_t_ref.dtype),
        dimension_numbers=(((1,), (1,)), ((), ())),
        preferred_element_type=jnp.float32,
    ) + b_out_ref[...]                                    # (O, TB)
    out_ref[...] = out_t[None].astype(out_ref.dtype)      # block (1, O, TB)


def molecule_gcn_forward(node_mat, adj_mat, params, *, n_conv, n_hidden,
                         tb=None, use_bf16_matmul=False):
    B, N, V = node_mat.shape
    F = params["w_init"].shape[1]
    H = params["w_fc0"].shape[1]
    O = params["w_out"].shape[1]

    # ---- batch tile size ----
    # Default 256: multiple of 128 (lane-dense output stores), amortizes per-grid-step
    # overhead, and double-buffered (TB,16,32)+(TB,16,16) f32 tiles plus lane-padded
    # intermediates stay ~20 MiB (inside every generation's VMEM incl. v7x 64 MiB).
    if tb is None:
        tb = 256
    tb = max(8, min((tb // 8) * 8, pl.cdiv(B, 8) * 8))
    # Keep >= 2 grid steps when possible so the "parallel" axis can feed both v7x
    # TensorCores (and exercise the pipeline); harmless on single-TC v5e/v6e.
    if pl.cdiv(B, tb) == 1 and tb > 8:
        tb = max(8, pl.cdiv(tb // 2, 8) * 8)

    num_tiles = pl.cdiv(B, tb)
    B_pad = num_tiles * tb
    if B_pad != B:
        pad = ((0, B_pad - B), (0, 0), (0, 0))
        node_mat = jnp.pad(node_mat, pad)
        adj_mat = jnp.pad(adj_mat, pad)

    mm_dtype = jnp.bfloat16 if use_bf16_matmul else jnp.float32
    node_in = node_mat.astype(mm_dtype)       # halves node-feature DMA when bf16
    adj_in = adj_mat.astype(jnp.float32)      # adjacency stays f32 (VPU math, v5e-safe)

    # Weights as (in, out); MXU operands optionally bf16, biases stay f32.
    weight_args = [params["w_init"].astype(mm_dtype),
                   params["b_init"].astype(jnp.float32)]
    if n_conv > 0:
        weight_args += [params["w_conv"].astype(mm_dtype),
                        params["b_conv"].astype(jnp.float32)]
    weight_args += [params["w_fc0"].astype(mm_dtype),
                    params["b_fc0"].astype(jnp.float32)]
    if n_hidden > 1:
        weight_args += [params["w_fch"].astype(mm_dtype),
                        params["b_fch"].astype(jnp.float32)]
    weight_args += [params["w_out"].T.astype(mm_dtype),            # (O, H) pre-transposed
                    params["b_out"].reshape(O, 1).astype(jnp.float32)]

    def const_spec(arr):
        zeros = (0,) * arr.ndim
        return pl.BlockSpec(arr.shape, lambda i, z=zeros: z)       # VMEM-resident weights

    in_specs = (
        [pl.BlockSpec((tb, N, V), lambda i: (i, 0, 0)),
         pl.BlockSpec((tb, N, N), lambda i: (i, 0, 0))]
        + [const_spec(a) for a in weight_args]
    )
    # Lane-dense output: per grid step one (1, O, tb) block of a (num_tiles, O, tb) slab.
    out_specs = pl.BlockSpec((1, O, tb), lambda i: (i, 0, 0))

    flops = 2 * B_pad * N * V * F
    flops += n_conv * (2 * B_pad * N * N * F + 2 * B_pad * N * F * F)
    flops += 2 * B_pad * F * H + max(n_hidden - 1, 0) * 2 * B_pad * H * H
    flops += 2 * B_pad * H * O
    bytes_accessed = sum(int(a.size) * a.dtype.itemsize
                         for a in [node_in, adj_in] + weight_args)
    bytes_accessed += B_pad * O * 4

    kernel = functools.partial(
        _gcn_kernel, n_conv=n_conv, n_hidden=n_hidden, tb=tb, n_atoms=N
    )

    out3 = pl.pallas_call(
        kernel,
        grid=(num_tiles,),
        out_shape=jax.ShapeDtypeStruct((num_tiles, O, tb), jnp.float32),
        in_specs=in_specs,
        out_specs=out_specs,
        compiler_params=pltpu.CompilerParams(
            dimension_semantics=("parallel",),      # megacore sharding on v7x
            vmem_limit_bytes=48 * 1024 * 1024,
        ),
        cost_estimate=pl.CostEstimate(
            flops=int(flops), transcendentals=0, bytes_accessed=int(bytes_accessed)
        ),
    )(node_in, adj_in, *weight_args)

    # (num_tiles, O, tb) -> (B, O)
    out = jnp.transpose(out3, (0, 2, 1)).reshape(B_pad, O)
    return out[:B]


def init_params(key, node_vec_len, node_fea_len, hidden_fea_len,
                n_conv, n_hidden, n_outputs):
    """Deterministic PyTorch-Linear-style init (uniform +-1/sqrt(fan_in))."""
    keys = jax.random.split(key, 16)

    def lin(k, fan_in, shape):
        bound = 1.0 / jnp.sqrt(fan_in)
        return jax.random.uniform(k, shape, jnp.float32, -bound, bound)

    V, F, H, O = node_vec_len, node_fea_len, hidden_fea_len, n_outputs
    return {
        "w_init": lin(keys[0], V, (V, F)),
        "b_init": lin(keys[1], V, (1, F)),
        "w_conv": lin(keys[2], F, (n_conv, F, F)),
        "b_conv": lin(keys[3], F, (n_conv, F)),
        "w_fc0": lin(keys[4], F, (F, H)),
        "b_fc0": lin(keys[5], F, (1, H)),
        "w_fch": lin(keys[6], H, (max(n_hidden - 1, 0), H, H)),
        "b_fch": lin(keys[7], H, (max(n_hidden - 1, 0), H)),
        "w_out": lin(keys[8], H, (H, O)),
        "b_out": lin(keys[9], H, (1, O)),
    }


def reference_forward(node_mat, adj_mat, params, *, n_conv, n_hidden):
    """Pure-JAX reference mirroring the PyTorch module (all f32)."""
    h = _leaky_relu(node_mat @ params["w_init"] + params["b_init"][None])
    deg = jnp.sum(adj_mat, axis=-1, keepdims=True)
    norm_adj = adj_mat * (1.0 / jnp.maximum(deg, 1.0))   # matches torch clamp(min=1.0)
    for i in range(n_conv):
        h = _leaky_relu(
            jnp.einsum("bnm,bmf->bnf", norm_adj, h) @ params["w_conv"][i]
            + params["b_conv"][i]
        )
    g = jnp.mean(h, axis=1)
    g = _leaky_relu(g @ params["w_fc0"] + params["b_fc0"])
    for j in range(n_hidden - 1):
        g = _leaky_relu(g @ params["w_fch"][j] + params["b_fch"][j])
    return g @ params["w_out"] + params["b_out"]


if __name__ == "__main__":
    # Small shapes consistent with the module's forward signature.
    B, N_ATOMS = 20, 16          # B not a multiple of TB -> exercises padding path
    NODE_VEC_LEN = 32            # node_vec_len
    NODE_FEA_LEN = 32            # node_fea_len
    HIDDEN_FEA_LEN = 32          # hidden_fea_len
    N_CONV, N_HIDDEN, N_OUTPUTS = 2, 2, 1
    # p_dropout = 0.0 -> dropout is identity; pooling_type = 'mean'

    key = jax.random.PRNGKey(0)
    k_node, k_adj, k_params = jax.random.split(key, 3)

    node_mat = jax.random.normal(k_node, (B, N_ATOMS, NODE_VEC_LEN), jnp.float32)
    # Symmetric binary adjacency with zeroed diagonal.
    a = jax.random.bernoulli(k_adj, 0.3, (B, N_ATOMS, N_ATOMS)).astype(jnp.float32)
    adj_mat = jnp.clip(a + jnp.swapaxes(a, 1, 2), 0.0, 1.0)
    adj_mat = adj_mat * (1.0 - jnp.eye(N_ATOMS)[None])

    params = init_params(
        k_params, NODE_VEC_LEN, NODE_FEA_LEN, HIDDEN_FEA_LEN,
        N_CONV, N_HIDDEN, N_OUTPUTS,
    )

    ref = reference_forward(
        node_mat, adj_mat, params, n_conv=N_CONV, n_hidden=N_HIDDEN
    )

    # f32 path: heuristic picks tb=16 -> grid=(2,), pads 20 -> 32 (multi-step pipeline,
    # padding path, parallel batch axis all exercised).
    out = molecule_gcn_forward(
        node_mat, adj_mat, params, n_conv=N_CONV, n_hidden=N_HIDDEN
    )
    out = jax.block_until_ready(out)
    assert out.shape == (B, N_OUTPUTS)
    assert jnp.allclose(out, ref, atol=1e-4, rtol=1e-4), (out, ref)

    # bf16 MXU-operand path (v6e/v7x perf option): f32 accumulation, looser tolerance.
    out_bf16 = jax.block_until_ready(
        molecule_gcn_forward(node_mat, adj_mat, params, n_conv=N_CONV,
                             n_hidden=N_HIDDEN, use_bf16_matmul=True)
    )
    scale = jnp.maximum(jnp.max(jnp.abs(ref)), 1.0)
    assert out_bf16.shape == (B, N_OUTPUTS)
    assert jnp.max(jnp.abs(out_bf16 - ref)) / scale < 5e-2, (out_bf16, ref)

    print("KERNEL_OK")
</pallas_src>

<mosaic_0001>
module attributes {stable_mosaic.version = 11 : i64} {
  func.func @_gcn_kernel(%arg0: i32, %arg1: memref<16x16x32xf32, #tpu.memory_space<vmem>>, %arg2: memref<16x16x16xf32, #tpu.memory_space<vmem>>, %arg3: memref<32x32xf32, #tpu.memory_space<vmem>>, %arg4: memref<1x32xf32, #tpu.memory_space<vmem>>, %arg5: memref<2x32x32xf32, #tpu.memory_space<vmem>>, %arg6: memref<2x32xf32, #tpu.memory_space<vmem>>, %arg7: memref<32x32xf32, #tpu.memory_space<vmem>>, %arg8: memref<1x32xf32, #tpu.memory_space<vmem>>, %arg9: memref<1x32x32xf32, #tpu.memory_space<vmem>>, %arg10: memref<1x32xf32, #tpu.memory_space<vmem>>, %arg11: memref<1x32xf32, #tpu.memory_space<vmem>>, %arg12: memref<1x1xf32, #tpu.memory_space<vmem>>, %arg13: memref<1x1x16xf32, #tpu.memory_space<vmem>>) attributes {dimension_semantics = [#tpu.dimension_semantics<parallel>], iteration_bounds = array<i64: 2>, scalar_prefetch = 0 : i64, scratch_operands = 0 : i64, tpu.core_type = #tpu.core_type<tc>, window_params = [{transform_indices = @transform_0, window_bounds = array<i64: 16, 16, 32>}, {transform_indices = @transform_1, window_bounds = array<i64: 16, 16, 16>}, {pipeline_mode = #tpu.pipeline_mode<synchronous>, transform_indices = @transform_2, window_bounds = array<i64: 32, 32>}, {pipeline_mode = #tpu.pipeline_mode<synchronous>, transform_indices = @transform_3, window_bounds = array<i64: 1, 32>}, {pipeline_mode = #tpu.pipeline_mode<synchronous>, transform_indices = @transform_4, window_bounds = array<i64: 2, 32, 32>}, {pipeline_mode = #tpu.pipeline_mode<synchronous>, transform_indices = @transform_5, window_bounds = array<i64: 2, 32>}, {pipeline_mode = #tpu.pipeline_mode<synchronous>, transform_indices = @transform_6, window_bounds = array<i64: 32, 32>}, {pipeline_mode = #tpu.pipeline_mode<synchronous>, transform_indices = @transform_7, window_bounds = array<i64: 1, 32>}, {pipeline_mode = #tpu.pipeline_mode<synchronous>, transform_indices = @transform_8, window_bounds = array<i64: 1, 32, 32>}, {pipeline_mode = #tpu.pipeline_mode<synchronous>, transform_indices = @transform_9, window_bounds = array<i64: 1, 32>}, {pipeline_mode = #tpu.pipeline_mode<synchronous>, transform_indices = @transform_10, window_bounds = array<i64: 1, 32>}, {pipeline_mode = #tpu.pipeline_mode<synchronous>, transform_indices = @transform_11, window_bounds = array<i64: 1, 1>}, {transform_indices = @transform_12, window_bounds = array<i64: 1, 1, 16>}]} {
    %c0 = arith.constant 0 : index
    %c0_0 = arith.constant 0 : index
    %c0_1 = arith.constant 0 : index
    %0 = vector.load %arg1[%c0, %c0_0, %c0_1] : memref<16x16x32xf32, #tpu.memory_space<vmem>>, vector<16x16x32xf32>
    %c0_2 = arith.constant 0 : index
    %c0_3 = arith.constant 0 : index
    %c0_4 = arith.constant 0 : index
    %1 = vector.load %arg2[%c0_2, %c0_3, %c0_4] : memref<16x16x16xf32, #tpu.memory_space<vmem>>, vector<16x16x16xf32>
    %2 = vector.shape_cast %0 : vector<16x16x32xf32> to vector<256x32xf32>
    %c0_5 = arith.constant 0 : index
    %c0_6 = arith.constant 0 : index
    %3 = vector.load %arg3[%c0_5, %c0_6] : memref<32x32xf32, #tpu.memory_space<vmem>>, vector<32x32xf32>
    %cst = arith.constant dense<0.000000e+00> : vector<256x32xf32>
    %4 = tpu.matmul %2, %3, %cst {dimension_numbers = #tpu.dot_dimension_numbers<[1], [0], [0], [1], [0, 0, 1, 1], [], []>} : vector<256x32xf32>, vector<32x32xf32>, vector<256x32xf32> -> vector<256x32xf32>
    %c0_7 = arith.constant 0 : index
    %c0_8 = arith.constant 0 : index
    %5 = vector.load %arg4[%c0_7, %c0_8] : memref<1x32xf32, #tpu.memory_space<vmem>>, vector<1x32xf32>
    %6 = vector.broadcast %5 : vector<1x32xf32> to vector<256x32xf32>
    %7 = arith.addf %4, %6 : vector<256x32xf32>
    %cst_9 = arith.constant 0.00999999977 : f32
    %8 = vector.broadcast %cst_9 : f32 to vector<256x32xf32>
    %9 = arith.mulf %8, %7 : vector<256x32xf32>
    %10 = arith.maximumf %7, %9 : vector<256x32xf32>
    %11 = vector.shape_cast %10 : vector<256x32xf32> to vector<16x16x32xf32>
    %cst_10 = arith.constant dense<0.000000e+00> : vector<16x16xf32>
    %12 = vector.multi_reduction <add>, %1, %cst_10 [2] : vector<16x16x16xf32> to vector<16x16xf32>
    %13 = vector.shape_cast %12 : vector<16x16xf32> to vector<16x16x1xf32>
    %cst_11 = arith.constant 1.000000e+00 : f32
    %14 = vector.broadcast %cst_11 : f32 to vector<16x16x1xf32>
    %15 = arith.maximumf %13, %14 : vector<16x16x1xf32>
    %cst_12 = arith.constant 1.000000e+00 : f32
    %16 = vector.broadcast %cst_12 : f32 to vector<16x16x1xf32>
    %17 = arith.divf %16, %15 : vector<16x16x1xf32>
    %18 = vector.broadcast %17 : vector<16x16x1xf32> to vector<16x16x16xf32>
    %19 = arith.mulf %1, %18 : vector<16x16x16xf32>
    %20 = vector.extract_strided_slice %19 {offsets = [0, 0, 0], sizes = [16, 16, 1], strides = [1, 1, 1]} : vector<16x16x16xf32> to vector<16x16x1xf32>
    %21 = vector.extract_strided_slice %11 {offsets = [0, 0, 0], sizes = [16, 1, 32], strides = [1, 1, 1]} : vector<16x16x32xf32> to vector<16x1x32xf32>
    %22 = vector.broadcast %20 : vector<16x16x1xf32> to vector<16x16x32xf32>
    %23 = vector.broadcast %21 : vector<16x1x32xf32> to vector<16x16x32xf32>
    %24 = arith.mulf %22, %23 : vector<16x16x32xf32>
    %25 = vector.extract_strided_slice %19 {offsets = [0, 0, 1], sizes = [16, 16, 1], strides = [1, 1, 1]} : vector<16x16x16xf32> to vector<16x16x1xf32>
    %26 = vector.extract_strided_slice %11 {offsets = [0, 1, 0], sizes = [16, 1, 32], strides = [1, 1, 1]} : vector<16x16x32xf32> to vector<16x1x32xf32>
    %27 = vector.broadcast %25 : vector<16x16x1xf32> to vector<16x16x32xf32>
    %28 = vector.broadcast %26 : vector<16x1x32xf32> to vector<16x16x32xf32>
    %29 = arith.mulf %27, %28 : vector<16x16x32xf32>
    %30 = arith.addf %24, %29 : vector<16x16x32xf32>
    %31 = vector.extract_strided_slice %19 {offsets = [0, 0, 2], sizes = [16, 16, 1], strides = [1, 1, 1]} : vector<16x16x16xf32> to vector<16x16x1xf32>
    %32 = vector.extract_strided_slice %11 {offsets = [0, 2, 0], sizes = [16, 1, 32], strides = [1, 1, 1]} : vector<16x16x32xf32> to vector<16x1x32xf32>
    %33 = vector.broadcast %31 : vector<16x16x1xf32> to vector<16x16x32xf32>
    %34 = vector.broadcast %32 : vector<16x1x32xf32> to vector<16x16x32xf32>
    %35 = arith.mulf %33, %34 : vector<16x16x32xf32>
    %36 = arith.addf %30, %35 : vector<16x16x32xf32>
    %37 = vector.extract_strided_slice %19 {offsets = [0, 0, 3], sizes = [16, 16, 1], strides = [1, 1, 1]} : vector<16x16x16xf32> to vector<16x16x1xf32>
    %38 = vector.extract_strided_slice %11 {offsets = [0, 3, 0], sizes = [16, 1, 32], strides = [1, 1, 1]} : vector<16x16x32xf32> to vector<16x1x32xf32>
    %39 = vector.broadcast %37 : vector<16x16x1xf32> to vector<16x16x32xf32>
    %40 = vector.broadcast %38 : vector<16x1x32xf32> to vector<16x16x32xf32>
    %41 = arith.mulf %39, %40 : vector<16x16x32xf32>
    %42 = arith.addf %36, %41 : vector<16x16x32xf32>
    %43 = vector.extract_strided_slice %19 {offsets = [0, 0, 4], sizes = [16, 16, 1], strides = [1, 1, 1]} : vector<16x16x16xf32> to vector<16x16x1xf32>
    %44 = vector.extract_strided_slice %11 {offsets = [0, 4, 0], sizes = [16, 1, 32], strides = [1, 1, 1]} : vector<16x16x32xf32> to vector<16x1x32xf32>
    %45 = vector.broadcast %43 : vector<16x16x1xf32> to vector<16x16x32xf32>
    %46 = vector.broadcast %44 : vector<16x1x32xf32> to vector<16x16x32xf32>
    %47 = arith.mulf %45, %46 : vector<16x16x32xf32>
    %48 = arith.addf %42, %47 : vector<16x16x32xf32>
    %49 = vector.extract_strided_slice %19 {offsets = [0, 0, 5], sizes = [16, 16, 1], strides = [1, 1, 1]} : vector<16x16x16xf32> to vector<16x16x1xf32>
    %50 = vector.extract_strided_slice %11 {offsets = [0, 5, 0], sizes = [16, 1, 32], strides = [1, 1, 1]} : vector<16x16x32xf32> to vector<16x1x32xf32>
    %51 = vector.broadcast %49 : vector<16x16x1xf32> to vector<16x16x32xf32>
    %52 = vector.broadcast %50 : vector<16x1x32xf32> to vector<16x16x32xf32>
    %53 = arith.mulf %51, %52 : vector<16x16x32xf32>
    %54 = arith.addf %48, %53 : vector<16x16x32xf32>
    %55 = vector.extract_strided_slice %19 {offsets = [0, 0, 6], sizes = [16, 16, 1], strides = [1, 1, 1]} : vector<16x16x16xf32> to vector<16x16x1xf32>
    %56 = vector.extract_strided_slice %11 {offsets = [0, 6, 0], sizes = [16, 1, 32], strides = [1, 1, 1]} : vector<16x16x32xf32> to vector<16x1x32xf32>
    %57 = vector.broadcast %55 : vector<16x16x1xf32> to vector<16x16x32xf32>
    %58 = vector.broadcast %56 : vector<16x1x32xf32> to vector<16x16x32xf32>
    %59 = arith.mulf %57, %58 : vector<16x16x32xf32>
    %60 = arith.addf %54, %59 : vector<16x16x32xf32>
    %61 = vector.extract_strided_slice %19 {offsets = [0, 0, 7], sizes = [16, 16, 1], strides = [1, 1, 1]} : vector<16x16x16xf32> to vector<16x16x1xf32>
    %62 = vector.extract_strided_slice %11 {offsets = [0, 7, 0], sizes = [16, 1, 32], strides = [1, 1, 1]} : vector<16x16x32xf32> to vector<16x1x32xf32>
    %63 = vector.broadcast %61 : vector<16x16x1xf32> to vector<16x16x32xf32>
    %64 = vector.broadcast %62 : vector<16x1x32xf32> to vector<16x16x32xf32>
    %65 = arith.mulf %63, %64 : vector<16x16x32xf32>
    %66 = arith.addf %60, %65 : vector<16x16x32xf32>
    %67 = vector.extract_strided_slice %19 {offsets = [0, 0, 8], sizes = [16, 16, 1], strides = [1, 1, 1]} : vector<16x16x16xf32> to vector<16x16x1xf32>
    %68 = vector.extract_strided_slice %11 {offsets = [0, 8, 0], sizes = [16, 1, 32], strides = [1, 1, 1]} : vector<16x16x32xf32> to vector<16x1x32xf32>
    %69 = vector.broadcast %67 : vector<16x16x1xf32> to vector<16x16x32xf32>
    %70 = vector.broadcast %68 : vector<16x1x32xf32> to vector<16x16x32xf32>
    %71 = arith.mulf %69, %70 : vector<16x16x32xf32>
    %72 = arith.addf %66, %71 : vector<16x16x32xf32>
    %73 = vector.extract_strided_slice %19 {offsets = [0, 0, 9], sizes = [16, 16, 1], strides = [1, 1, 1]} : vector<16x16x16xf32> to vector<16x16x1xf32>
    %74 = vector.extract_strided_slice %11 {offsets = [0, 9, 0], sizes = [16, 1, 32], strides = [1, 1, 1]} : vector<16x16x32xf32> to vector<16x1x32xf32>
    %75 = vector.broadcast %73 : vector<16x16x1xf32> to vector<16x16x32xf32>
    %76 = vector.broadcast %74 : vector<16x1x32xf32> to vector<16x16x32xf32>
    %77 = arith.mulf %75, %76 : vector<16x16x32xf32>
    %78 = arith.addf %72, %77 : vector<16x16x32xf32>
    %79 = vector.extract_strided_slice %19 {offsets = [0, 0, 10], sizes = [16, 16, 1], strides = [1, 1, 1]} : vector<16x16x16xf32> to vector<16x16x1xf32>
    %80 = vector.extract_strided_slice %11 {offsets = [0, 10, 0], sizes = [16, 1, 32], strides = [1, 1, 1]} : vector<16x16x32xf32> to vector<16x1x32xf32>
    %81 = vector.broadcast %79 : vector<16x16x1xf32> to vector<16x16x32xf32>
    %82 = vector.broadcast %80 : vector<16x1x32xf32> to vector<16x16x32xf32>
    %83 = arith.mulf %81, %82 : vector<16x16x32xf32>
    %84 = arith.addf %78, %83 : vector<16x16x32xf32>
    %85 = vector.extract_strided_slice %19 {offsets = [0, 0, 11], sizes = [16, 16, 1], strides = [1, 1, 1]} : vector<16x16x16xf32> to vector<16x16x1xf32>
    %86 = vector.extract_strided_slice %11 {offsets = [0, 11, 0], sizes = [16, 1, 32], strides = [1, 1, 1]} : vector<16x16x32xf32> to vector<16x1x32xf32>
    %87 = vector.broadcast %85 : vector<16x16x1xf32> to vector<16x16x32xf32>
    %88 = vector.broadcast %86 : vector<16x1x32xf32> to vector<16x16x32xf32>
    %89 = arith.mulf %87, %88 : vector<16x16x32xf32>
    %90 = arith.addf %84, %89 : vector<16x16x32xf32>
    %91 = vector.extract_strided_slice %19 {offsets = [0, 0, 12], sizes = [16, 16, 1], strides = [1, 1, 1]} : vector<16x16x16xf32> to vector<16x16x1xf32>
    %92 = vector.extract_strided_slice %11 {offsets = [0, 12, 0], sizes = [16, 1, 32], strides = [1, 1, 1]} : vector<16x16x32xf32> to vector<16x1x32xf32>
    %93 = vector.broadcast %91 : vector<16x16x1xf32> to vector<16x16x32xf32>
    %94 = vector.broadcast %92 : vector<16x1x32xf32> to vector<16x16x32xf32>
    %95 = arith.mulf %93, %94 : vector<16x16x32xf32>
    %96 = arith.addf %90, %95 : vector<16x16x32xf32>
    %97 = vector.extract_strided_slice %19 {offsets = [0, 0, 13], sizes = [16, 16, 1], strides = [1, 1, 1]} : vector<16x16x16xf32> to vector<16x16x1xf32>
    %98 = vector.extract_strided_slice %11 {offsets = [0, 13, 0], sizes = [16, 1, 32], strides = [1, 1, 1]} : vector<16x16x32xf32> to vector<16x1x32xf32>
    %99 = vector.broadcast %97 : vector<16x16x1xf32> to vector<16x16x32xf32>
    %100 = vector.broadcast %98 : vector<16x1x32xf32> to vector<16x16x32xf32>
    %101 = arith.mulf %99, %100 : vector<16x16x32xf32>
    %102 = arith.addf %96, %101 : vector<16x16x32xf32>
    %103 = vector.extract_strided_slice %19 {offsets = [0, 0, 14], sizes = [16, 16, 1], strides = [1, 1, 1]} : vector<16x16x16xf32> to vector<16x16x1xf32>
    %104 = vector.extract_strided_slice %11 {offsets = [0, 14, 0], sizes = [16, 1, 32], strides = [1, 1, 1]} : vector<16x16x32xf32> to vector<16x1x32xf32>
    %105 = vector.broadcast %103 : vector<16x16x1xf32> to vector<16x16x32xf32>
    %106 = vector.broadcast %104 : vector<16x1x32xf32> to vector<16x16x32xf32>
    %107 = arith.mulf %105, %106 : vector<16x16x32xf32>
    %108 = arith.addf %102, %107 : vector<16x16x32xf32>
    %109 = vector.extract_strided_slice %19 {offsets = [0, 0, 15], sizes = [16, 16, 1], strides = [1, 1, 1]} : vector<16x16x16xf32> to vector<16x16x1xf32>
    %110 = vector.extract_strided_slice %11 {offsets = [0, 15, 0], sizes = [16, 1, 32], strides = [1, 1, 1]} : vector<16x16x32xf32> to vector<16x1x32xf32>
    %111 = vector.broadcast %109 : vector<16x16x1xf32> to vector<16x16x32xf32>
    %112 = vector.broadcast %110 : vector<16x1x32xf32> to vector<16x16x32xf32>
    %113 = arith.mulf %111, %112 : vector<16x16x32xf32>
    %114 = arith.addf %108, %113 : vector<16x16x32xf32>
    %115 = vector.shape_cast %114 : vector<16x16x32xf32> to vector<256x32xf32>
    %c0_13 = arith.constant 0 : index
    %c0_14 = arith.constant 0 : index
    %c0_15 = arith.constant 0 : index
    %116 = vector.load %arg5[%c0_13, %c0_14, %c0_15] : memref<2x32x32xf32, #tpu.memory_space<vmem>>, vector<1x32x32xf32>
    %117 = vector.shape_cast %116 : vector<1x32x32xf32> to vector<32x32xf32>
    %cst_16 = arith.constant dense<0.000000e+00> : vector<256x32xf32>
    %118 = tpu.matmul %115, %117, %cst_16 {dimension_numbers = #tpu.dot_dimension_numbers<[1], [0], [0], [1], [0, 0, 1, 1], [], []>} : vector<256x32xf32>, vector<32x32xf32>, vector<256x32xf32> -> vector<256x32xf32>
    %c0_17 = arith.constant 0 : index
    %c0_18 = arith.constant 0 : index
    %119 = vector.load %arg6[%c0_17, %c0_18] : memref<2x32xf32, #tpu.memory_space<vmem>>, vector<1x32xf32>
    %120 = vector.shape_cast %119 : vector<1x32xf32> to vector<32xf32>
    %121 = vector.shape_cast %120 : vector<32xf32> to vector<1x32xf32>
    %122 = vector.broadcast %121 : vector<1x32xf32> to vector<256x32xf32>
    %123 = arith.addf %118, %122 : vector<256x32xf32>
    %cst_19 = arith.constant 0.00999999977 : f32
    %124 = vector.broadcast %cst_19 : f32 to vector<256x32xf32>
    %125 = arith.mulf %124, %123 : vector<256x32xf32>
    %126 = arith.maximumf %123, %125 : vector<256x32xf32>
    %127 = vector.shape_cast %126 : vector<256x32xf32> to vector<16x16x32xf32>
    %128 = vector.extract_strided_slice %19 {offsets = [0, 0, 0], sizes = [16, 16, 1], strides = [1, 1, 1]} : vector<16x16x16xf32> to vector<16x16x1xf32>
    %129 = vector.extract_strided_slice %127 {offsets = [0, 0, 0], sizes = [16, 1, 32], strides = [1, 1, 1]} : vector<16x16x32xf32> to vector<16x1x32xf32>
    %130 = vector.broadcast %128 : vector<16x16x1xf32> to vector<16x16x32xf32>
    %131 = vector.broadcast %129 : vector<16x1x32xf32> to vector<16x16x32xf32>
    %132 = arith.mulf %130, %131 : vector<16x16x32xf32>
    %133 = vector.extract_strided_slice %19 {offsets = [0, 0, 1], sizes = [16, 16, 1], strides = [1, 1, 1]} : vector<16x16x16xf32> to vector<16x16x1xf32>
    %134 = vector.extract_strided_slice %127 {offsets = [0, 1, 0], sizes = [16, 1, 32], strides = [1, 1, 1]} : vector<16x16x32xf32> to vector<16x1x32xf32>
    %135 = vector.broadcast %133 : vector<16x16x1xf32> to vector<16x16x32xf32>
    %136 = vector.broadcast %134 : vector<16x1x32xf32> to vector<16x16x32xf32>
    %137 = arith.mulf %135, %136 : vector<16x16x32xf32>
    %138 = arith.addf %132, %137 : vector<16x16x32xf32>
    %139 = vector.extract_strided_slice %19 {offsets = [0, 0, 2], sizes = [16, 16, 1], strides = [1, 1, 1]} : vector<16x16x16xf32> to vector<16x16x1xf32>
    %140 = vector.extract_strided_slice %127 {offsets = [0, 2, 0], sizes = [16, 1, 32], strides = [1, 1, 1]} : vector<16x16x32xf32> to vector<16x1x32xf32>
    %141 = vector.broadcast %139 : vector<16x16x1xf32> to vector<16x16x32xf32>
    %142 = vector.broadcast %140 : vector<16x1x32xf32> to vector<16x16x32xf32>
    %143 = arith.mulf %141, %142 : vector<16x16x32xf32>
    %144 = arith.addf %138, %143 : vector<16x16x32xf32>
    %145 = vector.extract_strided_slice %19 {offsets = [0, 0, 3], sizes = [16, 16, 1], strides = [1, 1, 1]} : vector<16x16x16xf32> to vector<16x16x1xf32>
    %146 = vector.extract_strided_slice %127 {offsets = [0, 3, 0], sizes = [16, 1, 32], strides = [1, 1, 1]} : vector<16x16x32xf32> to vector<16x1x32xf32>
    %147 = vector.broadcast %145 : vector<16x16x1xf32> to vector<16x16x32xf32>
    %148 = vector.broadcast %146 : vector<16x1x32xf32> to vector<16x16x32xf32>
    %149 = arith.mulf %147, %148 : vector<16x16x32xf32>
    %150 = arith.addf %144, %149 : vector<16x16x32xf32>
    %151 = vector.extract_strided_slice %19 {offsets = [0, 0, 4], sizes = [16, 16, 1], strides = [1, 1, 1]} : vector<16x16x16xf32> to vector<16x16x1xf32>
    %152 = vector.extract_strided_slice %127 {offsets = [0, 4, 0], sizes = [16, 1, 32], strides = [1, 1, 1]} : vector<16x16x32xf32> to vector<16x1x32xf32>
    %153 = vector.broadcast %151 : vector<16x16x1xf32> to vector<16x16x32xf32>
    %154 = vector.broadcast %152 : vector<16x1x32xf32> to vector<16x16x32xf32>
    %155 = arith.mulf %153, %154 : vector<16x16x32xf32>
    %156 = arith.addf %150, %155 : vector<16x16x32xf32>
    %157 = vector.extract_strided_slice %19 {offsets = [0, 0, 5], sizes = [16, 16, 1], strides = [1, 1, 1]} : vector<16x16x16xf32> to vector<16x16x1xf32>
    %158 = vector.extract_strided_slice %127 {offsets = [0, 5, 0], sizes = [16, 1, 32], strides = [1, 1, 1]} : vector<16x16x32xf32> to vector<16x1x32xf32>
    %159 = vector.broadcast %157 : vector<16x16x1xf32> to vector<16x16x32xf32>
    %160 = vector.broadcast %158 : vector<16x1x32xf32> to vector<16x16x32xf32>
    %161 = arith.mulf %159, %160 : vector<16x16x32xf32>
    %162 = arith.addf %156, %161 : vector<16x16x32xf32>
    %163 = vector.extract_strided_slice %19 {offsets = [0, 0, 6], sizes = [16, 16, 1], strides = [1, 1, 1]} : vector<16x16x16xf32> to vector<16x16x1xf32>
    %164 = vector.extract_strided_slice %127 {offsets = [0, 6, 0], sizes = [16, 1, 32], strides = [1, 1, 1]} : vector<16x16x32xf32> to vector<16x1x32xf32>
    %165 = vector.broadcast %163 : vector<16x16x1xf32> to vector<16x16x32xf32>
    %166 = vector.broadcast %164 : vector<16x1x32xf32> to vector<16x16x32xf32>
    %167 = arith.mulf %165, %166 : vector<16x16x32xf32>
    %168 = arith.addf %162, %167 : vector<16x16x32xf32>
    %169 = vector.extract_strided_slice %19 {offsets = [0, 0, 7], sizes = [16, 16, 1], strides = [1, 1, 1]} : vector<16x16x16xf32> to vector<16x16x1xf32>
    %170 = vector.extract_strided_slice %127 {offsets = [0, 7, 0], sizes = [16, 1, 32], strides = [1, 1, 1]} : vector<16x16x32xf32> to vector<16x1x32xf32>
    %171 = vector.broadcast %169 : vector<16x16x1xf32> to vector<16x16x32xf32>
    %172 = vector.broadcast %170 : vector<16x1x32xf32> to vector<16x16x32xf32>
    %173 = arith.mulf %171, %172 : vector<16x16x32xf32>
    %174 = arith.addf %168, %173 : vector<16x16x32xf32>
    %175 = vector.extract_strided_slice %19 {offsets = [0, 0, 8], sizes = [16, 16, 1], strides = [1, 1, 1]} : vector<16x16x16xf32> to vector<16x16x1xf32>
    %176 = vector.extract_strided_slice %127 {offsets = [0, 8, 0], sizes = [16, 1, 32], strides = [1, 1, 1]} : vector<16x16x32xf32> to vector<16x1x32xf32>
    %177 = vector.broadcast %175 : vector<16x16x1xf32> to vector<16x16x32xf32>
    %178 = vector.broadcast %176 : vector<16x1x32xf32> to vector<16x16x32xf32>
    %179 = arith.mulf %177, %178 : vector<16x16x32xf32>
    %180 = arith.addf %174, %179 : vector<16x16x32xf32>
    %181 = vector.extract_strided_slice %19 {offsets = [0, 0, 9], sizes = [16, 16, 1], strides = [1, 1, 1]} : vector<16x16x16xf32> to vector<16x16x1xf32>
    %182 = vector.extract_strided_slice %127 {offsets = [0, 9, 0], sizes = [16, 1, 32], strides = [1, 1, 1]} : vector<16x16x32xf32> to vector<16x1x32xf32>
    %183 = vector.broadcast %181 : vector<16x16x1xf32> to vector<16x16x32xf32>
    %184 = vector.broadcast %182 : vector<16x1x32xf32> to vector<16x16x32xf32>
    %185 = arith.mulf %183, %184 : vector<16x16x32xf32>
    %186 = arith.addf %180, %185 : vector<16x16x32xf32>
    %187 = vector.extract_strided_slice %19 {offsets = [0, 0, 10], sizes = [16, 16, 1], strides = [1, 1, 1]} : vector<16x16x16xf32> to vector<16x16x1xf32>
    %188 = vector.extract_strided_slice %127 {offsets = [0, 10, 0], sizes = [16, 1, 32], strides = [1, 1, 1]} : vector<16x16x32xf32> to vector<16x1x32xf32>
    %189 = vector.broadcast %187 : vector<16x16x1xf32> to vector<16x16x32xf32>
    %190 = vector.broadcast %188 : vector<16x1x32xf32> to vector<16x16x32xf32>
    %191 = arith.mulf %189, %190 : vector<16x16x32xf32>
    %192 = arith.addf %186, %191 : vector<16x16x32xf32>
    %193 = vector.extract_strided_slice %19 {offsets = [0, 0, 11], sizes = [16, 16, 1], strides = [1, 1, 1]} : vector<16x16x16xf32> to vector<16x16x1xf32>
    %194 = vector.extract_strided_slice %127 {offsets = [0, 11, 0], sizes = [16, 1, 32], strides = [1, 1, 1]} : vector<16x16x32xf32> to vector<16x1x32xf32>
    %195 = vector.broadcast %193 : vector<16x16x1xf32> to vector<16x16x32xf32>
    %196 = vector.broadcast %194 : vector<16x1x32xf32> to vector<16x16x32xf32>
    %197 = arith.mulf %195, %196 : vector<16x16x32xf32>
    %198 = arith.addf %192, %197 : vector<16x16x32xf32>
    %199 = vector.extract_strided_slice %19 {offsets = [0, 0, 12], sizes = [16, 16, 1], strides = [1, 1, 1]} : vector<16x16x16xf32> to vector<16x16x1xf32>
    %200 = vector.extract_strided_slice %127 {offsets = [0, 12, 0], sizes = [16, 1, 32], strides = [1, 1, 1]} : vector<16x16x32xf32> to vector<16x1x32xf32>
    %201 = vector.broadcast %199 : vector<16x16x1xf32> to vector<16x16x32xf32>
    %202 = vector.broadcast %200 : vector<16x1x32xf32> to vector<16x16x32xf32>
    %203 = arith.mulf %201, %202 : vector<16x16x32xf32>
    %204 = arith.addf %198, %203 : vector<16x16x32xf32>
    %205 = vector.extract_strided_slice %19 {offsets = [0, 0, 13], sizes = [16, 16, 1], strides = [1, 1, 1]} : vector<16x16x16xf32> to vector<16x16x1xf32>
    %206 = vector.extract_strided_slice %127 {offsets = [0, 13, 0], sizes = [16, 1, 32], strides = [1, 1, 1]} : vector<16x16x32xf32> to vector<16x1x32xf32>
    %207 = vector.broadcast %205 : vector<16x16x1xf32> to vector<16x16x32xf32>
    %208 = vector.broadcast %206 : vector<16x1x32xf32> to vector<16x16x32xf32>
    %209 = arith.mulf %207, %208 : vector<16x16x32xf32>
    %210 = arith.addf %204, %209 : vector<16x16x32xf32>
    %211 = vector.extract_strided_slice %19 {offsets = [0, 0, 14], sizes = [16, 16, 1], strides = [1, 1, 1]} : vector<16x16x16xf32> to vector<16x16x1xf32>
    %212 = vector.extract_strided_slice %127 {offsets = [0, 14, 0], sizes = [16, 1, 32], strides = [1, 1, 1]} : vector<16x16x32xf32> to vector<16x1x32xf32>
    %213 = vector.broadcast %211 : vector<16x16x1xf32> to vector<16x16x32xf32>
    %214 = vector.broadcast %212 : vector<16x1x32xf32> to vector<16x16x32xf32>
    %215 = arith.mulf %213, %214 : vector<16x16x32xf32>
    %216 = arith.addf %210, %215 : vector<16x16x32xf32>
    %217 = vector.extract_strided_slice %19 {offsets = [0, 0, 15], sizes = [16, 16, 1], strides = [1, 1, 1]} : vector<16x16x16xf32> to vector<16x16x1xf32>
    %218 = vector.extract_strided_slice %127 {offsets = [0, 15, 0], sizes = [16, 1, 32], strides = [1, 1, 1]} : vector<16x16x32xf32> to vector<16x1x32xf32>
    %219 = vector.broadcast %217 : vector<16x16x1xf32> to vector<16x16x32xf32>
    %220 = vector.broadcast %218 : vector<16x1x32xf32> to vector<16x16x32xf32>
    %221 = arith.mulf %219, %220 : vector<16x16x32xf32>
    %222 = arith.addf %216, %221 : vector<16x16x32xf32>
    %223 = vector.shape_cast %222 : vector<16x16x32xf32> to vector<256x32xf32>
    %c1 = arith.constant 1 : index
    %c0_20 = arith.constant 0 : index
    %c0_21 = arith.constant 0 : index
    %224 = vector.load %arg5[%c1, %c0_20, %c0_21] : memref<2x32x32xf32, #tpu.memory_space<vmem>>, vector<1x32x32xf32>
    %225 = vector.shape_cast %224 : vector<1x32x32xf32> to vector<32x32xf32>
    %cst_22 = arith.constant dense<0.000000e+00> : vector<256x32xf32>
    %226 = tpu.matmul %223, %225, %cst_22 {dimension_numbers = #tpu.dot_dimension_numbers<[1], [0], [0], [1], [0, 0, 1, 1], [], []>} : vector<256x32xf32>, vector<32x32xf32>, vector<256x32xf32> -> vector<256x32xf32>
    %c1_23 = arith.constant 1 : index
    %c0_24 = arith.constant 0 : index
    %227 = vector.load %arg6[%c1_23, %c0_24] : memref<2x32xf32, #tpu.memory_space<vmem>>, vector<1x32xf32>
    %228 = vector.shape_cast %227 : vector<1x32xf32> to vector<32xf32>
    %229 = vector.shape_cast %228 : vector<32xf32> to vector<1x32xf32>
    %230 = vector.broadcast %229 : vector<1x32xf32> to vector<256x32xf32>
    %231 = arith.addf %226, %230 : vector<256x32xf32>
    %cst_25 = arith.constant 0.00999999977 : f32
    %232 = vector.broadcast %cst_25 : f32 to vector<256x32xf32>
    %233 = arith.mulf %232, %231 : vector<256x32xf32>
    %234 = arith.maximumf %231, %233 : vector<256x32xf32>
    %235 = vector.shape_cast %234 : vector<256x32xf32> to vector<16x16x32xf32>
    %cst_26 = arith.constant dense<0.000000e+00> : vector<16x32xf32>
    %236 = vector.multi_reduction <add>, %235, %cst_26 [1] : vector<16x16x32xf32> to vector<16x32xf32>
    %cst_27 = arith.constant 1.600000e+01 : f32
    %237 = vector.broadcast %cst_27 : f32 to vector<16x32xf32>
    %238 = arith.divf %236, %237 : vector<16x32xf32>
    %c0_28 = arith.constant 0 : index
    %c0_29 = arith.constant 0 : index
    %239 = vector.load %arg7[%c0_28, %c0_29] : memref<32x32xf32, #tpu.memory_space<vmem>>, vector<32x32xf32>
    %cst_30 = arith.constant dense<0.000000e+00> : vector<16x32xf32>
    %240 = tpu.matmul %238, %239, %cst_30 {dimension_numbers = #tpu.dot_dimension_numbers<[1], [0], [0], [1], [0, 0, 1, 1], [], []>} : vector<16x32xf32>, vector<32x32xf32>, vector<16x32xf32> -> vector<16x32xf32>
    %c0_31 = arith.constant 0 : index
    %c0_32 = arith.constant 0 : index
    %241 = vector.load %arg8[%c0_31, %c0_32] : memref<1x32xf32, #tpu.memory_space<vmem>>, vector<1x32xf32>
    %242 = vector.broadcast %241 : vector<1x32xf32> to vector<16x32xf32>
    %243 = arith.addf %240, %242 : vector<16x32xf32>
    %cst_33 = arith.constant 0.00999999977 : f32
    %244 = vector.broadcast %cst_33 : f32 to vector<16x32xf32>
    %245 = arith.mulf %244, %243 : vector<16x32xf32>
    %246 = arith.maximumf %243, %245 : vector<16x32xf32>
    %c0_34 = arith.constant 0 : index
    %c0_35 = arith.constant 0 : index
    %c0_36 = arith.constant 0 : index
    %247 = vector.load %arg9[%c0_34, %c0_35, %c0_36] : memref<1x32x32xf32, #tpu.memory_space<vmem>>, vector<1x32x32xf32>
    %248 = vector.shape_cast %247 : vector<1x32x32xf32> to vector<32x32xf32>
    %cst_37 = arith.constant dense<0.000000e+00> : vector<16x32xf32>
    %249 = tpu.matmul %246, %248, %cst_37 {dimension_numbers = #tpu.dot_dimension_numbers<[1], [0], [0], [1], [0, 0, 1, 1], [], []>} : vector<16x32xf32>, vector<32x32xf32>, vector<16x32xf32> -> vector<16x32xf32>
    %c0_38 = arith.constant 0 : index
    %c0_39 = arith.constant 0 : index
    %250 = vector.load %arg10[%c0_38, %c0_39] : memref<1x32xf32, #tpu.memory_space<vmem>>, vector<1x32xf32>
    %251 = vector.shape_cast %250 : vector<1x32xf32> to vector<32xf32>
    %252 = vector.shape_cast %251 : vector<32xf32> to vector<1x32xf32>
    %253 = vector.broadcast %252 : vector<1x32xf32> to vector<16x32xf32>
    %254 = arith.addf %249, %253 : vector<16x32xf32>
    %cst_40 = arith.constant 0.00999999977 : f32
    %255 = vector.broadcast %cst_40 : f32 to vector<16x32xf32>
    %256 = arith.mulf %255, %254 : vector<16x32xf32>
    %257 = arith.maximumf %254, %256 : vector<16x32xf32>
    %c0_41 = arith.constant 0 : index
    %c0_42 = arith.constant 0 : index
    %258 = vector.load %arg11[%c0_41, %c0_42] : memref<1x32xf32, #tpu.memory_space<vmem>>, vector<1x32xf32>
    %cst_43 = arith.constant dense<0.000000e+00> : vector<1x16xf32>
    %259 = tpu.matmul %258, %257, %cst_43 {dimension_numbers = #tpu.dot_dimension_numbers<[1], [1], [0], [0], [0, 0, 1, 0], [], []>} : vector<1x32xf32>, vector<16x32xf32>, vector<1x16xf32> -> vector<1x16xf32>
    %c0_44 = arith.constant 0 : index
    %c0_45 = arith.constant 0 : index
    %260 = vector.load %arg12[%c0_44, %c0_45] : memref<1x1xf32, #tpu.memory_space<vmem>>, vector<1x1xf32>
    %261 = vector.broadcast %260 : vector<1x1xf32> to vector<1x16xf32>
    %262 = arith.addf %259, %261 : vector<1x16xf32>
    %263 = vector.shape_cast %262 : vector<1x16xf32> to vector<1x1x16xf32>
    %c0_46 = arith.constant 0 : index
    %c0_47 = arith.constant 0 : index
    %c0_48 = arith.constant 0 : index
    %264 = vector.load %arg13[%c0_46, %c0_47, %c0_48] : memref<1x1x16xf32, #tpu.memory_space<vmem>>, vector<1x1x16xf32>
    tpu.vector_store %arg13[%c0_46, %c0_47, %c0_48], %263 {strides = array<i32>} : memref<1x1x16xf32, #tpu.memory_space<vmem>>, vector<1x1x16xf32>,
    return
  }
  func.func @transform_0(%arg0: i32) -> (i32, i32, i32) {
    %c0_i32 = arith.constant 0 : i32
    %c0_i32_0 = arith.constant 0 : i32
    %c0_i32_1 = arith.constant 0 : i32
    return %arg0, %c0_i32, %c0_i32_0 : i32, i32, i32
  }
  func.func @transform_1(%arg0: i32) -> (i32, i32, i32) {
    %c0_i32 = arith.constant 0 : i32
    %c0_i32_0 = arith.constant 0 : i32
    %c0_i32_1 = arith.constant 0 : i32
    return %arg0, %c0_i32, %c0_i32_0 : i32, i32, i32
  }
  func.func @transform_2(%arg0: i32) -> (i32, i32) {
    %c0_i32 = arith.constant 0 : i32
    %c0_i32_0 = arith.constant 0 : i32
    %c0_i32_1 = arith.constant 0 : i32
    return %c0_i32, %c0_i32_0 : i32, i32
  }
  func.func @transform_3(%arg0: i32) -> (i32, i32) {
    %c0_i32 = arith.constant 0 : i32
    %c0_i32_0 = arith.constant 0 : i32
    %c0_i32_1 = arith.constant 0 : i32
    return %c0_i32, %c0_i32_0 : i32, i32
  }
  func.func @transform_4(%arg0: i32) -> (i32, i32, i32) {
    %c0_i32 = arith.constant 0 : i32
    %c0_i32_0 = arith.constant 0 : i32
    %c0_i32_1 = arith.constant 0 : i32
    %c0_i32_2 = arith.constant 0 : i32
    return %c0_i32, %c0_i32_0, %c0_i32_1 : i32, i32, i32
  }
  func.func @transform_5(%arg0: i32) -> (i32, i32) {
    %c0_i32 = arith.constant 0 : i32
    %c0_i32_0 = arith.constant 0 : i32
    %c0_i32_1 = arith.constant 0 : i32
    return %c0_i32, %c0_i32_0 : i32, i32
  }
  func.func @transform_6(%arg0: i32) -> (i32, i32) {
    %c0_i32 = arith.constant 0 : i32
    %c0_i32_0 = arith.constant 0 : i32
    %c0_i32_1 = arith.constant 0 : i32
    return %c0_i32, %c0_i32_0 : i32, i32
  }
  func.func @transform_7(%arg0: i32) -> (i32, i32) {
    %c0_i32 = arith.constant 0 : i32
    %c0_i32_0 = arith.constant 0 : i32
    %c0_i32_1 = arith.constant 0 : i32
    return %c0_i32, %c0_i32_0 : i32, i32
  }
  func.func @transform_8(%arg0: i32) -> (i32, i32, i32) {
    %c0_i32 = arith.constant 0 : i32
    %c0_i32_0 = arith.constant 0 : i32
    %c0_i32_1 = arith.constant 0 : i32
    %c0_i32_2 = arith.constant 0 : i32
    return %c0_i32, %c0_i32_0, %c0_i32_1 : i32, i32, i32
  }
  func.func @transform_9(%arg0: i32) -> (i32, i32) {
    %c0_i32 = arith.constant 0 : i32
    %c0_i32_0 = arith.constant 0 : i32
    %c0_i32_1 = arith.constant 0 : i32
    return %c0_i32, %c0_i32_0 : i32, i32
  }
  func.func @transform_10(%arg0: i32) -> (i32, i32) {
    %c0_i32 = arith.constant 0 : i32
    %c0_i32_0 = arith.constant 0 : i32
    %c0_i32_1 = arith.constant 0 : i32
    return %c0_i32, %c0_i32_0 : i32, i32
  }
  func.func @transform_11(%arg0: i32) -> (i32, i32) {
    %c0_i32 = arith.constant 0 : i32
    %c0_i32_0 = arith.constant 0 : i32
    %c0_i32_1 = arith.constant 0 : i32
    return %c0_i32, %c0_i32_0 : i32, i32
  }
  func.func @transform_12(%arg0: i32) -> (i32, i32, i32) {
    %c0_i32 = arith.constant 0 : i32
    %c0_i32_0 = arith.constant 0 : i32
    %c0_i32_1 = arith.constant 0 : i32
    return %arg0, %c0_i32, %c0_i32_0 : i32, i32, i32
  }
}

</mosaic_0001>

<bundles_post_ra>
// kernel: tpu_custom_call.1
= control target key start
LH: loop header
LB: loop body
LE: loop exit
PB: predicated region body
PF: predicated region fallthrough
CT: control target
= control target key end

     0   :  { %s15387_s0 = inlined_call_operand.vmem [shape: f32[32,16,32], index: 0, kind: input, shape index: {}]   ;;  %s15388_s1 = inlined_call_operand.vmem [shape: f32[32,16,16], index: 1, kind: input, shape index: {}]   ;;  %s15389_s2 = inlined_call_operand.vmem [shape: f32[32,32], index: 2, kind: input, shape index: {}]   ;;  %s15390_s3 = inlined_call_operand.vmem [shape: f32[1,32], index: 3, kind: input, shape index: {}]   ;;  %s15391_s4 = inlined_call_operand.vmem [shape: f32[2,32,32], index: 4, kind: input, shape index: {}]   ;;  %s15392_s5 = inlined_call_operand.vmem [shape: f32[2,32], index: 5, kind: input, shape index: {}]   ;;  %s15393_s6 = inlined_call_operand.vmem [shape: f32[32,32], index: 6, kind: input, shape index: {}]   ;;  %s15394_s7 = inlined_call_operand.vmem [shape: f32[1,32], index: 7, kind: input, shape index: {}]   ;;  %s15395_s8 = inlined_call_operand.vmem [shape: f32[1,32,32], index: 8, kind: input, shape index: {}]   ;;  %s15396_s9 = inlined_call_operand.vmem [shape: f32[1,32], index: 9, kind: input, shape index: {}]   ;;  %s15397_s10 = inlined_call_operand.vmem [shape: f32[1,32], index: 10, kind: input, shape index: {}]   ;;  %s15398_s11 = inlined_call_operand.<no memory space> [shape: f32[1,1], index: 11, kind: input, shape index: {}]   ;;  %s15399_s12 = inlined_call_operand.hbm [shape: f32[2,1,16], index: 12, kind: output, shape index: {}]  }
   0x1   :  { %16131 = sst [smem:[#allocation431_spill]] %s15387_s0  ;;  %v17_v0 = vstv %s15398_s11 }
   0x2   :  { %18 = vst [vmem:[#allocation2] sm:$0x1] %v17_v0 }
   0x3   :  { %19 = vsyncpa [#allocation4], 0 }
   0x4   :  { %21 = vsyncpa [#allocation4 + $0x1], 0  ;;  %s9601_s23 = smov 0   ;;  %s9603_s24 = smov 0  }
   0x5   :  { %s9605_s25 = smov 0   ;;  %s9607_s26 = smov 0  }
   0x6 LB: > { %s8589_s11 = sadd.s32 4294967295, %s9511_s26   ;;  %s8590_s27 = sadd.s32 4294967294, %s9511_s26   ;;  %s9511_s26 = sphi %s9607_s26, %s17749_s26   ;;  %s9507_s25 = sphi %s9605_s25, %s17748_s25   ;;  %s9503_s24 = sphi %s9603_s24, %s17747_s24   ;;  %s9499_s23 = sphi %s9601_s23, %s17746_s23  }
   0x7   : > { %s9624_s28 = sadd.s32 1, %s9511_s26   ;;  %s296_s29 = sadd.s32 1, %s9507_s25 }
   0x8   : > { %s293_s30 = ssub.s32 %s9511_s26, %s9624_s28  ;;  %p306_p0 = scmp.ne.s32.totalorder %s9507_s25, %s9503_s24 }
   0x9   : > { %p294_p1 = scmp.eq.s32.totalorder %s293_s30, 0  ;;  %p307_p2 = scmp.eq.s32.totalorder %s8589_s11, 1 }
   0xa   : > { %p312_p3 = scmp.ne.s32.totalorder %s9503_s24, %s9499_s23  ;;  %p313_p4 = scmp.eq.s32.totalorder %s8590_s27, 1 }
   0xb   : > { %s9634_s13 = scalar_select %p294_p1, %s9507_s25, %s296_s29  }
   0xc   : > { %p9636_p5 = por %p307_p2, %p306_p0  ;;  %p9640_p6 = por %p313_p4, %p312_p3 }
   0xd   : > { %p8593_p7 = scmp.ge.s32.totalorder %s9511_s26, 1  ;;  %p381_p8 = scmp.lt.s32.totalorder %s9511_s26, 3 }
   0xf   : > { %p382_p9 = pnand %p8593_p7, %p381_p8 }
  0x11   : > { %385 = sbr.rel (%p382_p9) target bundleno = 2970 (0xb9a), region = 68 }
  0x18   : > { %s9646_s16 = sshll.u32 %s8589_s11, 4  ;;  %v507_v1 = vld [vmem:[%s15389_s2] sm:$0xff]  ;;  %v508_v2 = vld [vmem:[%s15389_s2 + $0x8] sm:$0xff]  ;;  %v509_v3 = vld [vmem:[%s15389_s2 + $0x10] sm:$0xff]  ;;  %vm904_vm0 = vcmask 130048   ;;  %s16134_s0 = sld [smem:[#allocation431_spill]] }
  0x19   : > { %p430_p10 = scmp.lt.s32.totalorder %s9646_s16, 31  ;;  %v9037_v4 = vpack.c.bf16 %v508_v2, %v507_v1  ;;  %v510_v5 = vld [vmem:[%s15389_s2 + $0x18] sm:$0xff]  ;;  %vm518_vm1 = vcmask 261120   ;;  %v15400_v1 = vmov 0   ;;  %vm8218_vm2 = vcmask 1041409   ;;  %s15345_s29 = scalar_lea.hbm %s15399_s12, %s9646_s16 }
  0x1a   : > { %v9041_v6 = vpack.c.bf16 %v510_v5, %v509_v3  ;;  %9143 = vset.pattern.permute.xlu0 %v15400_v1  ;;  %9144 = vset.pattern.permute.xlu1 %v15400_v1  ;;  %vm8220_vm3 = vcmask 1042434   ;;  %vm8222_vm4 = vcmask 1043459   ;;  %vm8224_vm5 = vcmask 1044484   ;;  %vm9079_vm10 = vmpackc.low %vm518_vm1, %vm518_vm1  ;;  %s9532_s17 = smov [#allocation3]  }
  0x1b   : > { %s431_s11 = scalar_select %p430_p10, %s9646_s16, 31  ;;  %9038 = vmatprep.subr.bf16.mxu0 %v9037_v4  ;;  %9081 = vmatprep.subr.bf16.mxu1 %v9037_v4  ;;  %vm8226_vm6 = vcmask 1045509   ;;  %vm8228_vm7 = vcmask 1046534   ;;  %vm8230_vm8 = vcmask 1047559   ;;  %vm9530_vm9 = vmmov 0  }
  0x1c   : > { %9040 = vmatpush3.bf16.msra.mxu0 %v9037_v4  ;;  %9083 = vmatpush3.bf16.msra.mxu1 %v9037_v4  ;;  %vm8508_vm11 = vcmask 122880   ;;  %s9453_s18 = sshll.u32 %s9532_s17, 4  ;;  %s9454_s18 = int_to_ptr.vmem [resolvable:$false] %s9453_s18 }
  0x1d   : > { %s8715_s30 = sshll.u32 %s431_s11, 4  ;;  %9042 = vmatprep.subr.bf16.mxu0 %v9041_v6  ;;  %9082 = vmatprep.subr.bf16.mxu1 %v9041_v6 }
  0x1e   : > { %s9665_s19 = scalar_lea.vmem %s15388_s1, %s8715_s30  ;;  %s9696_s22 = scalar_lea.vmem %s16134_s0, %s8715_s30 }
  0x1f   : > { %v9668_v7 = vld [vmem:[%s9665_s19 + $0x10] sm:$0xff]  ;;  %v9671_v8 = vld [vmem:[%s9665_s19] sm:$0xff]  ;;  %v9674_v9 = vld [vmem:[%s9665_s19 + $0x18] sm:$0xff]  ;;  %s9455_s0 = scalar_lea.vmem %s9454_s18, 32 }
  0x20   : > { %v911_v10 = vsel %vm904_vm0, %v9668_v7, 0.0  ;;  %v905_v11 = vsel %vm904_vm0, %v9671_v8, 0.0  ;;  %v9681_v12 = vld [vmem:[%s9665_s19 + $0x8] sm:$0xff]  ;;  %9044 = vmatpush3.bf16.msra.mxu0 %v9041_v6  ;;  %9084 = vmatpush3.bf16.msra.mxu1 %v9041_v6  ;;  %v914_v13 = vsel %vm904_vm0, %v9674_v9, 0.0  ;;  %v9691_v16 = vld [vmem:[%s9665_s19 + $0x20] sm:$0xff]  ;;  %v9703_v19 = vld [vmem:[%s9665_s19 + $0x38] sm:$0xff] }
  0x21   : > { %912 = vadd.xlane.f32.xlu1 %v911_v10  ;;  %906 = vadd.xlane.f32.xlu0 %v905_v11  ;;  %v908_v14 = vsel %vm904_vm0, %v9681_v12, 0.0  ;;  %v9688_v15 = vld [vmem:[%s9665_s19 + $0x28] sm:$0xff]  ;;  %v917_v18 = vsel %vm904_vm0, %v9691_v16, 0.0  ;;  %v9706_v20 = vld [vmem:[%s9665_s19 + $0x30] sm:$0xff]  ;;  %v443_v21 = vld [vmem:[%s9696_s22] sm:$0xff]  ;;  %v926_v24 = vsel %vm904_vm0, %v9703_v19, 0.0 }
  0x22   : > { %v920_v17 = vsel %vm904_vm0, %v9688_v15, 0.0  ;;  %v444_v22 = vld [vmem:[%s9696_s22 + $0x8] sm:$0xff]  ;;  %v445_v23 = vld [vmem:[%s9696_s22 + $0x10] sm:$0xff]  ;;  %v923_v25 = vsel %vm904_vm0, %v9706_v20, 0.0  ;;  %8848 = vmatprep.mubr.msk.f32.mxu0 %vm518_vm1, %v443_v21  ;;  %v9720_v27 = vld [vmem:[%s9665_s19 + $0x40] sm:$0xff] }
  0x23   : > { %v9717_v26 = vld [vmem:[%s9665_s19 + $0x48] sm:$0xff]  ;;  %8849 = vmatmul.mubr.msk.f32.vlgmr.msra.gmra.mrb[0].mxu0 %vm518_vm1, %v444_v22  ;;  %v446_v28 = vld [vmem:[%s9696_s22 + $0x18] sm:$0xff]  ;;  %v447_v29 = vld [vmem:[%s9696_s22 + $0x20] sm:$0xff]  ;;  %v929_v31 = vsel %vm904_vm0, %v9720_v27, 0.0 }
  0x24   : > { %8851 = vmatprep.mubr.msk.f32.mxu0 %vm518_vm1, %v445_v23  ;;  %v932_v30 = vsel %vm904_vm0, %v9717_v26, 0.0  ;;  %v9731_v32 = vld [vmem:[%s9665_s19 + $0x58] sm:$0xff]  ;;  %v9734_v33 = vld [vmem:[%s9665_s19 + $0x50] sm:$0xff]  ;;  %v448_v34 = vld [vmem:[%s9696_s22 + $0x28] sm:$0xff] }
  0x25   : > { %915 = vadd.xlane.f32.xlu1 %v914_v13  ;;  %909 = vadd.xlane.f32.xlu0 %v908_v14  ;;  %v449_v35 = vld [vmem:[%s9696_s22 + $0x30] sm:$0xff]  ;;  %v466_v37 = vld [vmem:[%s9696_s22 + $0xb8] sm:$0xff]  ;;  %v467_v38 = vld [vmem:[%s9696_s22 + $0xc0] sm:$0xff]  ;;  %v938_v39 = vsel %vm904_vm0, %v9731_v32, 0.0  ;;  %v935_v40 = vsel %vm904_vm0, %v9734_v33, 0.0 }
  0x26   : > { %v465_v36 = vld [vmem:[%s9696_s22 + $0xb0] sm:$0xff]  ;;  %v9749_v41 = vld [vmem:[%s9665_s19 + $0x68] sm:$0xff]  ;;  %v9752_v42 = vld [vmem:[%s9665_s19 + $0x60] sm:$0xff] }
  0x27   : > { %8852 = vmatmul.mubr.msk.f32.gmra.mrb[2].mxu0 %vm518_vm1, %v446_v28  ;;  %8881 = vmatprep.mubr.msk.f32.mxu1 %vm518_vm1, %v465_v36  ;;  %v450_v43 = vld [vmem:[%s9696_s22 + $0x38] sm:$0xff]  ;;  %v468_v44 = vld [vmem:[%s9696_s22 + $0xc8] sm:$0xff]  ;;  %v451_v45 = vld [vmem:[%s9696_s22 + $0x40] sm:$0xff]  ;;  %v944_v47 = vsel %vm904_vm0, %v9749_v41, 0.0  ;;  %v941_v48 = vsel %vm904_vm0, %v9752_v42, 0.0 }
  0x28   : > { %8854 = vmatprep.mubr.msk.f32.mxu0 %vm518_vm1, %v447_v29  ;;  %8882 = vmatmul.mubr.msk.f32.vlgmr.msra.gmra.mrb[0].mxu1 %vm518_vm1, %v466_v37  ;;  %v469_v46 = vld [vmem:[%s9696_s22 + $0xd0] sm:$0xff]  ;;  %v9767_v49 = vld [vmem:[%s9665_s19 + $0x78] sm:$0xff]  ;;  %v452_v51 = vld [vmem:[%s9696_s22 + $0x48] sm:$0xff] }
  0x29   : > { %921 = vadd.xlane.f32.xlu1 %v920_v17  ;;  %918 = vadd.xlane.f32.xlu0 %v917_v18  ;;  %v9770_v50 = vld [vmem:[%s9665_s19 + $0x70] sm:$0xff]  ;;  %v470_v52 = vld [vmem:[%s9696_s22 + $0xd8] sm:$0xff]  ;;  %v471_v54 = vld [vmem:[%s9696_s22 + $0xe0] sm:$0xff]  ;;  %v950_v55 = vsel %vm904_vm0, %v9767_v49, 0.0 }
  0x2a   : > { %8884 = vmatprep.mubr.msk.f32.mxu1 %vm518_vm1, %v467_v38  ;;  %v453_v53 = vld [vmem:[%s9696_s22 + $0x50] sm:$0xff]  ;;  %v947_v56 = vsel %vm904_vm0, %v9770_v50, 0.0  ;;  %v9785_v57 = vld [vmem:[%s9665_s19 + $0x88] sm:$0xff]  ;;  %v9788_v58 = vld [vmem:[%s9665_s19 + $0x80] sm:$0xff] }
  0x2b   : > { %8855 = vmatmul.mubr.msk.f32.gmra.mrb[4].mxu0 %vm518_vm1, %v448_v34  ;;  %v454_v59 = vld [vmem:[%s9696_s22 + $0x58] sm:$0xff]  ;;  %v472_v60 = vld [vmem:[%s9696_s22 + $0xe8] sm:$0xff]  ;;  %v455_v61 = vld [vmem:[%s9696_s22 + $0x60] sm:$0xff]  ;;  %v956_v63 = vsel %vm904_vm0, %v9785_v57, 0.0  ;;  %v953_v0 = vsel %vm904_vm0, %v9788_v58, 0.0 }
  0x2c   : > { %8857 = vmatprep.mubr.msk.f32.mxu0 %vm518_vm1, %v449_v35  ;;  %8885 = vmatmul.mubr.msk.f32.gmra.mrb[2].mxu1 %vm518_vm1, %v468_v44  ;;  %v473_v62 = vld [vmem:[%s9696_s22 + $0xf0] sm:$0xff]  ;;  %v9805_v2 = vld [vmem:[%s9665_s19 + $0x98] sm:$0xff]  ;;  %v456_v4 = vld [vmem:[%s9696_s22 + $0x68] sm:$0xff] }
  0x2d   : > { %927 = vadd.xlane.f32.xlu1 %v926_v24  ;;  %924 = vadd.xlane.f32.xlu0 %v923_v25  ;;  %v9808_v3 = vld [vmem:[%s9665_s19 + $0x90] sm:$0xff]  ;;  %v474_v5 = vld [vmem:[%s9696_s22 + $0xf8] sm:$0xff]  ;;  %v962_v10 = vsel %vm904_vm0, %v9805_v2, 0.0  ;;  %v9822_v13 = vld [vmem:[%s9665_s19 + $0xa8] sm:$0xff] }
  0x2e   : > { %8887 = vmatprep.mubr.msk.f32.mxu1 %vm518_vm1, %v469_v46  ;;  %v457_v6 = vld [vmem:[%s9696_s22 + $0x70] sm:$0xff]  ;;  %v959_v11 = vsel %vm904_vm0, %v9808_v3, 0.0  ;;  %v9825_v14 = vld [vmem:[%s9665_s19 + $0xa0] sm:$0xff]  ;;  %v458_v17 = vld [vmem:[%s9696_s22 + $0x78] sm:$0xff]  ;;  %v968_v21 = vsel %vm904_vm0, %v9822_v13, 0.0 }
  0x2f   : > { %8858 = vmatmul.mubr.msk.f32.gmra.mrb[6].mxu0 %vm518_vm1, %v450_v43  ;;  %v459_v18 = vld [vmem:[%s9696_s22 + $0x80] sm:$0xff]  ;;  %v965_v22 = vsel %vm904_vm0, %v9825_v14, 0.0  ;;  %v9837_v23 = vld [vmem:[%s9665_s19 + $0xb8] sm:$0xff]  ;;  %v9840_v24 = vld [vmem:[%s9665_s19 + $0xb0] sm:$0xff] }
  0x30   : > { %8860 = vmatprep.mubr.msk.f32.mxu0 %vm518_vm1, %v451_v45  ;;  %8888 = vmatmul.mubr.msk.f32.gmra.mrb[4].mxu1 %vm518_vm1, %v470_v52  ;;  %v460_v25 = vld [vmem:[%s9696_s22 + $0x88] sm:$0xff]  ;;  %v461_v28 = vld [vmem:[%s9696_s22 + $0x90] sm:$0xff]  ;;  %v974_v29 = vsel %vm904_vm0, %v9837_v23, 0.0  ;;  %v9854_v34 = vld [vmem:[%s9665_s19 + $0xc0] sm:$0xff] }
  0x31   : > { %933 = vadd.xlane.f32.xlu1 %v932_v30  ;;  %930 = vadd.xlane.f32.xlu0 %v929_v31  ;;  %v971_v30 = vsel %vm904_vm0, %v9840_v24, 0.0  ;;  %v9851_v31 = vld [vmem:[%s9665_s19 + $0xc8] sm:$0xff]  ;;  %v462_v35 = vld [vmem:[%s9696_s22 + $0x98] sm:$0xff]  ;;  %v463_v36 = vld [vmem:[%s9696_s22 + $0xa0] sm:$0xff]  ;;  %v977_v38 = vsel %vm904_vm0, %v9854_v34, 0.0 }
  0x32   : > { %8890 = vmatprep.mubr.msk.f32.mxu1 %vm518_vm1, %v471_v54  ;;  %v980_v37 = vsel %vm904_vm0, %v9851_v31, 0.0  ;;  %v464_v43 = vld [vmem:[%s9696_s22 + $0xa8] sm:$0xff]  ;;  %v9889_v52 = vld [vmem:[%s9665_s19 + $0xf8] sm:$0xff] }
  0x33   : > { %8861 = vmatmul.mubr.msk.f32.gmra.mrb[8].mxu0 %vm518_vm1, %v452_v51  ;;  %v9878_v46 = vld [vmem:[%s9665_s19 + $0xe8] sm:$0xff]  ;;  %v998_v54 = vsel %vm904_vm0, %v9889_v52, 0.0 }
  0x34   : > { %8863 = vmatprep.mubr.msk.f32.mxu0 %vm518_vm1, %v453_v53  ;;  %8891 = vmatmul.mubr.msk.f32.gmra.mrb[6].mxu1 %vm518_vm1, %v472_v60  ;;  %v9892_v53 = vld [vmem:[%s9665_s19 + $0xf0] sm:$0xff] }
  0x35   : > { %939 = vadd.xlane.f32.xlu1 %v938_v39  ;;  %936 = vadd.xlane.f32.xlu0 %v935_v40  ;;  %v9865_v39 = vld [vmem:[%s9665_s19 + $0xd8] sm:$0xff]  ;;  %v9868_v40 = vld [vmem:[%s9665_s19 + $0xd0] sm:$0xff] }
  0x36   : > { %8893 = vmatprep.mubr.msk.f32.mxu1 %vm518_vm1, %v473_v62  ;;  %v986_v44 = vsel %vm904_vm0, %v9865_v39, 0.0  ;;  %v983_v45 = vsel %vm904_vm0, %v9868_v40, 0.0 }
  0x37   : > { %8864 = vmatmul.mubr.msk.f32.gmra.mrb[10].mxu0 %vm518_vm1, %v454_v59 }
  0x38   : > { %8866 = vmatprep.mubr.msk.f32.mxu0 %vm518_vm1, %v455_v61  ;;  %8894 = vmatmul.mubr.msk.f32.gmra.mrb[8].mxu1 %vm518_vm1, %v474_v5 }
  0x39   : > { %945 = vadd.xlane.f32.xlu1 %v944_v47  ;;  %942 = vadd.xlane.f32.xlu0 %v941_v48  ;;  %v9881_v47 = vld [vmem:[%s9665_s19 + $0xe0] sm:$0xff]  ;;  %v992_v48 = vsel %vm904_vm0, %v9878_v46, 0.0  ;;  %s427_s19 = sand.u32 1, %s9503_s24  }
  0x3a   : > { %v989_v51 = vsel %vm904_vm0, %v9881_v47, 0.0  ;;  %s428_s20 = scalar_lea.vmem [#allocation3], %s427_s19  ;;  %s8511_s11 = scalar_lea.sflag [#allocation4], %s427_s19 }
  0x3b   : > { %8867 = vmatmul.mubr.msk.f32.gmra.mrb[12].mxu0 %vm518_vm1, %v456_v4  ;;  %s8523_s21 = sshll.u32 %s428_s20, 4  ;;  %s15347_s21 = int_to_ptr.vmem [resolvable:$true] %s8523_s21 }
  0x3c   : > { %8869 = vmatprep.mubr.msk.f32.mxu0 %vm518_vm1, %v457_v6  ;;  %s9449_s30 = scalar_lea.vmem %s15347_s21, 16  ;;  %p9456_p0 = scmp.lt.s32.totalorder %s15347_s21, %s9454_s18 }
  0x3d   : > { %951 = vadd.xlane.f32.xlu1 %v950_v55  ;;  %948 = vadd.xlane.f32.xlu0 %v947_v56  ;;  %v995_v55 = vsel %vm904_vm0, %v9892_v53, 0.0  ;;  %p9450_p11 = scmp.ne.s32.totalorder %s15347_s21, %s9449_s30  ;;  %p9457_p1 = scmp.lt.s32.totalorder %s9455_s0, %s9449_s30 }
  0x3f   : > { %8870 = vmatmul.mubr.msk.f32.gmra.mrb[14].mxu0 %vm518_vm1, %v458_v17  ;;  %p9451_p12 = pnand %p9450_p11, %p9636_p5  ;;  %p9458_p2 = por %p9457_p1, %p9456_p0 }
  0x40   : > { %8872 = vmatprep.mubr.msk.f32.mxu0 %vm518_vm1, %v459_v18 }
  0x41   : > { %957 = vadd.xlane.f32.xlu1 %v956_v63  ;;  %954 = vadd.xlane.f32.xlu0 %v953_v0  ;;  %p9452_p13 = pneg %p9451_p12 }
  0x43   : > { %8873 = vmatmul.mubr.msk.f32.gmra.mrb[16].mxu0 %vm518_vm1, %v460_v25  ;;  %p9459_p3 = pnand %p9458_p2, %p9452_p13 }
  0x44   : > { %8875 = vmatprep.mubr.msk.f32.mxu0 %vm518_vm1, %v461_v28 }
  0x45   : > { %963 = vadd.xlane.f32.xlu1 %v962_v10  ;;  %960 = vadd.xlane.f32.xlu0 %v959_v11 }
  0x47   : > { %8876 = vmatmul.mubr.msk.f32.gmra.mrb[18].mxu0 %vm518_vm1, %v462_v35 }
  0x48   : > { %8878 = vmatprep.mubr.msk.f32.mxu0 %vm518_vm1, %v463_v36 }
  0x49   : > { %969 = vadd.xlane.f32.xlu1 %v968_v21  ;;  %966 = vadd.xlane.f32.xlu0 %v965_v22 }
  0x4b   : > { %8879 = vmatmul.mubr.msk.f32.gmra.mrb[20].mxu0 %vm518_vm1, %v464_v43 }
  0x4d   : > { %975 = vadd.xlane.f32.xlu1 %v974_v29  ;;  %972 = vadd.xlane.f32.xlu0 %v971_v30 }
  0x51   : > { %981 = vadd.xlane.f32.xlu1 %v980_v37  ;;  %978 = vadd.xlane.f32.xlu0 %v977_v38 }
  0x55   : > { %987 = vadd.xlane.f32.xlu1 %v986_v44  ;;  %984 = vadd.xlane.f32.xlu0 %v983_v45 }
  0x59   : > { %993 = vadd.xlane.f32.xlu1 %v992_v48  ;;  %990 = vadd.xlane.f32.xlu0 %v989_v51 }
  0x5d   : > { %999 = vadd.xlane.f32.xlu1 %v998_v54  ;;  %996 = vadd.xlane.f32.xlu0 %v995_v55 }
  0xae   : > { %v913_v56 = vpop.xlane.xlu1 %912  ;;  %v907_v59 = vpop.xlane.xlu0 %906 }
  0xaf   : > { %v1001_v60 = vmax.f32 %v907_v59, 1.0  ;;  %v1003_v61 = vmax.f32 %v913_v56, 1.0 }
  0xb1   : > { %9379 = vrcp.f32 %v1001_v60 }
  0xb2   : > { %v916_v62 = vpop.xlane.xlu1 %915  ;;  %v910_v63 = vpop.xlane.xlu0 %909  ;;  %9381 = vrcp.f32 %v1003_v61 }
  0xb3   : > { %v1002_v0 = vmax.f32 %v910_v63, 1.0  ;;  %v1004_v4 = vmax.f32 %v916_v62, 1.0 }
  0xb5   : > { %9383 = vrcp.f32 %v1002_v0 }
  0xb6   : > { %v922_v5 = vpop.xlane.xlu1 %921  ;;  %v919_v6 = vpop.xlane.xlu0 %918  ;;  %9385 = vrcp.f32 %v1004_v4 }
  0xb7   : > { %v1005_v11 = vmax.f32 %v919_v6, 1.0  ;;  %v1006_v22 = vmax.f32 %v922_v5, 1.0 }
  0xb9   : > { %9387 = vrcp.f32 %v1005_v11 }
  0xba   : > { %v928_v10 = vpop.xlane.xlu1 %927  ;;  %v925_v17 = vpop.xlane.xlu0 %924 }
  0xbb   : > { %v9380_v18 = vpop.eup %9379  ;;  %v1007_v38 = vmax.f32 %v925_v17, 1.0  ;;  %v1008_v48 = vmax.f32 %v928_v10, 1.0 }
  0xbc   : > { %v9899_v21 = vmul.f32 %v9380_v18, %v9671_v8  ;;  %v9382_v29 = vpop.eup %9381 }
  0xbd   : > { %v9906_v8 = vmul.f32 %v9382_v29, %v9668_v7 }
  0xbe   : > { %16135 = vst [vmem:[#allocation6_spill] sm:$0xff] %v9899_v21  ;;  %v934_v25 = vpop.xlane.xlu1 %933  ;;  %v931_v28 = vpop.xlane.xlu0 %930  ;;  %1131 = vperm.xlu0 %9143, %v9899_v21  }
  0xbf   : > { %v1010_v30 = vmax.f32 %v934_v25, 1.0  ;;  %v9384_v35 = vpop.eup %9383  ;;  %16137 = vst [vmem:[#allocation8_spill] sm:$0xff] %v9906_v8  ;;  %v1009_v59 = vmax.f32 %v931_v28, 1.0 }
  0xc0   : > { %v9903_v36 = vmul.f32 %v9384_v35, %v9681_v12  ;;  %v9386_v45 = vpop.eup %9385 }
  0xc1   : > { %9389 = vrcp.f32 %v1010_v30  ;;  %v9910_v12 = vmul.f32 %v9386_v45, %v9674_v9 }
  0xc2   : > { %16136 = vst [vmem:[#allocation7_spill] sm:$0xff] %v9903_v36  ;;  %9391 = vrcp.f32 %v1006_v22  ;;  %v940_v37 = vpop.xlane.xlu1 %939  ;;  %v937_v43 = vpop.xlane.xlu0 %936  ;;  %1136 = vperm.xlu1 %9144, %v9903_v36  }
  0xc3   : > { %v1012_v44 = vmax.f32 %v940_v37, 1.0  ;;  %16138 = vst [vmem:[#allocation9_spill] sm:$0xff] %v9910_v12  ;;  %v9388_v56 = vpop.eup %9387  ;;  %v1011_v5 = vmax.f32 %v937_v43, 1.0 }
  0xc4   : > { %v9914_v62 = vmul.f32 %v9388_v56, %v9691_v16 }
  0xc5   : > { %9393 = vrcp.f32 %v1012_v44 }
  0xc6   : > { %v946_v51 = vpop.xlane.xlu1 %945  ;;  %9395 = vrcp.f32 %v1007_v38  ;;  %v943_v54 = vpop.xlane.xlu0 %942  ;;  %1141 = vperm.xlu1 %9144, %v9906_v8   ;;  %16139 = vst [vmem:[#allocation10_spill] sm:$0xff] %v9914_v62 }
  0xc7   : > { %v1014_v55 = vmax.f32 %v946_v51, 1.0  ;;  %v1013_v22 = vmax.f32 %v943_v54, 1.0 }
  0xc9   : > { %9397 = vrcp.f32 %v1014_v55 }
  0xca   : > { %9399 = vrcp.f32 %v1008_v48  ;;  %v952_v7 = vpop.xlane.xlu1 %951  ;;  %v949_v60 = vpop.xlane.xlu0 %948  ;;  %1146 = vperm.xlu1 %9144, %v9910_v12  }
  0xcb   : > { %v9390_v61 = vpop.eup %9389  ;;  %v1016_v63 = vmax.f32 %v952_v7, 1.0  ;;  %v1015_v37 = vmax.f32 %v949_v60, 1.0 }
  0xcc   : > { %v9392_v0 = vpop.eup %9391  ;;  %v9918_v9 = vmul.f32 %v9390_v61, %v9717_v26 }
  0xcd   : > { %9401 = vrcp.f32 %v1016_v63  ;;  %v9922_v11 = vmul.f32 %v9392_v0, %v9688_v15 }
  0xce   : > { %16140 = vst [vmem:[#allocation11_spill] sm:$0xff] %v9918_v9  ;;  %v958_v4 = vpop.xlane.xlu1 %957  ;;  %1176 = vperm.xlu0 %9143, %v9918_v9   ;;  %9403 = vrcp.f32 %v1009_v59  ;;  %v955_v6 = vpop.xlane.xlu0 %954  ;;  %1151 = vperm.xlu1 %9144, %v9914_v62  }
  0xcf   : > { %v9394_v10 = vpop.eup %9393  ;;  %v1018_v16 = vmax.f32 %v958_v4, 1.0  ;;  %v1017_v51 = vmax.f32 %v955_v6, 1.0 }
  0xd0   : > { %v9396_v17 = vpop.eup %9395  ;;  %v9926_v18 = vmul.f32 %v9394_v10, %v9731_v32 }
  0xd1   : > { %9405 = vrcp.f32 %v1018_v16  ;;  %v9930_v29 = vmul.f32 %v9396_v17, %v9706_v20 }
  0xd2   : > { %16141 = vst [vmem:[#allocation12_spill] sm:$0xff] %v9926_v18  ;;  %v964_v26 = vpop.xlane.xlu1 %963  ;;  %1186 = vperm.xlu0 %9143, %v9926_v18   ;;  %9407 = vrcp.f32 %v1011_v5  ;;  %v961_v25 = vpop.xlane.xlu0 %960  ;;  %1156 = vperm.xlu1 %9144, %v9922_v11  }
  0xd3   : > { %v9398_v28 = vpop.eup %9397  ;;  %v1020_v15 = vmax.f32 %v964_v26, 1.0  ;;  %v1019_v60 = vmax.f32 %v961_v25, 1.0 }
  0xd4   : > { %v9400_v30 = vpop.eup %9399  ;;  %v9934_v35 = vmul.f32 %v9398_v28, %v9749_v41 }
  0xd5   : > { %9409 = vrcp.f32 %v1020_v15  ;;  %v9938_v44 = vmul.f32 %v9400_v30, %v9703_v19 }
  0xd6   : > { %16142 = vst [vmem:[#allocation13_spill] sm:$0xff] %v9934_v35  ;;  %v970_v32 = vpop.xlane.xlu1 %969  ;;  %1196 = vperm.xlu0 %9143, %v9934_v35   ;;  %9411 = vrcp.f32 %v1013_v22  ;;  %v967_v38 = vpop.xlane.xlu0 %966  ;;  %1161 = vperm.xlu1 %9144, %v9930_v29  }
  0xd7   : > { %v9402_v43 = vpop.eup %9401  ;;  %16143 = vst [vmem:[#allocation14_spill] sm:$0xff] %v9938_v44  ;;  %v1022_v20 = vmax.f32 %v970_v32, 1.0  ;;  %v1021_v6 = vmax.f32 %v967_v38, 1.0 }
  0xd8   : > { %v9404_v45 = vpop.eup %9403  ;;  %v9942_v48 = vmul.f32 %v9402_v43, %v9767_v49 }
  0xd9   : > { %9413 = vrcp.f32 %v1022_v20  ;;  %v9946_v55 = vmul.f32 %v9404_v45, %v9720_v27 }
  0xda   : > { %16144 = vst [vmem:[#allocation15_spill] sm:$0xff] %v9942_v48  ;;  %v976_v41 = vpop.xlane.xlu1 %975  ;;  %1206 = vperm.xlu0 %9143, %v9942_v48   ;;  %9415 = vrcp.f32 %v1015_v37  ;;  %1166 = vperm.xlu1 %9144, %v9938_v44   ;;  %v973_v19 = vpop.xlane.xlu0 %972 }
  0xdb   : > { %v9406_v54 = vpop.eup %9405  ;;  %16145 = vst [vmem:[#allocation16_spill] sm:$0xff] %v9946_v55  ;;  %v1024_v56 = vmax.f32 %v976_v41, 1.0  ;;  %v1023_v22 = vmax.f32 %v973_v19, 1.0 }
  0xdc   : > { %v9408_v7 = vpop.eup %9407  ;;  %v9950_v59 = vmul.f32 %v9406_v54, %v9785_v57 }
  0xdd   : > { %9417 = vrcp.f32 %v1024_v56  ;;  %v9954_v63 = vmul.f32 %v9408_v7, %v9734_v33 }
  0xde   : > { %16146 = vst [vmem:[#allocation17_spill] sm:$0xff] %v9950_v59  ;;  %v982_v49 = vpop.xlane.xlu1 %981  ;;  %1216 = vperm.xlu0 %9143, %v9950_v59   ;;  %9419 = vrcp.f32 %v1017_v51  ;;  %1171 = vperm.xlu1 %9144, %v9946_v55   ;;  %v979_v57 = vpop.xlane.xlu0 %978 }
  0xdf   : > { %v9410_v61 = vpop.eup %9409  ;;  %16147 = vst [vmem:[#allocation18_spill] sm:$0xff] %v9954_v63  ;;  %v1026_v27 = vmax.f32 %v982_v49, 1.0  ;;  %v1025_v37 = vmax.f32 %v979_v57, 1.0 }
  0xe0   : > { %v9412_v0 = vpop.eup %9411  ;;  %v9958_v4 = vmul.f32 %v9410_v61, %v9805_v2 }
  0xe1   : > { %9421 = vrcp.f32 %v1026_v27  ;;  %v9962_v16 = vmul.f32 %v9412_v0, %v9752_v42 }
  0xe2   : > { %16148 = vst [vmem:[#allocation19_spill] sm:$0xff] %v9958_v4  ;;  %v988_v5 = vpop.xlane.xlu1 %987  ;;  %1226 = vperm.xlu0 %9143, %v9958_v4   ;;  %9423 = vrcp.f32 %v1019_v60  ;;  %1181 = vperm.xlu1 %9144, %v9954_v63   ;;  %v985_v42 = vpop.xlane.xlu0 %984 }
  0xe3   : > { %v9414_v10 = vpop.eup %9413  ;;  %16149 = vst [vmem:[#allocation20_spill] sm:$0xff] %v9962_v16  ;;  %v1028_v33 = vmax.f32 %v988_v5, 1.0  ;;  %v1027_v41 = vmax.f32 %v985_v42, 1.0  ;;  %v9514_v5 = vmov 1  }
  0xe4   : > { %v9416_v17 = vpop.eup %9415  ;;  %v9966_v26 = vmul.f32 %v9414_v10, %v9822_v13 }
  0xe5   : > { %9425 = vrcp.f32 %v1028_v33  ;;  %v9970_v28 = vmul.f32 %v9416_v17, %v9770_v50 }
  0xe6   : > { %16150 = vst [vmem:[#allocation21_spill] sm:$0xff] %v9966_v26  ;;  %v994_v2 = vpop.xlane.xlu1 %993  ;;  %1236 = vperm.xlu0 %9143, %v9966_v26   ;;  %9427 = vrcp.f32 %v1021_v6  ;;  %1191 = vperm.xlu1 %9144, %v9962_v16  }
  0xe7   : > { %v9418_v25 = vpop.eup %9417  ;;  %16151 = vst [vmem:[#allocation22_spill] sm:$0xff] %v9970_v28  ;;  %v1030_v15 = vmax.f32 %v994_v2, 1.0  ;;  %v10034_v2 = vld [vmem:[%s15390_s3] ss:$0 sm:$0xff] }
  0xe8   : > { %v9420_v30 = vpop.eup %9419  ;;  %v9974_v32 = vmul.f32 %v9418_v25, %v9837_v23  ;;  %v991_v23 = vpop.xlane.xlu0 %990 }
  0xe9   : > { %9429 = vrcp.f32 %v1030_v15  ;;  %v9978_v43 = vmul.f32 %v9420_v30, %v9788_v58 }
  0xea   : > { %16152 = vst [vmem:[#allocation23_spill] sm:$0xff] %v9974_v32  ;;  %v1000_v13 = vpop.xlane.xlu1 %999  ;;  %1246 = vperm.xlu0 %9143, %v9974_v32   ;;  %9431 = vrcp.f32 %v1023_v22  ;;  %1201 = vperm.xlu1 %9144, %v9970_v28  }
  0xeb   : > { %v9422_v38 = vpop.eup %9421  ;;  %16153 = vst [vmem:[#allocation24_spill] sm:$0xff] %v9978_v43  ;;  %v1032_v50 = vmax.f32 %v1000_v13, 1.0 }
  0xec   : > { %v9424_v20 = vpop.eup %9423  ;;  %v9982_v45 = vmul.f32 %v9422_v38, %v9851_v31  ;;  %v1029_v31 = vmax.f32 %v991_v23, 1.0  ;;  %v997_v49 = vpop.xlane.xlu0 %996 }
  0xed   : > { %9433 = vrcp.f32 %v1032_v50  ;;  %v9986_v54 = vmul.f32 %v9424_v20, %v9808_v3 }
  0xee   : > { %16154 = vst [vmem:[#allocation25_spill] sm:$0xff] %v9982_v45  ;;  %1256 = vperm.xlu0 %9143, %v9982_v45   ;;  %9435 = vrcp.f32 %v1025_v37  ;;  %1211 = vperm.xlu1 %9144, %v9978_v43  }
  0xef   : > { %v9426_v51 = vpop.eup %9425  ;;  %16155 = vst [vmem:[#allocation26_spill] sm:$0xff] %v9986_v54  ;;  %9437 = vrcp.f32 %v1027_v41 }
  0xf0   : > { %v9428_v58 = vpop.eup %9427  ;;  %v9990_v56 = vmul.f32 %v9426_v51, %v9865_v39  ;;  %9439 = vrcp.f32 %v1029_v31  ;;  %v1031_v39 = vmax.f32 %v997_v49, 1.0 }
  0xf1   : > { %v9994_v7 = vmul.f32 %v9428_v58, %v9825_v14 }
  0xf2   : > { %16156 = vst [vmem:[#allocation27_spill] sm:$0xff] %v9990_v56  ;;  %1266 = vperm.xlu0 %9143, %v9990_v56   ;;  %1221 = vperm.xlu1 %9144, %v9986_v54   ;;  %9441 = vrcp.f32 %v1031_v39 }
  0xf3   : > { %v9430_v19 = vpop.eup %9429  ;;  %16157 = vst [vmem:[#allocation28_spill] sm:$0xff] %v9994_v7 }
  0xf4   : > { %v9432_v60 = vpop.eup %9431  ;;  %v9998_v3 = vmul.f32 %v9430_v19, %v9878_v46 }
  0xf5   : > { %v10002_v27 = vmul.f32 %v9432_v60, %v9840_v24 }
  0xf6   : > { %16158 = vst [vmem:[#allocation29_spill] sm:$0xff] %v9998_v3  ;;  %1276 = vperm.xlu0 %9143, %v9998_v3   ;;  %1231 = vperm.xlu1 %9144, %v9994_v7   ;;  %v10013_v6 = vpop.f32.mrb[0].mxu0 }
  0xf7   : > { %v9434_v61 = vpop.eup %9433  ;;  %16159 = vst [vmem:[#allocation30_spill] sm:$0xff] %v10002_v27 }
  0xf8   : > { %v9436_v0 = vpop.eup %9435  ;;  %v10006_v14 = vmul.f32 %v9434_v61, %v9889_v52  ;;  %v10020_v52 = vpop.f32.mrb[1].mxu0 }
  0xf9   : > { %v10010_v46 = vmul.f32 %v9436_v0, %v9854_v34  ;;  %v9438_v57 = vpop.eup %9437 }
  0xfa   : > { %16160 = vst [vmem:[#allocation31_spill] sm:$0xff] %v10006_v14  ;;  %1286 = vperm.xlu0 %9143, %v10006_v14   ;;  %1241 = vperm.xlu1 %9144, %v10002_v27   ;;  %v10016_v24 = vmul.f32 %v9438_v57, %v9868_v40  ;;  %v9440_v10 = vpop.eup %9439  ;;  %v10022_v33 = vpop.f32.mrb[2].mxu0 }
  0xfb   : > { %16161 = vst [vmem:[#allocation32_spill] sm:$0xff] %v10010_v46  ;;  %v10025_v34 = vmul.f32 %v9440_v10, %v9881_v47  ;;  %v10029_v17 = vpop.f32.mrb[3].mxu0  ;;  %v8883_v25 = vpop.f32.mrb[0].mxu1 }
  0xfc   : > { %16162 = vst [vmem:[#allocation33_spill] sm:$0xff] %v10016_v24  ;;  %v9442_v40 = vpop.eup %9441  ;;  %v10045_v30 = vadd.f32 %v8883_v25, %v10034_v2  ;;  %v791_v13 = vpop.f32.mrb[1].mxu1 }
  0xfd   : > { %16163 = vst [vmem:[#allocation34_spill] sm:$0xff] %v10025_v34  ;;  %v10037_v15 = vmul.f32 %v9442_v40, %v9892_v53  ;;  %v10051_v38 = vadd.f32 %v10034_v2, %v791_v13 }
  0xfe   : > { %9146 = vset.pattern.permute.xlu0 %v9514_v5  ;;  %1251 = vperm.xlu1 %9144, %v10010_v46   ;;  %v8856_v22 = vpop.f32.mrb[4].mxu0  ;;  %16166 = vst [vmem:[#allocation37_spill] sm:$0xff] %v10045_v30 }
  0xff   : > { %1390 = vperm.xlu0 %9146, %v9903_v36   ;;  %16164 = vst [vmem:[#allocation35_spill] sm:$0xff] %v10037_v15  ;;  %v10042_v47 = vadd.f32 %v8856_v22, %v10034_v2  ;;  %v701_v42 = vpop.f32.mrb[5].mxu0  ;;  %16167 = vst [vmem:[#allocation38_spill] sm:$0xff] %v10051_v38  ;;  %v8886_v50 = vpop.f32.mrb[2].mxu1 }
 0x100   : > { %v10048_v37 = vadd.f32 %v10034_v2, %v701_v42  ;;  %v801_v41 = vpop.f32.mrb[3].mxu1  ;;  %v10062_v58 = vadd.f32 %v8886_v50, %v10034_v2 }
 0x101   : > { %16165 = vst [vmem:[#allocation36_spill] sm:$0xff] %v10042_v47  ;;  %v10065_v31 = vadd.f32 %v10034_v2, %v801_v41 }
 0x102   : > { %1261 = vperm.xlu1 %9144, %v10016_v24   ;;  %v8859_v53 = vpop.f32.mrb[6].mxu0  ;;  %16170 = vst [vmem:[#allocation41_spill] sm:$0xff] %v10062_v58 }
 0x103   : > { %1402 = vperm.xlu0 %9146, %v9914_v62   ;;  %v10056_v20 = vadd.f32 %v8859_v53, %v10034_v2  ;;  %v711_v23 = vpop.f32.mrb[7].mxu0  ;;  %16171 = vst [vmem:[#allocation42_spill] sm:$0xff] %v10065_v31  ;;  %v8889_v49 = vpop.f32.mrb[4].mxu1 }
 0x104   : > { %v10059_v51 = vadd.f32 %v10034_v2, %v711_v23  ;;  %v10072_v61 = vadd.f32 %v8889_v49, %v10034_v2  ;;  %v811_v0 = vpop.f32.mrb[5].mxu1 }
 0x105   : > { %16168 = vst [vmem:[#allocation39_spill] sm:$0xff] %v10056_v20  ;;  %v10079_v10 = vadd.f32 %v10034_v2, %v811_v0 }
 0x106   : > { %1271 = vperm.xlu1 %9144, %v10025_v34   ;;  %16169 = vst [vmem:[#allocation40_spill] sm:$0xff] %v10059_v51  ;;  %v8862_v19 = vpop.f32.mrb[8].mxu0  ;;  %16173 = vst [vmem:[#allocation44_spill] sm:$0xff] %v10072_v61 }
 0x107   : > { %1410 = vperm.xlu0 %9146, %v9930_v29   ;;  %v10069_v60 = vadd.f32 %v8862_v19, %v10034_v2  ;;  %v721_v39 = vpop.f32.mrb[9].mxu0  ;;  %16175 = vst [vmem:[#allocation46_spill] sm:$0xff] %v10079_v10 }
 0x108   : > { %v10076_v57 = vadd.f32 %v10034_v2, %v721_v39 }
 0x109   : > { %16172 = vst [vmem:[#allocation43_spill] sm:$0xff] %v10069_v60 }
 0x10a   : > { %1281 = vperm.xlu1 %9144, %v10037_v15   ;;  %16174 = vst [vmem:[#allocation45_spill] sm:$0xff] %v10076_v57  ;;  %v8865_v40 = vpop.f32.mrb[10].mxu0 }
 0x10b   : > { %1418 = vperm.xlu0 %9146, %v9946_v55   ;;  %v10083_v22 = vadd.f32 %v8865_v40, %v10034_v2  ;;  %v731_v25 = vpop.f32.mrb[11].mxu0 }
 0x10c   : > { %v10090_v53 = vadd.f32 %v10034_v2, %v731_v25 }
 0x10d   : > { %16176 = vst [vmem:[#allocation47_spill] sm:$0xff] %v10083_v22 }
 0x10e   : > { %9145 = vset.pattern.permute.xlu1 %v9514_v5  ;;  %v8892_v5 = vpop.f32.mrb[6].mxu1  ;;  %16178 = vst [vmem:[#allocation49_spill] sm:$0xff] %v10090_v53  ;;  %v8868_v23 = vpop.f32.mrb[12].mxu0 }
 0x10f   : > { %1426 = vperm.xlu0 %9146, %v9954_v63   ;;  %1386 = vperm.xlu1 %9145, %v9899_v21   ;;  %v10086_v42 = vadd.f32 %v8892_v5, %v10034_v2  ;;  %v821_v13 = vpop.f32.mrb[7].mxu1  ;;  %v10097_v19 = vadd.f32 %v8868_v23, %v10034_v2  ;;  %v741_v49 = vpop.f32.mrb[13].mxu0 }
 0x110   : > { %v10093_v50 = vadd.f32 %v10034_v2, %v821_v13  ;;  %v8895_v41 = vpop.f32.mrb[8].mxu1  ;;  %v10101_v0 = vadd.f32 %v10034_v2, %v741_v49 }
 0x111   : > { %16177 = vst [vmem:[#allocation48_spill] sm:$0xff] %v10086_v42  ;;  %16180 = vst [vmem:[#allocation51_spill] sm:$0xff] %v10097_v19  ;;  %v831_v39 = vpop.f32.mrb[9].mxu1  ;;  %v10104_v40 = vadd.f32 %v8895_v41, %v10034_v2 }
 0x112   : > { %16179 = vst [vmem:[#allocation50_spill] sm:$0xff] %v10093_v50  ;;  %16181 = vst [vmem:[#allocation52_spill] sm:$0xff] %v10101_v0  ;;  %v10107_v5 = vadd.f32 %v10034_v2, %v831_v39  ;;  %v8871_v25 = vpop.f32.mrb[14].mxu0 }
 0x113   : > { %1434 = vperm.xlu0 %9146, %v9962_v16   ;;  %1394 = vperm.xlu1 %9145, %v9906_v8   ;;  %16182 = vst [vmem:[#allocation53_spill] sm:$0xff] %v10104_v40  ;;  %v10111_v13 = vadd.f32 %v8871_v25, %v10034_v2  ;;  %v751_v23 = vpop.f32.mrb[15].mxu0 }
 0x114   : > { %16183 = vst [vmem:[#allocation54_spill] sm:$0xff] %v10107_v5  ;;  %v10115_v1 = vadd.f32 %v10034_v2, %v751_v23 }
 0x115   : > { %16184 = vst [vmem:[#allocation55_spill] sm:$0xff] %v10111_v13 }
 0x116   : > { %16185 = vst [vmem:[#allocation56_spill] sm:$0xff] %v10115_v1  ;;  %v8874_v49 = vpop.f32.mrb[16].mxu0 }
 0x117   : > { %1442 = vperm.xlu0 %9146, %v9970_v28   ;;  %1398 = vperm.xlu1 %9145, %v9910_v12   ;;  %v10119_v41 = vadd.f32 %v8874_v49, %v10034_v2  ;;  %v761_v39 = vpop.f32.mrb[17].mxu0 }
 0x118   : > { %v10123_v40 = vadd.f32 %v10034_v2, %v761_v39 }
 0x119   : > { %16186 = vst [vmem:[#allocation57_spill] sm:$0xff] %v10119_v41 }
 0x11a   : > { %16187 = vst [vmem:[#allocation58_spill] sm:$0xff] %v10123_v40  ;;  %v8877_v25 = vpop.f32.mrb[18].mxu0 }
 0x11b   : > { %1450 = vperm.xlu0 %9146, %v9978_v43   ;;  %1406 = vperm.xlu1 %9145, %v9922_v11   ;;  %v10127_v5 = vadd.f32 %v8877_v25, %v10034_v2  ;;  %v771_v23 = vpop.f32.mrb[19].mxu0  ;;  %v9515_v25 = vmov 2  }
 0x11c   : > { %v10131_v42 = vadd.f32 %v10034_v2, %v771_v23 }
 0x11d   : > { %16188 = vst [vmem:[#allocation59_spill] sm:$0xff] %v10127_v5 }
 0x11e   : > { %16189 = vst [vmem:[#allocation60_spill] sm:$0xff] %v10131_v42  ;;  %v8880_v49 = vpop.f32.mrb[20].mxu0 }
 0x11f   : > { %1458 = vperm.xlu0 %9146, %v9986_v54   ;;  %1414 = vperm.xlu1 %9145, %v9938_v44   ;;  %v10135_v61 = vadd.f32 %v8880_v49, %v10034_v2  ;;  %v781_v39 = vpop.f32.mrb[21].mxu0 }
 0x120   : > { %v10139_v50 = vadd.f32 %v10034_v2, %v781_v39 }
 0x121   : > { %16190 = vst [vmem:[#allocation61_spill] sm:$0xff] %v10135_v61 }
 0x122   : > { %16191 = vst [vmem:[#allocation62_spill] sm:$0xff] %v10139_v50 }
 0x123   : > { %1466 = vperm.xlu0 %9146, %v9994_v7   ;;  %1422 = vperm.xlu1 %9145, %v9918_v9  }
 0x127   : > { %1474 = vperm.xlu0 %9146, %v10002_v27   ;;  %1430 = vperm.xlu1 %9145, %v9926_v18  }
 0x12b   : > { %1482 = vperm.xlu0 %9146, %v10010_v46   ;;  %1438 = vperm.xlu1 %9145, %v9934_v35  }
 0x12f   : > { %1490 = vperm.xlu0 %9146, %v10016_v24   ;;  %1446 = vperm.xlu1 %9145, %v9942_v48  }
 0x133   : > { %1498 = vperm.xlu0 %9146, %v10025_v34   ;;  %1454 = vperm.xlu1 %9145, %v9950_v59  }
 0x137   : > { %1506 = vperm.xlu0 %9146, %v10037_v15   ;;  %1462 = vperm.xlu1 %9145, %v9958_v4  }
 0x13b   : > { %9147 = vset.pattern.permute.xlu0 %v9515_v25  ;;  %1470 = vperm.xlu1 %9145, %v9966_v26  }
 0x13c   : > { %1642 = vperm.xlu0 %9147, %v9899_v21  }
 0x13d   : > { %v10161_v49 = vpop.permute.xlu0 %1131 }
 0x13e   : > { %16194 = vst [vmem:[#allocation65_spill] sm:$0xff] %v10161_v49 }
 0x13f   : > { %1478 = vperm.xlu1 %9145, %v9974_v32  }
 0x140   : > { %1654 = vperm.xlu0 %9147, %v9910_v12  }
 0x141   : > { %v10153_v2 = vpop.permute.xlu1 %1136 }
 0x142   : > { %16192 = vst [vmem:[#allocation63_spill] sm:$0xff] %v10153_v2 }
 0x143   : > { %1486 = vperm.xlu1 %9145, %v9982_v45  }
 0x144   : > { %1662 = vperm.xlu0 %9147, %v9922_v11  }
 0x145   : > { %v10157_v23 = vpop.permute.xlu1 %1141 }
 0x146   : > { %16193 = vst [vmem:[#allocation64_spill] sm:$0xff] %v10157_v23 }
 0x147   : > { %1494 = vperm.xlu1 %9145, %v9990_v56  }
 0x148   : > { %1670 = vperm.xlu0 %9147, %v9938_v44  }
 0x149   : > { %v10163_v39 = vpop.permute.xlu1 %1146 }
 0x14a   : > { %16195 = vst [vmem:[#allocation66_spill] sm:$0xff] %v10163_v39 }
 0x14b   : > { %1502 = vperm.xlu1 %9145, %v9998_v3  }
 0x14c   : > { %1678 = vperm.xlu0 %9147, %v9918_v9  }
 0x14d   : > { %v10167_v10 = vpop.permute.xlu0 %1176  ;;  %v10169_v58 = vpop.permute.xlu1 %1151 }
 0x14e   : > { %16196 = vst [vmem:[#allocation67_spill] sm:$0xff] %v10167_v10  ;;  %16197 = vst [vmem:[#allocation68_spill] sm:$0xff] %v10169_v58 }
 0x14f   : > { %1510 = vperm.xlu1 %9145, %v10006_v14  }
 0x150   : > { %1686 = vperm.xlu0 %9147, %v9926_v18  }
 0x151   : > { %v10173_v31 = vpop.permute.xlu0 %1186  ;;  %v10175_v30 = vpop.permute.xlu1 %1156 }
 0x152   : > { %16198 = vst [vmem:[#allocation69_spill] sm:$0xff] %v10173_v31  ;;  %16199 = vst [vmem:[#allocation70_spill] sm:$0xff] %v10175_v30 }
 0x153   : > { %9148 = vset.pattern.permute.xlu1 %v9515_v25 }
 0x154   : > { %1694 = vperm.xlu0 %9147, %v9934_v35   ;;  %1646 = vperm.xlu1 %9148, %v9903_v36  }
 0x155   : > { %v10179_v38 = vpop.permute.xlu0 %1196  ;;  %v10181_v61 = vpop.permute.xlu1 %1161 }
 0x156   : > { %16200 = vst [vmem:[#allocation71_spill] sm:$0xff] %v10179_v38  ;;  %16201 = vst [vmem:[#allocation72_spill] sm:$0xff] %v10181_v61  ;;  %v9516_v38 = vmov 3  }
 0x158   : > { %1702 = vperm.xlu0 %9147, %v9942_v48   ;;  %1650 = vperm.xlu1 %9148, %v9906_v8  }
 0x159   : > { %v10185_v50 = vpop.permute.xlu0 %1206  ;;  %v10187_v5 = vpop.permute.xlu1 %1166 }
 0x15a   : > { %16202 = vst [vmem:[#allocation73_spill] sm:$0xff] %v10185_v50  ;;  %16203 = vst [vmem:[#allocation74_spill] sm:$0xff] %v10187_v5 }
 0x15c   : > { %1710 = vperm.xlu0 %9147, %v9950_v59   ;;  %1658 = vperm.xlu1 %9148, %v9914_v62  }
 0x15d   : > { %v10191_v25 = vpop.permute.xlu0 %1216  ;;  %v10193_v42 = vpop.permute.xlu1 %1171 }
 0x15e   : > { %16204 = vst [vmem:[#allocation75_spill] sm:$0xff] %v10191_v25  ;;  %16205 = vst [vmem:[#allocation76_spill] sm:$0xff] %v10193_v42 }
 0x160   : > { %1718 = vperm.xlu0 %9147, %v9958_v4   ;;  %1666 = vperm.xlu1 %9148, %v9930_v29  }
 0x161   : > { %v10197_v41 = vpop.permute.xlu0 %1226  ;;  %v10199_v40 = vpop.permute.xlu1 %1181 }
 0x162   : > { %16206 = vst [vmem:[#allocation77_spill] sm:$0xff] %v10197_v41  ;;  %16207 = vst [vmem:[#allocation78_spill] sm:$0xff] %v10199_v40 }
 0x164   : > { %1726 = vperm.xlu0 %9147, %v9966_v26   ;;  %1674 = vperm.xlu1 %9148, %v9946_v55  }
 0x165   : > { %v10203_v50 = vpop.permute.xlu0 %1236  ;;  %v10205_v13 = vpop.permute.xlu1 %1191 }
 0x166   : > { %16208 = vst [vmem:[#allocation79_spill] sm:$0xff] %v10203_v50  ;;  %16209 = vst [vmem:[#allocation80_spill] sm:$0xff] %v10205_v13 }
 0x168   : > { %1734 = vperm.xlu0 %9147, %v9974_v32   ;;  %1682 = vperm.xlu1 %9148, %v9954_v63  }
 0x169   : > { %v10209_v25 = vpop.permute.xlu0 %1246  ;;  %v10211_v1 = vpop.permute.xlu1 %1201 }
 0x16a   : > { %16210 = vst [vmem:[#allocation81_spill] sm:$0xff] %v10209_v25  ;;  %16211 = vst [vmem:[#allocation82_spill] sm:$0xff] %v10211_v1 }
 0x16c   : > { %1742 = vperm.xlu0 %9147, %v9982_v45   ;;  %1690 = vperm.xlu1 %9148, %v9962_v16  }
 0x16d   : > { %v10215_v41 = vpop.permute.xlu0 %1256  ;;  %v10217_v19 = vpop.permute.xlu1 %1211 }
 0x16e   : > { %16212 = vst [vmem:[#allocation83_spill] sm:$0xff] %v10215_v41  ;;  %16213 = vst [vmem:[#allocation84_spill] sm:$0xff] %v10217_v19 }
 0x170   : > { %1750 = vperm.xlu0 %9147, %v9990_v56   ;;  %1698 = vperm.xlu1 %9148, %v9970_v28  }
 0x171   : > { %v10221_v50 = vpop.permute.xlu0 %1266  ;;  %v10223_v13 = vpop.permute.xlu1 %1221 }
 0x172   : > { %16214 = vst [vmem:[#allocation85_spill] sm:$0xff] %v10221_v50  ;;  %16215 = vst [vmem:[#allocation86_spill] sm:$0xff] %v10223_v13 }
 0x174   : > { %1758 = vperm.xlu0 %9147, %v9998_v3   ;;  %1706 = vperm.xlu1 %9148, %v9978_v43  }
 0x175   : > { %v10227_v25 = vpop.permute.xlu0 %1276  ;;  %v10229_v1 = vpop.permute.xlu1 %1231 }
 0x176   : > { %16216 = vst [vmem:[#allocation87_spill] sm:$0xff] %v10227_v25  ;;  %16217 = vst [vmem:[#allocation88_spill] sm:$0xff] %v10229_v1 }
 0x178   : > { %1766 = vperm.xlu0 %9147, %v10006_v14   ;;  %1714 = vperm.xlu1 %9148, %v9986_v54  }
 0x179   : > { %v10233_v41 = vpop.permute.xlu0 %1286  ;;  %v10235_v19 = vpop.permute.xlu1 %1241 }
 0x17a   : > { %16218 = vst [vmem:[#allocation89_spill] sm:$0xff] %v10233_v41  ;;  %16219 = vst [vmem:[#allocation90_spill] sm:$0xff] %v10235_v19 }
 0x17c   : > { %9150 = vset.pattern.permute.xlu0 %v9516_v38  ;;  %1722 = vperm.xlu1 %9148, %v9994_v7  }
 0x17d   : > { %1902 = vperm.xlu0 %9150, %v9903_v36   ;;  %v10239_v50 = vpop.permute.xlu1 %1251 }
 0x17e   : > { %16220 = vst [vmem:[#allocation91_spill] sm:$0xff] %v10239_v50  ;;  %v10241_v13 = vpop.permute.xlu0 %1390 }
 0x17f   : > { %16221 = vst [vmem:[#allocation92_spill] sm:$0xff] %v10241_v13  ;;  %v15611_v13 = vmov 12  }
 0x180   : > { %1730 = vperm.xlu1 %9148, %v10002_v27  }
 0x181   : > { %1914 = vperm.xlu0 %9150, %v9914_v62   ;;  %v10245_v25 = vpop.permute.xlu1 %1261 }
 0x182   : > { %16222 = vst [vmem:[#allocation93_spill] sm:$0xff] %v10245_v25  ;;  %v10247_v1 = vpop.permute.xlu0 %1402 }
 0x183   : > { %16223 = vst [vmem:[#allocation94_spill] sm:$0xff] %v10247_v1 }
 0x184   : > { %1738 = vperm.xlu1 %9148, %v10010_v46  }
 0x185   : > { %1922 = vperm.xlu0 %9150, %v9930_v29   ;;  %v10251_v41 = vpop.permute.xlu1 %1271 }
 0x186   : > { %16224 = vst [vmem:[#allocation95_spill] sm:$0xff] %v10251_v41  ;;  %v10253_v19 = vpop.permute.xlu0 %1410 }
 0x187   : > { %16225 = vst [vmem:[#allocation96_spill] sm:$0xff] %v10253_v19 }
 0x188   : > { %1746 = vperm.xlu1 %9148, %v10016_v24  }
 0x189   : > { %1930 = vperm.xlu0 %9150, %v9946_v55   ;;  %v10257_v50 = vpop.permute.xlu1 %1281 }
 0x18a   : > { %16226 = vst [vmem:[#allocation97_spill] sm:$0xff] %v10257_v50  ;;  %v10259_v0 = vpop.permute.xlu0 %1418 }
 0x18b   : > { %16227 = vst [vmem:[#allocation98_spill] sm:$0xff] %v10259_v0  ;;  %v9517_v0 = vmov 4  }
 0x18c   : > { %1754 = vperm.xlu1 %9148, %v10025_v34  }
 0x18d   : > { %1938 = vperm.xlu0 %9150, %v9954_v63  }
 0x18e   : > { %v10263_v25 = vpop.permute.xlu0 %1426  ;;  %v10265_v31 = vpop.permute.xlu1 %1386 }
 0x18f   : > { %16228 = vst [vmem:[#allocation99_spill] sm:$0xff] %v10263_v25  ;;  %16229 = vst [vmem:[#allocation100_spill] sm:$0xff] %v10265_v31 }
 0x190   : > { %1762 = vperm.xlu1 %9148, %v10037_v15  }
 0x191   : > { %1946 = vperm.xlu0 %9150, %v9962_v16  }
 0x192   : > { %v10269_v41 = vpop.permute.xlu0 %1434  ;;  %v10271_v22 = vpop.permute.xlu1 %1394 }
 0x193   : > { %16230 = vst [vmem:[#allocation101_spill] sm:$0xff] %v10269_v41  ;;  %16231 = vst [vmem:[#allocation102_spill] sm:$0xff] %v10271_v22 }
 0x194   : > { %9149 = vset.pattern.permute.xlu1 %v9516_v38 }
 0x195   : > { %1954 = vperm.xlu0 %9150, %v9970_v28   ;;  %1898 = vperm.xlu1 %9149, %v9899_v21  }
 0x196   : > { %v10275_v50 = vpop.permute.xlu0 %1442  ;;  %v10277_v40 = vpop.permute.xlu1 %1398 }
 0x197   : > { %16232 = vst [vmem:[#allocation103_spill] sm:$0xff] %v10275_v50  ;;  %16233 = vst [vmem:[#allocation104_spill] sm:$0xff] %v10277_v40 }
 0x199   : > { %1962 = vperm.xlu0 %9150, %v9978_v43   ;;  %1906 = vperm.xlu1 %9149, %v9906_v8  }
 0x19a   : > { %v10281_v25 = vpop.permute.xlu0 %1450  ;;  %v10283_v53 = vpop.permute.xlu1 %1406 }
 0x19b   : > { %16234 = vst [vmem:[#allocation105_spill] sm:$0xff] %v10281_v25  ;;  %16235 = vst [vmem:[#allocation106_spill] sm:$0xff] %v10283_v53  ;;  %v15585_v53 = vmov 10  }
 0x19d   : > { %1970 = vperm.xlu0 %9150, %v9986_v54   ;;  %1910 = vperm.xlu1 %9149, %v9910_v12  }
 0x19e   : > { %v10287_v38 = vpop.permute.xlu0 %1458  ;;  %v10289_v41 = vpop.permute.xlu1 %1414 }
 0x19f   : > { %16236 = vst [vmem:[#allocation107_spill] sm:$0xff] %v10287_v38  ;;  %16237 = vst [vmem:[#allocation108_spill] sm:$0xff] %v10289_v41  ;;  %v15497_v41 = vmov 5  }
 0x1a1   : > { %1978 = vperm.xlu0 %9150, %v9994_v7   ;;  %1918 = vperm.xlu1 %9149, %v9922_v11  }
 0x1a2   : > { %v10293_v50 = vpop.permute.xlu0 %1466  ;;  %v10295_v10 = vpop.permute.xlu1 %1422 }
 0x1a3   : > { %16238 = vst [vmem:[#allocation109_spill] sm:$0xff] %v10293_v50  ;;  %16239 = vst [vmem:[#allocation110_spill] sm:$0xff] %v10295_v10 }
 0x1a5   : > { %1986 = vperm.xlu0 %9150, %v10002_v27   ;;  %1926 = vperm.xlu1 %9149, %v9938_v44  }
 0x1a6   : > { %v10299_v25 = vpop.permute.xlu0 %1474  ;;  %v10301_v60 = vpop.permute.xlu1 %1430 }
 0x1a7   : > { %16240 = vst [vmem:[#allocation111_spill] sm:$0xff] %v10299_v25  ;;  %16241 = vst [vmem:[#allocation112_spill] sm:$0xff] %v10301_v60 }
 0x1a9   : > { %1994 = vperm.xlu0 %9150, %v10010_v46   ;;  %1934 = vperm.xlu1 %9149, %v9918_v9  }
 0x1aa   : > { %v10305_v38 = vpop.permute.xlu0 %1482  ;;  %v10307_v42 = vpop.permute.xlu1 %1438 }
 0x1ab   : > { %16242 = vst [vmem:[#allocation113_spill] sm:$0xff] %v10305_v38  ;;  %16243 = vst [vmem:[#allocation114_spill] sm:$0xff] %v10307_v42 }
 0x1ad   : > { %2002 = vperm.xlu0 %9150, %v10016_v24   ;;  %1942 = vperm.xlu1 %9149, %v9926_v18  }
 0x1ae   : > { %v10311_v50 = vpop.permute.xlu0 %1490  ;;  %v10313_v10 = vpop.permute.xlu1 %1446 }
 0x1af   : > { %16244 = vst [vmem:[#allocation115_spill] sm:$0xff] %v10311_v50  ;;  %16245 = vst [vmem:[#allocation116_spill] sm:$0xff] %v10313_v10 }
 0x1b1   : > { %2010 = vperm.xlu0 %9150, %v10025_v34   ;;  %1950 = vperm.xlu1 %9149, %v9934_v35  }
 0x1b2   : > { %v10317_v25 = vpop.permute.xlu0 %1498  ;;  %v10319_v60 = vpop.permute.xlu1 %1454 }
 0x1b3   : > { %16246 = vst [vmem:[#allocation117_spill] sm:$0xff] %v10317_v25  ;;  %16247 = vst [vmem:[#allocation118_spill] sm:$0xff] %v10319_v60 }
 0x1b5   : > { %2018 = vperm.xlu0 %9150, %v10037_v15   ;;  %1958 = vperm.xlu1 %9149, %v9942_v48  }
 0x1b6   : > { %v10323_v38 = vpop.permute.xlu0 %1506  ;;  %v10325_v42 = vpop.permute.xlu1 %1462 }
 0x1b7   : > { %16248 = vst [vmem:[#allocation119_spill] sm:$0xff] %v10323_v38  ;;  %16249 = vst [vmem:[#allocation120_spill] sm:$0xff] %v10325_v42 }
 0x1b9   : > { %9151 = vset.pattern.permute.xlu0 %v9517_v0  ;;  %1966 = vperm.xlu1 %9149, %v9950_v59  }
 0x1ba   : > { %2154 = vperm.xlu0 %9151, %v9899_v21   ;;  %v10329_v50 = vpop.permute.xlu1 %1470 }
 0x1bb   : > { %16250 = vst [vmem:[#allocation121_spill] sm:$0xff] %v10329_v50  ;;  %v10331_v10 = vpop.permute.xlu0 %1642 }
 0x1bc   : > { %16251 = vst [vmem:[#allocation122_spill] sm:$0xff] %v10331_v10 }
 0x1bd   : > { %1974 = vperm.xlu1 %9149, %v9958_v4  }
 0x1be   : > { %2166 = vperm.xlu0 %9151, %v9910_v12   ;;  %v10335_v25 = vpop.permute.xlu1 %1478 }
 0x1bf   : > { %16252 = vst [vmem:[#allocation123_spill] sm:$0xff] %v10335_v25  ;;  %v10337_v60 = vpop.permute.xlu0 %1654 }
 0x1c0   : > { %16253 = vst [vmem:[#allocation124_spill] sm:$0xff] %v10337_v60 }
 0x1c1   : > { %1982 = vperm.xlu1 %9149, %v9966_v26  }
 0x1c2   : > { %2174 = vperm.xlu0 %9151, %v9922_v11   ;;  %v10341_v38 = vpop.permute.xlu1 %1486 }
 0x1c3   : > { %16254 = vst [vmem:[#allocation125_spill] sm:$0xff] %v10341_v38  ;;  %v10343_v42 = vpop.permute.xlu0 %1662 }
 0x1c4   : > { %16255 = vst [vmem:[#allocation126_spill] sm:$0xff] %v10343_v42  ;;  %v15528_v42 = vmov 6  }
 0x1c5   : > { %1990 = vperm.xlu1 %9149, %v9974_v32  }
 0x1c6   : > { %2182 = vperm.xlu0 %9151, %v9938_v44   ;;  %v10347_v50 = vpop.permute.xlu1 %1494 }
 0x1c7   : > { %16256 = vst [vmem:[#allocation127_spill] sm:$0xff] %v10347_v50  ;;  %v10349_v57 = vpop.permute.xlu0 %1670 }
 0x1c8   : > { %16257 = vst [vmem:[#allocation128_spill] sm:$0xff] %v10349_v57 }
 0x1c9   : > { %1998 = vperm.xlu1 %9149, %v9982_v45  }
 0x1ca   : > { %2190 = vperm.xlu0 %9151, %v9918_v9   ;;  %v10353_v25 = vpop.permute.xlu1 %1502 }
 0x1cb   : > { %16258 = vst [vmem:[#allocation129_spill] sm:$0xff] %v10353_v25  ;;  %v10355_v61 = vpop.permute.xlu0 %1678 }
 0x1cc   : > { %16259 = vst [vmem:[#allocation130_spill] sm:$0xff] %v10355_v61 }
 0x1cd   : > { %2006 = vperm.xlu1 %9149, %v9990_v56  }
 0x1ce   : > { %2198 = vperm.xlu0 %9151, %v9926_v18   ;;  %v10359_v38 = vpop.permute.xlu1 %1510 }
 0x1cf   : > { %16260 = vst [vmem:[#allocation131_spill] sm:$0xff] %v10359_v38  ;;  %v10361_v19 = vpop.permute.xlu0 %1686 }
 0x1d0   : > { %16261 = vst [vmem:[#allocation132_spill] sm:$0xff] %v10361_v19 }
 0x1d1   : > { %2014 = vperm.xlu1 %9149, %v9998_v3  }
 0x1d2   : > { %2206 = vperm.xlu0 %9151, %v9934_v35  }
 0x1d3   : > { %v10365_v50 = vpop.permute.xlu0 %1694  ;;  %v10367_v20 = vpop.permute.xlu1 %1646 }
 0x1d4   : > { %16262 = vst [vmem:[#allocation133_spill] sm:$0xff] %v10365_v50  ;;  %16263 = vst [vmem:[#allocation134_spill] sm:$0xff] %v10367_v20 }
 0x1d5   : > { %2022 = vperm.xlu1 %9149, %v10006_v14  }
 0x1d6   : > { %2214 = vperm.xlu0 %9151, %v9942_v48  }
 0x1d7   : > { %v10371_v25 = vpop.permute.xlu0 %1702  ;;  %v10373_v61 = vpop.permute.xlu1 %1650 }
 0x1d8   : > { %16264 = vst [vmem:[#allocation135_spill] sm:$0xff] %v10371_v25  ;;  %16265 = vst [vmem:[#allocation136_spill] sm:$0xff] %v10373_v61 }
 0x1d9   : > { %9152 = vset.pattern.permute.xlu1 %v9517_v0 }
 0x1da   : > { %2222 = vperm.xlu0 %9151, %v9950_v59   ;;  %2158 = vperm.xlu1 %9152, %v9903_v36  }
 0x1db   : > { %v10377_v38 = vpop.permute.xlu0 %1710  ;;  %v10379_v19 = vpop.permute.xlu1 %1658 }
 0x1dc   : > { %16266 = vst [vmem:[#allocation137_spill] sm:$0xff] %v10377_v38  ;;  %16267 = vst [vmem:[#allocation138_spill] sm:$0xff] %v10379_v19 }
 0x1de   : > { %2230 = vperm.xlu0 %9151, %v9958_v4   ;;  %2162 = vperm.xlu1 %9152, %v9906_v8  }
 0x1df   : > { %v10383_v50 = vpop.permute.xlu0 %1718  ;;  %v10385_v57 = vpop.permute.xlu1 %1666 }
 0x1e0   : > { %16268 = vst [vmem:[#allocation139_spill] sm:$0xff] %v10383_v50  ;;  %16269 = vst [vmem:[#allocation140_spill] sm:$0xff] %v10385_v57 }
 0x1e2   : > { %2238 = vperm.xlu0 %9151, %v9966_v26   ;;  %2170 = vperm.xlu1 %9152, %v9914_v62  }
 0x1e3   : > { %v10389_v0 = vpop.permute.xlu0 %1726  ;;  %v10391_v25 = vpop.permute.xlu1 %1674 }
 0x1e4   : > { %16270 = vst [vmem:[#allocation141_spill] sm:$0xff] %v10389_v0  ;;  %16271 = vst [vmem:[#allocation142_spill] sm:$0xff] %v10391_v25 }
 0x1e6   : > { %2246 = vperm.xlu0 %9151, %v9974_v32   ;;  %2178 = vperm.xlu1 %9152, %v9930_v29  }
 0x1e7   : > { %v10395_v38 = vpop.permute.xlu0 %1734  ;;  %v10397_v5 = vpop.permute.xlu1 %1682 }
 0x1e8   : > { %16272 = vst [vmem:[#allocation143_spill] sm:$0xff] %v10395_v38  ;;  %16273 = vst [vmem:[#allocation144_spill] sm:$0xff] %v10397_v5 }
 0x1ea   : > { %2254 = vperm.xlu0 %9151, %v9982_v45   ;;  %2186 = vperm.xlu1 %9152, %v9946_v55  }
 0x1eb   : > { %v10401_v50 = vpop.permute.xlu0 %1742  ;;  %v10403_v57 = vpop.permute.xlu1 %1690 }
 0x1ec   : > { %16274 = vst [vmem:[#allocation145_spill] sm:$0xff] %v10401_v50  ;;  %16275 = vst [vmem:[#allocation146_spill] sm:$0xff] %v10403_v57 }
 0x1ee   : > { %2262 = vperm.xlu0 %9151, %v9990_v56   ;;  %2194 = vperm.xlu1 %9152, %v9954_v63  }
 0x1ef   : > { %v10407_v0 = vpop.permute.xlu0 %1750  ;;  %v10409_v25 = vpop.permute.xlu1 %1698 }
 0x1f0   : > { %16276 = vst [vmem:[#allocation147_spill] sm:$0xff] %v10407_v0  ;;  %16277 = vst [vmem:[#allocation148_spill] sm:$0xff] %v10409_v25 }
 0x1f2   : > { %2270 = vperm.xlu0 %9151, %v9998_v3   ;;  %2202 = vperm.xlu1 %9152, %v9962_v16  }
 0x1f3   : > { %v10413_v38 = vpop.permute.xlu0 %1758  ;;  %v10415_v5 = vpop.permute.xlu1 %1706 }
 0x1f4   : > { %16278 = vst [vmem:[#allocation149_spill] sm:$0xff] %v10413_v38  ;;  %16279 = vst [vmem:[#allocation150_spill] sm:$0xff] %v10415_v5 }
 0x1f6   : > { %2278 = vperm.xlu0 %9151, %v10006_v14   ;;  %2210 = vperm.xlu1 %9152, %v9970_v28  }
 0x1f7   : > { %v10419_v50 = vpop.permute.xlu0 %1766  ;;  %v10421_v57 = vpop.permute.xlu1 %1714 }
 0x1f8   : > { %16280 = vst [vmem:[#allocation151_spill] sm:$0xff] %v10419_v50  ;;  %16281 = vst [vmem:[#allocation152_spill] sm:$0xff] %v10421_v57 }
 0x1fa   : > { %9154 = vset.pattern.permute.xlu0 %v15497_v41  ;;  %2218 = vperm.xlu1 %9152, %v9978_v43  }
 0x1fb   : > { %2414 = vperm.xlu0 %9154, %v9903_v36   ;;  %v10426_v0 = vpop.permute.xlu1 %1722 }
 0x1fc   : > { %16282 = vst [vmem:[#allocation153_spill] sm:$0xff] %v10426_v0  ;;  %v10428_v38 = vpop.permute.xlu0 %1902 }
 0x1fd   : > { %16283 = vst [vmem:[#allocation154_spill] sm:$0xff] %v10428_v38 }
 0x1fe   : > { %2226 = vperm.xlu1 %9152, %v9986_v54  }
 0x1ff   : > { %2426 = vperm.xlu0 %9154, %v9914_v62   ;;  %v10432_v5 = vpop.permute.xlu1 %1730 }
 0x200   : > { %16284 = vst [vmem:[#allocation155_spill] sm:$0xff] %v10432_v5  ;;  %v10434_v50 = vpop.permute.xlu0 %1914 }
 0x201   : > { %16285 = vst [vmem:[#allocation156_spill] sm:$0xff] %v10434_v50 }
 0x202   : > { %2234 = vperm.xlu1 %9152, %v9994_v7  }
 0x203   : > { %2434 = vperm.xlu0 %9154, %v9930_v29   ;;  %v10438_v41 = vpop.permute.xlu1 %1738 }
 0x204   : > { %16286 = vst [vmem:[#allocation157_spill] sm:$0xff] %v10438_v41  ;;  %v10440_v57 = vpop.permute.xlu0 %1922 }
 0x205   : > { %16287 = vst [vmem:[#allocation158_spill] sm:$0xff] %v10440_v57 }
 0x206   : > { %2242 = vperm.xlu1 %9152, %v10002_v27  }
 0x207   : > { %2442 = vperm.xlu0 %9154, %v9946_v55   ;;  %v10444_v0 = vpop.permute.xlu1 %1746 }
 0x208   : > { %16288 = vst [vmem:[#allocation159_spill] sm:$0xff] %v10444_v0  ;;  %v10446_v25 = vpop.permute.xlu0 %1930 }
 0x209   : > { %16289 = vst [vmem:[#allocation160_spill] sm:$0xff] %v10446_v25 }
 0x20a   : > { %2250 = vperm.xlu1 %9152, %v10010_v46  }
 0x20b   : > { %2450 = vperm.xlu0 %9154, %v9954_v63   ;;  %v10450_v5 = vpop.permute.xlu1 %1754 }
 0x20c   : > { %16290 = vst [vmem:[#allocation161_spill] sm:$0xff] %v10450_v5  ;;  %v10452_v14 = vpop.permute.xlu0 %1938 }
 0x20d   : > { %16291 = vst [vmem:[#allocation162_spill] sm:$0xff] %v10452_v14 }
 0x20e   : > { %2258 = vperm.xlu1 %9152, %v10016_v24  }
 0x20f   : > { %2458 = vperm.xlu0 %9154, %v9962_v16   ;;  %v10456_v41 = vpop.permute.xlu1 %1762  ;;  %v16298_v16 = vmov 5  }
 0x210   : > { %16292 = vst [vmem:[#allocation163_spill] sm:$0xff] %v10456_v41  ;;  %v10458_v57 = vpop.permute.xlu0 %1946 }
 0x211   : > { %16293 = vst [vmem:[#allocation164_spill] sm:$0xff] %v10458_v57 }
 0x212   : > { %2266 = vperm.xlu1 %9152, %v10025_v34  }
 0x213   : > { %2466 = vperm.xlu0 %9154, %v9970_v28  }
 0x214   : > { %v10462_v0 = vpop.permute.xlu0 %1954  ;;  %v10464_v25 = vpop.permute.xlu1 %1898 }
 0x215   : > { %16294 = vst [vmem:[#allocation165_spill] sm:$0xff] %v10462_v0  ;;  %16295 = vst [vmem:[#allocation166_spill] sm:$0xff] %v10464_v25 }
 0x216   : > { %2274 = vperm.xlu1 %9152, %v10037_v15  }
 0x217   : > { %2474 = vperm.xlu0 %9154, %v9978_v43  }
 0x218   : > { %v10468_v5 = vpop.permute.xlu0 %1962  ;;  %v10470_v14 = vpop.permute.xlu1 %1906 }
 0x219   : > { %16296 = vst [vmem:[#allocation167_spill] sm:$0xff] %v10468_v5  ;;  %16297 = vst [vmem:[#allocation168_spill] sm:$0xff] %v10470_v14 }
 0x21a   : > { %9153 = vset.pattern.permute.xlu1 %v16298_v16 }
 0x21b   : > { %2482 = vperm.xlu0 %9154, %v9986_v54   ;;  %2410 = vperm.xlu1 %9153, %v9899_v21  }
 0x21c   : > { %v10475_v41 = vpop.permute.xlu0 %1970  ;;  %v10477_v57 = vpop.permute.xlu1 %1910 }
 0x21d   : > { %16299 = vst [vmem:[#allocation169_spill] sm:$0xff] %v10475_v41  ;;  %16300 = vst [vmem:[#allocation170_spill] sm:$0xff] %v10477_v57 }
 0x21f   : > { %2490 = vperm.xlu0 %9154, %v9994_v7   ;;  %2418 = vperm.xlu1 %9153, %v9906_v8  }
 0x220   : > { %v10481_v0 = vpop.permute.xlu0 %1978  ;;  %v10483_v51 = vpop.permute.xlu1 %1918 }
 0x221   : > { %16301 = vst [vmem:[#allocation171_spill] sm:$0xff] %v10481_v0  ;;  %16302 = vst [vmem:[#allocation172_spill] sm:$0xff] %v10483_v51 }
 0x223   : > { %2498 = vperm.xlu0 %9154, %v10002_v27   ;;  %2422 = vperm.xlu1 %9153, %v9910_v12  }
 0x224   : > { %v10487_v16 = vpop.permute.xlu0 %1986  ;;  %v10489_v5 = vpop.permute.xlu1 %1926 }
 0x225   : > { %16303 = vst [vmem:[#allocation173_spill] sm:$0xff] %v10487_v16  ;;  %16304 = vst [vmem:[#allocation174_spill] sm:$0xff] %v10489_v5 }
 0x227   : > { %2506 = vperm.xlu0 %9154, %v10010_v46   ;;  %2430 = vperm.xlu1 %9153, %v9922_v11  }
 0x228   : > { %v10493_v41 = vpop.permute.xlu0 %1994  ;;  %v10495_v54 = vpop.permute.xlu1 %1934 }
 0x229   : > { %16305 = vst [vmem:[#allocation175_spill] sm:$0xff] %v10493_v41  ;;  %16306 = vst [vmem:[#allocation176_spill] sm:$0xff] %v10495_v54 }
 0x22b   : > { %2514 = vperm.xlu0 %9154, %v10016_v24   ;;  %2438 = vperm.xlu1 %9153, %v9938_v44  }
 0x22c   : > { %v10499_v0 = vpop.permute.xlu0 %2002  ;;  %v10501_v51 = vpop.permute.xlu1 %1942 }
 0x22d   : > { %16307 = vst [vmem:[#allocation177_spill] sm:$0xff] %v10499_v0  ;;  %16308 = vst [vmem:[#allocation178_spill] sm:$0xff] %v10501_v51 }
 0x22f   : > { %9155 = vset.pattern.permute.xlu0 %v15528_v42  ;;  %2446 = vperm.xlu1 %9153, %v9918_v9  }
 0x230   : > { %2666 = vperm.xlu0 %9155, %v9899_v21   ;;  %v10506_v16 = vpop.permute.xlu0 %2010  ;;  %v10508_v41 = vpop.permute.xlu1 %1950 }
 0x231   : > { %16309 = vst [vmem:[#allocation179_spill] sm:$0xff] %v10506_v16  ;;  %16310 = vst [vmem:[#allocation180_spill] sm:$0xff] %v10508_v41 }
 0x233   : > { %2454 = vperm.xlu1 %9153, %v9926_v18  }
 0x234   : > { %2678 = vperm.xlu0 %9155, %v9910_v12   ;;  %v10512_v54 = vpop.permute.xlu0 %2018  ;;  %v10514_v0 = vpop.permute.xlu1 %1958 }
 0x235   : > { %16311 = vst [vmem:[#allocation181_spill] sm:$0xff] %v10512_v54  ;;  %16312 = vst [vmem:[#allocation182_spill] sm:$0xff] %v10514_v0 }
 0x237   : > { %2462 = vperm.xlu1 %9153, %v9934_v35  }
 0x238   : > { %2682 = vperm.xlu0 %9155, %v9914_v62   ;;  %v10518_v42 = vpop.permute.xlu1 %1966 }
 0x239   : > { %16313 = vst [vmem:[#allocation183_spill] sm:$0xff] %v10518_v42  ;;  %v10520_v51 = vpop.permute.xlu0 %2154 }
 0x23a   : > { %16314 = vst [vmem:[#allocation184_spill] sm:$0xff] %v10520_v51 }
 0x23b   : > { %2470 = vperm.xlu1 %9153, %v9942_v48  }
 0x23c   : > { %2686 = vperm.xlu0 %9155, %v9922_v11   ;;  %v10524_v16 = vpop.permute.xlu1 %1974 }
 0x23d   : > { %16315 = vst [vmem:[#allocation185_spill] sm:$0xff] %v10524_v16  ;;  %v10526_v41 = vpop.permute.xlu0 %2166 }
 0x23e   : > { %16316 = vst [vmem:[#allocation186_spill] sm:$0xff] %v10526_v41 }
 0x23f   : > { %2478 = vperm.xlu1 %9153, %v9950_v59  }
 0x240   : > { %2694 = vperm.xlu0 %9155, %v9938_v44   ;;  %v10530_v54 = vpop.permute.xlu1 %1982 }
 0x241   : > { %16317 = vst [vmem:[#allocation187_spill] sm:$0xff] %v10530_v54  ;;  %v10532_v0 = vpop.permute.xlu0 %2174 }
 0x242   : > { %16318 = vst [vmem:[#allocation188_spill] sm:$0xff] %v10532_v0 }
 0x243   : > { %2486 = vperm.xlu1 %9153, %v9958_v4  }
 0x244   : > { %2698 = vperm.xlu0 %9155, %v9946_v55   ;;  %v10536_v42 = vpop.permute.xlu1 %1990 }
 0x245   : > { %16319 = vst [vmem:[#allocation189_spill] sm:$0xff] %v10536_v42  ;;  %v10538_v5 = vpop.permute.xlu0 %2182 }
 0x246   : > { %16320 = vst [vmem:[#allocation190_spill] sm:$0xff] %v10538_v5 }
 0x247   : > { %2494 = vperm.xlu1 %9153, %v9966_v26  }
 0x248   : > { %2718 = vperm.xlu0 %9155, %v9934_v35   ;;  %v10542_v16 = vpop.permute.xlu1 %1998 }
 0x249   : > { %16321 = vst [vmem:[#allocation191_spill] sm:$0xff] %v10542_v16  ;;  %v10544_v59 = vpop.permute.xlu0 %2190 }
 0x24a   : > { %16322 = vst [vmem:[#allocation192_spill] sm:$0xff] %v10544_v59 }
 0x24b   : > { %2502 = vperm.xlu1 %9153, %v9974_v32   ;;  %v16329_v32 = vmov 6  }
 0x24c   : > { %2722 = vperm.xlu0 %9155, %v9970_v28   ;;  %v10548_v54 = vpop.permute.xlu1 %2006 }
 0x24d   : > { %16323 = vst [vmem:[#allocation193_spill] sm:$0xff] %v10548_v54  ;;  %v10550_v18 = vpop.permute.xlu0 %2198 }
 0x24e   : > { %16324 = vst [vmem:[#allocation194_spill] sm:$0xff] %v10550_v18 }
 0x24f   : > { %2510 = vperm.xlu1 %9153, %v9982_v45  }
 0x250   : > { %2742 = vperm.xlu0 %9155, %v9958_v4   ;;  %v10554_v42 = vpop.permute.xlu1 %2014 }
 0x251   : > { %16325 = vst [vmem:[#allocation195_spill] sm:$0xff] %v10554_v42  ;;  %v10556_v5 = vpop.permute.xlu0 %2206  ;;  %v15558_v42 = vmov 7  }
 0x252   : > { %16326 = vst [vmem:[#allocation196_spill] sm:$0xff] %v10556_v5 }
 0x253   : > { %2518 = vperm.xlu1 %9153, %v9990_v56  }
 0x254   : > { %2746 = vperm.xlu0 %9155, %v9994_v7   ;;  %v10560_v16 = vpop.permute.xlu1 %2022 }
 0x255   : > { %16327 = vst [vmem:[#allocation197_spill] sm:$0xff] %v10560_v16  ;;  %v10562_v59 = vpop.permute.xlu0 %2214 }
 0x256   : > { %16328 = vst [vmem:[#allocation198_spill] sm:$0xff] %v10562_v59 }
 0x257   : > { %9156 = vset.pattern.permute.xlu1 %v16329_v32 }
 0x258   : > { %2766 = vperm.xlu0 %9155, %v9982_v45   ;;  %2670 = vperm.xlu1 %9156, %v9903_v36  }
 0x259   : > { %v10567_v54 = vpop.permute.xlu0 %2222  ;;  %v10569_v18 = vpop.permute.xlu1 %2158 }
 0x25a   : > { %16330 = vst [vmem:[#allocation199_spill] sm:$0xff] %v10567_v54  ;;  %16331 = vst [vmem:[#allocation200_spill] sm:$0xff] %v10569_v18 }
 0x25c   : > { %2770 = vperm.xlu0 %9155, %v10016_v24   ;;  %9157 = vset.pattern.permute.xlu1 %v15558_v42  ;;  %v15566_v24 = vmov 8  }
 0x25d   : > { %v10573_v5 = vpop.permute.xlu0 %2230  ;;  %2922 = vperm.xlu1 %9157, %v9899_v21   ;;  %v10576_v16 = vpop.permute.xlu1 %2162 }
 0x25e   : > { %16332 = vst [vmem:[#allocation201_spill] sm:$0xff] %v10573_v5  ;;  %16333 = vst [vmem:[#allocation202_spill] sm:$0xff] %v10576_v16 }
 0x260   : > { %2782 = vperm.xlu0 %9155, %v9998_v3  }
 0x261   : > { %v10579_v59 = vpop.permute.xlu0 %2238  ;;  %9158 = vset.pattern.permute.xlu1 %v16329_v32  ;;  %v10582_v54 = vpop.permute.xlu1 %2170 }
 0x262   : > { %16334 = vst [vmem:[#allocation203_spill] sm:$0xff] %v10579_v59  ;;  %16335 = vst [vmem:[#allocation204_spill] sm:$0xff] %v10582_v54  ;;  %2674 = vperm.xlu1 %9158, %v9906_v8  }
 0x264   : > { %9318 = vset.pattern.permute.xlu0 %v15566_v24 }
 0x265   : > { %3194 = vperm.xlu0 %9318, %v9914_v62   ;;  %v10587_v42 = vpop.permute.xlu0 %2246  ;;  %v10589_v5 = vpop.permute.xlu1 %2178 }
 0x266   : > { %16336 = vst [vmem:[#allocation205_spill] sm:$0xff] %v10587_v42  ;;  %16337 = vst [vmem:[#allocation206_spill] sm:$0xff] %v10589_v5  ;;  %9159 = vset.pattern.permute.xlu1 %v15566_v24  ;;  %v16342_v42 = vmov 7  }
 0x267   : > { %3178 = vperm.xlu1 %9159, %v9899_v21  }
 0x269   : > { %3206 = vperm.xlu0 %9318, %v9938_v44   ;;  %v10594_v59 = vpop.permute.xlu0 %2254  ;;  %v10596_v0 = vpop.permute.xlu1 %2186 }
 0x26a   : > { %16338 = vst [vmem:[#allocation207_spill] sm:$0xff] %v10594_v59  ;;  %16339 = vst [vmem:[#allocation208_spill] sm:$0xff] %v10596_v0 }
 0x26b   : > { %3182 = vperm.xlu1 %9159, %v9903_v36  }
 0x26d   : > { %3210 = vperm.xlu0 %9318, %v9946_v55   ;;  %v10600_v18 = vpop.permute.xlu0 %2262  ;;  %v10602_v30 = vpop.permute.xlu1 %2194 }
 0x26e   : > { %16340 = vst [vmem:[#allocation209_spill] sm:$0xff] %v10600_v18  ;;  %16341 = vst [vmem:[#allocation210_spill] sm:$0xff] %v10602_v30  ;;  %v15577_v18 = vmov 9  }
 0x26f   : > { %9160 = vset.pattern.permute.xlu1 %v16342_v42 }
 0x270   : > { %2930 = vperm.xlu1 %9160, %v9906_v8  }
 0x271   : > { %3230 = vperm.xlu0 %9318, %v9934_v35   ;;  %v10607_v24 = vpop.permute.xlu0 %2270  ;;  %v10609_v5 = vpop.permute.xlu1 %2202 }
 0x272   : > { %16343 = vst [vmem:[#allocation211_spill] sm:$0xff] %v10607_v24  ;;  %16344 = vst [vmem:[#allocation212_spill] sm:$0xff] %v10609_v5  ;;  %v16349_v5 = vmov 8  }
 0x274   : > { %2934 = vperm.xlu1 %9160, %v9910_v12  }
 0x275   : > { %3234 = vperm.xlu0 %9318, %v9970_v28   ;;  %v10613_v59 = vpop.permute.xlu0 %2278  ;;  %v10615_v0 = vpop.permute.xlu1 %2210 }
 0x276   : > { %16345 = vst [vmem:[#allocation213_spill] sm:$0xff] %v10613_v59  ;;  %16346 = vst [vmem:[#allocation214_spill] sm:$0xff] %v10615_v0 }
 0x278   : > { %9161 = vset.pattern.permute.xlu1 %v15577_v18 }
 0x279   : > { %3254 = vperm.xlu0 %9318, %v9958_v4   ;;  %3438 = vperm.xlu1 %9161, %v9903_v36   ;;  %v10620_v30 = vpop.permute.xlu1 %2218 }
 0x27a   : > { %16347 = vst [vmem:[#allocation215_spill] sm:$0xff] %v10620_v30  ;;  %v10622_v24 = vpop.permute.xlu0 %2414 }
 0x27b   : > { %16348 = vst [vmem:[#allocation216_spill] sm:$0xff] %v10622_v24  ;;  %v15592_v24 = vmov 14  }
 0x27d   : > { %3258 = vperm.xlu0 %9318, %v9994_v7   ;;  %9162 = vset.pattern.permute.xlu1 %v16349_v5  ;;  %v10626_v38 = vpop.permute.xlu1 %2226 }
 0x27e   : > { %16350 = vst [vmem:[#allocation217_spill] sm:$0xff] %v10626_v38  ;;  %v10628_v59 = vpop.permute.xlu0 %2426  ;;  %3186 = vperm.xlu1 %9162, %v9906_v8  }
 0x27f   : > { %16351 = vst [vmem:[#allocation218_spill] sm:$0xff] %v10628_v59 }
 0x281   : > { %3278 = vperm.xlu0 %9318, %v9982_v45   ;;  %v10632_v18 = vpop.permute.xlu1 %2234 }
 0x282   : > { %16352 = vst [vmem:[#allocation219_spill] sm:$0xff] %v10632_v18  ;;  %v10634_v0 = vpop.permute.xlu0 %2434  ;;  %9163 = vset.pattern.permute.xlu1 %v15585_v53 }
 0x283   : > { %16353 = vst [vmem:[#allocation220_spill] sm:$0xff] %v10634_v0  ;;  %3690 = vperm.xlu1 %9163, %v9899_v21   ;;  %v16360_v0 = vmov 9  }
 0x285   : > { %3290 = vperm.xlu0 %9318, %v10025_v34   ;;  %v10639_v30 = vpop.permute.xlu1 %2242 }
 0x286   : > { %16354 = vst [vmem:[#allocation221_spill] sm:$0xff] %v10639_v30  ;;  %v10641_v38 = vpop.permute.xlu0 %2442 }
 0x287   : > { %16355 = vst [vmem:[#allocation222_spill] sm:$0xff] %v10641_v38  ;;  %9164 = vset.pattern.permute.xlu1 %v16349_v5 }
 0x288   : > { %3190 = vperm.xlu1 %9164, %v9910_v12  }
 0x289   : > { %9331 = vset.pattern.permute.xlu0 %v15592_v24  ;;  %v10646_v18 = vpop.permute.xlu1 %2250 }
 0x28a   : > { %16356 = vst [vmem:[#allocation223_spill] sm:$0xff] %v10646_v18  ;;  %4718 = vperm.xlu0 %9331, %v9903_v36   ;;  %v10649_v53 = vpop.permute.xlu0 %2450 }
 0x28b   : > { %16357 = vst [vmem:[#allocation224_spill] sm:$0xff] %v10649_v53 }
 0x28c   : > { %9165 = vset.pattern.permute.xlu1 %v16342_v42 }
 0x28d   : > { %2938 = vperm.xlu1 %9165, %v9914_v62   ;;  %v10653_v30 = vpop.permute.xlu1 %2258 }
 0x28e   : > { %16358 = vst [vmem:[#allocation225_spill] sm:$0xff] %v10653_v30  ;;  %4722 = vperm.xlu0 %9331, %v9906_v8   ;;  %v10656_v38 = vpop.permute.xlu0 %2458 }
 0x28f   : > { %16359 = vst [vmem:[#allocation226_spill] sm:$0xff] %v10656_v38  ;;  %v16371_v38 = vmov 10  }
 0x291   : > { %9166 = vset.pattern.permute.xlu1 %v16360_v0  ;;  %v10659_v45 = vpop.permute.xlu1 %2266 }
 0x292   : > { %16361 = vst [vmem:[#allocation227_spill] sm:$0xff] %v10659_v45  ;;  %4742 = vperm.xlu0 %9331, %v9938_v44   ;;  %v10662_v24 = vpop.permute.xlu0 %2466  ;;  %3442 = vperm.xlu1 %9166, %v9906_v8  }
 0x293   : > { %16362 = vst [vmem:[#allocation228_spill] sm:$0xff] %v10662_v24 }
 0x295   : > { %v10665_v18 = vpop.permute.xlu1 %2274 }
 0x296   : > { %16363 = vst [vmem:[#allocation229_spill] sm:$0xff] %v10665_v18  ;;  %4746 = vperm.xlu0 %9331, %v9946_v55   ;;  %v10668_v53 = vpop.permute.xlu0 %2474  ;;  %9167 = vset.pattern.permute.xlu1 %v16342_v42 }
 0x297   : > { %16364 = vst [vmem:[#allocation230_spill] sm:$0xff] %v10668_v53  ;;  %2942 = vperm.xlu1 %9167, %v9922_v11  }
 0x29a   : > { %4766 = vperm.xlu0 %9331, %v9934_v35   ;;  %v10673_v30 = vpop.permute.xlu0 %2482  ;;  %v10675_v45 = vpop.permute.xlu1 %2410 }
 0x29b   : > { %16365 = vst [vmem:[#allocation231_spill] sm:$0xff] %v10673_v30  ;;  %16366 = vst [vmem:[#allocation232_spill] sm:$0xff] %v10675_v45  ;;  %9168 = vset.pattern.permute.xlu1 %v16360_v0 }
 0x29c   : > { %3446 = vperm.xlu1 %9168, %v9910_v12  }
 0x29e   : > { %4770 = vperm.xlu0 %9331, %v9970_v28   ;;  %v10680_v18 = vpop.permute.xlu0 %2490  ;;  %v10682_v24 = vpop.permute.xlu1 %2418 }
 0x29f   : > { %16367 = vst [vmem:[#allocation233_spill] sm:$0xff] %v10680_v18  ;;  %16368 = vst [vmem:[#allocation234_spill] sm:$0xff] %v10682_v24 }
 0x2a0   : > { %9169 = vset.pattern.permute.xlu1 %v16329_v32 }
 0x2a1   : > { %2690 = vperm.xlu1 %9169, %v9930_v29  }
 0x2a2   : > { %4790 = vperm.xlu0 %9331, %v9958_v4   ;;  %v10687_v53 = vpop.permute.xlu0 %2498  ;;  %v10689_v30 = vpop.permute.xlu1 %2422 }
 0x2a3   : > { %16369 = vst [vmem:[#allocation235_spill] sm:$0xff] %v10687_v53  ;;  %16370 = vst [vmem:[#allocation236_spill] sm:$0xff] %v10689_v30 }
 0x2a5   : > { %9170 = vset.pattern.permute.xlu1 %v16371_v38 }
 0x2a6   : > { %4802 = vperm.xlu0 %9331, %v10002_v27   ;;  %v10693_v20 = vpop.permute.xlu0 %2506  ;;  %3698 = vperm.xlu1 %9170, %v9906_v8   ;;  %v10696_v18 = vpop.permute.xlu1 %2430 }
 0x2a7   : > { %16372 = vst [vmem:[#allocation237_spill] sm:$0xff] %v10693_v20  ;;  %16373 = vst [vmem:[#allocation238_spill] sm:$0xff] %v10696_v18 }
 0x2aa   : > { %9334 = vset.pattern.permute.xlu0 %v16342_v42  ;;  %v10699_v2 = vpop.permute.xlu0 %2514  ;;  %9171 = vset.pattern.permute.xlu1 %v15611_v13  ;;  %v10702_v53 = vpop.permute.xlu1 %2438 }
 0x2ab   : > { %16374 = vst [vmem:[#allocation239_spill] sm:$0xff] %v10699_v2  ;;  %16375 = vst [vmem:[#allocation240_spill] sm:$0xff] %v10702_v53  ;;  %2926 = vperm.xlu0 %9334, %v9903_v36   ;;  %4202 = vperm.xlu1 %9171, %v9899_v21  }
 0x2ae   : > { %v10706_v59 = vpop.permute.xlu1 %2446 }
 0x2af   : > { %16376 = vst [vmem:[#allocation241_spill] sm:$0xff] %v10706_v59  ;;  %2958 = vperm.xlu0 %9334, %v9918_v9   ;;  %v10709_v20 = vpop.permute.xlu0 %2666  ;;  %9172 = vset.pattern.permute.xlu1 %v16349_v5 }
 0x2b0   : > { %16377 = vst [vmem:[#allocation242_spill] sm:$0xff] %v10709_v20  ;;  %3198 = vperm.xlu1 %9172, %v9922_v11  }
 0x2b2   : > { %v10713_v2 = vpop.permute.xlu1 %2454 }
 0x2b3   : > { %16378 = vst [vmem:[#allocation243_spill] sm:$0xff] %v10713_v2  ;;  %2962 = vperm.xlu0 %9334, %v9954_v63   ;;  %v10716_v13 = vpop.permute.xlu0 %2678 }
 0x2b4   : > { %16379 = vst [vmem:[#allocation244_spill] sm:$0xff] %v10716_v13  ;;  %9173 = vset.pattern.permute.xlu1 %v16371_v38 }
 0x2b5   : > { %3702 = vperm.xlu1 %9173, %v9910_v12  }
 0x2b6   : > { %v10720_v53 = vpop.permute.xlu1 %2462 }
 0x2b7   : > { %16380 = vst [vmem:[#allocation245_spill] sm:$0xff] %v10720_v53  ;;  %2982 = vperm.xlu0 %9334, %v9942_v48   ;;  %v10723_v59 = vpop.permute.xlu0 %2682 }
 0x2b8   : > { %16381 = vst [vmem:[#allocation246_spill] sm:$0xff] %v10723_v59 }
 0x2b9   : > { %9174 = vset.pattern.permute.xlu1 %v16342_v42 }
 0x2ba   : > { %2946 = vperm.xlu1 %9174, %v9930_v29   ;;  %v10727_v18 = vpop.permute.xlu1 %2470 }
 0x2bb   : > { %16382 = vst [vmem:[#allocation247_spill] sm:$0xff] %v10727_v18  ;;  %2986 = vperm.xlu0 %9334, %v9978_v43   ;;  %v10730_v2 = vpop.permute.xlu0 %2686  ;;  %v15629_v18 = vmov 13  }
 0x2bc   : > { %16383 = vst [vmem:[#allocation248_spill] sm:$0xff] %v10730_v2 }
 0x2be   : > { %9175 = vset.pattern.permute.xlu1 %v16360_v0  ;;  %v10733_v63 = vpop.permute.xlu1 %2478 }
 0x2bf   : > { %16384 = vst [vmem:[#allocation249_spill] sm:$0xff] %v10733_v63  ;;  %3006 = vperm.xlu0 %9334, %v9966_v26   ;;  %v10736_v53 = vpop.permute.xlu0 %2694  ;;  %3450 = vperm.xlu1 %9175, %v9914_v62  }
 0x2c0   : > { %16385 = vst [vmem:[#allocation250_spill] sm:$0xff] %v10736_v53  ;;  %v10754_v53 = vld [vmem:[%s15390_s3] ss:$0 sm:$0xff] }
 0x2c2   : > { %v10739_v48 = vpop.permute.xlu1 %2486 }
 0x2c3   : > { %16386 = vst [vmem:[#allocation251_spill] sm:$0xff] %v10739_v48  ;;  %3010 = vperm.xlu0 %9334, %v10002_v27   ;;  %v10742_v59 = vpop.permute.xlu0 %2698  ;;  %9176 = vset.pattern.permute.xlu1 %v15629_v18  ;;  %v682_v48 = vadd.f32 %v10754_v53, %v10020_v52  ;;  %v15645_v27 = vmov 11  }
 0x2c4   : > { %16387 = vst [vmem:[#allocation252_spill] sm:$0xff] %v10742_v59  ;;  %4458 = vperm.xlu1 %9176, %v9899_v21   ;;  %v1289_v59 = vlaneseq }
 0x2c6   : > { %v10746_v2 = vpop.permute.xlu1 %2494 }
 0x2c7   : > { %16388 = vst [vmem:[#allocation253_spill] sm:$0xff] %v10746_v2  ;;  %3034 = vperm.xlu0 %9334, %v10025_v34   ;;  %v10749_v63 = vpop.permute.xlu0 %2718  ;;  %v1290_v34 = vshrl.u32 %v1289_v59, 7 }
 0x2c8   : > { %16389 = vst [vmem:[#allocation254_spill] sm:$0xff] %v10749_v63  ;;  %9177 = vset.pattern.permute.xlu1 %v16342_v42  ;;  %v840_v63 = vmul.f32 0.01, %v682_v48 }
 0x2c9   : > { %2950 = vperm.xlu1 %9177, %v9938_v44   ;;  %v10772_v54 = vsub.s32 0, %v1290_v34  ;;  %v10776_v50 = vsub.s32 2, %v1290_v34 }
 0x2ca   : > { %v10760_v18 = vpop.permute.xlu1 %2502  ;;  %v872_v43 = vmax.f32 %v682_v48, %v840_v63  ;;  %v10789_v63 = vsub.s32 3, %v1290_v34 }
 0x2cb   : > { %16390 = vst [vmem:[#allocation255_spill] sm:$0xff] %v10760_v18  ;;  %3038 = vperm.xlu0 %9334, %v9998_v3   ;;  %v10763_v2 = vpop.permute.xlu0 %2722  ;;  %16394 = vst [vmem:[#allocation259_spill] sm:$0xff] %v10772_v54  ;;  %v10774_v18 = vsub.s32 1, %v1290_v34 }
 0x2cc   : > { %16391 = vst [vmem:[#allocation256_spill] sm:$0xff] %v10763_v2  ;;  %16395 = vst [vmem:[#allocation260_spill] sm:$0xff] %v10776_v50  ;;  %v16396_v2 = vmov 13   ;;  %v10787_v48 = vrot.slane %v872_v43, %v10772_v54  ;;  %v10812_v19 = vrot.slane %v872_v43, %v10789_v63 }
 0x2cd   : > { %9178 = vset.pattern.permute.xlu1 %v15645_v27  ;;  %16400 = vst [vmem:[#allocation264_spill] sm:$0xff] %v10789_v63 }
 0x2ce   : > { %3958 = vperm.xlu1 %9178, %v9910_v12   ;;  %v10767_v26 = vpop.permute.xlu1 %2510  ;;  %16399 = vst [vmem:[#allocation263_spill] sm:$0xff] %v10787_v48  ;;  %v1353_v47 = vmul.f32 %v10787_v48, %v10161_v49  ;;  %v2089_v49 = vmul.f32 %v10812_v19, %v10464_v25  ;;  %v10828_v48 = vsub.s32 7, %v1290_v34 }
 0x2cf   : > { %16392 = vst [vmem:[#allocation257_spill] sm:$0xff] %v10767_v26  ;;  %3042 = vperm.xlu0 %9334, %v10037_v15   ;;  %v10770_v52 = vpop.permute.xlu0 %2742  ;;  %v10792_v26 = vrot.slane %v872_v43, %v10774_v18 }
 0x2d0   : > { %16393 = vst [vmem:[#allocation258_spill] sm:$0xff] %v10770_v52  ;;  %v10795_v52 = vrot.slane %v872_v43, %v10776_v50  ;;  %16410 = vst [vmem:[#allocation274_spill] sm:$0xff] %v10828_v48 }
 0x2d1   : > { %16401 = vst [vmem:[#allocation265_spill] sm:$0xff] %v10792_v26 }
 0x2d2   : > { %9179 = vset.pattern.permute.xlu1 %v16396_v2  ;;  %v10779_v59 = vpop.permute.xlu1 %2518  ;;  %16402 = vst [vmem:[#allocation266_spill] sm:$0xff] %v10795_v52 }
 0x2d3   : > { %16397 = vst [vmem:[#allocation261_spill] sm:$0xff] %v10779_v59  ;;  %9339 = vset.pattern.permute.xlu0 %v16371_v38  ;;  %v10782_v27 = vpop.permute.xlu0 %2746  ;;  %4462 = vperm.xlu1 %9179, %v9903_v36   ;;  %v10797_v59 = vsub.s32 4, %v1290_v34 }
 0x2d4   : > { %16398 = vst [vmem:[#allocation262_spill] sm:$0xff] %v10782_v27  ;;  %3694 = vperm.xlu0 %9339, %v9903_v36   ;;  %v687_v27 = vadd.f32 %v10754_v53, %v10013_v6  ;;  %v1577_v36 = vmul.f32 %v10792_v26, %v10265_v31  ;;  %v1833_v6 = vmul.f32 %v10795_v52, %v10331_v10  ;;  %v10820_v31 = vsub.s32 5, %v1290_v34 }
 0x2d5   : > { %16403 = vst [vmem:[#allocation267_spill] sm:$0xff] %v10797_v59 }
 0x2d6   : > { %16407 = vst [vmem:[#allocation271_spill] sm:$0xff] %v10820_v31  ;;  %v841_v26 = vmul.f32 0.01, %v687_v27  ;;  %v10837_v8 = vrot.slane %v872_v43, %v10820_v31 }
 0x2d7   : > { %v10799_v15 = vpop.permute.xlu0 %2766  ;;  %9180 = vset.pattern.permute.xlu1 %v16349_v5  ;;  %v10806_v13 = vpop.permute.xlu1 %2670  ;;  %v10822_v5 = vsub.s32 6, %v1290_v34 }
 0x2d8   : > { %16404 = vst [vmem:[#allocation268_spill] sm:$0xff] %v10799_v15  ;;  %16405 = vst [vmem:[#allocation269_spill] sm:$0xff] %v10806_v13  ;;  %3718 = vperm.xlu0 %9339, %v9938_v44   ;;  %3202 = vperm.xlu1 %9180, %v9930_v29   ;;  %v10818_v15 = vrot.slane %v872_v43, %v10797_v59  ;;  %v1609_v44 = vadd.f32 %v1577_v36, %v1353_v47 }
 0x2d9   : > { %16408 = vst [vmem:[#allocation272_spill] sm:$0xff] %v10822_v5  ;;  %v10840_v36 = vrot.slane %v872_v43, %v10822_v5  ;;  %v10845_v47 = vmax.f32 %v687_v27, %v841_v26  ;;  %v2601_v25 = vmul.f32 %v10837_v8, %v10675_v45 }
 0x2da   : > { %16406 = vst [vmem:[#allocation270_spill] sm:$0xff] %v10818_v15  ;;  %v1865_v52 = vadd.f32 %v1833_v6, %v1609_v44  ;;  %v2345_v58 = vmul.f32 %v10818_v15, %v10520_v51  ;;  %v10850_v44 = vrot.slane %v872_v43, %v10828_v48  ;;  %v692_v6 = vadd.f32 %v10754_v53, %v10029_v17 }
 0x2db   : > { %v10824_v13 = vpop.permute.xlu0 %2770  ;;  %16413 = vst [vmem:[#allocation277_spill] sm:$0xff] %v10845_v47  ;;  %v16414_v15 = vmov 14   ;;  %v10868_v17 = vrot.slane %v10845_v47, %v10772_v54 }
 0x2dc   : > { %16409 = vst [vmem:[#allocation273_spill] sm:$0xff] %v10824_v13  ;;  %3722 = vperm.xlu0 %9339, %v9946_v55   ;;  %9181 = vset.pattern.permute.xlu1 %v16371_v38  ;;  %v10832_v10 = vpop.permute.xlu1 %2922  ;;  %v2121_v13 = vadd.f32 %v2089_v49, %v1865_v52 }
 0x2dd   : > { %16411 = vst [vmem:[#allocation275_spill] sm:$0xff] %v10832_v10  ;;  %3706 = vperm.xlu1 %9181, %v9914_v62   ;;  %v2857_v62 = vmul.f32 %v10840_v36, %v10709_v20  ;;  %v3113_v43 = vmul.f32 %v10850_v44, %v10832_v10 }
 0x2de   : > { %v2377_v51 = vadd.f32 %v2345_v58, %v2121_v13  ;;  %v842_v58 = vmul.f32 0.01, %v692_v6 }
 0x2df   : > { %v10843_v34 = vpop.permute.xlu0 %2782 }
 0x2e0   : > { %16412 = vst [vmem:[#allocation276_spill] sm:$0xff] %v10843_v34  ;;  %3742 = vperm.xlu0 %9339, %v9934_v35   ;;  %v2633_v27 = vadd.f32 %v2601_v25, %v2377_v51  ;;  %v874_v10 = vmax.f32 %v692_v6, %v842_v58 }
 0x2e1   : > { %9182 = vset.pattern.permute.xlu1 %v16414_v15  ;;  %v10858_v26 = vpop.permute.xlu1 %2674  ;;  %v844_v15 = vmul.f32 0.01, %v10048_v37 }
 0x2e2   : > { %16415 = vst [vmem:[#allocation278_spill] sm:$0xff] %v10858_v26  ;;  %4714 = vperm.xlu1 %9182, %v9899_v21   ;;  %v2889_v13 = vadd.f32 %v2857_v62, %v2633_v27  ;;  %v1520_v45 = vrot.slane %v874_v10, %v10774_v18  ;;  %v1776_v6 = vrot.slane %v874_v10, %v10776_v50 }
 0x2e3   : > { %v2032_v58 = vrot.slane %v874_v10, %v10789_v63 }
 0x2e4   : > { %3746 = vperm.xlu0 %9339, %v9970_v28   ;;  %v10864_v49 = vpop.permute.xlu0 %3194  ;;  %v3145_v34 = vadd.f32 %v3113_v43, %v2889_v13  ;;  %v1296_v43 = vrot.slane %v874_v10, %v10772_v54  ;;  %v697_v13 = vadd.f32 %v10754_v53, %v10022_v33  ;;  %v16424_v28 = vmov 12  }
 0x2e5   : > { %16416 = vst [vmem:[#allocation279_spill] sm:$0xff] %v10864_v49  ;;  %v2091_v53 = vmul.f32 %v2032_v58, %v10470_v14  ;;  %v2800_v14 = vrot.slane %v874_v10, %v10822_v5 }
 0x2e6   : > { %9183 = vset.pattern.permute.xlu1 %v16329_v32  ;;  %v10871_v52 = vpop.permute.xlu1 %3178  ;;  %v843_v35 = vmul.f32 0.01, %v697_v13 }
 0x2e7   : > { %16417 = vst [vmem:[#allocation280_spill] sm:$0xff] %v10871_v52  ;;  %v3369_v51 = vmul.f32 %v10868_v17, %v10871_v52  ;;  %2702 = vperm.xlu1 %9183, %v9918_v9  }
 0x2e8   : > { %3766 = vperm.xlu0 %9339, %v9958_v4   ;;  %v10877_v25 = vpop.permute.xlu0 %3206  ;;  %v1835_v4 = vmul.f32 %v1776_v6, %v10373_v61 }
 0x2e9   : > { %16418 = vst [vmem:[#allocation281_spill] sm:$0xff] %v10877_v25  ;;  %v10879_v20 = vadd.f32 %v3369_v51, %v3145_v34  ;;  %v1579_v34 = vmul.f32 %v1520_v45, %v10271_v22  ;;  %v2288_v22 = vrot.slane %v874_v10, %v10797_v59  ;;  %v10913_v25 = vmax.f32 %v697_v13, %v843_v35 }
 0x2ea   : > { %v10882_v62 = vpop.permute.xlu1 %3182  ;;  %v1580_v35 = vmul.f32 %v1520_v45, %v10277_v40 }
 0x2eb   : > { %16419 = vst [vmem:[#allocation282_spill] sm:$0xff] %v10879_v20  ;;  %16420 = vst [vmem:[#allocation283_spill] sm:$0xff] %v10882_v62  ;;  %9184 = vset.pattern.permute.xlu1 %v16371_v38  ;;  %v2544_v20 = vrot.slane %v874_v10, %v10820_v31  ;;  %v2347_v61 = vmul.f32 %v2288_v22, %v10576_v16  ;;  %v3312_v45 = vrot.slane %v10913_v25, %v10772_v54 }
 0x2ec   : > { %3770 = vperm.xlu0 %9339, %v9994_v7   ;;  %v10886_v27 = vpop.permute.xlu0 %3210  ;;  %3710 = vperm.xlu1 %9184, %v9922_v11   ;;  %v1355_v7 = vmul.f32 %v1296_v43, %v10157_v23  ;;  %16427 = vst [vmem:[#allocation289_spill] sm:$0xff] %v10913_v25 }
 0x2ed   : > { %16421 = vst [vmem:[#allocation284_spill] sm:$0xff] %v10886_v27 }
 0x2ee   : > { %v1611_v33 = vadd.f32 %v1579_v34, %v1355_v7  ;;  %v2603_v34 = vmul.f32 %v2544_v20, %v10682_v24 }
 0x2ef   : > { %v10895_v51 = vpop.permute.xlu1 %2930 }
 0x2f0   : > { %16422 = vst [vmem:[#allocation285_spill] sm:$0xff] %v10895_v51  ;;  %3786 = vperm.xlu0 %9339, %v10010_v46   ;;  %v10898_v52 = vpop.permute.xlu0 %3230  ;;  %9185 = vset.pattern.permute.xlu1 %v16424_v28  ;;  %v1867_v23 = vadd.f32 %v1835_v4, %v1611_v33  ;;  %v2859_v33 = vmul.f32 %v2800_v14, %v10858_v26 }
 0x2f1   : > { %16423 = vst [vmem:[#allocation286_spill] sm:$0xff] %v10898_v52  ;;  %4214 = vperm.xlu1 %9185, %v9910_v12   ;;  %v3056_v12 = vrot.slane %v874_v10, %v10828_v48  ;;  %v1836_v10 = vmul.f32 %v1776_v6, %v10337_v60 }
 0x2f2   : > { %v2123_v7 = vadd.f32 %v2091_v53, %v1867_v23  ;;  %v10929_v23 = vmax.f32 %v10048_v37, %v844_v15  ;;  %v1356_v53 = vmul.f32 %v1296_v43, %v10163_v39  ;;  %v2092_v43 = vmul.f32 %v2032_v58, %v10477_v57  ;;  %v16436_v57 = vld [vmem:[#allocation36_spill] sm:$0xff] }
 0x2f3   : > { %v10907_v27 = vpop.permute.xlu1 %2934  ;;  %v16437_v39 = vld [vmem:[#allocation244_spill] sm:$0xff] }
 0x2f4   : > { %16425 = vst [vmem:[#allocation287_spill] sm:$0xff] %v10907_v27  ;;  %3798 = vperm.xlu0 %9339, %v9990_v56   ;;  %v10910_v52 = vpop.permute.xlu0 %3234  ;;  %v2379_v13 = vadd.f32 %v2347_v61, %v2123_v7  ;;  %v10939_v61 = vrot.slane %v10929_v23, %v10774_v18  ;;  %v1612_v37 = vadd.f32 %v1580_v35, %v1356_v53 }
 0x2f5   : > { %16426 = vst [vmem:[#allocation288_spill] sm:$0xff] %v10910_v52  ;;  %9186 = vset.pattern.permute.xlu1 %v16342_v42  ;;  %v3115_v52 = vmul.f32 %v3056_v12, %v10895_v51  ;;  %v10949_v7 = vrot.slane %v10929_v23, %v10772_v54  ;;  %v2348_v51 = vmul.f32 %v2288_v22, %v10526_v41  ;;  %v16435_v41 = vld [vmem:[#allocation138_spill] sm:$0xff] }
 0x2f6   : > { %2954 = vperm.xlu1 %9186, %v9946_v55   ;;  %v2635_v24 = vadd.f32 %v2603_v34, %v2379_v13  ;;  %v1868_v13 = vadd.f32 %v1836_v10, %v1612_v37  ;;  %v1581_v35 = vmul.f32 %v10939_v61, %v10247_v1  ;;  %v10963_v58 = vrot.slane %v10929_v23, %v10789_v63  ;;  %v16433_v10 = vld [vmem:[#allocation8_spill] sm:$0xff]  ;;  %v16470_v42 = vld [vmem:[#allocation106_spill] sm:$0xff] }
 0x2f7   : > { %v2604_v22 = vmul.f32 %v2544_v20, %v10689_v30  ;;  %v16434_v37 = vld [vmem:[#allocation68_spill] sm:$0xff]  ;;  %v845_v1 = vmul.f32 0.01, %v16436_v57 }
 0x2f8   : > { %3806 = vperm.xlu0 %9339, %v9998_v3   ;;  %v10922_v4 = vpop.permute.xlu0 %3254  ;;  %v10926_v16 = vpop.permute.xlu1 %3438  ;;  %v2891_v6 = vadd.f32 %v2859_v33, %v2635_v24  ;;  %v10959_v24 = vrot.slane %v10929_v23, %v10776_v50  ;;  %v2124_v53 = vadd.f32 %v2092_v43, %v1868_v13  ;;  %v16439_v20 = vld [vmem:[#allocation156_spill] sm:$0xff]  ;;  %v10987_v13 = vrot.slane %v10929_v23, %v10820_v31 }
 0x2f9   : > { %16428 = vst [vmem:[#allocation290_spill] sm:$0xff] %v10922_v4  ;;  %16429 = vst [vmem:[#allocation291_spill] sm:$0xff] %v10926_v16  ;;  %v16446_v4 = vld [vmem:[#allocation246_spill] sm:$0xff] }
 0x2fa   : > { %9187 = vset.pattern.permute.xlu1 %v16360_v0  ;;  %v3147_v60 = vadd.f32 %v3115_v52, %v2891_v6  ;;  %v1357_v6 = vmul.f32 %v10949_v7, %v16434_v37  ;;  %v2380_v40 = vadd.f32 %v2348_v51, %v2124_v53  ;;  %v3116_v51 = vmul.f32 %v3056_v12, %v10907_v27  ;;  %v16441_v53 = vld [vmem:[#allocation204_spill] sm:$0xff] }
 0x2fb   : > { %3458 = vperm.xlu1 %9187, %v9930_v29  }
 0x2fc   : > { %9350 = vset.pattern.permute.xlu0 %v16360_v0  ;;  %v10943_v15 = vpop.permute.xlu0 %3258  ;;  %v1613_v43 = vadd.f32 %v1581_v35, %v1357_v6  ;;  %v2636_v30 = vadd.f32 %v2604_v22, %v2380_v40  ;;  %v11002_v40 = vmax.f32 %v16436_v57, %v845_v1  ;;  %v16442_v22 = vld [vmem:[#allocation218_spill] sm:$0xff]  ;;  %v11017_v1 = vrot.slane %v10929_v23, %v10828_v48 }
 0x2fd   : > { %16430 = vst [vmem:[#allocation292_spill] sm:$0xff] %v10943_v15  ;;  %3434 = vperm.xlu0 %9350, %v9899_v21   ;;  %v10951_v34 = vpop.permute.xlu1 %3186  ;;  %v2860_v15 = vmul.f32 %v2800_v14, %v16437_v39  ;;  %v15715_v14 = vmov 15   ;;  %v16478_v48 = vld [vmem:[#allocation270_spill] sm:$0xff] }
 0x2fe   : > { %16431 = vst [vmem:[#allocation293_spill] sm:$0xff] %v10951_v34  ;;  %v3371_v26 = vmul.f32 %v3312_v45, %v10951_v34  ;;  %v1837_v34 = vmul.f32 %v10959_v24, %v16435_v41 }
 0x2ff   : > { %9188 = vset.pattern.permute.xlu1 %v16396_v2  ;;  %v2892_v39 = vadd.f32 %v2860_v15, %v2636_v30  ;;  %v16447_v15 = vld [vmem:[#allocation14_spill] sm:$0xff] }
 0x300   : > { %v10966_v33 = vpop.permute.xlu0 %3278  ;;  %v3403_v52 = vadd.f32 %v3371_v26, %v3147_v60  ;;  %4466 = vperm.xlu1 %9188, %v16433_v10   ;;  %v2093_v60 = vmul.f32 %v10963_v58, %v16439_v20  ;;  %v10983_v26 = vrot.slane %v10929_v23, %v10797_v59  ;;  %v1869_v35 = vadd.f32 %v1837_v34, %v1613_v43 }
 0x301   : > { %16432 = vst [vmem:[#allocation294_spill] sm:$0xff] %v10966_v33  ;;  %3454 = vperm.xlu0 %9350, %v9922_v11   ;;  %v10998_v20 = vrot.slane %v10929_v23, %v10822_v5  ;;  %v3148_v34 = vadd.f32 %v3116_v51, %v2892_v39  ;;  %v16449_v51 = vld [vmem:[#allocation15_spill] sm:$0xff]  ;;  %v16451_v23 = vmov 11  }
 0x302   : > { %v10977_v33 = vpop.permute.xlu1 %3690  ;;  %v2349_v6 = vmul.f32 %v10983_v26, %v16441_v53  ;;  %v2125_v12 = vadd.f32 %v2093_v60, %v1869_v35  ;;  %v16444_v53 = vld [vmem:[#allocation18_spill] sm:$0xff] }
 0x303   : > { %16438 = vst [vmem:[#allocation8_spill] sm:$0xff] %v10977_v33  ;;  %v2861_v30 = vmul.f32 %v10998_v20, %v16446_v4  ;;  %v16466_v33 = vld [vmem:[#allocation63_spill] sm:$0xff] }
 0x304   : > { %v10989_v41 = vpop.permute.xlu0 %3290  ;;  %9189 = vset.pattern.permute.xlu1 %v15715_v14  ;;  %v2605_v14 = vmul.f32 %v10987_v13, %v16442_v22  ;;  %v2381_v37 = vadd.f32 %v2349_v6, %v2125_v12 }
 0x305   : > { %16440 = vst [vmem:[#allocation36_spill] sm:$0xff] %v10989_v41  ;;  %3470 = vperm.xlu0 %9350, %v9918_v9   ;;  %4970 = vperm.xlu1 %9189, %v9899_v21   ;;  %v16468_v21 = vld [vmem:[#allocation134_spill] sm:$0xff] }
 0x306   : > { %v2637_v39 = vadd.f32 %v2605_v14, %v2381_v37 }
 0x307   : > { %v11006_v41 = vpop.permute.xlu1 %3190 }
 0x308   : > { %16443 = vst [vmem:[#allocation295_spill] sm:$0xff] %v11006_v41  ;;  %v3372_v43 = vmul.f32 %v3312_v45, %v11006_v41  ;;  %v11022_v45 = vrot.slane %v11002_v40, %v10772_v54  ;;  %v2893_v6 = vadd.f32 %v2861_v30, %v2637_v39 }
 0x309   : > { %3474 = vperm.xlu0 %9350, %v16444_v53   ;;  %v11010_v27 = vpop.permute.xlu0 %4718  ;;  %9190 = vset.pattern.permute.xlu1 %v16360_v0 }
 0x30a   : > { %16445 = vst [vmem:[#allocation18_spill] sm:$0xff] %v11010_v27  ;;  %v3404_v57 = vadd.f32 %v3372_v43, %v3148_v34  ;;  %3462 = vperm.xlu1 %9190, %v16447_v15   ;;  %v3568_v34 = vrot.slane %v10913_v25, %v10774_v18  ;;  %v3373_v37 = vmul.f32 %v11022_v45, %v10864_v49  ;;  %v16452_v43 = vld [vmem:[#allocation24_spill] sm:$0xff]  ;;  %v16457_v27 = vld [vmem:[#allocation21_spill] sm:$0xff]  ;;  %v16460_v49 = vld [vmem:[#allocation30_spill] sm:$0xff] }
 0x30c   : > { %v11024_v60 = vpop.permute.xlu1 %2938 }
 0x30d   : > { %16448 = vst [vmem:[#allocation296_spill] sm:$0xff] %v11024_v60  ;;  %3494 = vperm.xlu0 %9350, %v16449_v51   ;;  %v11027_v35 = vpop.permute.xlu0 %4722  ;;  %v3117_v12 = vmul.f32 %v11017_v1, %v11024_v60  ;;  %v16455_v60 = vmov 15  }
 0x30e   : > { %16450 = vst [vmem:[#allocation297_spill] sm:$0xff] %v11027_v35  ;;  %9191 = vset.pattern.permute.xlu1 %v16451_v23  ;;  %v16456_v35 = vld [vmem:[#allocation7_spill] sm:$0xff] }
 0x30f   : > { %v3149_v14 = vadd.f32 %v3117_v12, %v2893_v6  ;;  %3966 = vperm.xlu1 %9191, %v9922_v11  }
 0x311   : > { %3498 = vperm.xlu0 %9350, %v16452_v43   ;;  %v11038_v4 = vpop.permute.xlu0 %4742  ;;  %v11040_v22 = vpop.permute.xlu1 %3442  ;;  %v11042_v30 = vadd.f32 %v3373_v37, %v3149_v14  ;;  %v16463_v14 = vld [vmem:[#allocation92_spill] sm:$0xff] }
 0x312   : > { %16453 = vst [vmem:[#allocation298_spill] sm:$0xff] %v11038_v4  ;;  %16454 = vst [vmem:[#allocation299_spill] sm:$0xff] %v11040_v22  ;;  %v3627_v39 = vmul.f32 %v3568_v34, %v11040_v22 }
 0x313   : > { %9192 = vset.pattern.permute.xlu1 %v16455_v60 }
 0x314   : > { %v3659_v41 = vadd.f32 %v3627_v39, %v3403_v52  ;;  %4974 = vperm.xlu1 %9192, %v16456_v35   ;;  %v16464_v52 = vld [vmem:[#allocation265_spill] sm:$0xff] }
 0x315   : > { %3518 = vperm.xlu0 %9350, %v16457_v27   ;;  %v11048_v6 = vpop.permute.xlu0 %4746  ;;  %v1578_v39 = vmul.f32 %v16464_v52, %v16463_v14  ;;  %v16467_v27 = vld [vmem:[#allocation263_spill] sm:$0xff]  ;;  %v1582_v52 = vmul.f32 %v10939_v61, %v16470_v42 }
 0x316   : > { %16458 = vst [vmem:[#allocation300_spill] sm:$0xff] %v11048_v6  ;;  %v11050_v12 = vpop.permute.xlu1 %2942  ;;  %v1354_v35 = vmul.f32 %v16467_v27, %v16466_v33  ;;  %v16475_v27 = vld [vmem:[#allocation70_spill] sm:$0xff]  ;;  %v16477_v33 = vld [vmem:[#allocation200_spill] sm:$0xff] }
 0x317   : > { %16459 = vst [vmem:[#allocation301_spill] sm:$0xff] %v11050_v12  ;;  %v2346_v61 = vmul.f32 %v16478_v48, %v16477_v33  ;;  %v16510_v33 = vld [vmem:[#allocation174_spill] sm:$0xff] }
 0x318   : > { %9193 = vset.pattern.permute.xlu1 %v16329_v32 }
 0x319   : > { %3522 = vperm.xlu0 %9350, %v16460_v49   ;;  %v11054_v4 = vpop.permute.xlu0 %4766  ;;  %2706 = vperm.xlu1 %9193, %v16444_v53  }
 0x31a   : > { %16461 = vst [vmem:[#allocation302_spill] sm:$0xff] %v11054_v4  ;;  %v16469_v4 = vld [vmem:[#allocation266_spill] sm:$0xff] }
 0x31b   : > { %v11057_v37 = vpop.permute.xlu1 %3446  ;;  %v1834_v56 = vmul.f32 %v16469_v4, %v16468_v21  ;;  %v1358_v4 = vmul.f32 %v10949_v7, %v16475_v27  ;;  %v16481_v7 = vld [vmem:[#allocation216_spill] sm:$0xff] }
 0x31c   : > { %16462 = vst [vmem:[#allocation303_spill] sm:$0xff] %v11057_v37  ;;  %v3628_v22 = vmul.f32 %v3568_v34, %v11057_v37  ;;  %v1610_v34 = vadd.f32 %v1578_v39, %v1354_v35  ;;  %v16471_v37 = vld [vmem:[#allocation154_spill] sm:$0xff]  ;;  %v16479_v39 = vld [vmem:[#allocation172_spill] sm:$0xff]  ;;  %v2602_v27 = vmul.f32 %v10837_v8, %v16481_v7 }
 0x31d   : > { %3530 = vperm.xlu0 %9350, %v10010_v46   ;;  %v11063_v6 = vpop.permute.xlu0 %4770  ;;  %9194 = vset.pattern.permute.xlu1 %v16371_v38  ;;  %v2090_v14 = vmul.f32 %v10812_v19, %v16471_v37  ;;  %v16473_v38 = vld [vmem:[#allocation25_spill] sm:$0xff]  ;;  %v3824_v19 = vrot.slane %v10913_v25, %v10776_v50  ;;  %v1614_v35 = vadd.f32 %v1582_v52, %v1358_v4 }
 0x31e   : > { %16465 = vst [vmem:[#allocation265_spill] sm:$0xff] %v11063_v6  ;;  %v11070_v15 = vadd.f32 %v3628_v22, %v3404_v57  ;;  %3714 = vperm.xlu1 %9194, %v9930_v29   ;;  %v16476_v22 = vld [vmem:[#allocation126_spill] sm:$0xff]  ;;  %v1866_v21 = vadd.f32 %v1834_v56, %v1610_v34  ;;  %v2094_v42 = vmul.f32 %v10963_v58, %v16479_v39  ;;  %v16485_v4 = vld [vmem:[#allocation269_spill] sm:$0xff] }
 0x31f   : > { %v1838_v57 = vmul.f32 %v10959_v24, %v16476_v22  ;;  %v16483_v24 = vld [vmem:[#allocation188_spill] sm:$0xff]  ;;  %v2858_v58 = vmul.f32 %v10840_v36, %v16485_v4 }
 0x320   : > { %v11077_v6 = vpop.permute.xlu1 %2690  ;;  %v2350_v34 = vmul.f32 %v10983_v26, %v16483_v24  ;;  %v16489_v26 = vld [vmem:[#allocation35_spill] sm:$0xff] }
 0x321   : > { %16472 = vst [vmem:[#allocation263_spill] sm:$0xff] %v11077_v6  ;;  %3534 = vperm.xlu0 %9350, %v16473_v38   ;;  %v11080_v46 = vpop.permute.xlu0 %4790  ;;  %v2122_v38 = vadd.f32 %v2090_v14, %v1866_v21  ;;  %v1870_v48 = vadd.f32 %v1838_v57, %v1614_v35  ;;  %v16486_v14 = vld [vmem:[#allocation238_spill] sm:$0xff]  ;;  %v16488_v57 = vld [vmem:[#allocation12_spill] sm:$0xff] }
 0x322   : > { %16474 = vst [vmem:[#allocation266_spill] sm:$0xff] %v11080_v46  ;;  %9195 = vset.pattern.permute.xlu1 %v16424_v28  ;;  %v16480_v46 = vld [vmem:[#allocation10_spill] sm:$0xff]  ;;  %v2606_v8 = vmul.f32 %v10987_v13, %v16486_v14 }
 0x323   : > { %4218 = vperm.xlu1 %9195, %v16480_v46   ;;  %v2378_v52 = vadd.f32 %v2346_v61, %v2122_v38  ;;  %v2126_v21 = vadd.f32 %v2094_v42, %v1870_v48  ;;  %v16491_v61 = vld [vmem:[#allocation248_spill] sm:$0xff]  ;;  %v11119_v42 = vrot.slane %v10845_v47, %v10774_v18  ;;  %v3118_v48 = vmul.f32 %v11017_v1, %v11050_v12 }
 0x324   : > { %v2862_v36 = vmul.f32 %v10998_v20, %v16491_v61  ;;  %v16494_v20 = vld [vmem:[#allocation9_spill] sm:$0xff]  ;;  %v16506_v61 = vld [vmem:[#allocation128_spill] sm:$0xff] }
 0x325   : > { %3550 = vperm.xlu0 %9350, %v9998_v3   ;;  %v11097_v56 = vpop.permute.xlu0 %4802  ;;  %v11101_v22 = vpop.permute.xlu1 %3698  ;;  %v2634_v7 = vadd.f32 %v2602_v27, %v2378_v52  ;;  %v2382_v35 = vadd.f32 %v2350_v34, %v2126_v21  ;;  %v16493_v52 = vmov 8   ;;  %v16523_v3 = vld [vmem:[#allocation140_spill] sm:$0xff] }
 0x326   : > { %16482 = vst [vmem:[#allocation270_spill] sm:$0xff] %v11097_v56  ;;  %16484 = vst [vmem:[#allocation304_spill] sm:$0xff] %v11101_v22  ;;  %v3883_v39 = vmul.f32 %v3824_v19, %v11101_v22 }
 0x327   : > { %9196 = vset.pattern.permute.xlu1 %v16329_v32  ;;  %v2890_v24 = vadd.f32 %v2858_v58, %v2634_v7  ;;  %v2638_v27 = vadd.f32 %v2606_v8, %v2382_v35 }
 0x328   : > { %v11109_v56 = vadd.f32 %v3883_v39, %v3659_v41  ;;  %2710 = vperm.xlu1 %9196, %v16488_v57   ;;  %v3370_v39 = vmul.f32 %v10868_v17, %v10882_v62 }
 0x329   : > { %3554 = vperm.xlu0 %9350, %v16489_v26   ;;  %v2894_v58 = vadd.f32 %v2862_v36, %v2638_v27 }
 0x32a   : > { %16487 = vst [vmem:[#allocation305_spill] sm:$0xff] %v11109_v56  ;;  %v11113_v38 = vpop.permute.xlu0 %2926  ;;  %v11121_v13 = vpop.permute.xlu1 %4202 }
 0x32b   : > { %16490 = vst [vmem:[#allocation12_spill] sm:$0xff] %v11113_v38  ;;  %16492 = vst [vmem:[#allocation306_spill] sm:$0xff] %v11121_v13  ;;  %v3114_v41 = vmul.f32 %v10850_v44, %v11113_v38  ;;  %v3626_v44 = vmul.f32 %v11119_v42, %v10926_v16  ;;  %v3150_v8 = vadd.f32 %v3118_v48, %v2894_v58  ;;  %v16501_v58 = vmov 14   ;;  %v16509_v38 = vld [vmem:[#allocation39_spill] sm:$0xff]  ;;  %v16515_v13 = vld [vmem:[#allocation250_spill] sm:$0xff] }
 0x32c   : > { %9197 = vset.pattern.permute.xlu1 %v16493_v52  ;;  %v847_v4 = vmul.f32 0.01, %v16509_v38 }
 0x32d   : > { %v3146_v34 = vadd.f32 %v3114_v41, %v2890_v24  ;;  %9353 = vset.pattern.permute.xlu0 %v16396_v2  ;;  %3214 = vperm.xlu1 %9197, %v9918_v9   ;;  %v16498_v41 = vld [vmem:[#allocation40_spill] sm:$0xff] }
 0x32e   : > { %4470 = vperm.xlu0 %9353, %v16494_v20   ;;  %v11133_v7 = vpop.permute.xlu0 %2958  ;;  %v846_v36 = vmul.f32 0.01, %v16498_v41 }
 0x32f   : > { %16495 = vst [vmem:[#allocation307_spill] sm:$0xff] %v11133_v7  ;;  %v3402_v21 = vadd.f32 %v3370_v39, %v3146_v34  ;;  %v11137_v17 = vpop.permute.xlu1 %3198 }
 0x330   : > { %16496 = vst [vmem:[#allocation308_spill] sm:$0xff] %v11137_v17  ;;  %v3374_v1 = vmul.f32 %v11022_v45, %v11137_v17  ;;  %v878_v34 = vmax.f32 %v16498_v41, %v846_v36  ;;  %v16504_v41 = vld [vmem:[#allocation108_spill] sm:$0xff] }
 0x331   : > { %v11141_v24 = vadd.f32 %v3626_v44, %v3402_v21  ;;  %9198 = vset.pattern.permute.xlu1 %v16424_v28 }
 0x332   : > { %4474 = vperm.xlu0 %9353, %v16480_v46   ;;  %v11145_v35 = vpop.permute.xlu0 %2962  ;;  %v11148_v27 = vadd.f32 %v3374_v1, %v3150_v8  ;;  %4222 = vperm.xlu1 %9198, %v9922_v11   ;;  %v1528_v21 = vrot.slane %v878_v34, %v10774_v18  ;;  %v1784_v8 = vrot.slane %v878_v34, %v10776_v50 }
 0x333   : > { %16497 = vst [vmem:[#allocation309_spill] sm:$0xff] %v11145_v35  ;;  %v1304_v17 = vrot.slane %v878_v34, %v10772_v54  ;;  %v2296_v22 = vrot.slane %v878_v34, %v10797_v59  ;;  %v2808_v35 = vrot.slane %v878_v34, %v10822_v5 }
 0x334   : > { %v11151_v39 = vpop.permute.xlu1 %3702  ;;  %v1584_v36 = vmul.f32 %v1528_v21, %v16504_v41  ;;  %v1840_v14 = vmul.f32 %v1784_v8, %v16506_v61 }
 0x335   : > { %16499 = vst [vmem:[#allocation40_spill] sm:$0xff] %v11151_v39  ;;  %v3884_v48 = vmul.f32 %v3824_v19, %v11151_v39  ;;  %v2040_v39 = vrot.slane %v878_v34, %v10789_v63 }
 0x336   : > { %4494 = vperm.xlu0 %9353, %v9918_v9   ;;  %v11155_v45 = vpop.permute.xlu0 %2982  ;;  %9199 = vset.pattern.permute.xlu1 %v16501_v58 }
 0x337   : > { %16500 = vst [vmem:[#allocation310_spill] sm:$0xff] %v11155_v45  ;;  %v11160_v44 = vadd.f32 %v3884_v48, %v11070_v15  ;;  %4726 = vperm.xlu1 %9199, %v16494_v20   ;;  %v11175_v15 = vrot.slane %v11002_v40, %v10774_v18  ;;  %v16505_v48 = vld [vmem:[#allocation74_spill] sm:$0xff]  ;;  %v2096_v37 = vmul.f32 %v2040_v39, %v16510_v33 }
 0x338   : > { %v1360_v12 = vmul.f32 %v1304_v17, %v16505_v48  ;;  %v16511_v45 = vld [vmem:[#allocation190_spill] sm:$0xff]  ;;  %v11203_v33 = vmax.f32 %v16509_v38, %v847_v4  ;;  %v2864_v20 = vmul.f32 %v2808_v35, %v16515_v13  ;;  %v16520_v13 = vld [vmem:[#allocation23_spill] sm:$0xff] }
 0x339   : > { %v11165_v1 = vpop.permute.xlu1 %2946  ;;  %v2352_v56 = vmul.f32 %v2296_v22, %v16511_v45 }
 0x33a   : > { %16502 = vst [vmem:[#allocation311_spill] sm:$0xff] %v11165_v1  ;;  %4498 = vperm.xlu0 %9353, %v16444_v53   ;;  %v11168_v19 = vpop.permute.xlu0 %2986  ;;  %v1616_v41 = vadd.f32 %v1584_v36, %v1360_v12  ;;  %v3320_v4 = vrot.slane %v11203_v33, %v10772_v54 }
 0x33b   : > { %16503 = vst [vmem:[#allocation312_spill] sm:$0xff] %v11168_v19  ;;  %9200 = vset.pattern.permute.xlu1 %v16360_v0  ;;  %v2552_v19 = vrot.slane %v878_v34, %v10820_v31 }
 0x33c   : > { %3466 = vperm.xlu1 %9200, %v9946_v55   ;;  %v1872_v48 = vadd.f32 %v1840_v14, %v1616_v41  ;;  %v16513_v41 = vld [vmem:[#allocation240_spill] sm:$0xff] }
 0x33e   : > { %4518 = vperm.xlu0 %9353, %v16449_v51   ;;  %v11183_v16 = vpop.permute.xlu0 %3006  ;;  %v11185_v62 = vpop.permute.xlu1 %3450  ;;  %v2128_v14 = vadd.f32 %v2096_v37, %v1872_v48  ;;  %v16517_v37 = vld [vmem:[#allocation274_spill] sm:$0xff]  ;;  %v16518_v48 = vld [vmem:[#allocation96_spill] sm:$0xff] }
 0x33f   : > { %16507 = vst [vmem:[#allocation313_spill] sm:$0xff] %v11183_v16  ;;  %16508 = vst [vmem:[#allocation314_spill] sm:$0xff] %v11185_v62  ;;  %v3629_v61 = vmul.f32 %v11175_v15, %v11185_v62  ;;  %v2608_v62 = vmul.f32 %v2552_v19, %v16513_v41  ;;  %v3064_v38 = vrot.slane %v878_v34, %v16517_v37 }
 0x340   : > { %9201 = vset.pattern.permute.xlu1 %v16451_v23  ;;  %v2384_v45 = vadd.f32 %v2352_v56, %v2128_v14  ;;  %v11229_v34 = vrot.slane %v10913_v25, %v10789_v63 }
 0x341   : > { %v11196_v12 = vadd.f32 %v3629_v61, %v11042_v30  ;;  %3970 = vperm.xlu1 %9201, %v9930_v29  }
 0x342   : > { %4522 = vperm.xlu0 %9353, %v16452_v43   ;;  %v11200_v36 = vpop.permute.xlu0 %3010  ;;  %v2640_v61 = vadd.f32 %v2608_v62, %v2384_v45  ;;  %v1839_v62 = vmul.f32 %v1784_v8, %v16523_v3  ;;  %v16524_v45 = vmov 7   ;;  %16525 = vst [vmem:[#allocation319_spill] sm:$0xff] %v11229_v34 }
 0x343   : > { %16512 = vst [vmem:[#allocation39_spill] sm:$0xff] %v11200_v36  ;;  %v11206_v16 = vpop.permute.xlu1 %4458  ;;  %v1583_v36 = vmul.f32 %v1528_v21, %v16518_v48  ;;  %v16526_v21 = vld [vmem:[#allocation281_spill] sm:$0xff] }
 0x344   : > { %16514 = vst [vmem:[#allocation315_spill] sm:$0xff] %v11206_v16  ;;  %v2896_v56 = vadd.f32 %v2864_v20, %v2640_v61  ;;  %v3376_v48 = vmul.f32 %v3320_v4, %v16526_v21  ;;  %v16527_v61 = vld [vmem:[#allocation158_spill] sm:$0xff] }
 0x345   : > { %9202 = vset.pattern.permute.xlu1 %v16455_v60 }
 0x346   : > { %4546 = vperm.xlu0 %9353, %v16460_v49   ;;  %v11211_v30 = vpop.permute.xlu0 %3034  ;;  %4978 = vperm.xlu1 %9202, %v16433_v10  }
 0x347   : > { %16516 = vst [vmem:[#allocation316_spill] sm:$0xff] %v11211_v30  ;;  %v16522_v30 = vld [vmem:[#allocation72_spill] sm:$0xff] }
 0x348   : > { %v11218_v41 = vpop.permute.xlu1 %2950  ;;  %v1359_v16 = vmul.f32 %v1304_v17, %v16522_v30  ;;  %v16531_v30 = vld [vmem:[#allocation206_spill] sm:$0xff] }
 0x349   : > { %16519 = vst [vmem:[#allocation317_spill] sm:$0xff] %v11218_v41  ;;  %v3120_v14 = vmul.f32 %v3064_v38, %v11218_v41  ;;  %v2095_v41 = vmul.f32 %v2040_v39, %v16527_v61  ;;  %v2351_v60 = vmul.f32 %v2296_v22, %v16531_v30 }
 0x34a   : > { %4550 = vperm.xlu0 %9353, %v16520_v13   ;;  %v11222_v49 = vpop.permute.xlu0 %3038  ;;  %9203 = vset.pattern.permute.xlu1 %v16524_v45  ;;  %v1615_v20 = vadd.f32 %v1583_v36, %v1359_v16  ;;  %v16532_v16 = vld [vmem:[#allocation220_spill] sm:$0xff] }
 0x34b   : > { %16521 = vst [vmem:[#allocation318_spill] sm:$0xff] %v11222_v49  ;;  %v3152_v7 = vadd.f32 %v3120_v14, %v2896_v56  ;;  %2966 = vperm.xlu1 %9203, %v16488_v57   ;;  %v16529_v49 = vld [vmem:[#allocation32_spill] sm:$0xff]  ;;  %v2607_v36 = vmul.f32 %v2552_v19, %v16532_v16  ;;  %v16533_v14 = vld [vmem:[#allocation14_spill] sm:$0xff]  ;;  %v3119_v19 = vmul.f32 %v3064_v38, %v11165_v1 }
 0x34c   : > { %v1871_v3 = vadd.f32 %v1839_v62, %v1615_v20  ;;  %v2863_v62 = vmul.f32 %v2808_v35, %v11077_v6  ;;  %v16538_v35 = vld [vmem:[#allocation6_spill] sm:$0xff] }
 0x34d   : > { %v11234_v13 = vpop.permute.xlu1 %3958  ;;  %v11239_v8 = vadd.f32 %v3376_v48, %v3152_v7  ;;  %v11252_v7 = vrot.slane %v10845_v47, %v10776_v50  ;;  %v16534_v48 = vld [vmem:[#allocation27_spill] sm:$0xff] }
 0x34e   : > { %16528 = vst [vmem:[#allocation320_spill] sm:$0xff] %v11234_v13  ;;  %4554 = vperm.xlu0 %9353, %v16529_v49   ;;  %v11237_v17 = vpop.permute.xlu0 %3042  ;;  %v4140_v21 = vmul.f32 %v11229_v34, %v11234_v13  ;;  %v2127_v56 = vadd.f32 %v2095_v41, %v1871_v3  ;;  %v16553_v13 = vld [vmem:[#allocation76_spill] sm:$0xff] }
 0x34f   : > { %16530 = vst [vmem:[#allocation321_spill] sm:$0xff] %v11237_v17  ;;  %9204 = vset.pattern.permute.xlu1 %v16451_v23  ;;  %v16558_v34 = vld [vmem:[#allocation160_spill] sm:$0xff] }
 0x350   : > { %v11247_v39 = vadd.f32 %v4140_v21, %v11160_v44  ;;  %3974 = vperm.xlu1 %9204, %v16533_v14   ;;  %v2383_v22 = vadd.f32 %v2351_v60, %v2127_v56 }
 0x352   : > { %4566 = vperm.xlu0 %9353, %v16534_v48   ;;  %v11256_v20 = vpop.permute.xlu1 %4462  ;;  %v2639_v44 = vadd.f32 %v2607_v36, %v2383_v22  ;;  %v16541_v22 = vld [vmem:[#allocation20_spill] sm:$0xff] }
 0x353   : > { %16535 = vst [vmem:[#allocation14_spill] sm:$0xff] %v11256_v20  ;;  %v11258_v17 = vpop.permute.xlu0 %3694 }
 0x354   : > { %16536 = vst [vmem:[#allocation322_spill] sm:$0xff] %v11258_v17  ;;  %v3882_v3 = vmul.f32 %v11252_v7, %v11258_v17  ;;  %9205 = vset.pattern.permute.xlu1 %v16396_v2  ;;  %v2895_v60 = vadd.f32 %v2863_v62, %v2639_v44  ;;  %v16542_v62 = vld [vmem:[#allocation7_spill] sm:$0xff] }
 0x355   : > { %4478 = vperm.xlu1 %9205, %v9922_v11  }
 0x356   : > { %v11265_v41 = vadd.f32 %v3882_v3, %v11141_v24  ;;  %9358 = vset.pattern.permute.xlu0 %v16451_v23  ;;  %v3151_v6 = vadd.f32 %v3119_v19, %v2895_v60  ;;  %v11278_v24 = vrot.slane %v11002_v40, %v10776_v50 }
 0x357   : > { %3946 = vperm.xlu0 %9358, %v16538_v35   ;;  %v11270_v21 = vpop.permute.xlu0 %3718  ;;  %v11272_v56 = vpop.permute.xlu1 %3202 }
 0x358   : > { %16537 = vst [vmem:[#allocation323_spill] sm:$0xff] %v11265_v41  ;;  %16539 = vst [vmem:[#allocation6_spill] sm:$0xff] %v11270_v21  ;;  %v3375_v36 = vmul.f32 %v3320_v4, %v11272_v56  ;;  %v16545_v4 = vld [vmem:[#allocation45_spill] sm:$0xff] }
 0x359   : > { %16540 = vst [vmem:[#allocation324_spill] sm:$0xff] %v11272_v56  ;;  %9206 = vset.pattern.permute.xlu1 %v16329_v32  ;;  %v848_v60 = vmul.f32 0.01, %v16545_v4 }
 0x35a   : > { %v11280_v38 = vadd.f32 %v3375_v36, %v3151_v6  ;;  %2714 = vperm.xlu1 %9206, %v16541_v22  }
 0x35b   : > { %3950 = vperm.xlu0 %9358, %v16542_v62   ;;  %v11284_v3 = vpop.permute.xlu0 %3722  ;;  %v880_v56 = vmax.f32 %v16545_v4, %v848_v60  ;;  %v16552_v4 = vld [vmem:[#allocation98_spill] sm:$0xff] }
 0x35c   : > { %16543 = vst [vmem:[#allocation20_spill] sm:$0xff] %v11284_v3  ;;  %v11286_v44 = vpop.permute.xlu1 %3706 }
 0x35d   : > { %16544 = vst [vmem:[#allocation7_spill] sm:$0xff] %v11286_v44  ;;  %v3885_v19 = vmul.f32 %v11278_v24, %v11286_v44  ;;  %v11307_v16 = vrot.slane %v880_v56, %v10774_v18  ;;  %v11321_v61 = vrot.slane %v880_v56, %v10776_v50  ;;  %v11324_v44 = vrot.slane %v880_v56, %v10789_v63 }
 0x35e   : > { %9207 = vset.pattern.permute.xlu1 %v16493_v52  ;;  %v11341_v41 = vrot.slane %v880_v56, %v10797_v59 }
 0x35f   : > { %3954 = vperm.xlu0 %9358, %v16433_v10   ;;  %v11293_v35 = vpop.permute.xlu0 %3742  ;;  %v11296_v6 = vadd.f32 %v3885_v19, %v11196_v12  ;;  %3218 = vperm.xlu1 %9207, %v16444_v53   ;;  %v11311_v12 = vrot.slane %v880_v56, %v10772_v54  ;;  %v1585_v60 = vmul.f32 %v11307_v16, %v16552_v4  ;;  %v16556_v4 = vld [vmem:[#allocation43_spill] sm:$0xff] }
 0x360   : > { %16546 = vst [vmem:[#allocation45_spill] sm:$0xff] %v11293_v35  ;;  %v849_v20 = vmul.f32 0.01, %v16556_v4  ;;  %v2097_v49 = vmul.f32 %v11324_v44, %v16558_v34 }
 0x361   : > { %16547 = vst [vmem:[#allocation325_spill] sm:$0xff] %v11296_v6  ;;  %v11299_v36 = vpop.permute.xlu1 %4714  ;;  %v1361_v17 = vmul.f32 %v11311_v12, %v16553_v13  ;;  %v11344_v13 = vrot.slane %v880_v56, %v10820_v31 }
 0x362   : > { %16548 = vst [vmem:[#allocation326_spill] sm:$0xff] %v11299_v36  ;;  %v16560_v36 = vld [vmem:[#allocation208_spill] sm:$0xff]  ;;  %v11361_v34 = vmax.f32 %v16556_v4, %v849_v20 }
 0x363   : > { %3962 = vperm.xlu0 %9358, %v16480_v46   ;;  %v11303_v1 = vpop.permute.xlu0 %3746  ;;  %9208 = vset.pattern.permute.xlu1 %v16424_v28  ;;  %v1617_v48 = vadd.f32 %v1585_v60, %v1361_v17  ;;  %v2353_v47 = vmul.f32 %v11341_v41, %v16560_v36  ;;  %v11354_v17 = vrot.slane %v880_v56, %v10822_v5  ;;  %v16564_v5 = vld [vmem:[#allocation252_spill] sm:$0xff] }
 0x364   : > { %16549 = vst [vmem:[#allocation327_spill] sm:$0xff] %v11303_v1  ;;  %4226 = vperm.xlu1 %9208, %v9930_v29   ;;  %v16554_v1 = vld [vmem:[#allocation142_spill] sm:$0xff]  ;;  %v11381_v20 = vrot.slane %v11361_v34, %v10772_v54 }
 0x365   : > { %v1841_v35 = vmul.f32 %v11321_v61, %v16554_v1  ;;  %v11349_v1 = vrot.slane %v10913_v25, %v10797_v59  ;;  %v2865_v32 = vmul.f32 %v11354_v17, %v16564_v5  ;;  %v16565_v25 = vmov 10  }
 0x366   : > { %v11313_v19 = vpop.permute.xlu1 %2702 }
 0x367   : > { %16550 = vst [vmem:[#allocation328_spill] sm:$0xff] %v11313_v19  ;;  %3982 = vperm.xlu0 %9358, %v9918_v9   ;;  %v11316_v30 = vpop.permute.xlu0 %3766  ;;  %16559 = vst [vmem:[#allocation331_spill] sm:$0xff] %v11349_v1 }
 0x368   : > { %16551 = vst [vmem:[#allocation329_spill] sm:$0xff] %v11316_v30  ;;  %9209 = vset.pattern.permute.xlu1 %v16501_v58 }
 0x369   : > { %4730 = vperm.xlu1 %9209, %v16480_v46   ;;  %v16562_v46 = vld [vmem:[#allocation222_spill] sm:$0xff] }
 0x36a   : > { %v2609_v59 = vmul.f32 %v11344_v13, %v16562_v46 }
 0x36b   : > { %3986 = vperm.xlu0 %9358, %v16444_v53   ;;  %v11333_v30 = vpop.permute.xlu0 %3770  ;;  %v11336_v6 = vpop.permute.xlu1 %3710 }
 0x36c   : > { %16555 = vst [vmem:[#allocation330_spill] sm:$0xff] %v11333_v30  ;;  %16557 = vst [vmem:[#allocation43_spill] sm:$0xff] %v11336_v6  ;;  %v1873_v30 = vadd.f32 %v1841_v35, %v1617_v48 }
 0x36d   : > { %9210 = vset.pattern.permute.xlu1 %v16493_v52 }
 0x36e   : > { %3222 = vperm.xlu1 %9210, %v16488_v57   ;;  %v2129_v3 = vadd.f32 %v2097_v49, %v1873_v30 }
 0x36f   : > { %4006 = vperm.xlu0 %9358, %v16449_v51   ;;  %v11358_v60 = vpop.permute.xlu0 %3786 }
 0x370   : > { %16561 = vst [vmem:[#allocation332_spill] sm:$0xff] %v11358_v60  ;;  %v11365_v48 = vpop.permute.xlu1 %4214  ;;  %v2385_v36 = vadd.f32 %v2353_v47, %v2129_v3  ;;  %v11384_v47 = vrot.slane %v880_v56, %v16517_v37 }
 0x371   : > { %16563 = vst [vmem:[#allocation333_spill] sm:$0xff] %v11365_v48  ;;  %v4396_v35 = vmul.f32 %v11349_v1, %v11365_v48  ;;  %v16574_v48 = vld [vmem:[#allocation282_spill] sm:$0xff] }
 0x372   : > { %9211 = vset.pattern.permute.xlu1 %v16565_v25  ;;  %v2641_v30 = vadd.f32 %v2609_v59, %v2385_v36  ;;  %v3576_v59 = vrot.slane %v11203_v33, %v10774_v18  ;;  %v16570_v36 = vld [vmem:[#allocation284_spill] sm:$0xff] }
 0x373   : > { %4010 = vperm.xlu0 %9358, %v16452_v43   ;;  %v11373_v60 = vpop.permute.xlu0 %3798  ;;  %v11376_v49 = vadd.f32 %v4396_v35, %v11247_v39  ;;  %3726 = vperm.xlu1 %9211, %v9918_v9   ;;  %v3377_v35 = vmul.f32 %v11381_v20, %v16570_v36 }
 0x374   : > { %16566 = vst [vmem:[#allocation334_spill] sm:$0xff] %v11373_v60  ;;  %v2897_v4 = vadd.f32 %v2865_v32, %v2641_v30  ;;  %v16568_v60 = vld [vmem:[#allocation21_spill] sm:$0xff] }
 0x375   : > { %v11386_v3 = vpop.permute.xlu1 %2954 }
 0x376   : > { %16567 = vst [vmem:[#allocation335_spill] sm:$0xff] %v11386_v3  ;;  %v3121_v5 = vmul.f32 %v11384_v47, %v11386_v3 }
 0x377   : > { %4030 = vperm.xlu0 %9358, %v16568_v60   ;;  %v11391_v39 = vpop.permute.xlu0 %3806  ;;  %9212 = vset.pattern.permute.xlu1 %v16501_v58 }
 0x378   : > { %16569 = vst [vmem:[#allocation336_spill] sm:$0xff] %v11391_v39  ;;  %v3153_v56 = vadd.f32 %v3121_v5, %v2897_v4  ;;  %4734 = vperm.xlu1 %9212, %v9922_v11   ;;  %v16573_v5 = vld [vmem:[#allocation8_spill] sm:$0xff] }
 0x379   : > { %v3881_v4 = vmul.f32 %v11252_v7, %v16573_v5 }
 0x37a   : > { %v11399_v46 = vpop.permute.xlu1 %3458  ;;  %v11402_v32 = vadd.f32 %v3377_v35, %v3153_v56  ;;  %v16575_v56 = vld [vmem:[#allocation31_spill] sm:$0xff] }
 0x37b   : > { %16571 = vst [vmem:[#allocation337_spill] sm:$0xff] %v11399_v46  ;;  %4066 = vperm.xlu0 %9358, %v16489_v26   ;;  %v3631_v30 = vmul.f32 %v3576_v59, %v11399_v46 }
 0x37c   : > { %v11405_v39 = vpop.permute.xlu0 %3434  ;;  %9213 = vset.pattern.permute.xlu1 %v16524_v45 }
 0x37d   : > { %16572 = vst [vmem:[#allocation338_spill] sm:$0xff] %v11405_v39  ;;  %v3625_v3 = vmul.f32 %v11119_v42, %v11405_v39  ;;  %v11411_v36 = vadd.f32 %v3631_v30, %v11280_v38  ;;  %2970 = vperm.xlu1 %9213, %v16541_v22   ;;  %v3886_v38 = vmul.f32 %v11278_v24, %v11336_v6 }
 0x37f   : > { %v3657_v35 = vadd.f32 %v3625_v3, %v16574_v48  ;;  %4070 = vperm.xlu0 %9358, %v16575_v56   ;;  %v11418_v46 = vpop.permute.xlu1 %4466  ;;  %v5226_v3 = vld [vmem:[%s15391_s4 + $0x8] sm:$0xff] }
 0x380   : > { %16576 = vst [vmem:[#allocation282_spill] sm:$0xff] %v11418_v46  ;;  %v11420_v60 = vpop.permute.xlu0 %3454 }
 0x381   : > { %16577 = vst [vmem:[#allocation339_spill] sm:$0xff] %v11420_v60  ;;  %v3630_v1 = vmul.f32 %v11175_v15, %v11420_v60  ;;  %v11424_v42 = vadd.f32 %v3881_v4, %v3657_v35  ;;  %9214 = vset.pattern.permute.xlu1 %v16451_v23  ;;  %v5225_v15 = vld [vmem:[%s15391_s4] sm:$0xff]  ;;  %v5228_v4 = vld [vmem:[%s15391_s4 + $0x18] sm:$0xff]  ;;  %v3832_v35 = vrot.slane %v11203_v33, %v10776_v50 }
 0x382   : > { %3978 = vperm.xlu1 %9214, %v9946_v55  }
 0x383   : > { %v3662_v7 = vadd.f32 %v3630_v1, %v11148_v27  ;;  %9366 = vset.pattern.permute.xlu0 %v16424_v28  ;;  %v9045_v27 = vpack.c.bf16 %v5226_v3, %v5225_v15  ;;  %v11465_v3 = vrot.slane %v11002_v40, %v10789_v63  ;;  %v3888_v6 = vmul.f32 %v3832_v35, %v11270_v21 }
 0x384   : > { %4206 = vperm.xlu0 %9366, %v16542_v62   ;;  %v11433_v48 = vpop.permute.xlu0 %3470  ;;  %v11441_v30 = vpop.permute.xlu1 %4970  ;;  %v5227_v62 = vld [vmem:[%s15391_s4 + $0x10] sm:$0xff] }
 0x385   : > { %16578 = vst [vmem:[#allocation340_spill] sm:$0xff] %v11433_v48  ;;  %16579 = vst [vmem:[#allocation341_spill] sm:$0xff] %v11441_v30  ;;  %v3918_v24 = vadd.f32 %v3886_v38, %v3662_v7  ;;  %9046 = vmatprep.subr.bf16.mxu1 %v9045_v27  ;;  %v9049_v38 = vpack.c.bf16 %v5228_v4, %v5227_v62  ;;  %v16584_v62 = vld [vmem:[#allocation13_spill] sm:$0xff] }
 0x386   : > { %9215 = vset.pattern.permute.xlu1 %v16396_v2  ;;  %9048 = vmatpush3.bf16.msra.mxu1 %v9045_v27  ;;  %16583 = vst [vmem:[#allocation345_spill] sm:$0xff] %v11465_v3 }
 0x387   : > { %4482 = vperm.xlu1 %9215, %v9930_v29   ;;  %9050 = vmatprep.subr.bf16.mxu1 %v9049_v38 }
 0x388   : > { %4210 = vperm.xlu0 %9366, %v16433_v10   ;;  %v11446_v1 = vpop.permute.xlu0 %3474 }
 0x389   : > { %16580 = vst [vmem:[#allocation342_spill] sm:$0xff] %v11446_v1  ;;  %v11456_v7 = vpop.permute.xlu1 %3462 }
 0x38a   : > { %16581 = vst [vmem:[#allocation343_spill] sm:$0xff] %v11456_v7  ;;  %v3632_v15 = vmul.f32 %v3576_v59, %v11456_v7  ;;  %9052 = vmatpush3.bf16.msra.mxu1 %v9049_v38 }
 0x38b   : > { %9216 = vset.pattern.permute.xlu1 %v16524_v45 }
 0x38c   : > { %4230 = vperm.xlu0 %9366, %v16533_v14   ;;  %v11461_v10 = vpop.permute.xlu0 %3494  ;;  %v3664_v27 = vadd.f32 %v3632_v15, %v11239_v8  ;;  %2974 = vperm.xlu1 %9216, %v16584_v62  }
 0x38d   : > { %16582 = vst [vmem:[#allocation344_spill] sm:$0xff] %v11461_v10  ;;  %v16597_v10 = vld [vmem:[#allocation130_spill] sm:$0xff] }
 0x38e   : > { %v11470_v4 = vpop.permute.xlu1 %3966  ;;  %v11472_v59 = vadd.f32 %v3888_v6, %v3664_v27  ;;  %v16589_v6 = vld [vmem:[#allocation22_spill] sm:$0xff] }
 0x38f   : > { %16585 = vst [vmem:[#allocation346_spill] sm:$0xff] %v11470_v4  ;;  %v4142_v7 = vmul.f32 %v11465_v3, %v11470_v4  ;;  %v16594_v4 = vld [vmem:[#allocation110_spill] sm:$0xff]  ;;  %v16599_v3 = vld [vmem:[#allocation176_spill] sm:$0xff] }
 0x390   : > { %4234 = vperm.xlu0 %9366, %v9946_v55   ;;  %v11477_v60 = vpop.permute.xlu0 %3498  ;;  %9217 = vset.pattern.permute.xlu1 %v16360_v0  ;;  %v1586_v39 = vmul.f32 %v11307_v16, %v16594_v4  ;;  %v16600_v16 = vld [vmem:[#allocation28_spill] sm:$0xff] }
 0x391   : > { %16586 = vst [vmem:[#allocation347_spill] sm:$0xff] %v11477_v60  ;;  %v11480_v5 = vadd.f32 %v4142_v7, %v3918_v24  ;;  %3478 = vperm.xlu1 %9217, %v16488_v57   ;;  %v16592_v24 = vmov 15   ;;  %v16593_v7 = vld [vmem:[#allocation67_spill] sm:$0xff] }
 0x392   : > { %v1362_v21 = vmul.f32 %v11311_v12, %v16593_v7  ;;  %v2098_v12 = vmul.f32 %v11324_v44, %v16599_v3  ;;  %v16605_v3 = vld [vmem:[#allocation23_spill] sm:$0xff] }
 0x393   : > { %v11483_v8 = vpop.permute.xlu1 %4974 }
 0x394   : > { %16587 = vst [vmem:[#allocation348_spill] sm:$0xff] %v11483_v8  ;;  %4254 = vperm.xlu0 %9366, %v16584_v62   ;;  %v11486_v38 = vpop.permute.xlu0 %3518  ;;  %v1842_v8 = vmul.f32 %v11321_v61, %v16597_v10  ;;  %v1618_v26 = vadd.f32 %v1586_v39, %v1362_v21  ;;  %v16604_v39 = vld [vmem:[#allocation241_spill] sm:$0xff] }
 0x395   : > { %16588 = vst [vmem:[#allocation349_spill] sm:$0xff] %v11486_v38  ;;  %9218 = vset.pattern.permute.xlu1 %v16396_v2  ;;  %v16595_v38 = vld [vmem:[#allocation19_spill] sm:$0xff]  ;;  %v2610_v44 = vmul.f32 %v11344_v13, %v16604_v39 }
 0x396   : > { %4486 = vperm.xlu1 %9218, %v16533_v14   ;;  %v1874_v61 = vadd.f32 %v1842_v8, %v1618_v26  ;;  %v16608_v8 = vld [vmem:[#allocation33_spill] sm:$0xff] }
 0x398   : > { %4258 = vperm.xlu0 %9366, %v16589_v6   ;;  %v11491_v15 = vpop.permute.xlu0 %3522  ;;  %v11493_v27 = vpop.permute.xlu1 %2706  ;;  %v2130_v21 = vadd.f32 %v2098_v12, %v1874_v61  ;;  %v16610_v61 = vld [vmem:[#allocation307_spill] sm:$0xff] }
 0x399   : > { %16590 = vst [vmem:[#allocation350_spill] sm:$0xff] %v11491_v15  ;;  %16591 = vst [vmem:[#allocation351_spill] sm:$0xff] %v11493_v27 }
 0x39a   : > { %9219 = vset.pattern.permute.xlu1 %v16592_v24 }
 0x39b   : > { %4990 = vperm.xlu1 %9219, %v9922_v11  }
 0x39c   : > { %4278 = vperm.xlu0 %9366, %v16595_v38   ;;  %v11502_v60 = vpop.permute.xlu0 %3530 }
 0x39d   : > { %16596 = vst [vmem:[#allocation352_spill] sm:$0xff] %v11502_v60  ;;  %v11506_v15 = vpop.permute.xlu1 %3714  ;;  %v16602_v60 = vld [vmem:[#allocation192_spill] sm:$0xff] }
 0x39e   : > { %16598 = vst [vmem:[#allocation353_spill] sm:$0xff] %v11506_v15  ;;  %v3887_v46 = vmul.f32 %v3832_v35, %v11506_v15  ;;  %v2354_v10 = vmul.f32 %v11341_v41, %v16602_v60  ;;  %v16617_v60 = vld [vmem:[#allocation29_spill] sm:$0xff]  ;;  %v16618_v15 = vld [vmem:[#allocation267_spill] sm:$0xff] }
 0x39f   : > { %9220 = vset.pattern.permute.xlu1 %v16493_v52 }
 0x3a0   : > { %4282 = vperm.xlu0 %9366, %v16600_v16   ;;  %v11513_v11 = vpop.permute.xlu0 %3534  ;;  %v11516_v4 = vadd.f32 %v3887_v46, %v11411_v36  ;;  %3226 = vperm.xlu1 %9220, %v16541_v22   ;;  %v2386_v46 = vadd.f32 %v2354_v10, %v2130_v21  ;;  %v2866_v36 = vmul.f32 %v11354_v17, %v11313_v19  ;;  %v16611_v21 = vld [vmem:[#allocation289_spill] sm:$0xff] }
 0x3a1   : > { %16601 = vst [vmem:[#allocation354_spill] sm:$0xff] %v11513_v11  ;;  %v3122_v10 = vmul.f32 %v11384_v47, %v16610_v61  ;;  %v11543_v17 = vrot.slane %v16611_v21, %v10820_v31  ;;  %v16616_v11 = vmov 6  }
 0x3a2   : > { %v11521_v35 = vpop.permute.xlu1 %4218  ;;  %v2642_v26 = vadd.f32 %v2610_v44, %v2386_v46  ;;  %v3580_v44 = vrot.slane %v11361_v34, %v10774_v18  ;;  %v16613_v46 = vld [vmem:[#allocation34_spill] sm:$0xff] }
 0x3a3   : > { %16603 = vst [vmem:[#allocation355_spill] sm:$0xff] %v11521_v35  ;;  %16612 = vst [vmem:[#allocation359_spill] sm:$0xff] %v11543_v17 }
 0x3a4   : > { %4294 = vperm.xlu0 %9366, %v16605_v3   ;;  %v11526_v7 = vpop.permute.xlu0 %3550  ;;  %9221 = vset.pattern.permute.xlu1 %v16565_v25  ;;  %v2898_v13 = vadd.f32 %v2866_v36, %v2642_v26  ;;  %v3634_v61 = vmul.f32 %v3580_v44, %v11433_v48 }
 0x3a5   : > { %16606 = vst [vmem:[#allocation356_spill] sm:$0xff] %v11526_v7  ;;  %3730 = vperm.xlu1 %9221, %v16444_v53  }
 0x3a6   : > { %v3154_v36 = vadd.f32 %v3122_v10, %v2898_v13  ;;  %v11563_v13 = vrot.slane %v11002_v40, %v16618_v15 }
 0x3a7   : > { %v11532_v41 = vpop.permute.xlu1 %2710 }
 0x3a8   : > { %16607 = vst [vmem:[#allocation357_spill] sm:$0xff] %v11532_v41  ;;  %4306 = vperm.xlu0 %9366, %v16608_v8   ;;  %v11535_v12 = vpop.permute.xlu0 %3554  ;;  %v11599_v8 = vrot.slane %v11361_v34, %v10776_v50 }
 0x3a9   : > { %16609 = vst [vmem:[#allocation358_spill] sm:$0xff] %v11535_v12  ;;  %9222 = vset.pattern.permute.xlu1 %v16501_v58 }
 0x3aa   : > { %4738 = vperm.xlu1 %9222, %v9930_v29  }
 0x3ac   : > { %4314 = vperm.xlu0 %9366, %v16613_v46   ;;  %v11548_v7 = vpop.permute.xlu1 %3214 }
 0x3ad   : > { %16614 = vst [vmem:[#allocation360_spill] sm:$0xff] %v11548_v7  ;;  %v11550_v12 = vpop.permute.xlu0 %4470  ;;  %v3378_v26 = vmul.f32 %v11381_v20, %v11548_v7 }
 0x3ae   : > { %16615 = vst [vmem:[#allocation361_spill] sm:$0xff] %v11550_v12  ;;  %v4652_v47 = vmul.f32 %v11543_v17, %v11550_v12  ;;  %9223 = vset.pattern.permute.xlu1 %v16616_v11  ;;  %v16630_v12 = vld [vmem:[#allocation10_spill] sm:$0xff] }
 0x3af   : > { %v3410_v19 = vadd.f32 %v3378_v26, %v3154_v36  ;;  %2726 = vperm.xlu1 %9223, %v16449_v51   ;;  %v16623_v26 = vld [vmem:[#allocation272_spill] sm:$0xff] }
 0x3b0   : > { %v4684_v39 = vadd.f32 %v4652_v47, %v11376_v49  ;;  %4318 = vperm.xlu0 %9366, %v16617_v60   ;;  %v11583_v47 = vrot.slane %v16611_v21, %v16623_v26  ;;  %v16626_v60 = vld [vmem:[#allocation9_spill] sm:$0xff]  ;;  %v16646_v21 = vld [vmem:[#allocation26_spill] sm:$0xff] }
 0x3b1   : > { %v11565_v10 = vpop.permute.xlu0 %4474  ;;  %v11567_v20 = vpop.permute.xlu1 %4222  ;;  %v11569_v7 = vadd.f32 %v3634_v61, %v3410_v19 }
 0x3b2   : > { %16619 = vst [vmem:[#allocation267_spill] sm:$0xff] %v11565_v10  ;;  %16620 = vst [vmem:[#allocation362_spill] sm:$0xff] %v11567_v20  ;;  %v4398_v48 = vmul.f32 %v11563_v13, %v11567_v20 }
 0x3b3   : > { %16621 = vst [vmem:[#allocation363_spill] sm:$0xff] %v11569_v7  ;;  %9224 = vset.pattern.permute.xlu1 %v16565_v25  ;;  %16624 = vst [vmem:[#allocation272_spill] sm:$0xff] %v11583_v47 }
 0x3b4   : > { %4326 = vperm.xlu0 %9366, %v16575_v56   ;;  %v11576_v49 = vadd.f32 %v4398_v48, %v11480_v5  ;;  %3734 = vperm.xlu1 %9224, %v16488_v57  }
 0x3b5   : > { %v11579_v36 = vpop.permute.xlu0 %4494 }
 0x3b6   : > { %16622 = vst [vmem:[#allocation364_spill] sm:$0xff] %v11579_v36  ;;  %v11585_v19 = vpop.permute.xlu1 %4726 }
 0x3b7   : > { %16625 = vst [vmem:[#allocation365_spill] sm:$0xff] %v11585_v19  ;;  %v4908_v61 = vmul.f32 %v11583_v47, %v11585_v19 }
 0x3b8   : > { %9370 = vset.pattern.permute.xlu0 %v16592_v24  ;;  %9225 = vset.pattern.permute.xlu1 %v16424_v28 }
 0x3b9   : > { %4982 = vperm.xlu0 %9370, %v16626_v60   ;;  %v11592_v5 = vpop.permute.xlu0 %4498  ;;  %v11594_v48 = vadd.f32 %v4908_v61, %v4684_v39  ;;  %4238 = vperm.xlu1 %9225, %v9918_v9   ;;  %v4088_v60 = vrot.slane %v11203_v33, %v10789_v63  ;;  %v16632_v39 = vld [vmem:[#allocation20_spill] sm:$0xff] }
 0x3ba   : > { %16627 = vst [vmem:[#allocation9_spill] sm:$0xff] %v11592_v5  ;;  %v3889_v61 = vmul.f32 %v11599_v8, %v16632_v39 }
 0x3bb   : > { %16628 = vst [vmem:[#allocation366_spill] sm:$0xff] %v11594_v48  ;;  %v11601_v20 = vpop.permute.xlu1 %3466 }
 0x3bc   : > { %16629 = vst [vmem:[#allocation367_spill] sm:$0xff] %v11601_v20  ;;  %v3633_v19 = vmul.f32 %v3580_v44, %v11601_v20 }
 0x3bd   : > { %4986 = vperm.xlu0 %9370, %v16630_v12   ;;  %v11605_v16 = vpop.permute.xlu0 %4518  ;;  %9226 = vset.pattern.permute.xlu1 %v16524_v45 }
 0x3be   : > { %16631 = vst [vmem:[#allocation10_spill] sm:$0xff] %v11605_v16  ;;  %v3665_v5 = vadd.f32 %v3633_v19, %v11402_v32  ;;  %2978 = vperm.xlu1 %9226, %v16589_v6   ;;  %v16636_v16 = vld [vmem:[#allocation49_spill] sm:$0xff]  ;;  %v16648_v6 = vld [vmem:[#allocation162_spill] sm:$0xff] }
 0x3bf   : > { %v850_v48 = vmul.f32 0.01, %v16636_v16 }
 0x3c0   : > { %v11614_v36 = vpop.permute.xlu1 %3970  ;;  %v11619_v12 = vadd.f32 %v3889_v61, %v3665_v5 }
 0x3c1   : > { %16633 = vst [vmem:[#allocation368_spill] sm:$0xff] %v11614_v36  ;;  %5006 = vperm.xlu0 %9370, %v9918_v9   ;;  %v11617_v44 = vpop.permute.xlu0 %4522  ;;  %v4143_v20 = vmul.f32 %v4088_v60, %v11614_v36  ;;  %v882_v5 = vmax.f32 %v16636_v16, %v850_v48  ;;  %v16642_v48 = vld [vmem:[#allocation99_spill] sm:$0xff] }
 0x3c2   : > { %16634 = vst [vmem:[#allocation369_spill] sm:$0xff] %v11617_v44  ;;  %16635 = vst [vmem:[#allocation370_spill] sm:$0xff] %v11619_v12  ;;  %9227 = vset.pattern.permute.xlu1 %v16360_v0 }
 0x3c3   : > { %v11625_v39 = vadd.f32 %v4143_v20, %v11516_v4  ;;  %3482 = vperm.xlu1 %9227, %v16541_v22   ;;  %v11640_v4 = vrot.slane %v882_v5, %v10774_v18  ;;  %v1312_v36 = vrot.slane %v882_v5, %v10772_v54  ;;  %v11652_v44 = vrot.slane %v882_v5, %v10776_v50 }
 0x3c4   : > { %v11670_v9 = vrot.slane %v882_v5, %v16618_v15 }
 0x3c5   : > { %5010 = vperm.xlu0 %9370, %v16444_v53   ;;  %v11629_v32 = vpop.permute.xlu0 %4546  ;;  %v11631_v19 = vpop.permute.xlu1 %4978 }
 0x3c6   : > { %16637 = vst [vmem:[#allocation49_spill] sm:$0xff] %v11629_v32  ;;  %16638 = vst [vmem:[#allocation371_spill] sm:$0xff] %v11631_v19  ;;  %v1587_v32 = vmul.f32 %v11640_v4, %v16642_v48 }
 0x3c7   : > { %9228 = vset.pattern.permute.xlu1 %v16396_v2  ;;  %v16643_v2 = vld [vmem:[#allocation78_spill] sm:$0xff] }
 0x3c8   : > { %4490 = vperm.xlu1 %9228, %v9946_v55   ;;  %v1363_v45 = vmul.f32 %v1312_v36, %v16643_v2  ;;  %v16644_v55 = vld [vmem:[#allocation144_spill] sm:$0xff]  ;;  %v11685_v2 = vrot.slane %v882_v5, %v16623_v26 }
 0x3c9   : > { %5030 = vperm.xlu0 %9370, %v16449_v51   ;;  %v11637_v61 = vpop.permute.xlu0 %4550  ;;  %v1843_v19 = vmul.f32 %v11652_v44, %v16644_v55 }
 0x3ca   : > { %16639 = vst [vmem:[#allocation372_spill] sm:$0xff] %v11637_v61  ;;  %v11642_v20 = vpop.permute.xlu1 %2966  ;;  %v11655_v61 = vrot.slane %v882_v5, %v10789_v63  ;;  %v1619_v17 = vadd.f32 %v1587_v32, %v1363_v45  ;;  %v16651_v32 = vld [vmem:[#allocation210_spill] sm:$0xff] }
 0x3cb   : > { %16640 = vst [vmem:[#allocation373_spill] sm:$0xff] %v11642_v20 }
 0x3cc   : > { %9229 = vset.pattern.permute.xlu1 %v16592_v24  ;;  %v2099_v12 = vmul.f32 %v11655_v61, %v16648_v6  ;;  %v1875_v45 = vadd.f32 %v1843_v19, %v1619_v17  ;;  %v2355_v6 = vmul.f32 %v11670_v9, %v16651_v32 }
 0x3cd   : > { %5034 = vperm.xlu0 %9370, %v16452_v43   ;;  %v11647_v16 = vpop.permute.xlu0 %4554  ;;  %4994 = vperm.xlu1 %9229, %v9930_v29   ;;  %v11673_v29 = vrot.slane %v882_v5, %v10820_v31 }
 0x3ce   : > { %16641 = vst [vmem:[#allocation374_spill] sm:$0xff] %v11647_v16  ;;  %v2131_v19 = vadd.f32 %v2099_v12, %v1875_v45  ;;  %v2867_v12 = vmul.f32 %v11685_v2, %v11493_v27  ;;  %v16660_v27 = vld [vmem:[#allocation315_spill] sm:$0xff] }
 0x3cf   : > { %v11661_v47 = vpop.permute.xlu1 %3974 }
 0x3d0   : > { %16645 = vst [vmem:[#allocation375_spill] sm:$0xff] %v11661_v47  ;;  %v4144_v16 = vmul.f32 %v4088_v60, %v11661_v47  ;;  %v16650_v60 = vld [vmem:[#allocation277_spill] sm:$0xff]  ;;  %v11689_v47 = vrot.slane %v11002_v40, %v10820_v31 }
 0x3d1   : > { %5042 = vperm.xlu0 %9370, %v16646_v21   ;;  %v11665_v48 = vpop.permute.xlu0 %4566  ;;  %9230 = vset.pattern.permute.xlu1 %v16360_v0  ;;  %v16653_v21 = vld [vmem:[#allocation47_spill] sm:$0xff]  ;;  %v11707_v50 = vrot.slane %v16650_v60, %v10820_v31 }
 0x3d2   : > { %16647 = vst [vmem:[#allocation376_spill] sm:$0xff] %v11665_v48  ;;  %v11677_v55 = vadd.f32 %v4144_v16, %v11472_v59  ;;  %3486 = vperm.xlu1 %9230, %v16584_v62   ;;  %v4076_v48 = vrot.slane %v16650_v60, %v10789_v63  ;;  %v11693_v59 = vrot.slane %v16650_v60, %v16618_v15  ;;  %v851_v17 = vmul.f32 0.01, %v16653_v21  ;;  %v16654_v62 = vld [vmem:[#allocation224_spill] sm:$0xff] }
 0x3d3   : > { %v2611_v32 = vmul.f32 %v11673_v29, %v16654_v62  ;;  %v16656_v62 = vld [vmem:[#allocation306_spill] sm:$0xff] }
 0x3d4   : > { %16649 = vst [vmem:[#allocation377_spill] sm:$0xff] %v11677_v55  ;;  %v11695_v16 = vpop.permute.xlu1 %4478 }
 0x3d5   : > { %16652 = vst [vmem:[#allocation277_spill] sm:$0xff] %v11695_v16  ;;  %5046 = vperm.xlu0 %9370, %v16595_v38   ;;  %v4654_v55 = vmul.f32 %v11689_v47, %v11695_v16  ;;  %v2387_v38 = vadd.f32 %v2355_v6, %v2131_v19  ;;  %v4393_v16 = vmul.f32 %v11693_v59, %v16656_v62 }
 0x3d6   : > { %v11703_v0 = vpop.permute.xlu0 %3946  ;;  %9231 = vset.pattern.permute.xlu1 %v16451_v23  ;;  %v11722_v23 = vmax.f32 %v16653_v21, %v851_v17  ;;  %v11726_v6 = vrot.slane %v16650_v60, %v16623_v26  ;;  %v16661_v17 = vld [vmem:[#allocation326_spill] sm:$0xff] }
 0x3d7   : > { %16655 = vst [vmem:[#allocation47_spill] sm:$0xff] %v11703_v0  ;;  %v4137_v51 = vmul.f32 %v4076_v48, %v11703_v0  ;;  %v11714_v45 = vadd.f32 %v4654_v55, %v11576_v49  ;;  %3990 = vperm.xlu1 %9231, %v16488_v57   ;;  %v2643_v0 = vadd.f32 %v2611_v32, %v2387_v38 }
 0x3d8   : > { %16657 = vst [vmem:[#allocation378_spill] sm:$0xff] %v11722_v23  ;;  %v11729_v55 = vrot.slane %v882_v5, %v16517_v37  ;;  %v11745_v5 = vrot.slane %v11722_v23, %v10772_v54  ;;  %v4905_v62 = vmul.f32 %v11726_v6, %v16661_v17  ;;  %v16671_v17 = vld [vmem:[#allocation305_spill] sm:$0xff] }
 0x3d9   : > { %v4169_v7 = vadd.f32 %v4137_v51, %v11424_v42  ;;  %5062 = vperm.xlu0 %9370, %v16605_v3   ;;  %v11731_v49 = vpop.permute.xlu1 %2714  ;;  %v4649_v51 = vmul.f32 %v11707_v50, %v16660_v27  ;;  %v11739_v42 = vrot.slane %v16650_v60, %v16517_v37  ;;  %v2899_v32 = vadd.f32 %v2867_v12, %v2643_v0  ;;  %v16663_v60 = vld [vmem:[#allocation32_spill] sm:$0xff]  ;;  %v16666_v12 = vld [vmem:[#allocation309_spill] sm:$0xff] }
 0x3da   : > { %16658 = vst [vmem:[#allocation379_spill] sm:$0xff] %v11731_v49  ;;  %v11733_v19 = vpop.permute.xlu0 %3950  ;;  %v16662_v49 = vld [vmem:[#allocation323_spill] sm:$0xff]  ;;  %v16665_v0 = vld [vmem:[#allocation112_spill] sm:$0xff]  ;;  %v11761_v37 = vrot.slane %v11722_v23, %v10774_v18 }
 0x3db   : > { %16659 = vst [vmem:[#allocation380_spill] sm:$0xff] %v11733_v19  ;;  %v4425_v21 = vadd.f32 %v4393_v16, %v4169_v7  ;;  %v4138_v38 = vmul.f32 %v4076_v48, %v11733_v19  ;;  %9232 = vset.pattern.permute.xlu1 %v16592_v24  ;;  %v16664_v7 = vld [vmem:[#allocation69_spill] sm:$0xff]  ;;  %v1588_v16 = vmul.f32 %v11640_v4, %v16665_v0  ;;  %v16672_v23 = vld [vmem:[#allocation27_spill] sm:$0xff] }
 0x3dc   : > { %4998 = vperm.xlu1 %9232, %v16533_v14   ;;  %v1364_v48 = vmul.f32 %v1312_v36, %v16664_v7  ;;  %v3123_v19 = vmul.f32 %v11729_v55, %v16666_v12  ;;  %v16670_v7 = vld [vmem:[#allocation132_spill] sm:$0xff] }
 0x3dd   : > { %v4681_v3 = vadd.f32 %v4649_v51, %v4425_v21  ;;  %v11750_v27 = vadd.f32 %v4138_v38, %v16662_v49  ;;  %5066 = vperm.xlu0 %9370, %v16663_v60   ;;  %v5161_v49 = vmul.f32 %v11739_v42, %v11441_v30  ;;  %v16669_v21 = vld [vmem:[#allocation319_spill] sm:$0xff]  ;;  %v1844_v4 = vmul.f32 %v11652_v44, %v16670_v7 }
 0x3de   : > { %v11763_v51 = vpop.permute.xlu0 %3954  ;;  %v11767_v14 = vpop.permute.xlu1 %3218  ;;  %v3155_v0 = vadd.f32 %v3123_v19, %v2899_v32  ;;  %v11782_v30 = vrot.slane %v11203_v33, %v16618_v15  ;;  %v3635_v19 = vmul.f32 %v11761_v37, %v11446_v1  ;;  %v16682_v1 = vld [vmem:[#allocation35_spill] sm:$0xff] }
 0x3df   : > { %16667 = vst [vmem:[#allocation323_spill] sm:$0xff] %v11763_v51  ;;  %16668 = vst [vmem:[#allocation381_spill] sm:$0xff] %v11767_v14  ;;  %v4139_v36 = vmul.f32 %v16669_v21, %v11763_v51  ;;  %v4937_v38 = vadd.f32 %v4905_v62, %v4681_v3  ;;  %v3379_v12 = vmul.f32 %v11745_v5, %v11767_v14  ;;  %v16673_v62 = vld [vmem:[#allocation178_spill] sm:$0xff] }
 0x3e0   : > { %9233 = vset.pattern.permute.xlu1 %v16616_v11  ;;  %v1620_v3 = vadd.f32 %v1588_v16, %v1364_v48  ;;  %v2100_v44 = vmul.f32 %v11655_v61, %v16673_v62  ;;  %v16677_v16 = vld [vmem:[#allocation194_spill] sm:$0xff]  ;;  %v16703_v62 = vld [vmem:[#allocation133_spill] sm:$0xff] }
 0x3e1   : > { %v11776_v60 = vadd.f32 %v4139_v36, %v16671_v17  ;;  %5078 = vperm.xlu0 %9370, %v16672_v23   ;;  %v5193_v21 = vadd.f32 %v5161_v49, %v4937_v38  ;;  %v3411_v32 = vadd.f32 %v3379_v12, %v3155_v0  ;;  %2730 = vperm.xlu1 %9233, %v16452_v43   ;;  %v16675_v36 = vld [vmem:[#allocation345_spill] sm:$0xff] }
 0x3e2   : > { %v11789_v17 = vpop.permute.xlu0 %3962  ;;  %v1876_v7 = vadd.f32 %v1844_v4, %v1620_v3  ;;  %v2356_v61 = vmul.f32 %v11670_v9, %v16677_v16  ;;  %v4397_v0 = vmul.f32 %v11563_v13, %v11521_v35  ;;  %v16678_v12 = vld [vmem:[#allocation325_spill] sm:$0xff]  ;;  %v16680_v3 = vld [vmem:[#allocation243_spill] sm:$0xff]  ;;  %v4653_v13 = vmul.f32 %v11689_v47, %v11565_v10 }
 0x3e3   : > { %16674 = vst [vmem:[#allocation319_spill] sm:$0xff] %v11789_v17  ;;  %v4141_v14 = vmul.f32 %v16675_v36, %v11789_v17  ;;  %8904 = vmatprep.mubr.msk.f32.mxu1 %vm518_vm1, %v5193_v21  ;;  %v11794_v23 = vpop.permute.xlu1 %4226  ;;  %v11796_v48 = vadd.f32 %v3635_v19, %v3411_v32  ;;  %v4852_v21 = vrot.slane %v11002_v40, %v16623_v26 }
 0x3e4   : > { %16676 = vst [vmem:[#allocation305_spill] sm:$0xff] %v11794_v23  ;;  %v4399_v38 = vmul.f32 %v11782_v30, %v11794_v23  ;;  %v2132_v36 = vadd.f32 %v2100_v44, %v1876_v7  ;;  %v2612_v9 = vmul.f32 %v11673_v29, %v16680_v3  ;;  %v2868_v44 = vmul.f32 %v11685_v2, %v11532_v41  ;;  %v16706_v23 = vld [vmem:[#allocation51_spill] sm:$0xff] }
 0x3e5   : > { %v4173_v49 = vadd.f32 %v4141_v14, %v16678_v12  ;;  %5082 = vperm.xlu0 %9370, %v16613_v46   ;;  %9234 = vset.pattern.permute.xlu1 %v16565_v25 }
 0x3e6   : > { %v11807_v4 = vpop.permute.xlu0 %3982  ;;  %v11816_v19 = vadd.f32 %v4399_v38, %v11625_v39  ;;  %3738 = vperm.xlu1 %9234, %v16541_v22   ;;  %v2388_v7 = vadd.f32 %v2356_v61, %v2132_v36  ;;  %v3124_v39 = vmul.f32 %v11729_v55, %v11642_v20 }
 0x3e7   : > { %16679 = vst [vmem:[#allocation345_spill] sm:$0xff] %v11807_v4  ;;  %v4429_v14 = vadd.f32 %v4397_v0, %v4173_v49 }
 0x3e8   : > { %v11821_v32 = vpop.permute.xlu1 %4730  ;;  %v2644_v0 = vadd.f32 %v2612_v9, %v2388_v7 }
 0x3e9   : > { %16681 = vst [vmem:[#allocation325_spill] sm:$0xff] %v11821_v32  ;;  %v4685_v12 = vadd.f32 %v4653_v13, %v4429_v14  ;;  %9373 = vset.pattern.permute.xlu0 %v16501_v58  ;;  %v4909_v29 = vmul.f32 %v4852_v21, %v11821_v32  ;;  %v16687_v13 = vld [vmem:[#allocation17_spill] sm:$0xff]  ;;  %v4092_v14 = vrot.slane %v11361_v34, %v10789_v63 }
 0x3ea   : > { %4834 = vperm.xlu0 %9373, %v16682_v1   ;;  %v11826_v47 = vpop.permute.xlu0 %3986  ;;  %9235 = vset.pattern.permute.xlu1 %v16424_v28  ;;  %v2900_v2 = vadd.f32 %v2868_v44, %v2644_v0  ;;  %v16704_v1 = vld [vmem:[#allocation11_spill] sm:$0xff] }
 0x3eb   : > { %16683 = vst [vmem:[#allocation382_spill] sm:$0xff] %v11826_v47  ;;  %v11831_v61 = vadd.f32 %v4909_v29, %v4685_v12  ;;  %4242 = vperm.xlu1 %9235, %v16444_v53   ;;  %v16690_v12 = vmov 0   ;;  %v16691_v29 = vld [vmem:[#allocation52_spill] sm:$0xff] }
 0x3ec   : > { %v3156_v36 = vadd.f32 %v3124_v39, %v2900_v2  ;;  %v852_v0 = vmul.f32 0.01, %v16691_v29  ;;  %v4146_v39 = vmul.f32 %v4092_v14, %v11807_v4  ;;  %v16692_v2 = vld [vmem:[#allocation363_spill] sm:$0xff] }
 0x3ed   : > { %16684 = vst [vmem:[#allocation383_spill] sm:$0xff] %v11831_v61  ;;  %v11834_v49 = vpop.permute.xlu1 %3222 }
 0x3ee   : > { %16685 = vst [vmem:[#allocation384_spill] sm:$0xff] %v11834_v49  ;;  %9376 = vset.pattern.permute.xlu0 %v16592_v24  ;;  %v11837_v38 = vpop.permute.xlu0 %4006  ;;  %v3380_v9 = vmul.f32 %v11745_v5, %v11834_v49  ;;  %v884_v20 = vmax.f32 %v16691_v29, %v852_v0  ;;  %v16698_v0 = vld [vmem:[#allocation260_spill] sm:$0xff] }
 0x3ef   : > { %16686 = vst [vmem:[#allocation385_spill] sm:$0xff] %v11837_v38  ;;  %5094 = vperm.xlu0 %9376, %v16575_v56   ;;  %9236 = vset.pattern.permute.xlu1 %v16616_v11 }
 0x3f0   : > { %v11843_v55 = vadd.f32 %v3380_v9, %v3156_v36  ;;  %2734 = vperm.xlu1 %9236, %v16687_v13   ;;  %v16693_v9 = vld [vmem:[#allocation15_spill] sm:$0xff]  ;;  %v11879_v29 = vrot.slane %v884_v20, %v10774_v18  ;;  %v11897_v4 = vrot.slane %v884_v20, %v10789_v63  ;;  %v11920_v17 = vrot.slane %v884_v20, %v10820_v31 }
 0x3f2   : > { %v11848_v7 = vpop.permute.xlu0 %4010  ;;  %v11850_v44 = vpop.permute.xlu1 %3726 }
 0x3f3   : > { %16688 = vst [vmem:[#allocation17_spill] sm:$0xff] %v11848_v7  ;;  %16689 = vst [vmem:[#allocation386_spill] sm:$0xff] %v11850_v44  ;;  %9378 = vset.pattern.permute.xlu0 %v16690_v12  ;;  %v3890_v5 = vmul.f32 %v11599_v8, %v11850_v44  ;;  %v11900_v44 = vrot.slane %v884_v20, %v16618_v15 }
 0x3f4   : > { %9237 = vset.pattern.permute.xlu1 %v16493_v52 }
 0x3f5   : > { %v3922_v36 = vadd.f32 %v3890_v5, %v16692_v2  ;;  %3238 = vperm.xlu1 %9237, %v16693_v9   ;;  %v11876_v5 = vrot.slane %v884_v20, %v10772_v54  ;;  %v16717_v9 = vld [vmem:[#allocation18_spill] sm:$0xff] }
 0x3f6   : > { %v11860_v49 = vpop.permute.xlu0 %4030 }
 0x3f7   : > { %16694 = vst [vmem:[#allocation52_spill] sm:$0xff] %v11860_v49  ;;  %v11863_v41 = vpop.permute.xlu1 %4734  ;;  %v11865_v12 = vadd.f32 %v4146_v39, %v3922_v36  ;;  %v11882_v39 = vrot.slane %v884_v20, %v16698_v0 }
 0x3f8   : > { %16695 = vst [vmem:[#allocation363_spill] sm:$0xff] %v11863_v41  ;;  %v4910_v3 = vmul.f32 %v4852_v21, %v11863_v41  ;;  %v16700_v21 = vld [vmem:[#allocation71_spill] sm:$0xff]  ;;  %v16707_v41 = vld [vmem:[#allocation180_spill] sm:$0xff] }
 0x3f9   : > { %16696 = vst [vmem:[#allocation387_spill] sm:$0xff] %v11865_v12  ;;  %9238 = vset.pattern.permute.xlu1 %v16424_v28  ;;  %v1366_v36 = vmul.f32 %v11876_v5, %v16700_v21  ;;  %v1846_v56 = vmul.f32 %v11882_v39, %v16703_v62  ;;  %v16723_v12 = vld [vmem:[#allocation289_spill] sm:$0xff] }
 0x3fa   : > { %v11869_v8 = vpop.permute.xlu0 %4066  ;;  %v11872_v16 = vadd.f32 %v4910_v3, %v11714_v45  ;;  %4246 = vperm.xlu1 %9238, %v16488_v57  }
 0x3fb   : > { %16697 = vst [vmem:[#allocation388_spill] sm:$0xff] %v11869_v8  ;;  %v16701_v8 = vld [vmem:[#allocation114_spill] sm:$0xff] }
 0x3fc   : > { %v11884_v2 = vpop.permute.xlu1 %2970  ;;  %v1590_v45 = vmul.f32 %v11879_v29, %v16701_v8  ;;  %v853_v8 = vmul.f32 0.01, %v16706_v23 }
 0x3fd   : > { %16699 = vst [vmem:[#allocation260_spill] sm:$0xff] %v11884_v2 }
 0x3fe   : > { %v11890_v3 = vpop.permute.xlu0 %4070  ;;  %9239 = vset.pattern.permute.xlu1 %v16501_v58  ;;  %v1622_v49 = vadd.f32 %v1590_v45, %v1366_v36  ;;  %v11915_v36 = vrot.slane %v11203_v33, %v10820_v31  ;;  %v16710_v45 = vld [vmem:[#allocation196_spill] sm:$0xff]  ;;  %v16724_v31 = vmov 11  }
 0x3ff   : > { %16702 = vst [vmem:[#allocation389_spill] sm:$0xff] %v11890_v3  ;;  %4750 = vperm.xlu1 %9239, %v16704_v1   ;;  %v2102_v3 = vmul.f32 %v11897_v4, %v16707_v41  ;;  %v16709_v1 = vmov 9   ;;  %v2358_v35 = vmul.f32 %v11900_v44, %v16710_v45  ;;  %v16711_v41 = vld [vmem:[#allocation370_spill] sm:$0xff]  ;;  %v16714_v45 = vld [vmem:[#allocation245_spill] sm:$0xff] }
 0x400   : > { %v1878_v62 = vadd.f32 %v1846_v56, %v1622_v49  ;;  %v16712_v49 = vld [vmem:[#allocation22_spill] sm:$0xff]  ;;  %v2614_v38 = vmul.f32 %v11920_v17, %v16714_v45  ;;  %v16721_v45 = vld [vmem:[#allocation359_spill] sm:$0xff] }
 0x401   : > { %v11902_v21 = vpop.permute.xlu1 %3978 }
 0x402   : > { %16705 = vst [vmem:[#allocation11_spill] sm:$0xff] %v11902_v21  ;;  %v4145_v46 = vmul.f32 %v4092_v14, %v11902_v21  ;;  %v11923_v14 = vrot.slane %v884_v20, %v16623_v26  ;;  %v16713_v21 = vld [vmem:[#allocation14_spill] sm:$0xff]  ;;  %v2134_v7 = vadd.f32 %v2102_v3, %v1878_v62 }
 0x403   : > { %v11908_v32 = vpop.permute.xlu0 %4206  ;;  %9240 = vset.pattern.permute.xlu1 %v16709_v1  ;;  %v16720_v3 = vld [vmem:[#allocation282_spill] sm:$0xff] }
 0x404   : > { %16708 = vst [vmem:[#allocation51_spill] sm:$0xff] %v11908_v32  ;;  %v4394_v10 = vmul.f32 %v11693_v59, %v11908_v32  ;;  %v4177_v56 = vadd.f32 %v4145_v46, %v16711_v41  ;;  %3490 = vperm.xlu1 %9240, %v16712_v49   ;;  %v4650_v59 = vmul.f32 %v11707_v50, %v16713_v21  ;;  %v16722_v49 = vld [vmem:[#allocation274_spill] sm:$0xff] }
 0x405   : > { %v11931_v32 = vmax.f32 %v16706_v23, %v853_v8  ;;  %v4906_v41 = vmul.f32 %v11726_v6, %v16717_v9  ;;  %v2390_v23 = vadd.f32 %v2358_v35, %v2134_v7  ;;  %v16719_v8 = vld [vmem:[#allocation254_spill] sm:$0xff]  ;;  %v4651_v21 = vmul.f32 %v16721_v45, %v16720_v3  ;;  %v16725_v6 = vld [vmem:[#allocation348_spill] sm:$0xff] }
 0x406   : > { %v4426_v51 = vadd.f32 %v4394_v10, %v11750_v27  ;;  %v11935_v1 = vpop.permute.xlu1 %4482  ;;  %v16718_v27 = vld [vmem:[#allocation331_spill] sm:$0xff]  ;;  %v2870_v62 = vmul.f32 %v11923_v14, %v16719_v8  ;;  %v11951_v25 = vrot.slane %v16723_v12, %v16722_v49  ;;  %v16726_v12 = vld [vmem:[#allocation297_spill] sm:$0xff]  ;;  %v3076_v3 = vrot.slane %v884_v20, %v16722_v49 }
 0x407   : > { %16715 = vst [vmem:[#allocation370_spill] sm:$0xff] %v11935_v1  ;;  %v11937_v61 = vpop.permute.xlu0 %4210  ;;  %v4655_v50 = vmul.f32 %v11915_v36, %v11935_v1  ;;  %v2646_v7 = vadd.f32 %v2614_v38, %v2390_v23  ;;  %v11963_v45 = vrot.slane %v11931_v32, %v10772_v54  ;;  %v11976_v38 = vrot.slane %v11361_v34, %v16618_v15 }
 0x408   : > { %16716 = vst [vmem:[#allocation390_spill] sm:$0xff] %v11937_v61  ;;  %v4682_v46 = vadd.f32 %v4650_v59, %v4426_v51  ;;  %v4395_v10 = vmul.f32 %v16718_v27, %v11937_v61  ;;  %9241 = vset.pattern.permute.xlu1 %v16724_v31  ;;  %v5162_v51 = vmul.f32 %v11739_v42, %v16725_v6  ;;  %v16727_v27 = vld [vmem:[#allocation272_spill] sm:$0xff] }
 0x409   : > { %v11957_v1 = vadd.f32 %v4655_v50, %v11816_v19  ;;  %3994 = vperm.xlu1 %9241, %v16541_v22   ;;  %v4907_v8 = vmul.f32 %v16727_v27, %v16726_v12  ;;  %v16731_v27 = vld [vmem:[#allocation377_spill] sm:$0xff] }
 0x40a   : > { %v4938_v59 = vadd.f32 %v4906_v41, %v4682_v46  ;;  %v4427_v35 = vadd.f32 %v4395_v10, %v11776_v60  ;;  %v2902_v46 = vadd.f32 %v2870_v62, %v2646_v7  ;;  %v16730_v10 = vld [vmem:[#allocation371_spill] sm:$0xff] }
 0x40b   : > { %v11968_v61 = vpop.permute.xlu0 %4230  ;;  %v11970_v19 = vpop.permute.xlu1 %2974  ;;  %v5163_v23 = vmul.f32 %v11951_v25, %v16730_v10 }
 0x40c   : > { %16728 = vst [vmem:[#allocation331_spill] sm:$0xff] %v11968_v61  ;;  %v5194_v42 = vadd.f32 %v5162_v51, %v4938_v59  ;;  %v4683_v41 = vadd.f32 %v4651_v21, %v4427_v35  ;;  %16729 = vst [vmem:[#allocation359_spill] sm:$0xff] %v11970_v19  ;;  %v4400_v60 = vmul.f32 %v11782_v30, %v11968_v61  ;;  %v16732_v21 = vld [vmem:[#allocation286_spill] sm:$0xff]  ;;  %v16733_v59 = vld [vmem:[#allocation16_spill] sm:$0xff] }
 0x40d   : > { %v3126_v50 = vmul.f32 %v3076_v3, %v11970_v19  ;;  %9242 = vset.pattern.permute.xlu1 %v16592_v24  ;;  %v3382_v30 = vmul.f32 %v11963_v45, %v16732_v21  ;;  %v16735_v19 = vld [vmem:[#allocation101_spill] sm:$0xff] }
 0x40e   : > { %v4939_v20 = vadd.f32 %v4907_v8, %v4683_v41  ;;  %v4432_v12 = vadd.f32 %v4400_v60, %v16731_v27  ;;  %8905 = vmatmul.mubr.msk.f32.vlgmr.msra.gmra.mrb[10].mxu1 %vm518_vm1, %v5194_v42  ;;  %5002 = vperm.xlu1 %9242, %v16733_v59   ;;  %v1589_v8 = vmul.f32 %v11879_v29, %v16735_v19  ;;  %v16738_v59 = vld [vmem:[#allocation146_spill] sm:$0xff]  ;;  %v16747_v19 = vld [vmem:[#allocation13_spill] sm:$0xff] }
 0x40f   : > { %v3158_v51 = vadd.f32 %v3126_v50, %v2902_v46  ;;  %v11987_v35 = vpop.permute.xlu0 %4234  ;;  %v16737_v50 = vld [vmem:[#allocation80_spill] sm:$0xff]  ;;  %v16770_v61 = vld [vmem:[#allocation165_spill] sm:$0xff] }
 0x410   : > { %16734 = vst [vmem:[#allocation274_spill] sm:$0xff] %v11987_v35  ;;  %v4401_v62 = vmul.f32 %v11976_v38, %v11987_v35  ;;  %v5195_v7 = vadd.f32 %v5163_v23, %v4939_v20  ;;  %v11993_v41 = vpop.permute.xlu1 %3478  ;;  %v1365_v27 = vmul.f32 %v11876_v5, %v16737_v50  ;;  %v1845_v23 = vmul.f32 %v11882_v39, %v16738_v59  ;;  %v16743_v39 = vld [vmem:[#allocation212_spill] sm:$0xff] }
 0x411   : > { %16736 = vst [vmem:[#allocation289_spill] sm:$0xff] %v11993_v41  ;;  %v11995_v60 = vadd.f32 %v3382_v30, %v3158_v51  ;;  %v3636_v46 = vmul.f32 %v11761_v37, %v11993_v41  ;;  %v16739_v20 = vmov 7   ;;  %v16741_v51 = vld [vmem:[#allocation164_spill] sm:$0xff]  ;;  %v2357_v21 = vmul.f32 %v11900_v44, %v16743_v39  ;;  %v16748_v39 = vld [vmem:[#allocation379_spill] sm:$0xff] }
 0x412   : > { %v11997_v42 = vadd.f32 %v4401_v62, %v4177_v56  ;;  %8907 = vmatprep.mubr.msk.f32.mxu1 %vm518_vm1, %v5195_v7  ;;  %9243 = vset.pattern.permute.xlu1 %v16739_v20  ;;  %v1621_v56 = vadd.f32 %v1589_v8, %v1365_v27  ;;  %v2101_v37 = vmul.f32 %v11897_v4, %v16741_v51  ;;  %v16746_v51 = vld [vmem:[#allocation298_spill] sm:$0xff] }
 0x413   : > { %v12007_v29 = vpop.permute.xlu0 %4254  ;;  %v12010_v30 = vadd.f32 %v3636_v46, %v11843_v55  ;;  %2990 = vperm.xlu1 %9243, %v16687_v13   ;;  %v4856_v62 = vrot.slane %v11203_v33, %v16623_v26  ;;  %v12028_v8 = vrot.slane %v11002_v40, %v16722_v49  ;;  %v16745_v46 = vld [vmem:[#allocation226_spill] sm:$0xff] }
 0x414   : > { %16740 = vst [vmem:[#allocation272_spill] sm:$0xff] %v12007_v29  ;;  %v1877_v7 = vadd.f32 %v1845_v23, %v1621_v56  ;;  %v2613_v27 = vmul.f32 %v11920_v17, %v16745_v46  ;;  %v3125_v17 = vmul.f32 %v3076_v3, %v11884_v2  ;;  %v16754_v3 = vld [vmem:[#allocation378_spill] sm:$0xff] }
 0x415   : > { %v12017_v5 = vpop.permute.xlu1 %4486  ;;  %v4912_v23 = vmul.f32 %v4856_v62, %v16746_v51 }
 0x416   : > { %16742 = vst [vmem:[#allocation377_spill] sm:$0xff] %v12017_v5  ;;  %v4656_v59 = vmul.f32 %v11915_v36, %v12017_v5  ;;  %v2133_v4 = vadd.f32 %v2101_v37, %v1877_v7  ;;  %v2869_v36 = vmul.f32 %v11923_v14, %v16748_v39  ;;  %v16751_v7 = vmov 13  }
 0x417   : > { %v12023_v55 = vpop.permute.xlu0 %4258  ;;  %9244 = vset.pattern.permute.xlu1 %v16724_v31 }
 0x418   : > { %16744 = vst [vmem:[#allocation16_spill] sm:$0xff] %v12023_v55  ;;  %v4688_v56 = vadd.f32 %v4656_v59, %v4432_v12  ;;  %3998 = vperm.xlu1 %9244, %v16747_v19   ;;  %v2389_v44 = vadd.f32 %v2357_v21, %v2133_v4  ;;  %v16776_v55 = vld [vmem:[#allocation256_spill] sm:$0xff] }
 0x41a   : > { %v12036_v50 = vpop.permute.xlu1 %4990  ;;  %v12040_v35 = vadd.f32 %v4912_v23, %v4688_v56  ;;  %v2645_v37 = vadd.f32 %v2613_v27, %v2389_v44  ;;  %v3840_v27 = vrot.slane %v16754_v3, %v16698_v0 }
 0x41b   : > { %16749 = vst [vmem:[#allocation13_spill] sm:$0xff] %v12036_v50  ;;  %v12038_v41 = vpop.permute.xlu0 %4278  ;;  %v5166_v40 = vmul.f32 %v12028_v8, %v12036_v50  ;;  %v16771_v50 = vld [vmem:[#allocation271_spill] sm:$0xff] }
 0x41c   : > { %16750 = vst [vmem:[#allocation391_spill] sm:$0xff] %v12038_v41  ;;  %9245 = vset.pattern.permute.xlu1 %v16751_v7  ;;  %v2901_v14 = vadd.f32 %v2869_v36, %v2645_v37  ;;  %v12066_v36 = vrot.slane %v16754_v3, %v10789_v63  ;;  %v16758_v37 = vld [vmem:[#allocation56_spill] sm:$0xff] }
 0x41d   : > { %v12047_v12 = vadd.f32 %v5166_v40, %v11872_v16  ;;  %4502 = vperm.xlu1 %9245, %v16488_v57   ;;  %v16755_v16 = vld [vmem:[#allocation26_spill] sm:$0xff] }
 0x41e   : > { %v3157_v4 = vadd.f32 %v3125_v17, %v2901_v14  ;;  %v854_v17 = vmul.f32 0.01, %v16758_v37 }
 0x41f   : > { %v12050_v21 = vpop.permute.xlu0 %4282  ;;  %v12052_v59 = vpop.permute.xlu1 %3226 }
 0x420   : > { %16752 = vst [vmem:[#allocation392_spill] sm:$0xff] %v12050_v21  ;;  %16753 = vst [vmem:[#allocation393_spill] sm:$0xff] %v12052_v59  ;;  %v3381_v23 = vmul.f32 %v11963_v45, %v12052_v59  ;;  %v886_v59 = vmax.f32 %v16758_v37, %v854_v17  ;;  %v16768_v21 = vld [vmem:[#allocation55_spill] sm:$0xff] }
 0x421   : > { %9246 = vset.pattern.permute.xlu1 %v16616_v11  ;;  %v16781_v11 = vld [vmem:[#allocation15_spill] sm:$0xff] }
 0x422   : > { %v12059_v56 = vadd.f32 %v3381_v23, %v3157_v4  ;;  %2738 = vperm.xlu1 %9246, %v16755_v16   ;;  %v4147_v4 = vmul.f32 %v12066_v36, %v11826_v47 }
 0x423   : > { %v12062_v44 = vpop.permute.xlu0 %4294 }
 0x424   : > { %16756 = vst [vmem:[#allocation378_spill] sm:$0xff] %v12062_v44  ;;  %v12068_v40 = vpop.permute.xlu1 %3730 }
 0x425   : > { %16757 = vst [vmem:[#allocation394_spill] sm:$0xff] %v12068_v40  ;;  %v3891_v45 = vmul.f32 %v3840_v27, %v12068_v40  ;;  %v12088_v40 = vrot.slane %v886_v59, %v10774_v18 }
 0x426   : > { %9247 = vset.pattern.permute.xlu1 %v16493_v52 }
 0x427   : > { %v12073_v14 = vpop.permute.xlu0 %4306  ;;  %v3923_v23 = vadd.f32 %v3891_v45, %v11796_v48  ;;  %3242 = vperm.xlu1 %9247, %v16452_v43   ;;  %v12096_v48 = vrot.slane %v886_v59, %v10772_v54 }
 0x428   : > { %16759 = vst [vmem:[#allocation56_spill] sm:$0xff] %v12073_v14 }
 0x429   : > { %v12080_v2 = vpop.permute.xlu1 %4738  ;;  %v12082_v39 = vadd.f32 %v4147_v4, %v3923_v23  ;;  %v12105_v4 = vrot.slane %v886_v59, %v16698_v0  ;;  %v12108_v23 = vrot.slane %v886_v59, %v10789_v63  ;;  %v16777_v63 = vld [vmem:[#allocation366_spill] sm:$0xff] }
 0x42a   : > { %16760 = vst [vmem:[#allocation395_spill] sm:$0xff] %v12080_v2  ;;  %v4911_v46 = vmul.f32 %v4856_v62, %v12080_v2  ;;  %v16764_v62 = vld [vmem:[#allocation103_spill] sm:$0xff]  ;;  %v12124_v2 = vrot.slane %v886_v59, %v16618_v15 }
 0x42b   : > { %v12085_v44 = vpop.permute.xlu0 %4314  ;;  %9248 = vset.pattern.permute.xlu1 %v16424_v28  ;;  %v1591_v45 = vmul.f32 %v12088_v40, %v16764_v62  ;;  %v855_v62 = vmul.f32 0.01, %v16768_v21  ;;  %v2103_v41 = vmul.f32 %v12108_v23, %v16770_v61  ;;  %v4604_v61 = vrot.slane %v11361_v34, %v16771_v50 }
 0x42c   : > { %16761 = vst [vmem:[#allocation396_spill] sm:$0xff] %v12085_v44  ;;  %v12092_v14 = vadd.f32 %v4911_v46, %v11957_v1  ;;  %4250 = vperm.xlu1 %9248, %v16541_v22   ;;  %v16765_v1 = vld [vmem:[#allocation82_spill] sm:$0xff]  ;;  %v16766_v44 = vld [vmem:[#allocation148_spill] sm:$0xff] }
 0x42d   : > { %v1367_v46 = vmul.f32 %v12096_v48, %v16765_v1  ;;  %v1847_v47 = vmul.f32 %v12105_v4, %v16766_v44  ;;  %v12127_v1 = vrot.slane %v886_v59, %v16771_v50 }
 0x42e   : > { %v12098_v37 = vpop.permute.xlu1 %2726 }
 0x42f   : > { %16762 = vst [vmem:[#allocation397_spill] sm:$0xff] %v12098_v37  ;;  %v12100_v17 = vpop.permute.xlu0 %4318  ;;  %v1623_v51 = vadd.f32 %v1591_v45, %v1367_v46  ;;  %v12134_v45 = vrot.slane %v886_v59, %v16623_v26 }
 0x430   : > { %16763 = vst [vmem:[#allocation398_spill] sm:$0xff] %v12100_v17  ;;  %9249 = vset.pattern.permute.xlu1 %v16501_v58 }
 0x431   : > { %4754 = vperm.xlu1 %9249, %v16444_v53   ;;  %v1879_v44 = vadd.f32 %v1847_v47, %v1623_v51  ;;  %v16774_v51 = vld [vmem:[#allocation228_spill] sm:$0xff]  ;;  %v2871_v29 = vmul.f32 %v12134_v45, %v16776_v55 }
 0x433   : > { %v12116_v17 = vpop.permute.xlu0 %4326  ;;  %v12119_v5 = vpop.permute.xlu1 %3734  ;;  %v2135_v47 = vadd.f32 %v2103_v41, %v1879_v44  ;;  %v16779_v41 = vld [vmem:[#allocation364_spill] sm:$0xff] }
 0x434   : > { %16767 = vst [vmem:[#allocation399_spill] sm:$0xff] %v12116_v17  ;;  %16769 = vst [vmem:[#allocation55_spill] sm:$0xff] %v12119_v5  ;;  %v3892_v53 = vmul.f32 %v3840_v27, %v12119_v5  ;;  %v16772_v17 = vld [vmem:[#allocation214_spill] sm:$0xff]  ;;  %v12145_v27 = vmax.f32 %v16768_v21, %v855_v62  ;;  %v16778_v21 = vmov 10   ;;  %v4658_v44 = vmul.f32 %v4604_v61, %v16779_v41  ;;  %v16780_v62 = vld [vmem:[#allocation387_spill] sm:$0xff] }
 0x435   : > { %9250 = vset.pattern.permute.xlu1 %v16493_v52  ;;  %v2359_v10 = vmul.f32 %v12124_v2, %v16772_v17  ;;  %v2615_v17 = vmul.f32 %v12127_v1, %v16774_v51 }
 0x436   : > { %v12137_v46 = vadd.f32 %v3892_v53, %v12010_v30  ;;  %3246 = vperm.xlu1 %9250, %v16687_v13  }
 0x437   : > { %v2391_v9 = vadd.f32 %v2359_v10, %v2135_v47  ;;  %v12169_v10 = vrot.slane %v886_v59, %v16722_v49  ;;  %v3588_v59 = vrot.slane %v11931_v32, %v10774_v18 }
 0x438   : > { %v12142_v6 = vpop.permute.xlu0 %4982  ;;  %v12149_v5 = vpop.permute.xlu1 %4238 }
 0x439   : > { %16773 = vst [vmem:[#allocation271_spill] sm:$0xff] %v12142_v6  ;;  %16775 = vst [vmem:[#allocation400_spill] sm:$0xff] %v12149_v5  ;;  %v5164_v30 = vmul.f32 %v11951_v25, %v12142_v6  ;;  %v4402_v53 = vmul.f32 %v11976_v38, %v12149_v5  ;;  %v2647_v25 = vadd.f32 %v2615_v17, %v2391_v9  ;;  %v16785_v17 = vld [vmem:[#allocation288_spill] sm:$0xff]  ;;  %v16795_v5 = vmov 9  }
 0x43a   : > { %9251 = vset.pattern.permute.xlu1 %v16778_v21  ;;  %v12166_v38 = vrot.slane %v12145_v27, %v10772_v54 }
 0x43b   : > { %v5196_v28 = vadd.f32 %v5164_v30, %v16777_v63  ;;  %v4434_v51 = vadd.f32 %v4402_v53, %v16780_v62  ;;  %3750 = vperm.xlu1 %9251, %v16781_v11   ;;  %v2903_v53 = vadd.f32 %v2871_v29, %v2647_v25  ;;  %v16784_v62 = vld [vmem:[#allocation383_spill] sm:$0xff]  ;;  %v12200_v25 = vrot.slane %v11361_v34, %v16623_v26 }
 0x43c   : > { %v12162_v43 = vpop.permute.xlu0 %4986 }
 0x43d   : > { %16782 = vst [vmem:[#allocation366_spill] sm:$0xff] %v12162_v43  ;;  %v5165_v63 = vmul.f32 %v12028_v8, %v12162_v43  ;;  %8908 = vmatmul.mubr.msk.f32.gmra.mrb[12].mxu1 %vm518_vm1, %v5196_v28  ;;  %v12174_v47 = vpop.permute.xlu1 %2978  ;;  %v12176_v30 = vadd.f32 %v4658_v44, %v4434_v51  ;;  %v3383_v8 = vmul.f32 %v12166_v38, %v16785_v17 }
 0x43e   : > { %16783 = vst [vmem:[#allocation387_spill] sm:$0xff] %v12174_v47  ;;  %v3127_v9 = vmul.f32 %v12169_v10, %v12174_v47  ;;  %v16793_v47 = vld [vmem:[#allocation19_spill] sm:$0xff] }
 0x43f   : > { %v5197_v55 = vadd.f32 %v5165_v63, %v16784_v62  ;;  %9252 = vset.pattern.permute.xlu1 %v16501_v58  ;;  %v16788_v63 = vld [vmem:[#allocation300_spill] sm:$0xff]  ;;  %v16789_v62 = vld [vmem:[#allocation22_spill] sm:$0xff] }
 0x440   : > { %v3159_v41 = vadd.f32 %v3127_v9, %v2903_v53  ;;  %4758 = vperm.xlu1 %9252, %v16488_v57   ;;  %v4913_v53 = vmul.f32 %v12200_v25, %v16788_v63  ;;  %v16830_v63 = vld [vmem:[#allocation167_spill] sm:$0xff] }
 0x441   : > { %8910 = vmatprep.mubr.msk.f32.mxu1 %vm518_vm1, %v5197_v55 }
 0x442   : > { %8911 = vmatmul.mubr.msk.f32.gmra.mrb[14].mxu1 %vm518_vm1, %v12047_v12  ;;  %v12190_v28 = vpop.permute.xlu1 %3482  ;;  %v12192_v29 = vadd.f32 %v3383_v8, %v3159_v41  ;;  %v5112_v41 = vrot.slane %v11203_v33, %v16722_v49  ;;  %v3844_v33 = vrot.slane %v11931_v32, %v16698_v0 }
 0x443   : > { %16786 = vst [vmem:[#allocation15_spill] sm:$0xff] %v12190_v28  ;;  %v3637_v51 = vmul.f32 %v3588_v59, %v12190_v28 }
 0x444   : > { %9253 = vset.pattern.permute.xlu1 %v16739_v20 }
 0x445   : > { %v3669_v44 = vadd.f32 %v3637_v51, %v12059_v56  ;;  %2994 = vperm.xlu1 %9253, %v16755_v16  }
 0x447   : > { %v12202_v55 = vpop.permute.xlu1 %4490 }
 0x448   : > { %16787 = vst [vmem:[#allocation383_spill] sm:$0xff] %v12202_v55  ;;  %v4657_v12 = vmul.f32 %v4604_v61, %v12202_v55 }
 0x449   : > { %9254 = vset.pattern.permute.xlu1 %v16724_v31 }
 0x44a   : > { %v4689_v56 = vadd.f32 %v4657_v12, %v11997_v42  ;;  %4002 = vperm.xlu1 %9254, %v16789_v62   ;;  %v16792_v12 = vld [vmem:[#allocation45_spill] sm:$0xff] }
 0x44c   : > { %v12212_v9 = vpop.permute.xlu1 %4994  ;;  %v12214_v8 = vadd.f32 %v4913_v53, %v4689_v56  ;;  %v3894_v53 = vmul.f32 %v3844_v33, %v16792_v12 }
 0x44d   : > { %16790 = vst [vmem:[#allocation401_spill] sm:$0xff] %v12212_v9  ;;  %v5167_v51 = vmul.f32 %v5112_v41, %v12212_v9 }
 0x44e   : > { %9255 = vset.pattern.permute.xlu1 %v16751_v7 }
 0x44f   : > { %v5199_v61 = vadd.f32 %v5167_v51, %v12092_v14  ;;  %4506 = vperm.xlu1 %9255, %v16541_v22  }
 0x451   : > { %v12222_v17 = vpop.permute.xlu1 %3486  ;;  %8913 = vmatprep.mubr.msk.f32.mxu1 %vm518_vm1, %v5199_v61 }
 0x452   : > { %16791 = vst [vmem:[#allocation402_spill] sm:$0xff] %v12222_v17  ;;  %v3638_v42 = vmul.f32 %v3588_v59, %v12222_v17 }
 0x453   : > { %9256 = vset.pattern.permute.xlu1 %v16739_v20 }
 0x454   : > { %v3670_v56 = vadd.f32 %v3638_v42, %v11995_v60  ;;  %2998 = vperm.xlu1 %9256, %v16793_v47  }
 0x456   : > { %v12230_v14 = vpop.permute.xlu1 %3990  ;;  %v12232_v51 = vadd.f32 %v3894_v53, %v3670_v56 }
 0x457   : > { %16794 = vst [vmem:[#allocation403_spill] sm:$0xff] %v12230_v14  ;;  %v4148_v28 = vmul.f32 %v12066_v36, %v12230_v14  ;;  %v16798_v36 = vld [vmem:[#allocation73_spill] sm:$0xff]  ;;  %v16802_v14 = vld [vmem:[#allocation182_spill] sm:$0xff] }
 0x458   : > { %9257 = vset.pattern.permute.xlu1 %v16795_v5 }
 0x459   : > { %v4180_v61 = vadd.f32 %v4148_v28, %v12137_v46  ;;  %3502 = vperm.xlu1 %9257, %v16687_v13   ;;  %v1368_v46 = vmul.f32 %v12096_v48, %v16798_v36  ;;  %v16799_v28 = vld [vmem:[#allocation116_spill] sm:$0xff]  ;;  %v4352_v48 = vrot.slane %v16754_v3, %v16618_v15 }
 0x45a   : > { %v1592_v53 = vmul.f32 %v12088_v40, %v16799_v28  ;;  %v16803_v40 = vld [vmem:[#allocation198_spill] sm:$0xff] }
 0x45b   : > { %v12239_v59 = vpop.permute.xlu1 %4998 }
 0x45c   : > { %16796 = vst [vmem:[#allocation404_spill] sm:$0xff] %v12239_v59  ;;  %v5168_v12 = vmul.f32 %v5112_v41, %v12239_v59  ;;  %v16800_v41 = vld [vmem:[#allocation135_spill] sm:$0xff]  ;;  %v1624_v17 = vadd.f32 %v1592_v53, %v1368_v46 }
 0x45d   : > { %9258 = vset.pattern.permute.xlu1 %v16751_v7  ;;  %v1848_v56 = vmul.f32 %v12105_v4, %v16800_v41  ;;  %v2360_v4 = vmul.f32 %v12124_v2, %v16803_v40  ;;  %v16805_v53 = vld [vmem:[#allocation247_spill] sm:$0xff]  ;;  %v2872_v2 = vmul.f32 %v12134_v45, %v12098_v37  ;;  %v16807_v40 = vld [vmem:[#allocation24_spill] sm:$0xff]  ;;  %v3592_v45 = vrot.slane %v12145_v27, %v10774_v18 }
 0x45e   : > { %v5200_v60 = vadd.f32 %v5168_v12, %v12040_v35  ;;  %4510 = vperm.xlu1 %9258, %v16747_v19  }
 0x460   : > { %v12245_v42 = vpop.permute.xlu1 %2730  ;;  %8914 = vmatmul.mubr.msk.f32.gmra.mrb[16].mxu1 %vm518_vm1, %v5200_v60  ;;  %v2104_v60 = vmul.f32 %v12108_v23, %v16802_v14  ;;  %v2616_v14 = vmul.f32 %v12127_v1, %v16805_v53 }
 0x461   : > { %16797 = vst [vmem:[#allocation405_spill] sm:$0xff] %v12245_v42 }
 0x462   : > { %9259 = vset.pattern.permute.xlu1 %v16592_v24 }
 0x463   : > { %5014 = vperm.xlu1 %9259, %v16488_v57   ;;  %v1880_v57 = vadd.f32 %v1848_v56, %v1624_v17 }
 0x465   : > { %v12256_v35 = vpop.permute.xlu1 %3738  ;;  %v2136_v23 = vadd.f32 %v2104_v60, %v1880_v57 }
 0x466   : > { %16801 = vst [vmem:[#allocation406_spill] sm:$0xff] %v12256_v35  ;;  %v3893_v12 = vmul.f32 %v3844_v33, %v12256_v35  ;;  %v12271_v33 = vrot.slane %v16754_v3, %v16771_v50  ;;  %v16820_v35 = vld [vmem:[#allocation327_spill] sm:$0xff] }
 0x467   : > { %9260 = vset.pattern.permute.xlu1 %v16493_v52 }
 0x468   : > { %v12264_v36 = vadd.f32 %v3893_v12, %v3669_v44  ;;  %3250 = vperm.xlu1 %9260, %v16755_v16   ;;  %v2392_v44 = vadd.f32 %v2360_v4, %v2136_v23  ;;  %v16806_v12 = vld [vmem:[#allocation9_spill] sm:$0xff]  ;;  %v16809_v4 = vld [vmem:[#allocation310_spill] sm:$0xff] }
 0x469   : > { %v4659_v17 = vmul.f32 %v12271_v33, %v16806_v12  ;;  %v3128_v23 = vmul.f32 %v12169_v10, %v16809_v4 }
 0x46a   : > { %v12273_v46 = vpop.permute.xlu1 %4242  ;;  %v2648_v28 = vadd.f32 %v2616_v14, %v2392_v44  ;;  %v16812_v44 = vld [vmem:[#allocation344_spill] sm:$0xff] }
 0x46b   : > { %16804 = vst [vmem:[#allocation407_spill] sm:$0xff] %v12273_v46  ;;  %v4403_v41 = vmul.f32 %v4352_v48, %v12273_v46  ;;  %v16821_v46 = vld [vmem:[#allocation28_spill] sm:$0xff] }
 0x46c   : > { %9261 = vset.pattern.permute.xlu1 %v16778_v21  ;;  %v2904_v1 = vadd.f32 %v2872_v2, %v2648_v28  ;;  %v3640_v28 = vmul.f32 %v3592_v45, %v16812_v44  ;;  %v16813_v2 = vld [vmem:[#allocation21_spill] sm:$0xff] }
 0x46d   : > { %v4435_v56 = vadd.f32 %v4403_v41, %v12082_v39  ;;  %3754 = vperm.xlu1 %9261, %v16807_v40   ;;  %v16811_v41 = vmov 6  }
 0x46e   : > { %v3160_v39 = vadd.f32 %v3128_v23, %v2904_v1  ;;  %v12313_v1 = vpop.permute.xlu0 %5006 }
 0x46f   : > { %v12285_v60 = vpop.permute.xlu1 %2734  ;;  %v12287_v57 = vadd.f32 %v4659_v17, %v4435_v56  ;;  %16815 = vst [vmem:[#allocation410_spill] sm:$0xff] %v12313_v1 }
 0x470   : > { %16808 = vst [vmem:[#allocation24_spill] sm:$0xff] %v12285_v60 }
 0x471   : > { %9262 = vset.pattern.permute.xlu1 %v16501_v58 }
 0x472   : > { %4762 = vperm.xlu1 %9262, %v16541_v22  }
 0x474   : > { %v12295_v37 = vpop.permute.xlu1 %3238 }
 0x475   : > { %16810 = vst [vmem:[#allocation408_spill] sm:$0xff] %v12295_v37  ;;  %v3384_v14 = vmul.f32 %v12166_v38, %v12295_v37  ;;  %v5116_v38 = vrot.slane %v11361_v34, %v16722_v49  ;;  %v8666_v34 = vld [vmem:[%s15391_s4 + $0x20] sm:$0xff] }
 0x476   : > { %9263 = vset.pattern.permute.xlu1 %v16811_v41 }
 0x477   : > { %v3416_v17 = vadd.f32 %v3384_v14, %v3160_v39  ;;  %2750 = vperm.xlu1 %9263, %v16813_v2   ;;  %v16817_v14 = vmov 12  }
 0x479   : > { %v12302_v56 = vpop.permute.xlu1 %4246  ;;  %v12304_v53 = vadd.f32 %v3640_v28, %v3416_v17 }
 0x47a   : > { %16814 = vst [vmem:[#allocation409_spill] sm:$0xff] %v12302_v56  ;;  %v4404_v10 = vmul.f32 %v4352_v48, %v12302_v56  ;;  %v5170_v48 = vmul.f32 %v5116_v38, %v12313_v1 }
 0x47b   : > { %9264 = vset.pattern.permute.xlu1 %v16778_v21 }
 0x47c   : > { %v12308_v4 = vadd.f32 %v4404_v10, %v4180_v61  ;;  %3758 = vperm.xlu1 %9264, %v16687_v13   ;;  %v12325_v61 = vrot.slane %v12145_v27, %v16698_v0 }
 0x47e   : > { %v12315_v23 = vpop.permute.xlu1 %4750  ;;  %v3895_v56 = vmul.f32 %v12325_v61, %v16820_v35 }
 0x47f   : > { %16816 = vst [vmem:[#allocation411_spill] sm:$0xff] %v12315_v23  ;;  %v4914_v39 = vmul.f32 %v12200_v25, %v12315_v23  ;;  %v8667_v25 = vld [vmem:[%s15391_s4 + $0x28] sm:$0xff] }
 0x480   : > { %9265 = vset.pattern.permute.xlu1 %v16817_v14  ;;  %v9053_v44 = vpack.c.bf16 %v8667_v25, %v8666_v34 }
 0x481   : > { %v4946_v28 = vadd.f32 %v4914_v39, %v12176_v30  ;;  %4262 = vperm.xlu1 %9265, %v16781_v11   ;;  %v16819_v39 = vld [vmem:[#allocation264_spill] sm:$0xff] }
 0x482   : > { %v4100_v37 = vrot.slane %v11931_v32, %v16819_v39  ;;  %9054 = vmatprep.subr.bf16.mxu0 %v9053_v44 }
 0x483   : > { %v12333_v17 = vpop.permute.xlu1 %3490  ;;  %v5202_v10 = vadd.f32 %v5170_v48, %v4946_v28  ;;  %9056 = vmatpush3.bf16.msra.mxu0 %v9053_v44  ;;  %v8668_v48 = vld [vmem:[%s15391_s4 + $0x30] sm:$0xff] }
 0x484   : > { %16818 = vst [vmem:[#allocation412_spill] sm:$0xff] %v12333_v17  ;;  %v3639_v30 = vmul.f32 %v3592_v45, %v12333_v17  ;;  %v8669_v45 = vld [vmem:[%s15391_s4 + $0x38] sm:$0xff] }
 0x485   : > { %9266 = vset.pattern.permute.xlu1 %v16739_v20  ;;  %v9057_v28 = vpack.c.bf16 %v8669_v45, %v8668_v48  ;;  %v16835_v20 = vld [vmem:[#allocation230_spill] sm:$0xff] }
 0x486   : > { %v3671_v12 = vadd.f32 %v3639_v30, %v12192_v29  ;;  %3002 = vperm.xlu1 %9266, %v16821_v46   ;;  %v16823_v29 = vld [vmem:[#allocation58_spill] sm:$0xff] }
 0x487   : > { %9058 = vmatprep.subr.bf16.mxu0 %v9057_v28  ;;  %v856_v44 = vmul.f32 0.01, %v16823_v29 }
 0x488   : > { %v12349_v34 = vpop.permute.xlu1 %3994  ;;  %v12351_v25 = vadd.f32 %v3895_v56, %v3671_v12  ;;  %9060 = vmatpush3.bf16.msra.mxu0 %v9057_v28 }
 0x489   : > { %16822 = vst [vmem:[#allocation264_spill] sm:$0xff] %v12349_v34  ;;  %v4149_v35 = vmul.f32 %v4100_v37, %v12349_v34  ;;  %v888_v12 = vmax.f32 %v16823_v29, %v856_v44  ;;  %v4356_v44 = vrot.slane %v11931_v32, %v16618_v15 }
 0x48a   : > { %9267 = vset.pattern.permute.xlu1 %v16795_v5 }
 0x48b   : > { %v12357_v30 = vadd.f32 %v4149_v35, %v12264_v36  ;;  %3506 = vperm.xlu1 %9267, %v16755_v16   ;;  %v1548_v45 = vrot.slane %v888_v12, %v10774_v18  ;;  %v1324_v36 = vrot.slane %v888_v12, %v10772_v54  ;;  %v16826_v35 = vld [vmem:[#allocation105_spill] sm:$0xff]  ;;  %v1804_v29 = vrot.slane %v888_v12, %v16698_v0 }
 0x48c   : > { %v2316_v55 = vrot.slane %v888_v12, %v16618_v15  ;;  %v2572_v59 = vrot.slane %v888_v12, %v16771_v50 }
 0x48d   : > { %v12360_v17 = vpop.permute.xlu1 %5002 }
 0x48e   : > { %16824 = vst [vmem:[#allocation58_spill] sm:$0xff] %v12360_v17  ;;  %v5169_v48 = vmul.f32 %v5116_v38, %v12360_v17  ;;  %v1593_v38 = vmul.f32 %v1548_v45, %v16826_v35 }
 0x48f   : > { %9268 = vset.pattern.permute.xlu1 %v16751_v7 }
 0x490   : > { %v5201_v56 = vadd.f32 %v5169_v48, %v12214_v8  ;;  %4514 = vperm.xlu1 %9268, %v16789_v62   ;;  %v2060_v8 = vrot.slane %v888_v12, %v16819_v39  ;;  %v16827_v48 = vld [vmem:[#allocation84_spill] sm:$0xff]  ;;  %v2617_v62 = vmul.f32 %v2572_v59, %v16835_v20 }
 0x491   : > { %v1369_v34 = vmul.f32 %v1324_v36, %v16827_v48  ;;  %v16832_v48 = vld [vmem:[#allocation215_spill] sm:$0xff] }
 0x492   : > { %v12368_v28 = vpop.permute.xlu1 %2990  ;;  %8916 = vmatprep.mubr.msk.f32.mxu1 %vm518_vm1, %v5201_v56  ;;  %v16828_v56 = vld [vmem:[#allocation150_spill] sm:$0xff]  ;;  %v2105_v35 = vmul.f32 %v2060_v8, %v16830_v63  ;;  %v2361_v6 = vmul.f32 %v2316_v55, %v16832_v48  ;;  %v16834_v63 = vld [vmem:[#allocation57_spill] sm:$0xff] }
 0x493   : > { %16825 = vst [vmem:[#allocation413_spill] sm:$0xff] %v12368_v28  ;;  %8917 = vmatmul.mubr.msk.f32.gmra.mrb[18].mxu1 %vm518_vm1, %v5202_v10  ;;  %v1849_v1 = vmul.f32 %v1804_v29, %v16828_v56  ;;  %v1625_v17 = vadd.f32 %v1593_v38, %v1369_v34  ;;  %v16844_v48 = vld [vmem:[#allocation30_spill] sm:$0xff] }
 0x494   : > { %9269 = vset.pattern.permute.xlu1 %v16592_v24 }
 0x495   : > { %5018 = vperm.xlu1 %9269, %v16541_v22   ;;  %v16831_v22 = vld [vmem:[#allocation272_spill] sm:$0xff]  ;;  %v1881_v56 = vadd.f32 %v1849_v1, %v1625_v17 }
 0x496   : > { %v4406_v9 = vmul.f32 %v4356_v44, %v16831_v22 }
 0x497   : > { %v12382_v23 = vpop.permute.xlu1 %3998  ;;  %v2137_v7 = vadd.f32 %v2105_v35, %v1881_v56  ;;  %v3084_v35 = vrot.slane %v888_v12, %v16722_v49 }
 0x498   : > { %16829 = vst [vmem:[#allocation414_spill] sm:$0xff] %v12382_v23  ;;  %v4150_v10 = vmul.f32 %v4100_v37, %v12382_v23  ;;  %v2828_v37 = vrot.slane %v888_v12, %v16623_v26  ;;  %v857_v23 = vmul.f32 0.01, %v16834_v63 }
 0x499   : > { %9270 = vset.pattern.permute.xlu1 %v16795_v5 }
 0x49a   : > { %v4182_v43 = vadd.f32 %v4150_v10, %v12232_v51  ;;  %3510 = vperm.xlu1 %9270, %v16793_v47   ;;  %v2393_v51 = vadd.f32 %v2361_v6, %v2137_v7  ;;  %v2873_v1 = vmul.f32 %v2828_v37, %v12245_v42  ;;  %v16838_v7 = vld [vmem:[#allocation312_spill] sm:$0xff] }
 0x49c   : > { %v12394_v34 = vpop.permute.xlu1 %4502  ;;  %v12396_v38 = vadd.f32 %v4406_v9, %v4182_v43  ;;  %v12409_v43 = vmax.f32 %v16834_v63, %v857_v23  ;;  %v2649_v9 = vadd.f32 %v2617_v62, %v2393_v51  ;;  %v16839_v63 = vld [vmem:[#allocation75_spill] sm:$0xff]  ;;  %v16840_v23 = vld [vmem:[#allocation118_spill] sm:$0xff] }
 0x49d   : > { %16833 = vst [vmem:[#allocation415_spill] sm:$0xff] %v12394_v34  ;;  %v4660_v22 = vmul.f32 %v12271_v33, %v12394_v34  ;;  %v3129_v33 = vmul.f32 %v3084_v35, %v16838_v7  ;;  %v1370_v62 = vmul.f32 %v1324_v36, %v16839_v63  ;;  %v1594_v12 = vmul.f32 %v1548_v45, %v16840_v23 }
 0x49e   : > { %9271 = vset.pattern.permute.xlu1 %v16724_v31  ;;  %16836 = vst [vmem:[#allocation57_spill] sm:$0xff] %v12409_v43  ;;  %v2905_v10 = vadd.f32 %v2873_v1, %v2649_v9  ;;  %v3340_v6 = vrot.slane %v12409_v43, %v10772_v54  ;;  %v16842_v9 = vld [vmem:[#allocation137_spill] sm:$0xff]  ;;  %v4612_v23 = vrot.slane %v11931_v32, %v16771_v50 }
 0x49f   : > { %v12405_v17 = vadd.f32 %v4660_v22, %v12308_v4  ;;  %4014 = vperm.xlu1 %9271, %v16687_v13   ;;  %v12421_v4 = vrot.slane %v12409_v43, %v10774_v18  ;;  %v1850_v42 = vmul.f32 %v1804_v29, %v16842_v9  ;;  %v1626_v34 = vadd.f32 %v1594_v12, %v1370_v62  ;;  %v16845_v43 = vld [vmem:[#allocation183_spill] sm:$0xff] }
 0x4a0   : > { %v3161_v51 = vadd.f32 %v3129_v33, %v2905_v10  ;;  %v2106_v36 = vmul.f32 %v2060_v8, %v16845_v43  ;;  %v16847_v33 = vld [vmem:[#allocation199_spill] sm:$0xff]  ;;  %v2874_v8 = vmul.f32 %v2828_v37, %v12285_v60 }
 0x4a1   : > { %v12412_v56 = vpop.permute.xlu1 %2738  ;;  %v1882_v10 = vadd.f32 %v1850_v42, %v1626_v34  ;;  %v12452_v42 = vpop.permute.xlu0 %5010 }
 0x4a2   : > { %16837 = vst [vmem:[#allocation416_spill] sm:$0xff] %v12412_v56  ;;  %16849 = vst [vmem:[#allocation419_spill] sm:$0xff] %v12452_v42 }
 0x4a3   : > { %9272 = vset.pattern.permute.xlu1 %v16592_v24 }
 0x4a4   : > { %5022 = vperm.xlu1 %9272, %v16747_v19   ;;  %v16843_v19 = vld [vmem:[#allocation347_spill] sm:$0xff] }
 0x4a5   : > { %v3641_v7 = vmul.f32 %v12421_v4, %v16843_v19  ;;  %v4864_v19 = vrot.slane %v16754_v3, %v16623_v26 }
 0x4a6   : > { %v12425_v22 = vpop.permute.xlu1 %3242 }
 0x4a7   : > { %16841 = vst [vmem:[#allocation417_spill] sm:$0xff] %v12425_v22  ;;  %v3385_v1 = vmul.f32 %v3340_v6, %v12425_v22  ;;  %v2362_v22 = vmul.f32 %v2316_v55, %v16847_v33 }
 0x4a8   : > { %9273 = vset.pattern.permute.xlu1 %v16811_v41 }
 0x4a9   : > { %v3417_v20 = vadd.f32 %v3385_v1, %v3161_v51  ;;  %2754 = vperm.xlu1 %9273, %v16844_v48   ;;  %v2138_v51 = vadd.f32 %v2106_v36, %v1882_v10  ;;  %v16848_v1 = vld [vmem:[#allocation249_spill] sm:$0xff] }
 0x4aa   : > { %v2618_v9 = vmul.f32 %v2572_v59, %v16848_v1  ;;  %v3130_v59 = vmul.f32 %v3084_v35, %v12368_v28 }
 0x4ab   : > { %v12434_v63 = vpop.permute.xlu1 %4250  ;;  %v12436_v45 = vadd.f32 %v3641_v7, %v3417_v20  ;;  %v12450_v20 = vrot.slane %v16754_v3, %v16722_v49  ;;  %v2394_v55 = vadd.f32 %v2362_v22, %v2138_v51  ;;  %v16854_v51 = vld [vmem:[#allocation60_spill] sm:$0xff] }
 0x4ac   : > { %16846 = vst [vmem:[#allocation418_spill] sm:$0xff] %v12434_v63  ;;  %v4405_v29 = vmul.f32 %v4356_v44, %v12434_v63 }
 0x4ad   : > { %9274 = vset.pattern.permute.xlu1 %v16778_v21  ;;  %v2650_v7 = vadd.f32 %v2618_v9, %v2394_v55  ;;  %v16852_v9 = vld [vmem:[#allocation23_spill] sm:$0xff]  ;;  %v858_v55 = vmul.f32 0.01, %v16854_v51 }
 0x4ae   : > { %v12445_v62 = vadd.f32 %v4405_v29, %v12357_v30  ;;  %3762 = vperm.xlu1 %9274, %v16755_v16   ;;  %v5171_v30 = vmul.f32 %v12450_v20, %v12452_v42 }
 0x4af   : > { %v2906_v12 = vadd.f32 %v2874_v8, %v2650_v7 }
 0x4b0   : > { %v12455_v44 = vpop.permute.xlu1 %4754 }
 0x4b1   : > { %16850 = vst [vmem:[#allocation420_spill] sm:$0xff] %v12455_v44  ;;  %v4915_v34 = vmul.f32 %v4864_v19, %v12455_v44  ;;  %v3162_v36 = vadd.f32 %v3130_v59, %v2906_v12  ;;  %v890_v59 = vmax.f32 %v16854_v51, %v858_v55  ;;  %v16858_v51 = vld [vmem:[#allocation77_spill] sm:$0xff] }
 0x4b2   : > { %9275 = vset.pattern.permute.xlu1 %v16817_v14 }
 0x4b3   : > { %v4947_v3 = vadd.f32 %v4915_v34, %v12287_v57  ;;  %4266 = vperm.xlu1 %9275, %v16807_v40   ;;  %v4104_v57 = vrot.slane %v12145_v27, %v16819_v39 }
 0x4b5   : > { %v12464_v22 = vpop.permute.xlu1 %3246  ;;  %v5203_v37 = vadd.f32 %v5171_v30, %v4947_v3 }
 0x4b6   : > { %16851 = vst [vmem:[#allocation421_spill] sm:$0xff] %v12464_v22  ;;  %v3386_v10 = vmul.f32 %v3340_v6, %v12464_v22  ;;  %v16855_v6 = vld [vmem:[#allocation385_spill] sm:$0xff]  ;;  %v12508_v22 = vrot.slane %v12145_v27, %v16618_v15 }
 0x4b7   : > { %9276 = vset.pattern.permute.xlu1 %v16811_v41  ;;  %8919 = vmatprep.mubr.msk.f32.mxu1 %vm518_vm1, %v5203_v37  ;;  %v4152_v34 = vmul.f32 %v4104_v57, %v16855_v6  ;;  %v1328_v37 = vrot.slane %v890_v59, %v10772_v54  ;;  %v16864_v6 = vld [vmem:[#allocation201_spill] sm:$0xff] }
 0x4b8   : > { %v12469_v35 = vadd.f32 %v3386_v10, %v3162_v36  ;;  %2758 = vperm.xlu1 %9276, %v16852_v9   ;;  %v1808_v36 = vrot.slane %v890_v59, %v16698_v0 }
 0x4b9   : > { %v1372_v55 = vmul.f32 %v1328_v37, %v16858_v51  ;;  %v16862_v51 = vld [vmem:[#allocation59_spill] sm:$0xff] }
 0x4ba   : > { %v12474_v29 = vpop.permute.xlu1 %3750  ;;  %v859_v1 = vmul.f32 0.01, %v16862_v51 }
 0x4bb   : > { %16853 = vst [vmem:[#allocation422_spill] sm:$0xff] %v12474_v29  ;;  %v3896_v8 = vmul.f32 %v12325_v61, %v12474_v29 }
 0x4bc   : > { %9277 = vset.pattern.permute.xlu1 %v16493_v52 }
 0x4bd   : > { %v3928_v7 = vadd.f32 %v3896_v8, %v12304_v53  ;;  %3262 = vperm.xlu1 %9277, %v16813_v2   ;;  %v1552_v53 = vrot.slane %v890_v59, %v10774_v18  ;;  %v16859_v8 = vld [vmem:[#allocation120_spill] sm:$0xff] }
 0x4bf   : > { %v12484_v30 = vpop.permute.xlu1 %4758  ;;  %v12486_v3 = vadd.f32 %v4152_v34, %v3928_v7  ;;  %v1596_v34 = vmul.f32 %v1552_v53, %v16859_v8  ;;  %v16863_v8 = vld [vmem:[#allocation185_spill] sm:$0xff] }
 0x4c0   : > { %16856 = vst [vmem:[#allocation60_spill] sm:$0xff] %v12484_v30  ;;  %v4916_v12 = vmul.f32 %v4864_v19, %v12484_v30  ;;  %v16860_v19 = vld [vmem:[#allocation139_spill] sm:$0xff] }
 0x4c1   : > { %9278 = vset.pattern.permute.xlu1 %v16817_v14  ;;  %v1852_v7 = vmul.f32 %v1808_v36, %v16860_v19  ;;  %v1628_v28 = vadd.f32 %v1596_v34, %v1372_v55  ;;  %v2832_v55 = vrot.slane %v890_v59, %v16623_v26  ;;  %v16865_v34 = vld [vmem:[#allocation16_spill] sm:$0xff] }
 0x4c2   : > { %v12491_v61 = vadd.f32 %v4916_v12, %v12405_v17  ;;  %4270 = vperm.xlu1 %9278, %v16687_v13   ;;  %v2064_v17 = vrot.slane %v890_v59, %v16819_v39  ;;  %v2320_v12 = vrot.slane %v890_v59, %v16618_v15  ;;  %v4407_v63 = vmul.f32 %v12508_v22, %v16865_v34 }
 0x4c3   : > { %v1884_v19 = vadd.f32 %v1852_v7, %v1628_v28  ;;  %v12526_v28 = vmax.f32 %v16862_v51, %v859_v1  ;;  %v16867_v7 = vld [vmem:[#allocation251_spill] sm:$0xff]  ;;  %v3088_v1 = vrot.slane %v890_v59, %v16722_v49  ;;  %v16871_v51 = vld [vmem:[#allocation290_spill] sm:$0xff] }
 0x4c4   : > { %v12497_v10 = vpop.permute.xlu1 %2994  ;;  %v2108_v33 = vmul.f32 %v2064_v17, %v16863_v8  ;;  %v2364_v29 = vmul.f32 %v2320_v12, %v16864_v6 }
 0x4c5   : > { %16857 = vst [vmem:[#allocation423_spill] sm:$0xff] %v12497_v10  ;;  %16866 = vst [vmem:[#allocation59_spill] sm:$0xff] %v12526_v28 }
 0x4c6   : > { %9279 = vset.pattern.permute.xlu1 %v16501_v58 }
 0x4c7   : > { %4774 = vperm.xlu1 %9279, %v16781_v11   ;;  %v2576_v11 = vrot.slane %v890_v59, %v16771_v50 }
 0x4c9   : > { %v12510_v60 = vpop.permute.xlu1 %4002  ;;  %v2620_v8 = vmul.f32 %v2576_v11, %v16867_v7  ;;  %v16876_v7 = vmov 7  }
 0x4ca   : > { %16861 = vst [vmem:[#allocation424_spill] sm:$0xff] %v12510_v60  ;;  %v4151_v43 = vmul.f32 %v4104_v57, %v12510_v60  ;;  %v2140_v57 = vadd.f32 %v2108_v33, %v1884_v19  ;;  %v3344_v33 = vrot.slane %v12526_v28, %v10772_v54 }
 0x4cb   : > { %9280 = vset.pattern.permute.xlu1 %v16795_v5  ;;  %v16869_v5 = vld [vmem:[#allocation258_spill] sm:$0xff] }
 0x4cc   : > { %v4183_v30 = vadd.f32 %v4151_v43, %v12351_v25  ;;  %3514 = vperm.xlu1 %9280, %v16821_v46   ;;  %v2396_v44 = vadd.f32 %v2364_v29, %v2140_v57  ;;  %v2876_v2 = vmul.f32 %v2832_v55, %v16869_v5  ;;  %v3388_v19 = vmul.f32 %v3344_v33, %v16871_v51 }
 0x4ce   : > { %v12529_v60 = vpop.permute.xlu1 %4506  ;;  %v12531_v42 = vadd.f32 %v4407_v63, %v4183_v30  ;;  %v2652_v43 = vadd.f32 %v2620_v8, %v2396_v44  ;;  %v16875_v8 = vld [vmem:[#allocation107_spill] sm:$0xff] }
 0x4cf   : > { %16868 = vst [vmem:[#allocation425_spill] sm:$0xff] %v12529_v60  ;;  %v4661_v6 = vmul.f32 %v4612_v23, %v12529_v60  ;;  %v1595_v5 = vmul.f32 %v1552_v53, %v16875_v8  ;;  %v16879_v53 = vld [vmem:[#allocation169_spill] sm:$0xff]  ;;  %v2875_v8 = vmul.f32 %v2832_v55, %v12412_v56  ;;  %v16894_v56 = vld [vmem:[#allocation32_spill] sm:$0xff] }
 0x4d0   : > { %9281 = vset.pattern.permute.xlu1 %v16724_v31  ;;  %v2908_v30 = vadd.f32 %v2876_v2, %v2652_v43  ;;  %v16877_v2 = vld [vmem:[#allocation86_spill] sm:$0xff] }
 0x4d1   : > { %v12537_v25 = vadd.f32 %v4661_v6, %v12445_v62  ;;  %4018 = vperm.xlu1 %9281, %v16755_v16   ;;  %v16872_v62 = vld [vmem:[#allocation22_spill] sm:$0xff]  ;;  %v1371_v43 = vmul.f32 %v1328_v37, %v16877_v2  ;;  %v16881_v37 = vld [vmem:[#allocation217_spill] sm:$0xff] }
 0x4d3   : > { %v12543_v63 = vpop.permute.xlu1 %2998 }
 0x4d4   : > { %16870 = vst [vmem:[#allocation426_spill] sm:$0xff] %v12543_v63  ;;  %v3132_v29 = vmul.f32 %v3088_v1, %v12543_v63  ;;  %v16878_v63 = vld [vmem:[#allocation152_spill] sm:$0xff] }
 0x4d5   : > { %9282 = vset.pattern.permute.xlu1 %v16592_v24  ;;  %v1851_v34 = vmul.f32 %v1808_v36, %v16878_v63  ;;  %v16882_v36 = vld [vmem:[#allocation302_spill] sm:$0xff] }
 0x4d6   : > { %v3164_v57 = vadd.f32 %v3132_v29, %v2908_v30  ;;  %5026 = vperm.xlu1 %9282, %v16872_v62   ;;  %v12565_v30 = vrot.slane %v11931_v32, %v16623_v26  ;;  %v1627_v29 = vadd.f32 %v1595_v5, %v1371_v43 }
 0x4d8   : > { %v12549_v6 = vpop.permute.xlu1 %3502  ;;  %v12551_v44 = vadd.f32 %v3388_v19, %v3164_v57  ;;  %v2107_v19 = vmul.f32 %v2064_v17, %v16879_v53  ;;  %v1883_v62 = vadd.f32 %v1851_v34, %v1627_v29 }
 0x4d9   : > { %16873 = vst [vmem:[#allocation22_spill] sm:$0xff] %v12549_v6  ;;  %v3642_v59 = vmul.f32 %v12421_v4, %v12549_v6  ;;  %v2363_v6 = vmul.f32 %v2320_v12, %v16881_v37 }
 0x4da   : > { %16874 = vst [vmem:[#allocation427_spill] sm:$0xff] %v12551_v44  ;;  %9283 = vset.pattern.permute.xlu1 %v16876_v7  ;;  %v2139_v43 = vadd.f32 %v2107_v19, %v1883_v62 }
 0x4db   : > { %v12560_v51 = vadd.f32 %v3642_v59, %v12469_v35  ;;  %3014 = vperm.xlu1 %9283, %v16852_v9   ;;  %v12576_v35 = vld [vmem:[%s15392_s5] ss:$0 sm:$0xff]  ;;  %v4918_v59 = vmul.f32 %v12565_v30, %v16882_v36 }
 0x4dc   : > { %v2395_v63 = vadd.f32 %v2363_v6, %v2139_v43 }
 0x4dd   : > { %v12568_v57 = vpop.permute.xlu1 %4510 }
 0x4de   : > { %16880 = vst [vmem:[#allocation428_spill] sm:$0xff] %v12568_v57  ;;  %v4662_v4 = vmul.f32 %v4612_v23, %v12568_v57  ;;  %v16883_v23 = vld [vmem:[#allocation231_spill] sm:$0xff]  ;;  %v16887_v57 = vmov 13  }
 0x4df   : > { %9284 = vset.pattern.permute.xlu1 %v16724_v31  ;;  %v2619_v34 = vmul.f32 %v2576_v11, %v16883_v23  ;;  %v3131_v11 = vmul.f32 %v3088_v1, %v12497_v10  ;;  %v16895_v23 = vld [vmem:[#allocation134_spill] sm:$0xff] }
 0x4e0   : > { %v4694_v5 = vadd.f32 %v4662_v4, %v12396_v38  ;;  %4022 = vperm.xlu1 %9284, %v16793_v47   ;;  %v16886_v38 = vld [vmem:[#allocation62_spill] sm:$0xff] }
 0x4e1   : > { %v8906_v17 = vpop.f32.mrb[10].mxu1  ;;  %v860_v4 = vmul.f32 0.01, %v16886_v38  ;;  %v2651_v19 = vadd.f32 %v2619_v34, %v2395_v63 }
 0x4e2   : > { %v5396_v29 = vpop.f32.mrb[11].mxu1  ;;  %v12583_v12 = vpop.permute.xlu1 %5014  ;;  %v12586_v53 = vadd.f32 %v4918_v59, %v4694_v5  ;;  %v5402_v6 = vadd.f32 %v8906_v17, %v12576_v35  ;;  %v16890_v17 = vld [vmem:[#allocation65_spill] sm:$0xff] }
 0x4e3   : > { %16884 = vst [vmem:[#allocation429_spill] sm:$0xff] %v12583_v12  ;;  %v5397_v37 = vadd.f32 %v12576_v35, %v5396_v29  ;;  %v5172_v2 = vmul.f32 %v12450_v20, %v12583_v12  ;;  %v2907_v5 = vadd.f32 %v2875_v8, %v2651_v19  ;;  %v12601_v20 = vmax.f32 %v16886_v38, %v860_v4  ;;  %v16891_v29 = vld [vmem:[#allocation63_spill] sm:$0xff]  ;;  %v16892_v4 = vld [vmem:[#allocation100_spill] sm:$0xff] }
 0x4e4   : > { %16885 = vst [vmem:[#allocation430_spill] sm:$0xff] %v12586_v53  ;;  %9285 = vset.pattern.permute.xlu1 %v16887_v57  ;;  %v16902_v53 = vld [vmem:[#allocation200_spill] sm:$0xff] }
 0x4e5   : > { %v5555_v36 = vmul.f32 0.01, %v5397_v37  ;;  %v5204_v62 = vadd.f32 %v5172_v2, %v12491_v61  ;;  %4526 = vperm.xlu1 %9285, %v16687_v13   ;;  %v3163_v61 = vadd.f32 %v3131_v11, %v2907_v5  ;;  %v5556_v11 = vmul.f32 0.01, %v5402_v6 }
 0x4e7   : > { %v5587_v59 = vmax.f32 %v5397_v37, %v5555_v36  ;;  %v12597_v55 = vpop.permute.xlu1 %3250  ;;  %8920 = vmatmul.mubr.msk.f32.gmra.mrb[20].mxu1 %vm518_vm1, %v5204_v62  ;;  %v16889_v37 = vld [vmem:[#allocation57_spill] sm:$0xff]  ;;  %v16893_v62 = vld [vmem:[#allocation92_spill] sm:$0xff] }
 0x4e8   : > { %16888 = vst [vmem:[#allocation62_spill] sm:$0xff] %v12597_v55  ;;  %v3387_v8 = vmul.f32 %v3344_v33, %v12597_v55  ;;  %v12611_v36 = vrot.slane %v16889_v37, %v16698_v0 }
 0x4e9   : > { %v5622_v43 = vrot.slane %v5587_v59, %v10772_v54  ;;  %v5718_v63 = vrot.slane %v5587_v59, %v10774_v18  ;;  %v5846_v1 = vrot.slane %v5587_v59, %v16698_v0  ;;  %v5974_v2 = vrot.slane %v5587_v59, %v16819_v39  ;;  %9286 = vset.pattern.permute.xlu1 %v16811_v41 }
 0x4ea   : > { %2762 = vperm.xlu1 %9286, %v16894_v56   ;;  %v12618_v5 = vadd.f32 %v3387_v8, %v3163_v61  ;;  %v6102_v33 = vrot.slane %v5587_v59, %v16618_v15  ;;  %v6230_v8 = vrot.slane %v5587_v59, %v16771_v50 }
 0x4eb   : > { %v5683_v34 = vmul.f32 %v5622_v43, %v16890_v17  ;;  %v5684_v38 = vmul.f32 %v5622_v43, %v16891_v29  ;;  %v5779_v19 = vmul.f32 %v5718_v63, %v16892_v4  ;;  %v5780_v10 = vmul.f32 %v5718_v63, %v16893_v62  ;;  %v16897_v17 = vld [vmem:[#allocation122_spill] sm:$0xff]  ;;  %v16898_v43 = vld [vmem:[#allocation61_spill] sm:$0xff] }
 0x4ec   : > { %v5908_v60 = vmul.f32 %v5846_v1, %v16895_v23  ;;  %v12622_v12 = vpop.permute.xlu1 %3754  ;;  %v5907_v24 = vmul.f32 %v5846_v1, %v16897_v17  ;;  %v861_v29 = vmul.f32 0.01, %v16898_v43  ;;  %v12628_v63 = vrot.slane %v12601_v20, %v10772_v54 }
 0x4ed   : > { %v5812_v55 = vadd.f32 %v5780_v10, %v5684_v38  ;;  %16896 = vst [vmem:[#allocation65_spill] sm:$0xff] %v12622_v12  ;;  %v5811_v41 = vadd.f32 %v5779_v19, %v5683_v34  ;;  %v3897_v61 = vmul.f32 %v12611_v36, %v12622_v12  ;;  %v16899_v10 = vld [vmem:[#allocation154_spill] sm:$0xff]  ;;  %v12638_v1 = vrot.slane %v12601_v20, %v10774_v18 }
 0x4ee   : > { %v6036_v38 = vmul.f32 %v5974_v2, %v16899_v10  ;;  %9287 = vset.pattern.permute.xlu1 %v16493_v52  ;;  %v16900_v34 = vld [vmem:[#allocation166_spill] sm:$0xff]  ;;  %v12640_v62 = vmax.f32 %v5402_v6, %v5556_v11  ;;  %v6358_v12 = vrot.slane %v5587_v59, %v16623_v26  ;;  %v16901_v10 = vld [vmem:[#allocation184_spill] sm:$0xff]  ;;  %v12653_v6 = vrot.slane %v16889_v37, %v16819_v39 }
 0x4ef   : > { %v5940_v4 = vadd.f32 %v5908_v60, %v5812_v55  ;;  %v5939_v23 = vadd.f32 %v5907_v24, %v5811_v41  ;;  %v6035_v19 = vmul.f32 %v5974_v2, %v16900_v34  ;;  %v3929_v17 = vadd.f32 %v3897_v61, %v12436_v45  ;;  %3266 = vperm.xlu1 %9287, %v16844_v48   ;;  %v16905_v45 = vld [vmem:[#allocation232_spill] sm:$0xff]  ;;  %v16908_v48 = vld [vmem:[#allocation242_spill] sm:$0xff] }
 0x4f0   : > { %v6163_v47 = vmul.f32 %v6102_v33, %v16901_v10  ;;  %v6164_v24 = vmul.f32 %v6102_v33, %v16902_v53  ;;  %v12649_v41 = vrot.slane %v12601_v20, %v16698_v0  ;;  %16903 = vst [vmem:[#allocation63_spill] sm:$0xff] %v12653_v6  ;;  %v6291_v11 = vmul.f32 %v6230_v8, %v16905_v45  ;;  %v16906_v61 = vld [vmem:[#allocation216_spill] sm:$0xff]  ;;  %v16907_v33 = vld [vmem:[#allocation109_spill] sm:$0xff] }
 0x4f1   : > { %v6068_v60 = vadd.f32 %v6036_v38, %v5940_v4  ;;  %v6067_v55 = vadd.f32 %v6035_v19, %v5939_v23  ;;  %v12655_v2 = vpop.permute.xlu1 %4762  ;;  %v6292_v34 = vmul.f32 %v6230_v8, %v16906_v61  ;;  %v6486_v53 = vrot.slane %v5587_v59, %v16722_v49  ;;  %v16919_v37 = vld [vmem:[#allocation280_spill] sm:$0xff] }
 0x4f2   : > { %16904 = vst [vmem:[#allocation100_spill] sm:$0xff] %v12655_v2  ;;  %v4917_v4 = vmul.f32 %v12565_v30, %v12655_v2  ;;  %v1597_v19 = vmul.f32 %v12638_v1, %v16907_v33  ;;  %v12666_v10 = vrot.slane %v12601_v20, %v16819_v39  ;;  %v6419_v45 = vmul.f32 %v6358_v12, %v16908_v48  ;;  %v16912_v33 = vld [vmem:[#allocation153_spill] sm:$0xff] }
 0x4f3   : > { %v6195_v38 = vadd.f32 %v6163_v47, %v6067_v55  ;;  %v6196_v23 = vadd.f32 %v6164_v24, %v6068_v60  ;;  %9288 = vset.pattern.permute.xlu1 %v16817_v14  ;;  %v6614_v8 = vrot.slane %v12640_v62, %v10772_v54  ;;  %v16910_v60 = vld [vmem:[#allocation269_spill] sm:$0xff]  ;;  %v16911_v24 = vld [vmem:[#allocation88_spill] sm:$0xff]  ;;  %v1853_v2 = vmul.f32 %v12649_v41, %v16912_v33 }
 0x4f4   : > { %v12673_v30 = vadd.f32 %v4917_v4, %v12537_v25  ;;  %4274 = vperm.xlu1 %9288, %v16755_v16   ;;  %v6420_v55 = vmul.f32 %v6358_v12, %v16910_v60  ;;  %v1373_v61 = vmul.f32 %v12628_v63, %v16911_v24  ;;  %v16913_v14 = vld [vmem:[#allocation17_spill] sm:$0xff]  ;;  %v6742_v44 = vrot.slane %v12640_v62, %v10774_v18  ;;  %v16917_v60 = vld [vmem:[#allocation171_spill] sm:$0xff] }
 0x4f5   : > { %v6323_v47 = vadd.f32 %v6291_v11, %v6195_v38  ;;  %v6324_v59 = vadd.f32 %v6292_v34, %v6196_v23  ;;  %v4153_v48 = vmul.f32 %v12653_v6, %v16913_v14  ;;  %v16915_v11 = vld [vmem:[#allocation275_spill] sm:$0xff]  ;;  %v16916_v38 = vld [vmem:[#allocation12_spill] sm:$0xff]  ;;  %v2109_v24 = vmul.f32 %v12666_v10, %v16917_v60 }
 0x4f6   : > { %16909 = vst [vmem:[#allocation92_spill] sm:$0xff] %v12673_v30  ;;  %v12685_v25 = vpop.permute.xlu1 %2750  ;;  %v6547_v34 = vmul.f32 %v6486_v53, %v16915_v11  ;;  %v6548_v12 = vmul.f32 %v6486_v53, %v16916_v38  ;;  %v1629_v23 = vadd.f32 %v1597_v19, %v1373_v61  ;;  %v6870_v33 = vrot.slane %v12640_v62, %v16698_v0  ;;  %v16926_v38 = vld [vmem:[#allocation322_spill] sm:$0xff] }
 0x4f7   : > { %16914 = vst [vmem:[#allocation134_spill] sm:$0xff] %v12685_v25  ;;  %v6451_v4 = vadd.f32 %v6419_v45, %v6323_v47  ;;  %v6452_v30 = vadd.f32 %v6420_v55, %v6324_v59  ;;  %v12693_v16 = vadd.f32 %v4153_v48, %v3929_v17  ;;  %v6675_v45 = vmul.f32 %v6614_v8, %v16919_v37  ;;  %v16920_v47 = vld [vmem:[#allocation283_spill] sm:$0xff] }
 0x4f8   : > { %9289 = vset.pattern.permute.xlu1 %v16501_v58  ;;  %v6676_v59 = vmul.f32 %v6614_v8, %v16920_v47  ;;  %v12699_v55 = vmax.f32 %v16898_v43, %v861_v29  ;;  %v1885_v53 = vadd.f32 %v1853_v2, %v1629_v23  ;;  %v12703_v19 = vrot.slane %v12601_v20, %v16618_v15  ;;  %v16923_v37 = vld [vmem:[#allocation291_spill] sm:$0xff]  ;;  %v16925_v2 = vld [vmem:[#allocation8_spill] sm:$0xff] }
 0x4f9   : > { %16918 = vst [vmem:[#allocation122_spill] sm:$0xff] %v12693_v16  ;;  %v6579_v14 = vadd.f32 %v6547_v34, %v6451_v4  ;;  %v6580_v6 = vadd.f32 %v6548_v12, %v6452_v30  ;;  %4778 = vperm.xlu1 %9289, %v16807_v40   ;;  %v6998_v17 = vrot.slane %v12640_v62, %v16819_v39  ;;  %v16922_v30 = vld [vmem:[#allocation338_spill] sm:$0xff]  ;;  %v16928_v47 = vld [vmem:[#allocation47_spill] sm:$0xff] }
 0x4fa   : > { %16921 = vst [vmem:[#allocation61_spill] sm:$0xff] %v12699_v55  ;;  %v6803_v4 = vmul.f32 %v6742_v44, %v16922_v30  ;;  %v6804_v11 = vmul.f32 %v6742_v44, %v16923_v37  ;;  %v2141_v8 = vadd.f32 %v2109_v24, %v1885_v53  ;;  %v12712_v43 = vrot.slane %v12601_v20, %v16771_v50  ;;  %v16927_v44 = vld [vmem:[#allocation219_spill] sm:$0xff] }
 0x4fb   : > { %v6707_v61 = vadd.f32 %v6675_v45, %v6579_v14  ;;  %v6708_v48 = vadd.f32 %v6676_v59, %v6580_v6  ;;  %v12714_v29 = vpop.permute.xlu1 %3758  ;;  %v6931_v34 = vmul.f32 %v6870_v33, %v16925_v2  ;;  %v6932_v40 = vmul.f32 %v6870_v33, %v16926_v38  ;;  %v16929_v33 = vld [vmem:[#allocation380_spill] sm:$0xff] }
 0x4fc   : > { %16924 = vst [vmem:[#allocation154_spill] sm:$0xff] %v12714_v29  ;;  %v3898_v12 = vmul.f32 %v12611_v36, %v12714_v29  ;;  %v7126_v23 = vrot.slane %v12640_v62, %v16618_v15  ;;  %v2365_v24 = vmul.f32 %v12703_v19, %v16927_v44  ;;  %v12726_v45 = vrot.slane %v12601_v20, %v16623_v26 }
 0x4fd   : > { %v6835_v14 = vadd.f32 %v6803_v4, %v6707_v61  ;;  %v6836_v6 = vadd.f32 %v6804_v11, %v6708_v48  ;;  %9290 = vset.pattern.permute.xlu1 %v16493_v52  ;;  %v7059_v59 = vmul.f32 %v6998_v17, %v16928_v47  ;;  %v7060_v53 = vmul.f32 %v6998_v17, %v16929_v33  ;;  %v16930_v4 = vld [vmem:[#allocation233_spill] sm:$0xff]  ;;  %v16934_v33 = vld [vmem:[#allocation262_spill] sm:$0xff] }
 0x4fe   : > { %v12732_v36 = vadd.f32 %v3898_v12, %v12560_v51  ;;  %3270 = vperm.xlu1 %9290, %v16852_v9   ;;  %v7254_v30 = vrot.slane %v12640_v62, %v16771_v50  ;;  %v2621_v37 = vmul.f32 %v12712_v43, %v16930_v4  ;;  %v12741_v11 = vrot.slane %v12699_v55, %v10772_v54 }
 0x4ff   : > { %v6963_v61 = vadd.f32 %v6931_v34, %v6835_v14  ;;  %v6964_v48 = vadd.f32 %v6932_v40, %v6836_v6  ;;  %v4616_v17 = vrot.slane %v12145_v27, %v16771_v50  ;;  %v7382_v51 = vrot.slane %v12640_v62, %v16623_v26  ;;  %v16932_v40 = vld [vmem:[#allocation306_spill] sm:$0xff]  ;;  %v16933_v14 = vld [vmem:[#allocation51_spill] sm:$0xff] }
 0x500   : > { %v12747_v2 = vpop.permute.xlu1 %4262  ;;  %v7187_v12 = vmul.f32 %v7126_v23, %v16932_v40  ;;  %v7188_v6 = vmul.f32 %v7126_v23, %v16933_v14  ;;  %v2397_v47 = vadd.f32 %v2365_v24, %v2141_v8  ;;  %v2877_v4 = vmul.f32 %v12726_v45, %v16934_v33  ;;  %v16937_v23 = vld [vmem:[#allocation10_spill] sm:$0xff]  ;;  %v16938_v14 = vld [vmem:[#allocation21_spill] sm:$0xff] }
 0x501   : > { %16931 = vst [vmem:[#allocation166_spill] sm:$0xff] %v12747_v2  ;;  %v7091_v34 = vadd.f32 %v7059_v59, %v6963_v61  ;;  %v7092_v38 = vadd.f32 %v7060_v53, %v6964_v48  ;;  %v4408_v44 = vmul.f32 %v12508_v22, %v12747_v2  ;;  %v7510_v60 = vrot.slane %v12640_v62, %v16722_v49  ;;  %v16935_v59 = vld [vmem:[#allocation315_spill] sm:$0xff]  ;;  %v16936_v61 = vld [vmem:[#allocation14_spill] sm:$0xff] }
 0x502   : > { %9291 = vset.pattern.permute.xlu1 %v16778_v21  ;;  %v7315_v53 = vmul.f32 %v7254_v30, %v16935_v59  ;;  %v7316_v48 = vmul.f32 %v7254_v30, %v16936_v61  ;;  %v2653_v40 = vadd.f32 %v2621_v37, %v2397_v47  ;;  %v12762_v8 = vrot.slane %v12601_v20, %v16722_v49  ;;  %v16939_v2 = vld [vmem:[#allocation326_spill] sm:$0xff]  ;;  %v16942_v30 = vld [vmem:[#allocation341_spill] sm:$0xff] }
 0x503   : > { %v7219_v29 = vadd.f32 %v7187_v12, %v7091_v34  ;;  %v7220_v16 = vadd.f32 %v7188_v6, %v7092_v38  ;;  %v4664_v24 = vmul.f32 %v4616_v17, %v16937_v23  ;;  %v4440_v22 = vadd.f32 %v4408_v44, %v12486_v3  ;;  %3774 = vperm.xlu1 %9291, %v16938_v14   ;;  %v16940_v38 = vld [vmem:[#allocation18_spill] sm:$0xff]  ;;  %v16944_v44 = vld [vmem:[#allocation348_spill] sm:$0xff] }
 0x504   : > { %v7443_v34 = vmul.f32 %v7382_v51, %v16939_v2  ;;  %v7444_v12 = vmul.f32 %v7382_v51, %v16940_v38  ;;  %v2909_v6 = vadd.f32 %v2877_v4, %v2653_v40  ;;  %v7571_v37 = vmul.f32 %v7510_v60, %v16942_v30 }
 0x505   : > { %v7347_v62 = vadd.f32 %v7315_v53, %v7219_v29  ;;  %v7348_v33 = vadd.f32 %v7316_v48, %v7220_v16  ;;  %v12769_v59 = vpop.permute.xlu1 %3002  ;;  %v12772_v47 = vadd.f32 %v4664_v24, %v4440_v22  ;;  %v7572_v23 = vmul.f32 %v7510_v60, %v16944_v44  ;;  %v16945_v29 = vld [vmem:[#allocation292_spill] sm:$0xff]  ;;  %v16946_v48 = vld [vmem:[#allocation79_spill] sm:$0xff] }
 0x506   : > { %16941 = vst [vmem:[#allocation184_spill] sm:$0xff] %v12769_v59  ;;  %v3133_v20 = vmul.f32 %v12762_v8, %v12769_v59  ;;  %v12780_v16 = vrot.slane %v12526_v28, %v10774_v18  ;;  %v3389_v4 = vmul.f32 %v12741_v11, %v16945_v29  ;;  %v1374_v40 = vmul.f32 %v12628_v63, %v16946_v48  ;;  %v16962_v29 = vld [vmem:[#allocation313_spill] sm:$0xff] }
 0x507   : > { %16943 = vst [vmem:[#allocation200_spill] sm:$0xff] %v12772_v47  ;;  %v7475_v61 = vadd.f32 %v7443_v34, %v7347_v62  ;;  %v7476_v3 = vadd.f32 %v7444_v12, %v7348_v33  ;;  %9292 = vset.pattern.permute.xlu1 %v16501_v58  ;;  %v16947_v33 = vld [vmem:[#allocation121_spill] sm:$0xff] }
 0x508   : > { %v3165_v51 = vadd.f32 %v3133_v20, %v2909_v6  ;;  %4782 = vperm.xlu1 %9292, %v16687_v13   ;;  %v1598_v60 = vmul.f32 %v12638_v1, %v16947_v33  ;;  %v16950_v62 = vld [vmem:[#allocation141_spill] sm:$0xff]  ;;  %v16952_v6 = vld [vmem:[#allocation38_spill] sm:$0xff]  ;;  %v16954_v20 = vld [vmem:[#allocation203_spill] sm:$0xff] }
 0x509   : > { %v7603_v2 = vadd.f32 %v7571_v37, %v7475_v61  ;;  %v7604_v53 = vadd.f32 %v7572_v23, %v7476_v3  ;;  %v1854_v34 = vmul.f32 %v12649_v41, %v16950_v62  ;;  %v16951_v23 = vld [vmem:[#allocation187_spill] sm:$0xff]  ;;  %v862_v30 = vmul.f32 0.01, %v16952_v6  ;;  %v16968_v62 = vld [vmem:[#allocation329_spill] sm:$0xff]  ;;  %v16970_v33 = vld [vmem:[#allocation64_spill] sm:$0xff] }
 0x50a   : > { %v12789_v24 = vpop.permute.xlu1 %3506  ;;  %v12792_v22 = vadd.f32 %v3389_v4, %v3165_v51  ;;  %v1630_v63 = vadd.f32 %v1598_v60, %v1374_v40  ;;  %v2110_v1 = vmul.f32 %v12666_v10, %v16951_v23  ;;  %v12809_v41 = vrot.slane %v12145_v27, %v16623_v26  ;;  %v16956_v51 = vld [vmem:[#allocation253_spill] sm:$0xff] }
 0x50b   : > { %16948 = vst [vmem:[#allocation232_spill] sm:$0xff] %v12789_v24  ;;  %8960 = vmatprep.mubr.msk.f32.mxu0 %vm518_vm1, %v7603_v2  ;;  %v3643_v38 = vmul.f32 %v12780_v16, %v12789_v24  ;;  %v2366_v61 = vmul.f32 %v12703_v19, %v16954_v20  ;;  %v2622_v2 = vmul.f32 %v12712_v43, %v16956_v51  ;;  %v16958_v60 = vld [vmem:[#allocation265_spill] sm:$0xff]  ;;  %v16967_v51 = vld [vmem:[#allocation92_spill] sm:$0xff]  ;;  %v16971_v24 = vld [vmem:[#allocation102_spill] sm:$0xff] }
 0x50c   : > { %16949 = vst [vmem:[#allocation216_spill] sm:$0xff] %v12792_v22  ;;  %8961 = vmatmul.mubr.msk.f32.vlgmr.msra.gmra.mrb[22].mxu0 %vm518_vm1, %v7604_v53  ;;  %9293 = vset.pattern.permute.xlu1 %v16876_v7  ;;  %16953 = vst [vmem:[#allocation242_spill] sm:$0xff] %v12809_v41  ;;  %v1886_v37 = vadd.f32 %v1854_v34, %v1630_v63  ;;  %v12822_v40 = vrot.slane %v11931_v32, %v16722_v49  ;;  %v16995_v47 = vld [vmem:[#allocation285_spill] sm:$0xff] }
 0x50d   : > { %v12803_v12 = vadd.f32 %v3643_v38, %v12618_v5  ;;  %3018 = vperm.xlu1 %9293, %v16894_v56   ;;  %v12825_v19 = vmax.f32 %v16952_v6, %v862_v30  ;;  %v4919_v34 = vmul.f32 %v12809_v41, %v16958_v60  ;;  %v2878_v32 = vmul.f32 %v12726_v45, %v12685_v25  ;;  %v17010_v41 = vld [vmem:[#allocation138_spill] sm:$0xff] }
 0x50e   : > { %v2142_v5 = vadd.f32 %v2110_v1, %v1886_v37  ;;  %v3134_v45 = vmul.f32 %v12762_v8, %v16962_v29  ;;  %v16966_v29 = vld [vmem:[#allocation26_spill] sm:$0xff] }
 0x50f   : > { %v12813_v3 = vpop.permute.xlu1 %4514  ;;  %16957 = vst [vmem:[#allocation275_spill] sm:$0xff] %v12825_v19  ;;  %v12833_v63 = vrot.slane %v12825_v19, %v10774_v18  ;;  %v16982_v19 = vld [vmem:[#allocation66_spill] sm:$0xff] }
 0x510   : > { %16955 = vst [vmem:[#allocation269_spill] sm:$0xff] %v12813_v3  ;;  %v8909_v44 = vpop.f32.mrb[12].mxu1  ;;  %v4663_v10 = vmul.f32 %v4616_v17, %v12813_v3  ;;  %v2398_v38 = vadd.f32 %v2366_v61, %v2142_v5 }
 0x511   : > { %v5406_v4 = vpop.f32.mrb[13].mxu1  ;;  %9294 = vset.pattern.permute.xlu1 %v16724_v31  ;;  %16959 = vst [vmem:[#allocation12_spill] sm:$0xff] %v12833_v63  ;;  %v5412_v1 = vadd.f32 %v8909_v44, %v12576_v35  ;;  %v12852_v44 = vrot.slane %v12699_v55, %v16698_v0 }
 0x512   : > { %v5407_v53 = vadd.f32 %v12576_v35, %v5406_v4  ;;  %v4695_v17 = vadd.f32 %v4663_v10, %v12531_v42  ;;  %4026 = vperm.xlu1 %9294, %v16821_v46   ;;  %v2654_v4 = vadd.f32 %v2622_v2, %v2398_v38  ;;  %v12844_v42 = vrot.slane %v12526_v28, %v16698_v0  ;;  %v17000_v28 = vld [vmem:[#allocation293_spill] sm:$0xff] }
 0x513   : > { %16963 = vst [vmem:[#allocation338_spill] sm:$0xff] %v12852_v44  ;;  %v5558_v59 = vmul.f32 0.01, %v5412_v1 }
 0x514   : > { %v5557_v43 = vmul.f32 0.01, %v5407_v53  ;;  %v12838_v6 = vpop.permute.xlu1 %5018  ;;  %v12840_v37 = vadd.f32 %v4919_v34, %v4695_v17  ;;  %v12856_v34 = vrot.slane %v12699_v55, %v10774_v18  ;;  %v2910_v25 = vadd.f32 %v2878_v32, %v2654_v4  ;;  %v16973_v55 = vld [vmem:[#allocation330_spill] sm:$0xff] }
 0x515   : > { %16960 = vst [vmem:[#allocation280_spill] sm:$0xff] %v12838_v6  ;;  %v8912_v30 = vpop.f32.mrb[14].mxu1  ;;  %v5173_v10 = vmul.f32 %v12822_v40, %v12838_v6  ;;  %v12880_v46 = vmul.f32 %v12852_v44, %v16973_v55 }
 0x516   : > { %16961 = vst [vmem:[#allocation283_spill] sm:$0xff] %v12840_v37  ;;  %v5589_v61 = vmax.f32 %v5407_v53, %v5557_v43  ;;  %v5416_v5 = vpop.f32.mrb[15].mxu1  ;;  %16964 = vst [vmem:[#allocation291_spill] sm:$0xff] %v12856_v34  ;;  %9295 = vset.pattern.permute.xlu1 %v16887_v57  ;;  %v16965_v53 = vld [vmem:[#allocation57_spill] sm:$0xff]  ;;  %v5422_v32 = vadd.f32 %v8912_v30, %v12576_v35  ;;  %v5590_v30 = vmax.f32 %v5412_v1, %v5558_v59  ;;  %v16989_v37 = vld [vmem:[#allocation68_spill] sm:$0xff] }
 0x517   : > { %v5417_v2 = vadd.f32 %v12576_v35, %v5416_v5  ;;  %v12862_v17 = vrot.slane %v16965_v53, %v16771_v50  ;;  %4530 = vperm.xlu1 %9295, %v16966_v29   ;;  %v5205_v20 = vadd.f32 %v5173_v10, %v16967_v51  ;;  %v12871_v5 = vmul.f32 %v12844_v42, %v16968_v62  ;;  %v16977_v62 = vld [vmem:[#allocation136_spill] sm:$0xff] }
 0x518   : > { %v5626_v38 = vrot.slane %v5589_v61, %v10772_v54  ;;  %v5722_v8 = vrot.slane %v5589_v61, %v10774_v18  ;;  %v5850_v43 = vrot.slane %v5589_v61, %v16698_v0  ;;  %v5978_v3 = vrot.slane %v5589_v61, %v16819_v39  ;;  %16974 = vst [vmem:[#allocation47_spill] sm:$0xff] %v12880_v46  ;;  %v16983_v46 = vld [vmem:[#allocation104_spill] sm:$0xff] }
 0x519   : > { %v5559_v23 = vmul.f32 0.01, %v5417_v2  ;;  %16969 = vst [vmem:[#allocation8_spill] sm:$0xff] %v12871_v5  ;;  %v12876_v6 = vpop.permute.xlu1 %3510  ;;  %8922 = vmatprep.mubr.msk.f32.mxu1 %vm518_vm1, %v5205_v20  ;;  %v6106_v55 = vrot.slane %v5589_v61, %v16618_v15  ;;  %v12904_v20 = vadd.f32 %v3134_v45, %v2910_v25  ;;  %v6234_v44 = vrot.slane %v5589_v61, %v16771_v50  ;;  %v16985_v25 = vld [vmem:[#allocation63_spill] sm:$0xff] }
 0x51a   : > { %v5685_v48 = vmul.f32 %v5626_v38, %v16970_v33  ;;  %v5781_v60 = vmul.f32 %v5722_v8, %v16971_v24  ;;  %16972 = vst [vmem:[#allocation322_spill] sm:$0xff] %v12876_v6  ;;  %v3644_v4 = vmul.f32 %v12780_v16, %v12876_v6  ;;  %v16975_v33 = vld [vmem:[#allocation349_spill] sm:$0xff]  ;;  %v5909_v63 = vmul.f32 %v5850_v43, %v16977_v62  ;;  %v16981_v62 = vld [vmem:[#allocation168_spill] sm:$0xff] }
 0x51b   : > { %v12883_v51 = vmax.f32 %v5417_v2, %v5559_v23  ;;  %v12890_v24 = vmul.f32 %v12856_v34, %v16975_v33  ;;  %9296 = vset.pattern.permute.xlu1 %v16876_v7  ;;  %v12897_v23 = vrot.slane %v12145_v27, %v16722_v49  ;;  %v16978_v2 = vld [vmem:[#allocation25_spill] sm:$0xff]  ;;  %v12902_v16 = vrot.slane %v16965_v53, %v16618_v15  ;;  %v16979_v33 = vld [vmem:[#allocation427_spill] sm:$0xff] }
 0x51c   : > { %v5813_v10 = vadd.f32 %v5781_v60, %v5685_v48  ;;  %3022 = vperm.xlu1 %9296, %v16978_v2   ;;  %v12907_v6 = vadd.f32 %v3644_v4, %v16979_v33  ;;  %v6037_v60 = vmul.f32 %v5978_v3, %v16981_v62  ;;  %v5686_v27 = vmul.f32 %v5626_v38, %v16982_v19  ;;  %v16986_v33 = vld [vmem:[#allocation202_spill] sm:$0xff] }
 0x51d   : > { %16976 = vst [vmem:[#allocation380_spill] sm:$0xff] %v12890_v24  ;;  %v5782_v59 = vmul.f32 %v5722_v8, %v16983_v46  ;;  %v5560_v1 = vmul.f32 0.01, %v5422_v32  ;;  %v5630_v2 = vrot.slane %v12883_v51, %v10772_v54  ;;  %v5726_v62 = vrot.slane %v12883_v51, %v10774_v18 }
 0x51e   : > { %16980 = vst [vmem:[#allocation306_spill] sm:$0xff] %v12907_v6  ;;  %v5941_v48 = vadd.f32 %v5909_v63, %v5813_v10  ;;  %v12915_v53 = vpop.permute.xlu1 %4014  ;;  %v6165_v63 = vmul.f32 %v6106_v55, %v16986_v33  ;;  %v6362_v10 = vrot.slane %v5589_v61, %v16623_v26  ;;  %v16987_v19 = vmov 9   ;;  %v16992_v6 = vld [vmem:[#allocation124_spill] sm:$0xff] }
 0x51f   : > { %16984 = vst [vmem:[#allocation51_spill] sm:$0xff] %v12915_v53  ;;  %v4154_v45 = vmul.f32 %v16985_v25, %v12915_v53  ;;  %v12925_v46 = vrot.slane %v5590_v30, %v10772_v54  ;;  %v12928_v38 = vrot.slane %v5590_v30, %v10774_v18  ;;  %v12931_v8 = vrot.slane %v5590_v30, %v16698_v0  ;;  %v16988_v25 = vld [vmem:[#allocation234_spill] sm:$0xff] }
 0x520   : > { %v6069_v4 = vadd.f32 %v6037_v60, %v5941_v48  ;;  %9297 = vset.pattern.permute.xlu1 %v16987_v19  ;;  %v6293_v33 = vmul.f32 %v6234_v44, %v16988_v25  ;;  %v6490_v53 = vrot.slane %v5589_v61, %v16722_v49  ;;  %v12939_v19 = vmax.f32 %v5422_v32, %v5560_v1  ;;  %v16993_v32 = vld [vmem:[#allocation70_spill] sm:$0xff] }
 0x521   : > { %v12934_v48 = vadd.f32 %v4154_v45, %v12732_v36  ;;  %3526 = vperm.xlu1 %9297, %v16852_v9   ;;  %v5687_v24 = vmul.f32 %v5630_v2, %v16989_v37  ;;  %v12944_v31 = vrot.slane %v12883_v51, %v16698_v0  ;;  %v12948_v5 = vrot.slane %v12883_v51, %v16819_v39  ;;  %v16994_v37 = vld [vmem:[#allocation94_spill] sm:$0xff] }
 0x522   : > { %v6197_v60 = vadd.f32 %v6165_v63, %v6069_v4  ;;  %v16991_v4 = vld [vmem:[#allocation278_spill] sm:$0xff]  ;;  %v5814_v25 = vadd.f32 %v5782_v59, %v5686_v27  ;;  %v5910_v61 = vmul.f32 %v5850_v43, %v16992_v6  ;;  %v12955_v1 = vmul.f32 %v5630_v2, %v16993_v32  ;;  %v16999_v32 = vld [vmem:[#allocation19_spill] sm:$0xff] }
 0x523   : > { %v12950_v36 = vpop.permute.xlu1 %5022  ;;  %v6421_v63 = vmul.f32 %v6362_v10, %v16991_v4  ;;  %v5783_v7 = vmul.f32 %v5726_v62, %v16994_v37  ;;  %v7002_v34 = vrot.slane %v5590_v30, %v16819_v39  ;;  %v16996_v4 = vld [vmem:[#allocation170_spill] sm:$0xff]  ;;  %v7130_v37 = vrot.slane %v5590_v30, %v16618_v15 }
 0x524   : > { %16990 = vst [vmem:[#allocation315_spill] sm:$0xff] %v12950_v36  ;;  %v6325_v45 = vadd.f32 %v6293_v33, %v6197_v60  ;;  %v5174_v22 = vmul.f32 %v12822_v40, %v12950_v36  ;;  %v6549_v60 = vmul.f32 %v6490_v53, %v16995_v47  ;;  %v5942_v33 = vadd.f32 %v5910_v61, %v5814_v25  ;;  %v16997_v59 = vld [vmem:[#allocation106_spill] sm:$0xff] }
 0x525   : > { %9298 = vset.pattern.permute.xlu1 %v16887_v57  ;;  %v6038_v27 = vmul.f32 %v5978_v3, %v16996_v4  ;;  %v12965_v6 = vmul.f32 %v5726_v62, %v16997_v59  ;;  %v16998_v43 = vld [vmem:[#allocation430_spill] sm:$0xff]  ;;  %v7258_v40 = vrot.slane %v5590_v30, %v16771_v50  ;;  %v17003_v3 = vld [vmem:[#allocation299_spill] sm:$0xff]  ;;  %v17004_v62 = vld [vmem:[#allocation304_spill] sm:$0xff]  ;;  %v5815_v57 = vadd.f32 %v5783_v7, %v5687_v24 }
 0x526   : > { %v6453_v14 = vadd.f32 %v6421_v63, %v6325_v45  ;;  %v5206_v2 = vadd.f32 %v5174_v22, %v16998_v43  ;;  %4534 = vperm.xlu1 %9298, %v16999_v32   ;;  %v6677_v45 = vmul.f32 %v12925_v46, %v17000_v28  ;;  %v17001_v47 = vld [vmem:[#allocation186_spill] sm:$0xff]  ;;  %v6805_v22 = vmul.f32 %v12928_v38, %v17003_v3  ;;  %v17005_v59 = vld [vmem:[#allocation323_spill] sm:$0xff] }
 0x527   : > { %v6070_v63 = vadd.f32 %v6038_v27, %v5942_v33  ;;  %v6166_v25 = vmul.f32 %v6106_v55, %v17001_v47  ;;  %v6933_v4 = vmul.f32 %v12931_v8, %v17004_v62  ;;  %v7061_v43 = vmul.f32 %v7002_v34, %v17005_v59  ;;  %v17006_v55 = vld [vmem:[#allocation236_spill] sm:$0xff]  ;;  %v17015_v24 = vld [vmem:[#allocation371_spill] sm:$0xff] }
 0x528   : > { %v6581_v36 = vadd.f32 %v6549_v60, %v6453_v14  ;;  %v12974_v61 = vpop.permute.xlu1 %2754  ;;  %8923 = vmatmul.mubr.msk.f32.gmra.mrb[22].mxu1 %vm518_vm1, %v5206_v2  ;;  %v7386_v14 = vrot.slane %v5590_v30, %v16623_v26  ;;  %v12984_v28 = vrot.slane %v5590_v30, %v16722_v49  ;;  %v6294_v27 = vmul.f32 %v6234_v44, %v17006_v55  ;;  %v17008_v2 = vld [vmem:[#allocation390_spill] sm:$0xff]  ;;  %v17012_v44 = vld [vmem:[#allocation297_spill] sm:$0xff] }
 0x529   : > { %17002 = vst [vmem:[#allocation14_spill] sm:$0xff] %v12974_v61  ;;  %v6198_v33 = vadd.f32 %v6166_v25, %v6070_v63  ;;  %v17007_v32 = vmov 15   ;;  %v7189_v47 = vmul.f32 %v7130_v37, %v17008_v2  ;;  %v17009_v61 = vld [vmem:[#allocation282_spill] sm:$0xff]  ;;  %v5911_v62 = vmul.f32 %v12944_v31, %v17010_v41  ;;  %v17013_v2 = vld [vmem:[#allocation156_spill] sm:$0xff] }
 0x52a   : > { %v6709_v60 = vadd.f32 %v6677_v45, %v6581_v36  ;;  %9299 = vset.pattern.permute.xlu1 %v17007_v32  ;;  %v7317_v3 = vmul.f32 %v7258_v40, %v17009_v61  ;;  %v17011_v45 = vld [vmem:[#allocation244_spill] sm:$0xff]  ;;  %v12996_v63 = vrot.slane %v12883_v51, %v16618_v15  ;;  %v7445_v25 = vmul.f32 %v7386_v14, %v17012_v44 }
 0x52b   : > { %5038 = vperm.xlu1 %9299, %v16687_v13   ;;  %v6326_v36 = vadd.f32 %v6294_v27, %v6198_v33  ;;  %v6422_v30 = vmul.f32 %v6362_v10, %v17011_v45  ;;  %v5943_v55 = vadd.f32 %v5911_v62, %v5815_v57  ;;  %v6039_v61 = vmul.f32 %v12948_v5, %v17013_v2  ;;  %v17017_v62 = vld [vmem:[#allocation204_spill] sm:$0xff]  ;;  %v17018_v2 = vld [vmem:[#allocation295_spill] sm:$0xff] }
 0x52c   : > { %v6837_v59 = vadd.f32 %v6805_v22, %v6709_v60  ;;  %v13003_v7 = vrot.slane %v12883_v51, %v16771_v50  ;;  %v7573_v10 = vmul.f32 %v12984_v28, %v17015_v24  ;;  %v17016_v60 = vld [vmem:[#allocation287_spill] sm:$0xff]  ;;  %v6167_v45 = vmul.f32 %v12996_v63, %v17017_v62 }
 0x52d   : > { %v13005_v41 = vpop.permute.xlu1 %3762  ;;  %v6454_v22 = vadd.f32 %v6422_v30, %v6326_v36  ;;  %v6550_v33 = vmul.f32 %v6490_v53, %v17016_v60  ;;  %v6071_v57 = vadd.f32 %v6039_v61, %v5943_v55  ;;  %v13016_v44 = vrot.slane %v12883_v51, %v16623_v26  ;;  %v17019_v30 = vld [vmem:[#allocation303_spill] sm:$0xff]  ;;  %v17020_v61 = vld [vmem:[#allocation218_spill] sm:$0xff] }
 0x52e   : > { %17014 = vst [vmem:[#allocation326_spill] sm:$0xff] %v13005_v41  ;;  %v6965_v13 = vadd.f32 %v6933_v4, %v6837_v59  ;;  %v3899_v27 = vmul.f32 %v12844_v42, %v13005_v41  ;;  %v6678_v36 = vmul.f32 %v12925_v46, %v17018_v2  ;;  %v6806_v53 = vmul.f32 %v12928_v38, %v17019_v30 }
 0x52f   : > { %9300 = vset.pattern.permute.xlu1 %v16493_v52  ;;  %v6582_v59 = vadd.f32 %v6550_v33, %v6454_v22  ;;  %v6199_v55 = vadd.f32 %v6167_v45, %v6071_v57  ;;  %v6295_v24 = vmul.f32 %v13003_v7, %v17020_v61  ;;  %v13031_v60 = vrot.slane %v12883_v51, %v16722_v49  ;;  %v17021_v22 = vld [vmem:[#allocation40_spill] sm:$0xff]  ;;  %v17025_v57 = vld [vmem:[#allocation246_spill] sm:$0xff] }
 0x530   : > { %v7093_v4 = vadd.f32 %v7061_v43, %v6965_v13  ;;  %v13024_v42 = vadd.f32 %v3899_v27, %v12803_v12  ;;  %3274 = vperm.xlu1 %9300, %v16894_v56   ;;  %v6934_v46 = vmul.f32 %v12931_v8, %v17021_v22  ;;  %v17022_v33 = vld [vmem:[#allocation320_spill] sm:$0xff]  ;;  %v17024_v12 = vld [vmem:[#allocation333_spill] sm:$0xff]  ;;  %v6423_v45 = vmul.f32 %v13016_v44, %v17025_v57 }
 0x531   : > { %v6710_v13 = vadd.f32 %v6678_v36, %v6582_v59  ;;  %v7062_v38 = vmul.f32 %v7002_v34, %v17022_v33  ;;  %v7190_v27 = vmul.f32 %v7130_v37, %v17024_v12  ;;  %v6327_v2 = vadd.f32 %v6295_v24, %v6199_v55  ;;  %v17026_v59 = vld [vmem:[#allocation361_spill] sm:$0xff]  ;;  %v17028_v24 = vld [vmem:[#allocation296_spill] sm:$0xff]  ;;  %v17029_v12 = vld [vmem:[#allocation122_spill] sm:$0xff] }
 0x532   : > { %v7221_v43 = vadd.f32 %v7189_v47, %v7093_v4  ;;  %v13036_v62 = vpop.permute.xlu1 %4266  ;;  %v13043_v30 = vrot.slane %v12939_v19, %v10772_v54  ;;  %v7318_v34 = vmul.f32 %v7258_v40, %v17026_v59  ;;  %v17027_v37 = vld [vmem:[#allocation365_spill] sm:$0xff]  ;;  %v6551_v22 = vmul.f32 %v13031_v60, %v17028_v24  ;;  %v17031_v59 = vld [vmem:[#allocation279_spill] sm:$0xff] }
 0x533   : > { %17023 = vst [vmem:[#allocation18_spill] sm:$0xff] %v13036_v62  ;;  %v4409_v51 = vmul.f32 %v12902_v16, %v13036_v62  ;;  %v8915_v47 = vpop.f32.mrb[16].mxu1  ;;  %v6838_v8 = vadd.f32 %v6806_v53, %v6710_v13  ;;  %v7446_v55 = vmul.f32 %v7386_v14, %v17027_v37  ;;  %v6455_v61 = vadd.f32 %v6423_v45, %v6327_v2  ;;  %v17030_v53 = vld [vmem:[#allocation30_spill] sm:$0xff] }
 0x534   : > { %v7349_v4 = vadd.f32 %v7317_v3, %v7221_v43  ;;  %9301 = vset.pattern.permute.xlu1 %v16778_v21  ;;  %v5426_v36 = vpop.f32.mrb[17].mxu1  ;;  %v13054_v33 = vrot.slane %v12939_v19, %v10774_v18  ;;  %v6679_v14 = vmul.f32 %v13043_v30, %v17031_v59  ;;  %v13065_v2 = vrot.slane %v12939_v19, %v16698_v0 }
 0x535   : > { %v13057_v57 = vadd.f32 %v4409_v51, %v17029_v12  ;;  %v5427_v3 = vadd.f32 %v12576_v35, %v5426_v36  ;;  %3778 = vperm.xlu1 %9301, %v17030_v53   ;;  %v6966_v43 = vadd.f32 %v6934_v46, %v6838_v8  ;;  %v6583_v13 = vadd.f32 %v6551_v22, %v6455_v61  ;;  %v17033_v46 = vld [vmem:[#allocation271_spill] sm:$0xff]  ;;  %v17034_v61 = vld [vmem:[#allocation314_spill] sm:$0xff] }
 0x536   : > { %v7477_v40 = vadd.f32 %v7445_v25, %v7349_v4  ;;  %v13069_v45 = vrot.slane %v12939_v19, %v16819_v39  ;;  %v13075_v25 = vrot.slane %v12939_v19, %v16618_v15  ;;  %v7574_v4 = vmul.f32 %v12984_v28, %v17033_v46 }
 0x537   : > { %v5561_v51 = vmul.f32 0.01, %v5427_v3  ;;  %v13071_v37 = vpop.permute.xlu1 %2758  ;;  %v7094_v24 = vadd.f32 %v7062_v38, %v6966_v43  ;;  %v6711_v8 = vadd.f32 %v6679_v14, %v6583_v13  ;;  %v6807_v22 = vmul.f32 %v13054_v33, %v17034_v61  ;;  %v17036_v13 = vld [vmem:[#allocation319_spill] sm:$0xff] }
 0x538   : > { %17032 = vst [vmem:[#allocation341_spill] sm:$0xff] %v13071_v37  ;;  %v7605_v36 = vadd.f32 %v7573_v10, %v7477_v40  ;;  %v5816_v12 = vadd.f32 %v12965_v6, %v12955_v1  ;;  %v13089_v38 = vrot.slane %v12939_v19, %v16771_v50  ;;  %v17035_v40 = vld [vmem:[#allocation7_spill] sm:$0xff]  ;;  %v7063_v1 = vmul.f32 %v13069_v45, %v17036_v13  ;;  %v17037_v6 = vld [vmem:[#allocation126_spill] sm:$0xff] }
 0x539   : > { %v13083_v59 = vmax.f32 %v5427_v3, %v5561_v51  ;;  %9302 = vset.pattern.permute.xlu1 %v16501_v58  ;;  %v7222_v10 = vadd.f32 %v7190_v27, %v7094_v24  ;;  %v6839_v28 = vadd.f32 %v6807_v22, %v6711_v8  ;;  %v6935_v43 = vmul.f32 %v13065_v2, %v17035_v40  ;;  %v17040_v22 = vld [vmem:[#allocation172_spill] sm:$0xff] }
 0x53a   : > { %8963 = vmatprep.mubr.msk.f32.mxu0 %vm518_vm1, %v7605_v36  ;;  %4786 = vperm.xlu1 %9302, %v16966_v29   ;;  %v5912_v3 = vmul.f32 %v12944_v31, %v17037_v6  ;;  %v5432_v14 = vadd.f32 %v8915_v47, %v12576_v35  ;;  %v17038_v29 = vld [vmem:[#allocation355_spill] sm:$0xff]  ;;  %v6040_v31 = vmul.f32 %v12948_v5, %v17040_v22  ;;  %v17042_v6 = vld [vmem:[#allocation188_spill] sm:$0xff]  ;;  %v17087_v56 = vmov 7  }
 0x53b   : > { %v13101_v27 = vrot.slane %v13083_v59, %v10772_v54  ;;  %v13105_v51 = vrot.slane %v13083_v59, %v10774_v18  ;;  %v7191_v36 = vmul.f32 %v13075_v25, %v17038_v29  ;;  %v7350_v24 = vadd.f32 %v7318_v34, %v7222_v10  ;;  %v17041_v35 = vld [vmem:[#allocation267_spill] sm:$0xff]  ;;  %v13125_v10 = vpop.permute.xlu0 %5030  ;;  %v17045_v29 = vld [vmem:[#allocation72_spill] sm:$0xff] }
 0x53c   : > { %v13109_v46 = vpop.permute.xlu1 %3262  ;;  %v6967_v8 = vadd.f32 %v6935_v43, %v6839_v28  ;;  %v5944_v61 = vadd.f32 %v5912_v3, %v5816_v12  ;;  %v7319_v47 = vmul.f32 %v13089_v38, %v17041_v35  ;;  %v13117_v40 = vrot.slane %v12939_v19, %v16623_v26  ;;  %17043 = vst [vmem:[#allocation38_spill] sm:$0xff] %v13125_v10  ;;  %v17046_v35 = vld [vmem:[#allocation96_spill] sm:$0xff] }
 0x53d   : > { %17039 = vst [vmem:[#allocation348_spill] sm:$0xff] %v13109_v46  ;;  %v13121_v13 = vrot.slane %v12939_v19, %v16722_v49  ;;  %v6168_v34 = vmul.f32 %v12996_v63, %v17042_v6  ;;  %v7478_v12 = vadd.f32 %v7446_v55, %v7350_v24  ;;  %v3390_v5 = vmul.f32 %v12741_v11, %v13109_v46  ;;  %v17047_v63 = vld [vmem:[#allocation27_spill] sm:$0xff]  ;;  %v17048_v55 = vld [vmem:[#allocation238_spill] sm:$0xff] }
 0x53e   : > { %v17044_v28 = vmov 6   ;;  %v7095_v43 = vadd.f32 %v7063_v1, %v6967_v8  ;;  %v6072_v3 = vadd.f32 %v6040_v31, %v5944_v61  ;;  %v5689_v22 = vmul.f32 %v13101_v27, %v17045_v29  ;;  %v17049_v61 = vld [vmem:[#allocation369_spill] sm:$0xff] }
 0x53f   : > { %9303 = vset.pattern.permute.xlu1 %v17044_v28  ;;  %v5785_v19 = vmul.f32 %v13105_v51, %v17046_v35  ;;  %v13136_v41 = vrot.slane %v13083_v59, %v16698_v0  ;;  %v6296_v24 = vmul.f32 %v13003_v7, %v17048_v55  ;;  %v7606_v11 = vadd.f32 %v7574_v4, %v7478_v12  ;;  %v17051_v7 = vld [vmem:[#allocation325_spill] sm:$0xff] }
 0x540   : > { %2774 = vperm.xlu1 %9303, %v17047_v63   ;;  %v13142_v6 = vadd.f32 %v3390_v5, %v12904_v20  ;;  %v7223_v1 = vadd.f32 %v7191_v36, %v7095_v43  ;;  %v6200_v8 = vadd.f32 %v6168_v34, %v6072_v3  ;;  %v13146_v31 = vmul.f32 %v12862_v17, %v17049_v61  ;;  %v17052_v34 = vld [vmem:[#allocation248_spill] sm:$0xff]  ;;  %v17053_v5 = vld [vmem:[#allocation366_spill] sm:$0xff] }
 0x541   : > { %v5176_v29 = vmul.f32 %v12897_v23, %v13125_v10  ;;  %v5562_v35 = vmul.f32 0.01, %v5432_v14  ;;  %v13152_v46 = vrot.slane %v13083_v59, %v16819_v39  ;;  %v13154_v62 = vpop.permute.xlu1 %4270  ;;  %8964 = vmatmul.mubr.msk.f32.gmra.mrb[24].mxu0 %vm518_vm1, %v7606_v11  ;;  %v7447_v4 = vmul.f32 %v13117_v40, %v17051_v7  ;;  %v17054_v61 = vld [vmem:[#allocation140_spill] sm:$0xff]  ;;  %v17055_v10 = vld [vmem:[#allocation301_spill] sm:$0xff]  ;;  %v17056_v7 = vld [vmem:[#allocation158_spill] sm:$0xff] }
 0x542   : > { %17050 = vst [vmem:[#allocation26_spill] sm:$0xff] %v13154_v62  ;;  %v7351_v20 = vadd.f32 %v7319_v47, %v7223_v1  ;;  %v6328_v36 = vadd.f32 %v6296_v24, %v6200_v8  ;;  %v6424_v12 = vmul.f32 %v13016_v44, %v17052_v34  ;;  %v7575_v43 = vmul.f32 %v13121_v13, %v17053_v5  ;;  %v17060_v5 = vld [vmem:[#allocation206_spill] sm:$0xff] }
 0x543   : > { %v4410_v3 = vmul.f32 %v12902_v16, %v13154_v62  ;;  %v5817_v55 = vadd.f32 %v5785_v19, %v5689_v22  ;;  %v5913_v11 = vmul.f32 %v13136_v41, %v17054_v61  ;;  %v6552_v24 = vmul.f32 %v13031_v60, %v17055_v10 }
 0x544   : > { %9304 = vset.pattern.permute.xlu1 %v16778_v21  ;;  %v7479_v47 = vadd.f32 %v7447_v4, %v7351_v20  ;;  %v6456_v1 = vadd.f32 %v6424_v12, %v6328_v36  ;;  %v13173_v44 = vrot.slane %v13083_v59, %v16618_v15  ;;  %v6041_v22 = vmul.f32 %v13152_v46, %v17056_v7  ;;  %v17057_v20 = vld [vmem:[#allocation308_spill] sm:$0xff] }
 0x545   : > { %3782 = vperm.xlu1 %9304, %v16852_v9   ;;  %v13176_v8 = vadd.f32 %v4410_v3, %v12934_v48  ;;  %v5945_v16 = vadd.f32 %v5913_v11, %v5817_v55  ;;  %v13182_v19 = vrot.slane %v13083_v59, %v16771_v50  ;;  %v13184_v61 = vmax.f32 %v5432_v14, %v5562_v35  ;;  %v17059_v48 = vld [vmem:[#allocation242_spill] sm:$0xff]  ;;  %v17061_v35 = vld [vmem:[#allocation339_spill] sm:$0xff]  ;;  %v17100_v21 = vld [vmem:[#allocation380_spill] sm:$0xff] }
 0x546   : > { %v7607_v60 = vadd.f32 %v7575_v43, %v7479_v47  ;;  %v6584_v10 = vadd.f32 %v6552_v24, %v6456_v1  ;;  %v6680_v4 = vmul.f32 %v13043_v30, %v17057_v20  ;;  %v13188_v36 = vpop.permute.xlu1 %4774  ;;  %v6169_v3 = vmul.f32 %v13173_v44, %v17060_v5  ;;  %v17063_v11 = vld [vmem:[#allocation59_spill] sm:$0xff]  ;;  %v17064_v1 = vld [vmem:[#allocation200_spill] sm:$0xff] }
 0x547   : > { %17058 = vst [vmem:[#allocation92_spill] sm:$0xff] %v13188_v36  ;;  %v4920_v34 = vmul.f32 %v17059_v48, %v13188_v36  ;;  %v6073_v12 = vadd.f32 %v6041_v22, %v5945_v16  ;;  %v13196_v55 = vrot.slane %v13083_v59, %v16623_v26  ;;  %v6808_v43 = vmul.f32 %v13054_v33, %v17061_v35  ;;  %v17065_v16 = vld [vmem:[#allocation21_spill] sm:$0xff]  ;;  %v17066_v22 = vld [vmem:[#allocation220_spill] sm:$0xff]  ;;  %v17069_v35 = vld [vmem:[#allocation43_spill] sm:$0xff] }
 0x548   : > { %8966 = vmatprep.mubr.msk.f32.mxu0 %vm518_vm1, %v7607_v60  ;;  %v6712_v14 = vadd.f32 %v6680_v4, %v6584_v10  ;;  %v17062_v30 = vmov 12   ;;  %v13204_v47 = vrot.slane %v17063_v11, %v16819_v39  ;;  %v6297_v20 = vmul.f32 %v13182_v19, %v17066_v22  ;;  %v17067_v10 = vld [vmem:[#allocation74_spill] sm:$0xff]  ;;  %v17068_v4 = vld [vmem:[#allocation108_spill] sm:$0xff] }
 0x549   : > { %9305 = vset.pattern.permute.xlu1 %v17062_v30  ;;  %v4952_v24 = vadd.f32 %v4920_v34, %v17064_v1  ;;  %v6201_v7 = vadd.f32 %v6169_v3, %v6073_v12  ;;  %v6498_v60 = vrot.slane %v13083_v59, %v16722_v49  ;;  %v5690_v33 = vmul.f32 %v13101_v27, %v17067_v10  ;;  %v17071_v3 = vld [vmem:[#allocation263_spill] sm:$0xff]  ;;  %v17072_v10 = vld [vmem:[#allocation346_spill] sm:$0xff] }
 0x54a   : > { %4286 = vperm.xlu1 %9305, %v17065_v16   ;;  %v5786_v48 = vmul.f32 %v13105_v51, %v17068_v4  ;;  %v6840_v5 = vadd.f32 %v6808_v43, %v6712_v14  ;;  %v6936_v62 = vmul.f32 %v13065_v2, %v17069_v35  ;;  %v6425_v22 = vmul.f32 %v13196_v55, %v17071_v3  ;;  %v17073_v14 = vld [vmem:[#allocation362_spill] sm:$0xff]  ;;  %v17074_v2 = vld [vmem:[#allocation291_spill] sm:$0xff] }
 0x54b   : > { %v13218_v34 = vpop.permute.xlu1 %3514  ;;  %v13220_v1 = vadd.f32 %v5176_v29, %v4952_v24  ;;  %v6329_v12 = vadd.f32 %v6297_v20, %v6201_v7  ;;  %v13226_v59 = vrot.slane %v13184_v61, %v10772_v54  ;;  %v7064_v51 = vmul.f32 %v13069_v45, %v17072_v10  ;;  %v17075_v29 = vld [vmem:[#allocation277_spill] sm:$0xff]  ;;  %v17077_v35 = vld [vmem:[#allocation311_spill] sm:$0xff]  ;;  %v17078_v45 = vld [vmem:[#allocation216_spill] sm:$0xff] }
 0x54c   : > { %17070 = vst [vmem:[#allocation64_spill] sm:$0xff] %v13218_v34  ;;  %v6968_v27 = vadd.f32 %v6936_v62, %v6840_v5  ;;  %v7192_v43 = vmul.f32 %v13075_v25, %v17073_v14  ;;  %v3645_v4 = vmul.f32 %v17074_v2, %v13218_v34  ;;  %v7320_v24 = vmul.f32 %v13089_v38, %v17075_v29  ;;  %v17079_v36 = vld [vmem:[#allocation34_spill] sm:$0xff]  ;;  %v17080_v14 = vld [vmem:[#allocation128_spill] sm:$0xff] }
 0x54d   : > { %v17076_v7 = vmov 5   ;;  %v6457_v20 = vadd.f32 %v6425_v22, %v6329_v12  ;;  %v6553_v3 = vmul.f32 %v6498_v60, %v17077_v35  ;;  %v13240_v62 = vrot.slane %v13184_v61, %v10774_v18  ;;  %v17081_v38 = vld [vmem:[#allocation324_spill] sm:$0xff] }
 0x54e   : > { %9306 = vset.pattern.permute.xlu1 %v17076_v7  ;;  %v7096_v5 = vadd.f32 %v7064_v51, %v6968_v27  ;;  %v3677_v10 = vadd.f32 %v3645_v4, %v17078_v45  ;;  %v5818_v25 = vadd.f32 %v5786_v48, %v5690_v33  ;;  %v5914_v2 = vmul.f32 %v13136_v41, %v17080_v14  ;;  %v17083_v48 = vld [vmem:[#allocation174_spill] sm:$0xff]  ;;  %v17085_v14 = vld [vmem:[#allocation337_spill] sm:$0xff] }
 0x54f   : > { %2522 = vperm.xlu1 %9306, %v17079_v36   ;;  %v6585_v34 = vadd.f32 %v6553_v3, %v6457_v20  ;;  %v6681_v29 = vmul.f32 %v13226_v59, %v17081_v38  ;;  %v13250_v12 = vrot.slane %v13184_v61, %v16698_v0  ;;  %v13254_v22 = vrot.slane %v13184_v61, %v16819_v39  ;;  %v17084_v20 = vld [vmem:[#allocation363_spill] sm:$0xff]  ;;  %v17086_v38 = vld [vmem:[#allocation13_spill] sm:$0xff] }
 0x550   : > { %v7224_v27 = vadd.f32 %v7192_v43, %v7096_v5  ;;  %v13256_v51 = vpop.permute.xlu1 %4018  ;;  %v13260_v33 = vrot.slane %v13184_v61, %v16618_v15  ;;  %v5946_v41 = vadd.f32 %v5914_v2, %v5818_v25  ;;  %v6042_v4 = vmul.f32 %v13152_v46, %v17083_v48  ;;  %v17088_v2 = vld [vmem:[#allocation190_spill] sm:$0xff] }
 0x551   : > { %17082 = vst [vmem:[#allocation102_spill] sm:$0xff] %v13256_v51  ;;  %v7448_v35 = vmul.f32 %v13117_v40, %v17084_v20  ;;  %v4155_v3 = vmul.f32 %v13204_v47, %v13256_v51  ;;  %v6713_v45 = vadd.f32 %v6681_v29, %v6585_v34  ;;  %v6809_v43 = vmul.f32 %v13240_v62, %v17085_v14  ;;  %v17089_v40 = vld [vmem:[#allocation33_spill] sm:$0xff]  ;;  %v17091_v14 = vld [vmem:[#allocation368_spill] sm:$0xff] }
 0x552   : > { %v7352_v5 = vadd.f32 %v7320_v24, %v7224_v27  ;;  %v7576_v32 = vmul.f32 %v13121_v13, %v17086_v38  ;;  %v6074_v25 = vadd.f32 %v6042_v4, %v5946_v41  ;;  %v6170_v46 = vmul.f32 %v13173_v44, %v17088_v2  ;;  %v17090_v34 = vld [vmem:[#allocation353_spill] sm:$0xff]  ;;  %v17093_v4 = vld [vmem:[#allocation240_spill] sm:$0xff] }
 0x553   : > { %9307 = vset.pattern.permute.xlu1 %v17087_v56  ;;  %v13276_v48 = vadd.f32 %v4155_v3, %v13024_v42  ;;  %v6841_v20 = vadd.f32 %v6809_v43, %v6713_v45  ;;  %v6937_v29 = vmul.f32 %v13250_v12, %v17090_v34  ;;  %v7065_v24 = vmul.f32 %v13254_v22, %v17091_v14  ;;  %v17092_v13 = vld [vmem:[#allocation305_spill] sm:$0xff]  ;;  %v17095_v43 = vld [vmem:[#allocation250_spill] sm:$0xff] }
 0x554   : > { %3026 = vperm.xlu1 %9307, %v17089_v40   ;;  %v7480_v27 = vadd.f32 %v7448_v35, %v7352_v5  ;;  %v7193_v38 = vmul.f32 %v13260_v33, %v17092_v13  ;;  %v6202_v41 = vadd.f32 %v6170_v46, %v6074_v25  ;;  %v6298_v44 = vmul.f32 %v13182_v19, %v17093_v4  ;;  %v17096_v34 = vld [vmem:[#allocation306_spill] sm:$0xff]  ;;  %v17097_v19 = vld [vmem:[#allocation8_spill] sm:$0xff] }
 0x555   : > { %v13287_v2 = vpop.permute.xlu1 %5026  ;;  %v6969_v42 = vadd.f32 %v6937_v29, %v6841_v20  ;;  %v7266_v3 = vrot.slane %v13184_v61, %v16771_v50  ;;  %v13293_v45 = vrot.slane %v13184_v61, %v16623_v26  ;;  %v6426_v35 = vmul.f32 %v13196_v55, %v17095_v43  ;;  %v17099_v29 = vld [vmem:[#allocation317_spill] sm:$0xff] }
 0x556   : > { %17094 = vst [vmem:[#allocation136_spill] sm:$0xff] %v13287_v2  ;;  %v7608_v5 = vadd.f32 %v7576_v32, %v7480_v27  ;;  %v5175_v25 = vmul.f32 %v12897_v23, %v13287_v2  ;;  %v6330_v46 = vadd.f32 %v6298_v44, %v6202_v41  ;;  %v3932_v14 = vadd.f32 %v17097_v19, %v17096_v34  ;;  %v17101_v23 = vld [vmem:[#allocation283_spill] sm:$0xff] }
 0x557   : > { %v17098_v13 = vmov 11   ;;  %v7097_v20 = vadd.f32 %v7065_v24, %v6969_v42  ;;  %v6554_v4 = vmul.f32 %v6498_v60, %v17099_v29  ;;  %v13305_v51 = vadd.f32 %v13146_v31, %v13057_v57  ;;  %v17102_v41 = vld [vmem:[#allocation47_spill] sm:$0xff]  ;;  %v17104_v60 = vld [vmem:[#allocation370_spill] sm:$0xff] }
 0x558   : > { %9308 = vset.pattern.permute.xlu1 %v17098_v13  ;;  %v13309_v55 = vadd.f32 %v17100_v21, %v13142_v6  ;;  %8967 = vmatmul.mubr.msk.f32.gmra.mrb[26].mxu0 %vm518_vm1, %v7608_v5  ;;  %v5207_v32 = vadd.f32 %v5175_v25, %v17101_v23  ;;  %v6458_v27 = vadd.f32 %v6426_v35, %v6330_v46  ;;  %v17105_v31 = vld [vmem:[#allocation275_spill] sm:$0xff]  ;;  %v17107_v5 = vld [vmem:[#allocation281_spill] sm:$0xff]  ;;  %v17111_v19 = vmov 13  }
 0x559   : > { %4034 = vperm.xlu1 %9308, %v17030_v53   ;;  %v13315_v44 = vadd.f32 %v17102_v41, %v3677_v10  ;;  %v7225_v24 = vadd.f32 %v7193_v38, %v7097_v20  ;;  %v7321_v42 = vmul.f32 %v7266_v3, %v17104_v60  ;;  %v7522_v57 = vrot.slane %v13184_v61, %v16722_v49  ;;  %v17108_v38 = vld [vmem:[#allocation395_spill] sm:$0xff]  ;;  %v17110_v61 = vld [vmem:[#allocation12_spill] sm:$0xff] }
 0x55a   : > { %v1336_v21 = vrot.slane %v17105_v31, %v10772_v54  ;;  %v13322_v6 = vpop.permute.xlu1 %3014  ;;  %8925 = vmatprep.mubr.msk.f32.mxu1 %vm518_vm1, %v5207_v32  ;;  %v6586_v43 = vadd.f32 %v6554_v4, %v6458_v27  ;;  %v6682_v35 = vmul.f32 %v13226_v59, %v17107_v5  ;;  %v7449_v25 = vmul.f32 %v13293_v45, %v17108_v38  ;;  %v17109_v46 = vld [vmem:[#allocation111_spill] sm:$0xff]  ;;  %v17114_v27 = vld [vmem:[#allocation401_spill] sm:$0xff]  ;;  %v17116_v5 = vld [vmem:[#allocation6_spill] sm:$0xff] }
 0x55b   : > { %17103 = vst [vmem:[#allocation427_spill] sm:$0xff] %v13315_v44  ;;  %17106 = vst [vmem:[#allocation168_spill] sm:$0xff] %v13322_v6  ;;  %8926 = vmatmul.mubr.msk.f32.gmra.mrb[24].mxu1 %vm518_vm1, %v13220_v1  ;;  %v7353_v10 = vadd.f32 %v7321_v42, %v7225_v24  ;;  %v1599_v34 = vmul.f32 %v17110_v61, %v17109_v46  ;;  %v17112_v29 = vld [vmem:[#allocation343_spill] sm:$0xff]  ;;  %v1816_v4 = vrot.slane %v17105_v31, %v16698_v0  ;;  %v17113_v1 = vld [vmem:[#allocation28_spill] sm:$0xff] }
 0x55c   : > { %v6714_v20 = vadd.f32 %v6682_v35, %v6586_v43  ;;  %v6810_v23 = vmul.f32 %v13240_v62, %v17112_v29  ;;  %v2072_v59 = vrot.slane %v17105_v31, %v16819_v39  ;;  %v7577_v41 = vmul.f32 %v7522_v57, %v17114_v27  ;;  %v17115_v24 = vld [vmem:[#allocation90_spill] sm:$0xff]  ;;  %v17117_v35 = vld [vmem:[#allocation155_spill] sm:$0xff] }
 0x55d   : > { %9309 = vset.pattern.permute.xlu1 %v17111_v19  ;;  %v7481_v32 = vadd.f32 %v7449_v25, %v7353_v10  ;;  %v1375_v60 = vmul.f32 %v1336_v21, %v17115_v24  ;;  %v13345_v42 = vrot.slane %v17063_v11, %v16618_v15  ;;  %v6938_v62 = vmul.f32 %v13250_v12, %v17116_v5  ;;  %v17119_v10 = vld [vmem:[#allocation375_spill] sm:$0xff]  ;;  %v17120_v24 = vld [vmem:[#allocation173_spill] sm:$0xff] }
 0x55e   : > { %4538 = vperm.xlu1 %9309, %v17113_v1   ;;  %v6842_v43 = vadd.f32 %v6810_v23, %v6714_v20  ;;  %v1855_v38 = vmul.f32 %v1816_v4, %v17117_v35  ;;  %v7066_v25 = vmul.f32 %v13254_v22, %v17119_v10  ;;  %v2111_v11 = vmul.f32 %v2072_v59, %v17120_v24  ;;  %v17124_v5 = vld [vmem:[#allocation221_spill] sm:$0xff] }
 0x55f   : > { %v7609_v29 = vadd.f32 %v7577_v41, %v7481_v32  ;;  %v13350_v46 = vpop.permute.xlu1 %4022  ;;  %v1631_v2 = vadd.f32 %v1599_v34, %v1375_v60  ;;  %v2328_v20 = vrot.slane %v17105_v31, %v16618_v15  ;;  %v13361_v12 = vrot.slane %v17105_v31, %v16771_v50  ;;  %v17121_v34 = vld [vmem:[#allocation391_spill] sm:$0xff]  ;;  %v17123_v60 = vld [vmem:[#allocation29_spill] sm:$0xff] }
 0x560   : > { %17118 = vst [vmem:[#allocation66_spill] sm:$0xff] %v13350_v46  ;;  %v6970_v44 = vadd.f32 %v6938_v62, %v6842_v43  ;;  %v4156_v27 = vmul.f32 %v13204_v47, %v13350_v46  ;;  %v4412_v23 = vmul.f32 %v13345_v42, %v17121_v34  ;;  %v17122_v32 = vld [vmem:[#allocation331_spill] sm:$0xff]  ;;  %v13373_v10 = vrot.slane %v17105_v31, %v16623_v26  ;;  %v17125_v24 = vld [vmem:[#allocation377_spill] sm:$0xff] }
 0x561   : > { %8969 = vmatprep.mubr.msk.f32.mxu0 %vm518_vm1, %v7609_v29  ;;  %v7194_v47 = vmul.f32 %v13260_v33, %v17122_v32  ;;  %v1887_v43 = vadd.f32 %v1855_v38, %v1631_v2  ;;  %v2367_v62 = vmul.f32 %v2328_v20, %v17124_v5  ;;  %v7322_v35 = vmul.f32 %v7266_v3, %v17125_v24  ;;  %v17129_v32 = vld [vmem:[#allocation298_spill] sm:$0xff]  ;;  %v17130_v24 = vld [vmem:[#allocation81_spill] sm:$0xff] }
 0x562   : > { %9310 = vset.pattern.permute.xlu1 %v17076_v7  ;;  %v7098_v22 = vadd.f32 %v7066_v25, %v6970_v44  ;;  %v4188_v41 = vadd.f32 %v4156_v27, %v3932_v14  ;;  %v17127_v44 = vld [vmem:[#allocation37_spill] sm:$0xff]  ;;  %v17128_v14 = vld [vmem:[#allocation235_spill] sm:$0xff]  ;;  %v7450_v5 = vmul.f32 %v13293_v45, %v17129_v32  ;;  %v17133_v45 = vld [vmem:[#allocation404_spill] sm:$0xff] }
 0x563   : > { %2526 = vperm.xlu1 %9310, %v17123_v60   ;;  %v863_v25 = vmul.f32 0.01, %v17127_v44  ;;  %v2143_v33 = vadd.f32 %v2111_v11, %v1887_v43  ;;  %v2623_v27 = vmul.f32 %v13361_v12, %v17128_v14  ;;  %v7578_v32 = vmul.f32 %v7522_v57, %v17133_v45 }
 0x564   : > { %v7226_v29 = vadd.f32 %v7194_v47, %v7098_v22  ;;  %v13376_v46 = vpop.permute.xlu1 %4526  ;;  %v13378_v34 = vadd.f32 %v4412_v23, %v4188_v41  ;;  %v1376_v22 = vmul.f32 %v1336_v21, %v17130_v24  ;;  %v17131_v47 = vld [vmem:[#allocation14_spill] sm:$0xff]  ;;  %v13401_v21 = vld [vmem:[%s15392_s5] ss:$0 sm:$0xff] }
 0x565   : > { %17126 = vst [vmem:[#allocation104_spill] sm:$0xff] %v13376_v46  ;;  %v4666_v2 = vmul.f32 %v12862_v17, %v13376_v46  ;;  %v2399_v23 = vadd.f32 %v2367_v62, %v2143_v33  ;;  %v2879_v41 = vmul.f32 %v13373_v10, %v17131_v47  ;;  %v17132_v17 = vld [vmem:[#allocation123_spill] sm:$0xff]  ;;  %v13405_v33 = vmax.f32 %v17127_v44, %v863_v25  ;;  %v17137_v44 = vld [vmem:[#allocation189_spill] sm:$0xff]  ;;  %v17144_v46 = vld [vmem:[#allocation110_spill] sm:$0xff] }
 0x566   : > { %v7354_v38 = vadd.f32 %v7322_v35, %v7226_v29  ;;  %v8918_v3 = vpop.f32.mrb[18].mxu1  ;;  %v1600_v35 = vmul.f32 %v17110_v61, %v17132_v17  ;;  %v17136_v61 = vld [vmem:[#allocation143_spill] sm:$0xff]  ;;  %v2112_v25 = vmul.f32 %v2072_v59, %v17137_v44  ;;  %v17142_v44 = vld [vmem:[#allocation98_spill] sm:$0xff] }
 0x567   : > { %9311 = vset.pattern.permute.xlu1 %v17087_v56  ;;  %v13392_v11 = vadd.f32 %v4666_v2, %v13176_v8  ;;  %v5436_v43 = vpop.f32.mrb[19].mxu1  ;;  %17134 = vst [vmem:[#allocation63_spill] sm:$0xff] %v13405_v33  ;;  %v2655_v8 = vadd.f32 %v2623_v27, %v2399_v23  ;;  %v3096_v2 = vrot.slane %v17105_v31, %v16722_v49  ;;  %v17138_v31 = vld [vmem:[#allocation39_spill] sm:$0xff] }
 0x568   : > { %3030 = vperm.xlu1 %9311, %v17047_v63   ;;  %v7482_v29 = vadd.f32 %v7450_v5, %v7354_v38  ;;  %v5437_v62 = vadd.f32 %v13401_v21, %v5436_v43  ;;  %v1856_v5 = vmul.f32 %v1816_v4, %v17136_v61  ;;  %v13415_v14 = vrot.slane %v13405_v33, %v10772_v54  ;;  %v17143_v17 = vld [vmem:[#allocation67_spill] sm:$0xff] }
 0x569   : > { %v13409_v47 = vpop.permute.xlu1 %2762  ;;  %v2911_v45 = vadd.f32 %v2879_v41, %v2655_v8  ;;  %v1632_v43 = vadd.f32 %v1600_v35, %v1376_v22  ;;  %v3135_v23 = vmul.f32 %v3096_v2, %v17138_v31  ;;  %v5442_v4 = vadd.f32 %v13401_v21, %v8918_v3  ;;  %v17140_v22 = vld [vmem:[#allocation205_spill] sm:$0xff] }
 0x56a   : > { %17135 = vst [vmem:[#allocation202_spill] sm:$0xff] %v13409_v47  ;;  %v7610_v38 = vadd.f32 %v7578_v32, %v7482_v29  ;;  %v5563_v57 = vmul.f32 0.01, %v5437_v62  ;;  %v2368_v59 = vmul.f32 %v2328_v20, %v17140_v22 }
 0x56b   : > { %v1888_v29 = vadd.f32 %v1856_v5, %v1632_v43  ;;  %v3167_v35 = vadd.f32 %v3135_v23, %v2911_v45  ;;  %v5564_v43 = vmul.f32 0.01, %v5442_v4  ;;  %v17145_v45 = vld [vmem:[#allocation142_spill] sm:$0xff] }
 0x56c   : > { %9312 = vset.pattern.permute.xlu1 %v17098_v13  ;;  %8970 = vmatmul.mubr.msk.f32.gmra.mrb[28].mxu0 %vm518_vm1, %v7610_v38  ;;  %v5595_v27 = vmax.f32 %v5437_v62, %v5563_v57  ;;  %v17141_v57 = vld [vmem:[#allocation76_spill] sm:$0xff] }
 0x56d   : > { %4038 = vperm.xlu1 %9312, %v16852_v9   ;;  %v2144_v38 = vadd.f32 %v2112_v25, %v1888_v29 }
 0x56e   : > { %v5638_v41 = vrot.slane %v5595_v27, %v10772_v54  ;;  %v5734_v32 = vrot.slane %v5595_v27, %v10774_v18  ;;  %v5862_v8 = vrot.slane %v5595_v27, %v16698_v0  ;;  %v13425_v61 = vpop.permute.xlu1 %3266  ;;  %v5990_v5 = vrot.slane %v5595_v27, %v16819_v39 }
 0x56f   : > { %17139 = vst [vmem:[#allocation234_spill] sm:$0xff] %v13425_v61  ;;  %v3391_v62 = vmul.f32 %v13415_v14, %v13425_v61  ;;  %v6118_v25 = vrot.slane %v5595_v27, %v16618_v15  ;;  %v2400_v29 = vadd.f32 %v2368_v59, %v2144_v38  ;;  %v13443_v61 = vrot.slane %v13405_v33, %v10774_v18  ;;  %v17149_v59 = vld [vmem:[#allocation160_spill] sm:$0xff] }
 0x570   : > { %v5691_v31 = vmul.f32 %v5638_v41, %v17141_v57  ;;  %v5787_v3 = vmul.f32 %v5734_v32, %v17142_v44  ;;  %v5692_v24 = vmul.f32 %v5638_v41, %v17143_v17  ;;  %v5788_v56 = vmul.f32 %v5734_v32, %v17144_v46  ;;  %v17146_v57 = vld [vmem:[#allocation255_spill] sm:$0xff] }
 0x571   : > { %9313 = vset.pattern.permute.xlu1 %v17111_v19  ;;  %v3423_v9 = vadd.f32 %v3391_v62, %v3167_v35  ;;  %v5915_v23 = vmul.f32 %v5862_v8, %v17145_v45  ;;  %v2624_v44 = vmul.f32 %v13361_v12, %v17146_v57  ;;  %v6246_v46 = vrot.slane %v5595_v27, %v16771_v50  ;;  %v17150_v57 = vld [vmem:[#allocation208_spill] sm:$0xff] }
 0x572   : > { %4542 = vperm.xlu1 %9313, %v17065_v16   ;;  %v5819_v20 = vadd.f32 %v5787_v3, %v5691_v31  ;;  %v17148_v31 = vld [vmem:[#allocation57_spill] sm:$0xff]  ;;  %v6043_v35 = vmul.f32 %v5990_v5, %v17149_v59  ;;  %v2880_v12 = vmul.f32 %v13373_v10, %v13071_v37  ;;  %v13457_v62 = vmax.f32 %v5442_v4, %v5564_v43  ;;  %v17152_v43 = vld [vmem:[#allocation222_spill] sm:$0xff] }
 0x573   : > { %v13445_v22 = vpop.permute.xlu1 %4274  ;;  %v13452_v41 = vrot.slane %v17148_v31, %v16623_v26  ;;  %v6374_v38 = vrot.slane %v5595_v27, %v16623_v26  ;;  %v5820_v3 = vadd.f32 %v5788_v56, %v5692_v24  ;;  %v13469_v10 = vrot.slane %v17148_v31, %v16722_v49  ;;  %v13473_v56 = vpop.permute.xlu0 %5034 }
 0x574   : > { %17147 = vst [vmem:[#allocation68_spill] sm:$0xff] %v13445_v22  ;;  %v4411_v17 = vmul.f32 %v13345_v42, %v13445_v22  ;;  %v5947_v32 = vadd.f32 %v5915_v23, %v5819_v20  ;;  %v6171_v20 = vmul.f32 %v6118_v25, %v17150_v57  ;;  %v17151_v23 = vld [vmem:[#allocation130_spill] sm:$0xff]  ;;  %v2656_v22 = vadd.f32 %v2624_v44, %v2400_v29  ;;  %v17155_v57 = vld [vmem:[#allocation176_spill] sm:$0xff] }
 0x575   : > { %v5916_v59 = vmul.f32 %v5862_v8, %v17151_v23  ;;  %v3136_v4 = vmul.f32 %v3096_v2, %v13322_v6  ;;  %v6299_v37 = vmul.f32 %v6246_v46, %v17152_v43  ;;  %17153 = vst [vmem:[#allocation278_spill] sm:$0xff] %v13473_v56  ;;  %v17156_v8 = vld [vmem:[#allocation350_spill] sm:$0xff]  ;;  %v6630_v2 = vrot.slane %v13457_v62, %v10772_v54  ;;  %v17157_v43 = vld [vmem:[#allocation252_spill] sm:$0xff] }
 0x576   : > { %9314 = vset.pattern.permute.xlu1 %v17044_v28  ;;  %v13462_v45 = vadd.f32 %v4411_v17, %v13276_v48  ;;  %v6075_v42 = vadd.f32 %v6043_v35, %v5947_v32  ;;  %v6502_v17 = vrot.slane %v5595_v27, %v16722_v49  ;;  %v6044_v35 = vmul.f32 %v5990_v5, %v17155_v57  ;;  %v17158_v27 = vld [vmem:[#allocation192_spill] sm:$0xff] }
 0x577   : > { %2778 = vperm.xlu1 %9314, %v17079_v36   ;;  %v5948_v32 = vadd.f32 %v5916_v59, %v5820_v3  ;;  %v3647_v29 = vmul.f32 %v13443_v61, %v17156_v8  ;;  %v2912_v44 = vadd.f32 %v2880_v12, %v2656_v22  ;;  %v6172_v3 = vmul.f32 %v6118_v25, %v17158_v27  ;;  %v17159_v8 = vld [vmem:[#allocation335_spill] sm:$0xff] }
 0x578   : > { %v13475_v48 = vpop.permute.xlu1 %4778  ;;  %v6203_v24 = vadd.f32 %v6171_v20, %v6075_v42  ;;  %v6427_v42 = vmul.f32 %v6374_v38, %v17157_v43  ;;  %v5177_v5 = vmul.f32 %v13469_v10, %v13473_v56  ;;  %v6758_v12 = vrot.slane %v13457_v62, %v10774_v18 }
 0x579   : > { %17154 = vst [vmem:[#allocation124_spill] sm:$0xff] %v13475_v48  ;;  %v4921_v31 = vmul.f32 %v13452_v41, %v13475_v48  ;;  %v6076_v20 = vadd.f32 %v6044_v35, %v5948_v32  ;;  %v3168_v59 = vadd.f32 %v3136_v4, %v2912_v44  ;;  %v6555_v6 = vmul.f32 %v6502_v17, %v17159_v8  ;;  %v17162_v35 = vld [vmem:[#allocation284_spill] sm:$0xff] }
 0x57a   : > { %v6331_v23 = vadd.f32 %v6299_v37, %v6203_v24  ;;  %v17160_v24 = vld [vmem:[#allocation241_spill] sm:$0xff]  ;;  %v6683_v27 = vmul.f32 %v6630_v2, %v17162_v35  ;;  %v6886_v4 = vrot.slane %v13457_v62, %v16698_v0  ;;  %v17169_v35 = vld [vmem:[#allocation360_spill] sm:$0xff] }
 0x57b   : > { %9315 = vset.pattern.permute.xlu1 %v16493_v52  ;;  %v4953_v22 = vadd.f32 %v4921_v31, %v13305_v51  ;;  %v6204_v37 = vadd.f32 %v6172_v3, %v6076_v20  ;;  %v6300_v43 = vmul.f32 %v6246_v46, %v17160_v24  ;;  %v13501_v51 = vadd.f32 %v3647_v29, %v3423_v9  ;;  %v17164_v46 = vld [vmem:[#allocation367_spill] sm:$0xff] }
 0x57c   : > { %3282 = vperm.xlu1 %9315, %v17089_v40   ;;  %v6459_v57 = vadd.f32 %v6427_v42, %v6331_v23  ;;  %v17163_v42 = vld [vmem:[#allocation328_spill] sm:$0xff]  ;;  %v6811_v20 = vmul.f32 %v6758_v12, %v17164_v46  ;;  %v7014_v3 = vrot.slane %v13457_v62, %v16819_v39  ;;  %v17172_v46 = vld [vmem:[#allocation11_spill] sm:$0xff] }
 0x57d   : > { %v13496_v32 = vpop.permute.xlu1 %3270  ;;  %v5209_v25 = vadd.f32 %v5177_v5, %v4953_v22  ;;  %v6332_v23 = vadd.f32 %v6300_v43, %v6204_v37  ;;  %v6428_v8 = vmul.f32 %v6374_v38, %v17163_v42  ;;  %v17166_v22 = vld [vmem:[#allocation61_spill] sm:$0xff]  ;;  %v17170_v42 = vld [vmem:[#allocation42_spill] sm:$0xff] }
 0x57e   : > { %17161 = vst [vmem:[#allocation70_spill] sm:$0xff] %v13496_v32  ;;  %v3392_v44 = vmul.f32 %v13415_v14, %v13496_v32  ;;  %v6587_v31 = vadd.f32 %v6555_v6, %v6459_v57  ;;  %v17165_v14 = vld [vmem:[#allocation307_spill] sm:$0xff]  ;;  %v13517_v38 = vrot.slane %v17166_v22, %v16819_v39  ;;  %v17167_v57 = vld [vmem:[#allocation20_spill] sm:$0xff] }
 0x57f   : > { %8928 = vmatprep.mubr.msk.f32.mxu1 %vm518_vm1, %v5209_v25  ;;  %v6460_v29 = vadd.f32 %v6428_v8, %v6332_v23  ;;  %v6556_v6 = vmul.f32 %v6502_v17, %v17165_v14  ;;  %v6939_v37 = vmul.f32 %v6886_v4, %v17167_v57  ;;  %v7142_v25 = vrot.slane %v13457_v62, %v16618_v15  ;;  %v17174_v32 = vld [vmem:[#allocation52_spill] sm:$0xff] }
 0x580   : > { %9316 = vset.pattern.permute.xlu1 %v17062_v30  ;;  %v13511_v5 = vadd.f32 %v3392_v44, %v3168_v59  ;;  %v6715_v9 = vadd.f32 %v6683_v27, %v6587_v31  ;;  %v6684_v44 = vmul.f32 %v6630_v2, %v17169_v35  ;;  %v864_v27 = vmul.f32 0.01, %v17170_v42  ;;  %v17171_v31 = vld [vmem:[#allocation338_spill] sm:$0xff] }
 0x581   : > { %4290 = vperm.xlu1 %9316, %v17030_v53   ;;  %v6588_v59 = vadd.f32 %v6556_v6, %v6460_v29  ;;  %v7270_v23 = vrot.slane %v13457_v62, %v16771_v50  ;;  %v7067_v14 = vmul.f32 %v7014_v3, %v17172_v46  ;;  %v4158_v29 = vmul.f32 %v13517_v38, %v17174_v32 }
 0x582   : > { %v13520_v24 = vpop.permute.xlu1 %3774  ;;  %v6843_v43 = vadd.f32 %v6811_v20, %v6715_v9  ;;  %v17173_v9 = vld [vmem:[#allocation340_spill] sm:$0xff]  ;;  %v7398_v6 = vrot.slane %v13457_v62, %v16623_v26 }
 0x583   : > { %17168 = vst [vmem:[#allocation94_spill] sm:$0xff] %v13520_v24  ;;  %v3902_v17 = vmul.f32 %v17171_v31, %v13520_v24  ;;  %v6716_v20 = vadd.f32 %v6684_v44, %v6588_v59  ;;  %v6812_v57 = vmul.f32 %v6758_v12, %v17173_v9  ;;  %v17175_v31 = vld [vmem:[#allocation274_spill] sm:$0xff]  ;;  %v13542_v59 = vmax.f32 %v17170_v42, %v864_v27  ;;  %v17178_v44 = vld [vmem:[#allocation383_spill] sm:$0xff] }
 0x584   : > { %v6971_v8 = vadd.f32 %v6939_v37, %v6843_v43  ;;  %v7195_v24 = vmul.f32 %v7142_v25, %v17175_v31  ;;  %v17176_v37 = vld [vmem:[#allocation386_spill] sm:$0xff]  ;;  %v7323_v46 = vmul.f32 %v7270_v23, %v17178_v44  ;;  %v17184_v44 = vld [vmem:[#allocation364_spill] sm:$0xff] }
 0x585   : > { %9317 = vset.pattern.permute.xlu1 %v16501_v58  ;;  %v3934_v2 = vadd.f32 %v3902_v17, %v13309_v55  ;;  %v6844_v56 = vadd.f32 %v6812_v57, %v6716_v20  ;;  %v6940_v43 = vmul.f32 %v6886_v4, %v17176_v37  ;;  %v7526_v55 = vrot.slane %v13457_v62, %v16722_v49  ;;  %v17179_v20 = vld [vmem:[#allocation345_spill] sm:$0xff]  ;;  %v17180_v4 = vld [vmem:[#allocation300_spill] sm:$0xff] }
 0x586   : > { %4794 = vperm.xlu1 %9317, %v17113_v1   ;;  %v7099_v35 = vadd.f32 %v7067_v14, %v6971_v8  ;;  %v7068_v57 = vmul.f32 %v7014_v3, %v17179_v20  ;;  %v7451_v42 = vmul.f32 %v7398_v6, %v17180_v4  ;;  %v13569_v3 = vrot.slane %v13542_v59, %v16698_v0 }
 0x587   : > { %v13544_v12 = vpop.permute.xlu1 %4782  ;;  %v13549_v17 = vadd.f32 %v4158_v29, %v3934_v2  ;;  %v6972_v9 = vadd.f32 %v6940_v43, %v6844_v56  ;;  %v17181_v29 = vld [vmem:[#allocation400_spill] sm:$0xff]  ;;  %v1564_v56 = vrot.slane %v13542_v59, %v10774_v18  ;;  %v17187_v20 = vmov 10  }
 0x588   : > { %17177 = vst [vmem:[#allocation285_spill] sm:$0xff] %v13544_v12  ;;  %v4922_v8 = vmul.f32 %v13452_v41, %v13544_v12  ;;  %v7227_v14 = vadd.f32 %v7195_v24, %v7099_v35  ;;  %v7196_v2 = vmul.f32 %v7142_v25, %v17181_v29  ;;  %v13563_v41 = vrot.slane %v13542_v59, %v10772_v54  ;;  %v17183_v35 = vld [vmem:[#allocation58_spill] sm:$0xff]  ;;  %v17185_v25 = vld [vmem:[#allocation83_spill] sm:$0xff]  ;;  %v17189_v12 = vld [vmem:[#allocation145_spill] sm:$0xff] }
 0x589   : > { %v7100_v62 = vadd.f32 %v7068_v57, %v6972_v9  ;;  %v7579_v37 = vmul.f32 %v7526_v55, %v17183_v35  ;;  %v17188_v29 = vld [vmem:[#allocation411_spill] sm:$0xff]  ;;  %v1858_v48 = vmul.f32 %v13569_v3, %v17189_v12  ;;  %v2588_v19 = vrot.slane %v13542_v59, %v16771_v50 }
 0x58a   : > { %9319 = vset.pattern.permute.xlu1 %v16493_v52  ;;  %v13557_v27 = vadd.f32 %v4922_v8, %v13392_v11  ;;  %v7355_v31 = vadd.f32 %v7323_v46, %v7227_v14  ;;  %v7324_v46 = vmul.f32 %v7270_v23, %v17184_v44  ;;  %v1378_v8 = vmul.f32 %v13563_v41, %v17185_v25  ;;  %v17186_v14 = vld [vmem:[#allocation125_spill] sm:$0xff] }
 0x58b   : > { %3286 = vperm.xlu1 %9319, %v17047_v63   ;;  %v7228_v43 = vadd.f32 %v7196_v2, %v7100_v62  ;;  %v1602_v9 = vmul.f32 %v1564_v56, %v17186_v14  ;;  %v7452_v32 = vmul.f32 %v7398_v6, %v17188_v29  ;;  %v2332_v23 = vrot.slane %v13542_v59, %v16618_v15 }
 0x58c   : > { %v13571_v24 = vpop.permute.xlu1 %3018  ;;  %v7483_v11 = vadd.f32 %v7451_v42, %v7355_v31  ;;  %v2076_v42 = vrot.slane %v13542_v59, %v16819_v39  ;;  %v17190_v31 = vld [vmem:[#allocation25_spill] sm:$0xff]  ;;  %v13589_v62 = vrot.slane %v17166_v22, %v16618_v15 }
 0x58d   : > { %17182 = vst [vmem:[#allocation170_spill] sm:$0xff] %v13571_v24  ;;  %v7356_v4 = vadd.f32 %v7324_v46, %v7228_v43  ;;  %v1634_v35 = vadd.f32 %v1602_v9, %v1378_v8  ;;  %v17193_v43 = vld [vmem:[#allocation41_spill] sm:$0xff]  ;;  %v17194_v46 = vld [vmem:[#allocation191_spill] sm:$0xff] }
 0x58e   : > { %v7611_v57 = vadd.f32 %v7579_v37, %v7483_v11  ;;  %v17191_v11 = vld [vmem:[#allocation410_spill] sm:$0xff]  ;;  %v865_v44 = vmul.f32 0.01, %v17193_v43  ;;  %v2114_v29 = vmul.f32 %v2076_v42, %v17194_v46  ;;  %v17196_v9 = vld [vmem:[#allocation207_spill] sm:$0xff] }
 0x58f   : > { %9320 = vset.pattern.permute.xlu1 %v17187_v20  ;;  %v7484_v2 = vadd.f32 %v7452_v32, %v7356_v4  ;;  %v7580_v6 = vmul.f32 %v7526_v55, %v17191_v11  ;;  %v1890_v25 = vadd.f32 %v1858_v48, %v1634_v35  ;;  %v2844_v32 = vrot.slane %v13542_v59, %v16623_v26  ;;  %v17195_v55 = vld [vmem:[#allocation59_spill] sm:$0xff]  ;;  %v17197_v4 = vld [vmem:[#allocation392_spill] sm:$0xff] }
 0x590   : > { %3790 = vperm.xlu1 %9320, %v17190_v31   ;;  %8972 = vmatprep.mubr.msk.f32.mxu0 %vm518_vm1, %v7611_v57  ;;  %v4624_v8 = vrot.slane %v17195_v55, %v16771_v50  ;;  %v2370_v57 = vmul.f32 %v2332_v23, %v17196_v9  ;;  %v4413_v11 = vmul.f32 %v13589_v62, %v17197_v4  ;;  %v17198_v46 = vld [vmem:[#allocation427_spill] sm:$0xff]  ;;  %v17203_v4 = vld [vmem:[#allocation268_spill] sm:$0xff] }
 0x591   : > { %v13593_v37 = vpop.permute.xlu1 %4026  ;;  %v7612_v14 = vadd.f32 %v7580_v6, %v7484_v2  ;;  %v13613_v48 = vmax.f32 %v17193_v43, %v865_v44  ;;  %v2146_v2 = vadd.f32 %v2114_v29, %v1890_v25  ;;  %v17200_v6 = vld [vmem:[#allocation257_spill] sm:$0xff]  ;;  %v3100_v44 = vrot.slane %v13542_v59, %v16722_v49 }
 0x592   : > { %17192 = vst [vmem:[#allocation106_spill] sm:$0xff] %v13593_v37  ;;  %v4157_v12 = vmul.f32 %v13517_v38, %v13593_v37  ;;  %v2626_v35 = vmul.f32 %v2588_v19, %v17200_v6 }
 0x593   : > { %8973 = vmatmul.mubr.msk.f32.gmra.mrb[30].mxu0 %vm518_vm1, %v7612_v14  ;;  %17199 = vst [vmem:[#allocation430_spill] sm:$0xff] %v13613_v48  ;;  %v2402_v36 = vadd.f32 %v2370_v57, %v2146_v2  ;;  %v17204_v14 = vld [vmem:[#allocation35_spill] sm:$0xff]  ;;  %v3356_v25 = vrot.slane %v13613_v48, %v10772_v54 }
 0x594   : > { %9321 = vset.pattern.permute.xlu1 %v16501_v58  ;;  %v4189_v38 = vadd.f32 %v4157_v12, %v17198_v46  ;;  %v2882_v58 = vmul.f32 %v2844_v32, %v17203_v4  ;;  %v17209_v4 = vld [vmem:[#allocation354_spill] sm:$0xff] }
 0x595   : > { %4798 = vperm.xlu1 %9321, %v17065_v16   ;;  %v2658_v43 = vadd.f32 %v2626_v35, %v2402_v36  ;;  %v17208_v36 = vld [vmem:[#allocation113_spill] sm:$0xff] }
 0x596   : > { %v13616_v37 = vpop.permute.xlu1 %4530  ;;  %v13618_v53 = vadd.f32 %v4413_v11, %v4189_v38  ;;  %v17206_v11 = vmov 9   ;;  %v17207_v38 = vld [vmem:[#allocation294_spill] sm:$0xff]  ;;  %v1601_v35 = vmul.f32 %v1564_v56, %v17208_v36  ;;  %v17216_v36 = vld [vmem:[#allocation32_spill] sm:$0xff] }
 0x597   : > { %17201 = vst [vmem:[#allocation19_spill] sm:$0xff] %v13616_v37  ;;  %v4667_v9 = vmul.f32 %v4624_v8, %v13616_v37  ;;  %v2914_v29 = vadd.f32 %v2882_v58, %v2658_v43  ;;  %v3394_v2 = vmul.f32 %v3356_v25, %v17207_v38  ;;  %v17211_v58 = vld [vmem:[#allocation91_spill] sm:$0xff]  ;;  %v13647_v38 = vpop.permute.xlu0 %5042 }
 0x598   : > { %17202 = vst [vmem:[#allocation293_spill] sm:$0xff] %v13618_v53  ;;  %v1377_v43 = vmul.f32 %v13563_v41, %v17211_v58  ;;  %17213 = vst [vmem:[#allocation304_spill] sm:$0xff] %v13647_v38  ;;  %v4880_v41 = vrot.slane %v17195_v55, %v16623_v26  ;;  %v17218_v58 = vld [vmem:[#allocation223_spill] sm:$0xff] }
 0x599   : > { %9322 = vset.pattern.permute.xlu1 %v17076_v7  ;;  %v13624_v12 = vadd.f32 %v4667_v9, %v13462_v45  ;;  %v3612_v45 = vrot.slane %v13613_v48, %v10774_v18 }
 0x59a   : > { %2530 = vperm.xlu1 %9322, %v17204_v14   ;;  %v1633_v56 = vadd.f32 %v1601_v35, %v1377_v43  ;;  %v17220_v35 = vmov 15   ;;  %v17222_v43 = vld [vmem:[#allocation266_spill] sm:$0xff] }
 0x59b   : > { %v13631_v46 = vpop.permute.xlu1 %3022  ;;  %v3650_v6 = vmul.f32 %v3612_v45, %v17209_v4  ;;  %v17215_v4 = vld [vmem:[#allocation175_spill] sm:$0xff] }
 0x59c   : > { %17205 = vst [vmem:[#allocation186_spill] sm:$0xff] %v13631_v46  ;;  %v3138_v57 = vmul.f32 %v3100_v44, %v13631_v46  ;;  %v17212_v46 = vld [vmem:[#allocation157_spill] sm:$0xff] }
 0x59d   : > { %v1857_v53 = vmul.f32 %v13569_v3, %v17212_v46 }
 0x59e   : > { %9323 = vset.pattern.permute.xlu1 %v17206_v11  ;;  %v3170_v9 = vadd.f32 %v3138_v57, %v2914_v29 }
 0x59f   : > { %3538 = vperm.xlu1 %9323, %v17089_v40   ;;  %v1889_v3 = vadd.f32 %v1857_v53, %v1633_v56 }
 0x5a0   : > { %v3426_v59 = vadd.f32 %v3394_v2, %v3170_v9  ;;  %v13641_v37 = vpop.permute.xlu1 %3526  ;;  %v2113_v2 = vmul.f32 %v2076_v42, %v17215_v4  ;;  %v17221_v42 = vld [vmem:[#allocation237_spill] sm:$0xff]  ;;  %v5136_v4 = vrot.slane %v17195_v55, %v16722_v49 }
 0x5a1   : > { %17210 = vst [vmem:[#allocation299_spill] sm:$0xff] %v13641_v37  ;;  %v3648_v29 = vmul.f32 %v13443_v61, %v13641_v37  ;;  %v2369_v61 = vmul.f32 %v2332_v23, %v17218_v58  ;;  %v3137_v58 = vmul.f32 %v3100_v44, %v13571_v24 }
 0x5a2   : > { %v13652_v57 = vadd.f32 %v3650_v6, %v3426_v59  ;;  %v2145_v6 = vadd.f32 %v2113_v2, %v1889_v3  ;;  %v13665_v59 = vpop.permute.xlu0 %5046 }
 0x5a3   : > { %9324 = vset.pattern.permute.xlu1 %v17098_v13  ;;  %v13656_v9 = vadd.f32 %v3648_v29, %v13511_v5  ;;  %17219 = vst [vmem:[#allocation390_spill] sm:$0xff] %v13665_v59  ;;  %v2625_v5 = vmul.f32 %v2588_v19, %v17221_v42  ;;  %v4924_v29 = vmul.f32 %v4880_v41, %v17222_v43 }
 0x5a4   : > { %17214 = vst [vmem:[#allocation323_spill] sm:$0xff] %v13652_v57  ;;  %4042 = vperm.xlu1 %9324, %v17216_v36   ;;  %v2401_v56 = vadd.f32 %v2369_v61, %v2145_v6  ;;  %v5180_v23 = vmul.f32 %v5136_v4, %v13665_v59 }
 0x5a5   : > { %v13661_v46 = vpop.permute.xlu1 %4534 }
 0x5a6   : > { %17217 = vst [vmem:[#allocation236_spill] sm:$0xff] %v13661_v46  ;;  %v4668_v37 = vmul.f32 %v4624_v8, %v13661_v46  ;;  %v2881_v8 = vmul.f32 %v2844_v32, %v13409_v47  ;;  %v2657_v42 = vadd.f32 %v2625_v5, %v2401_v56  ;;  %v13689_v32 = vrot.slane %v13613_v48, %v16698_v0  ;;  %v17257_v46 = vld [vmem:[#allocation382_spill] sm:$0xff] }
 0x5a8   : > { %9325 = vset.pattern.permute.xlu1 %v17220_v35  ;;  %v4700_v53 = vadd.f32 %v4668_v37, %v13378_v34  ;;  %v2913_v37 = vadd.f32 %v2881_v8, %v2657_v42  ;;  %17226 = vst [vmem:[#allocation244_spill] sm:$0xff] %v13689_v32  ;;  %v17228_v42 = vld [vmem:[#allocation332_spill] sm:$0xff] }
 0x5a9   : > { %5050 = vperm.xlu1 %9325, %v17113_v1   ;;  %v17224_v1 = vld [vmem:[#allocation31_spill] sm:$0xff] }
 0x5aa   : > { %v4956_v2 = vadd.f32 %v4924_v29, %v4700_v53  ;;  %v13676_v3 = vpop.permute.xlu1 %5038  ;;  %v3905_v29 = vmul.f32 %v13689_v32, %v17228_v42  ;;  %v17237_v42 = vld [vmem:[#allocation69_spill] sm:$0xff] }
 0x5ab   : > { %17223 = vst [vmem:[#allocation282_spill] sm:$0xff] %v13676_v3  ;;  %v5178_v19 = vmul.f32 %v13469_v10, %v13676_v3  ;;  %v3169_v10 = vadd.f32 %v3137_v58, %v2913_v37  ;;  %v17268_v3 = vld [vmem:[#allocation403_spill] sm:$0xff] }
 0x5ac   : > { %v5212_v55 = vadd.f32 %v5180_v23, %v4956_v2 }
 0x5ad   : > { %9326 = vset.pattern.permute.xlu1 %v17076_v7  ;;  %v5210_v34 = vadd.f32 %v5178_v19, %v13557_v27  ;;  %v3864_v7 = vrot.slane %v13405_v33, %v16698_v0  ;;  %v17227_v27 = vld [vmem:[#allocation352_spill] sm:$0xff] }
 0x5ae   : > { %2534 = vperm.xlu1 %9326, %v17224_v1   ;;  %v3649_v44 = vmul.f32 %v3612_v45, %v17227_v27 }
 0x5af   : > { %v13684_v61 = vpop.permute.xlu1 %3274  ;;  %8929 = vmatmul.mubr.msk.f32.gmra.mrb[26].mxu1 %vm518_vm1, %v5210_v34  ;;  %v5179_v34 = vmul.f32 %v5136_v4, %v13647_v38 }
 0x5b0   : > { %17225 = vst [vmem:[#allocation138_spill] sm:$0xff] %v13684_v61  ;;  %v3393_v6 = vmul.f32 %v3356_v25, %v13684_v61  ;;  %v17238_v61 = vld [vmem:[#allocation112_spill] sm:$0xff] }
 0x5b2   : > { %9327 = vset.pattern.permute.xlu1 %v17206_v11  ;;  %v3425_v5 = vadd.f32 %v3393_v6, %v3169_v10 }
 0x5b3   : > { %3542 = vperm.xlu1 %9327, %v17047_v63  }
 0x5b4   : > { %v3681_v53 = vadd.f32 %v3649_v44, %v3425_v5  ;;  %v13699_v56 = vpop.permute.xlu1 %3778 }
 0x5b5   : > { %17229 = vst [vmem:[#allocation297_spill] sm:$0xff] %v13699_v56  ;;  %v3903_v58 = vmul.f32 %v3864_v7, %v13699_v56 }
 0x5b6   : > { %v13703_v25 = vadd.f32 %v3905_v29, %v3681_v53  ;;  %v17234_v53 = vld [vmem:[#allocation78_spill] sm:$0xff] }
 0x5b7   : > { %9328 = vset.pattern.permute.xlu1 %v17098_v13  ;;  %v13706_v23 = vadd.f32 %v3903_v58, %v13501_v51 }
 0x5b8   : > { %17230 = vst [vmem:[#allocation156_spill] sm:$0xff] %v13703_v25  ;;  %4046 = vperm.xlu1 %9328, %v17190_v31  }
 0x5b9   : > { %v13709_v45 = vpop.permute.xlu1 %4786 }
 0x5ba   : > { %17231 = vst [vmem:[#allocation371_spill] sm:$0xff] %v13709_v45  ;;  %v4923_v8 = vmul.f32 %v4880_v41, %v13709_v45  ;;  %v8921_v2 = vpop.f32.mrb[20].mxu1 }
 0x5bb   : > { %v5446_v19 = vpop.f32.mrb[21].mxu1  ;;  %v5452_v41 = vadd.f32 %v13401_v21, %v8921_v2 }
 0x5bc   : > { %9329 = vset.pattern.permute.xlu1 %v17220_v35  ;;  %v4955_v37 = vadd.f32 %v4923_v8, %v13624_v12  ;;  %v5447_v10 = vadd.f32 %v13401_v21, %v5446_v19  ;;  %v17235_v8 = vld [vmem:[#allocation99_spill] sm:$0xff] }
 0x5bd   : > { %5054 = vperm.xlu1 %9329, %v17065_v16  }
 0x5be   : > { %v5565_v51 = vmul.f32 0.01, %v5447_v10  ;;  %v5211_v44 = vadd.f32 %v5179_v34, %v4955_v37  ;;  %v5566_v37 = vmul.f32 0.01, %v5452_v41 }
 0x5bf   : > { %v13717_v6 = vpop.permute.xlu1 %2774 }
 0x5c0   : > { %17232 = vst [vmem:[#allocation287_spill] sm:$0xff] %v13717_v6  ;;  %v5597_v5 = vmax.f32 %v5447_v10, %v5565_v51  ;;  %8931 = vmatprep.mubr.msk.f32.mxu1 %vm518_vm1, %v5211_v44  ;;  %v17236_v10 = vld [vmem:[#allocation144_spill] sm:$0xff]  ;;  %v5598_v59 = vmax.f32 %v5452_v41, %v5566_v37 }
 0x5c1   : > { %9330 = vset.pattern.permute.xlu1 %v17044_v28  ;;  %8932 = vmatmul.mubr.msk.f32.gmra.mrb[28].mxu1 %vm518_vm1, %v5212_v55  ;;  %v17243_v37 = vld [vmem:[#allocation132_spill] sm:$0xff] }
 0x5c2   : > { %2786 = vperm.xlu1 %9330, %v17204_v14   ;;  %v5642_v4 = vrot.slane %v5597_v5, %v10772_v54  ;;  %v5738_v12 = vrot.slane %v5597_v5, %v10774_v18  ;;  %v5866_v16 = vrot.slane %v5597_v5, %v16698_v0  ;;  %v5994_v34 = vrot.slane %v5597_v5, %v16819_v39 }
 0x5c3   : > { %v6122_v44 = vrot.slane %v5597_v5, %v16618_v15  ;;  %v6250_v56 = vrot.slane %v5597_v5, %v16771_v50  ;;  %v6506_v41 = vrot.slane %v5597_v5, %v16722_v49 }
 0x5c4   : > { %v13727_v29 = vpop.permute.xlu1 %3782  ;;  %v5693_v58 = vmul.f32 %v5642_v4, %v17234_v53  ;;  %v5789_v19 = vmul.f32 %v5738_v12, %v17235_v8  ;;  %v5917_v51 = vmul.f32 %v5866_v16, %v17236_v10  ;;  %v5694_v27 = vmul.f32 %v5642_v4, %v17237_v42  ;;  %v17241_v42 = vld [vmem:[#allocation210_spill] sm:$0xff] }
 0x5c5   : > { %17233 = vst [vmem:[#allocation204_spill] sm:$0xff] %v13727_v29  ;;  %v3904_v2 = vmul.f32 %v3864_v7, %v13727_v29  ;;  %v5790_v53 = vmul.f32 %v5738_v12, %v17238_v61  ;;  %v17240_v7 = vld [vmem:[#allocation162_spill] sm:$0xff]  ;;  %v6173_v4 = vmul.f32 %v6122_v44, %v17241_v42  ;;  %v6378_v61 = vrot.slane %v5597_v5, %v16623_v26  ;;  %v17247_v5 = vld [vmem:[#allocation309_spill] sm:$0xff] }
 0x5c6   : > { %9332 = vset.pattern.permute.xlu1 %v17187_v20  ;;  %v5821_v55 = vadd.f32 %v5789_v19, %v5693_v58  ;;  %v6045_v29 = vmul.f32 %v5994_v34, %v17240_v7  ;;  %v17245_v7 = vld [vmem:[#allocation351_spill] sm:$0xff] }
 0x5c7   : > { %3794 = vperm.xlu1 %9332, %v17089_v40   ;;  %v13740_v8 = vadd.f32 %v3904_v2, %v13656_v9  ;;  %v5822_v12 = vadd.f32 %v5790_v53, %v5694_v27  ;;  %v6429_v42 = vmul.f32 %v6378_v61, %v17245_v7  ;;  %v6762_v27 = vrot.slane %v5598_v59, %v10774_v18 }
 0x5c8   : > { %v5949_v47 = vadd.f32 %v5917_v51, %v5821_v55  ;;  %v17242_v55 = vld [vmem:[#allocation224_spill] sm:$0xff]  ;;  %v13775_v7 = vrot.slane %v13405_v33, %v16819_v39 }
 0x5c9   : > { %v13742_v24 = vpop.permute.xlu1 %4286  ;;  %v6301_v10 = vmul.f32 %v6250_v56, %v17242_v55 }
 0x5ca   : > { %17239 = vst [vmem:[#allocation295_spill] sm:$0xff] %v13742_v24  ;;  %v4414_v58 = vmul.f32 %v13589_v62, %v13742_v24  ;;  %v6077_v19 = vadd.f32 %v6045_v29, %v5949_v47  ;;  %v5918_v62 = vmul.f32 %v5866_v16, %v17243_v37  ;;  %v6634_v47 = vrot.slane %v5598_v59, %v10772_v54  ;;  %v17249_v37 = vld [vmem:[#allocation381_spill] sm:$0xff] }
 0x5cb   : > { %9333 = vset.pattern.permute.xlu1 %v17062_v30 }
 0x5cc   : > { %v13752_v9 = vadd.f32 %v4414_v58, %v13549_v17  ;;  %4298 = vperm.xlu1 %9333, %v17216_v36   ;;  %v6205_v2 = vadd.f32 %v6173_v4, %v6077_v19  ;;  %v5950_v24 = vadd.f32 %v5918_v62, %v5822_v12  ;;  %v17246_v17 = vld [vmem:[#allocation178_spill] sm:$0xff]  ;;  %v6557_v19 = vmul.f32 %v6506_v41, %v17247_v5  ;;  %v17251_v62 = vld [vmem:[#allocation243_spill] sm:$0xff] }
 0x5cd   : > { %v6046_v58 = vmul.f32 %v5994_v34, %v17246_v17  ;;  %v17248_v4 = vld [vmem:[#allocation194_spill] sm:$0xff]  ;;  %v6685_v43 = vmul.f32 %v6634_v47, %v17249_v37  ;;  %v6890_v12 = vrot.slane %v5598_v59, %v16698_v0 }
 0x5ce   : > { %v13758_v51 = vpop.permute.xlu1 %2522  ;;  %v6333_v29 = vadd.f32 %v6301_v10, %v6205_v2  ;;  %v6174_v55 = vmul.f32 %v6122_v44, %v17248_v4  ;;  %v17252_v44 = vld [vmem:[#allocation342_spill] sm:$0xff] }
 0x5cf   : > { %17244 = vst [vmem:[#allocation303_spill] sm:$0xff] %v13758_v51  ;;  %v6078_v16 = vadd.f32 %v6046_v58, %v5950_v24  ;;  %v17253_v58 = vld [vmem:[#allocation357_spill] sm:$0xff] }
 0x5d0   : > { %9335 = vset.pattern.permute.xlu1 %v17044_v28  ;;  %v6461_v53 = vadd.f32 %v6429_v42, %v6333_v29  ;;  %v6302_v28 = vmul.f32 %v6250_v56, %v17251_v62  ;;  %v7018_v29 = vrot.slane %v5598_v59, %v16819_v39  ;;  %v6813_v42 = vmul.f32 %v6762_v27, %v17252_v44  ;;  %v17254_v56 = vld [vmem:[#allocation394_spill] sm:$0xff] }
 0x5d1   : > { %2790 = vperm.xlu1 %9335, %v17224_v1   ;;  %v6206_v34 = vadd.f32 %v6174_v55, %v6078_v16  ;;  %v6430_v5 = vmul.f32 %v6378_v61, %v17253_v58  ;;  %v6941_v16 = vmul.f32 %v6890_v12, %v17254_v56  ;;  %v17255_v55 = vld [vmem:[#allocation373_spill] sm:$0xff] }
 0x5d2   : > { %v6589_v10 = vadd.f32 %v6557_v19, %v6461_v53  ;;  %v7146_v53 = vrot.slane %v5598_v59, %v16618_v15  ;;  %v6558_v37 = vmul.f32 %v6506_v41, %v17255_v55  ;;  %v7069_v38 = vmul.f32 %v7018_v29, %v17257_v46  ;;  %v17259_v41 = vld [vmem:[#allocation407_spill] sm:$0xff] }
 0x5d3   : > { %v13769_v2 = vpop.permute.xlu1 %3026  ;;  %v6334_v17 = vadd.f32 %v6302_v28, %v6206_v34  ;;  %v17258_v28 = vld [vmem:[#allocation384_spill] sm:$0xff] }
 0x5d4   : > { %17250 = vst [vmem:[#allocation218_spill] sm:$0xff] %v13769_v2  ;;  %v6717_v24 = vadd.f32 %v6685_v43, %v6589_v10  ;;  %v7274_v43 = vrot.slane %v5598_v59, %v16771_v50  ;;  %v6686_v44 = vmul.f32 %v6634_v47, %v17258_v28  ;;  %v7530_v47 = vrot.slane %v5598_v59, %v16722_v49 }
 0x5d5   : > { %9336 = vset.pattern.permute.xlu1 %v16493_v52  ;;  %v6462_v4 = vadd.f32 %v6430_v5, %v6334_v17  ;;  %v7402_v17 = vrot.slane %v5598_v59, %v16623_v26 }
 0x5d6   : > { %3294 = vperm.xlu1 %9336, %v17123_v60   ;;  %v6845_v19 = vadd.f32 %v6813_v42, %v6717_v24  ;;  %v13795_v24 = vrot.slane %v17166_v22, %v16771_v50  ;;  %v7197_v42 = vmul.f32 %v7146_v53, %v17259_v41  ;;  %v7070_v60 = vmul.f32 %v7018_v29, %v17268_v3 }
 0x5d7   : > { %v6590_v34 = vadd.f32 %v6558_v37, %v6462_v4  ;;  %v13810_v4 = vld [vmem:[%s15392_s5 + $0x1] ss:$0 sm:$0xff] }
 0x5d8   : > { %v13785_v62 = vpop.permute.xlu1 %4034  ;;  %v6973_v61 = vadd.f32 %v6941_v16, %v6845_v19  ;;  %v17260_v19 = vld [vmem:[#allocation289_spill] sm:$0xff]  ;;  %17262 = vst [vmem:[#allocation333_spill] sm:$0xff] %v13810_v4 }
 0x5d9   : > { %17256 = vst [vmem:[#allocation40_spill] sm:$0xff] %v13785_v62  ;;  %v4159_v10 = vmul.f32 %v13775_v7, %v13785_v62  ;;  %v6718_v5 = vadd.f32 %v6686_v44, %v6590_v34  ;;  %v6814_v56 = vmul.f32 %v6762_v27, %v17260_v19  ;;  %v17263_v37 = vld [vmem:[#allocation9_spill] sm:$0xff]  ;;  %v17265_v62 = vld [vmem:[#allocation46_spill] sm:$0xff]  ;;  %v17267_v44 = vld [vmem:[#allocation420_spill] sm:$0xff] }
 0x5da   : > { %9337 = vset.pattern.permute.xlu1 %v17062_v30  ;;  %v7101_v58 = vadd.f32 %v7069_v38, %v6973_v61  ;;  %v7325_v28 = vmul.f32 %v7274_v43, %v17263_v37  ;;  %v866_v38 = vmul.f32 0.01, %v17265_v62  ;;  %v17266_v61 = vmov 14   ;;  %v17270_v37 = vld [vmem:[#allocation293_spill] sm:$0xff] }
 0x5db   : > { %v13800_v46 = vadd.f32 %v4159_v10, %v13706_v23  ;;  %4302 = vperm.xlu1 %9337, %v17190_v31   ;;  %v6846_v23 = vadd.f32 %v6814_v56, %v6718_v5  ;;  %v17264_v10 = vld [vmem:[#allocation55_spill] sm:$0xff]  ;;  %v7453_v19 = vmul.f32 %v7402_v17, %v17267_v44  ;;  %v17273_v44 = vld [vmem:[#allocation409_spill] sm:$0xff] }
 0x5dc   : > { %v7229_v55 = vadd.f32 %v7197_v42, %v7101_v58  ;;  %v6942_v41 = vmul.f32 %v6890_v12, %v17264_v10  ;;  %v17269_v42 = vld [vmem:[#allocation50_spill] sm:$0xff]  ;;  %v17271_v12 = vld [vmem:[#allocation23_spill] sm:$0xff] }
 0x5dd   : > { %v13805_v16 = vpop.permute.xlu1 %4538  ;;  %v868_v58 = vmul.f32 0.01, %v17269_v42 }
 0x5de   : > { %17261 = vst [vmem:[#allocation320_spill] sm:$0xff] %v13805_v16  ;;  %v4669_v27 = vmul.f32 %v13795_v24, %v13805_v16  ;;  %v7357_v34 = vadd.f32 %v7325_v28, %v7229_v55  ;;  %v6974_v45 = vadd.f32 %v6942_v41, %v6846_v23  ;;  %v17272_v16 = vld [vmem:[#allocation419_spill] sm:$0xff]  ;;  %v7198_v23 = vmul.f32 %v7146_v53, %v17273_v44  ;;  %v17285_v44 = vld [vmem:[#allocation44_spill] sm:$0xff] }
 0x5df   : > { %9338 = vset.pattern.permute.xlu1 %v17266_v61  ;;  %v8962_v59 = vpop.f32.mrb[22].mxu0  ;;  %v7581_v25 = vmul.f32 %v7530_v47, %v17272_v16 }
 0x5e0   : > { %v13822_v5 = vadd.f32 %v4669_v27, %v17270_v37  ;;  %4806 = vperm.xlu1 %9338, %v17271_v12   ;;  %v7813_v56 = vadd.f32 %v8962_v59, %v13810_v4  ;;  %v7807_v10 = vpop.f32.mrb[23].mxu0  ;;  %v7485_v55 = vadd.f32 %v7453_v19, %v7357_v34  ;;  %v7102_v28 = vadd.f32 %v7070_v60, %v6974_v45  ;;  %v17275_v37 = vld [vmem:[#allocation415_spill] sm:$0xff]  ;;  %v17276_v45 = vld [vmem:[#allocation34_spill] sm:$0xff]  ;;  %v17277_v34 = vld [vmem:[#allocation60_spill] sm:$0xff] }
 0x5e1   : > { %v7808_v48 = vadd.f32 %v13810_v4, %v7807_v10  ;;  %v7326_v57 = vmul.f32 %v7274_v43, %v17275_v37  ;;  %v13833_v12 = vmax.f32 %v17265_v62, %v866_v38  ;;  %v13836_v59 = vmax.f32 %v17269_v42, %v868_v58  ;;  %v17279_v42 = vld [vmem:[#allocation429_spill] sm:$0xff] }
 0x5e2   : > { %v7967_v41 = vmul.f32 0.01, %v7813_v56  ;;  %v13829_v3 = vpop.permute.xlu1 %2526  ;;  %v7613_v30 = vadd.f32 %v7581_v25, %v7485_v55  ;;  %v7230_v27 = vadd.f32 %v7198_v23, %v7102_v28  ;;  %v7454_v25 = vmul.f32 %v7402_v17, %v17277_v34 }
 0x5e3   : > { %17274 = vst [vmem:[#allocation246_spill] sm:$0xff] %v13829_v3  ;;  %v7966_v29 = vmul.f32 0.01, %v7808_v48  ;;  %v13844_v43 = vrot.slane %v13836_v59, %v10774_v18  ;;  %v7582_v58 = vmul.f32 %v7530_v47, %v17279_v42  ;;  %v13863_v17 = vrot.slane %v13833_v12, %v10772_v54  ;;  %v17283_v47 = vld [vmem:[#allocation117_spill] sm:$0xff] }
 0x5e4   : > { %v7999_v16 = vmax.f32 %v7813_v56, %v7967_v41  ;;  %9340 = vset.pattern.permute.xlu1 %v17206_v11  ;;  %8975 = vmatprep.mubr.msk.f32.mxu0 %vm518_vm1, %v7613_v30  ;;  %v7358_v53 = vadd.f32 %v7326_v57, %v7230_v27  ;;  %v13857_v30 = vrot.slane %v13833_v12, %v10774_v18  ;;  %v867_v23 = vmul.f32 0.01, %v17285_v44  ;;  %v17287_v27 = vld [vmem:[#allocation95_spill] sm:$0xff] }
 0x5e5   : > { %v7998_v60 = vmax.f32 %v7808_v48, %v7966_v29  ;;  %3546 = vperm.xlu1 %9340, %v17276_v45   ;;  %17278 = vst [vmem:[#allocation361_spill] sm:$0xff] %v13844_v43  ;;  %v13853_v48 = vrot.slane %v13836_v59, %v10772_v54  ;;  %v1605_v55 = vmul.f32 %v13844_v43, %v17283_v47  ;;  %v17294_v43 = vld [vmem:[#allocation179_spill] sm:$0xff] }
 0x5e6   : > { %v8031_v62 = vsel %vm518_vm1, %v7999_v16, 0.0  ;;  %v7486_v19 = vadd.f32 %v7454_v25, %v7358_v53  ;;  %v13870_v28 = vrot.slane %v13836_v59, %v16819_v39  ;;  %v13876_v41 = vrot.slane %v13836_v59, %v16698_v0  ;;  %v17288_v16 = vld [vmem:[#allocation115_spill] sm:$0xff] }
 0x5e7   : > { %v8030_v38 = vsel %vm518_vm1, %v7998_v60, 0.0  ;;  %v13849_v56 = vpop.permute.xlu1 %3030  ;;  %17281 = vst [vmem:[#allocation296_spill] sm:$0xff] %v13853_v48  ;;  %v13880_v29 = vrot.slane %v13405_v33, %v16618_v15  ;;  %v1381_v37 = vmul.f32 %v13853_v48, %v17287_v27  ;;  %v1603_v60 = vmul.f32 %v13857_v30, %v17288_v16  ;;  %v17293_v16 = vld [vmem:[#allocation159_spill] sm:$0xff] }
 0x5e8   : > { %17280 = vst [vmem:[#allocation365_spill] sm:$0xff] %v13849_v56  ;;  %v13859_v57 = vadd.f32 %v8031_v62, %v8030_v38  ;;  %v7614_v10 = vadd.f32 %v7582_v58, %v7486_v19  ;;  %17284 = vst [vmem:[#allocation279_spill] sm:$0xff] %v13870_v28  ;;  %v13889_v53 = vrot.slane %v13833_v12, %v16698_v0  ;;  %v17290_v62 = vld [vmem:[#allocation48_spill] sm:$0xff]  ;;  %v17291_v19 = vld [vmem:[#allocation93_spill] sm:$0xff] }
 0x5e9   : > { %9341 = vset.pattern.permute.xlu1 %v17098_v13  ;;  %17286 = vst [vmem:[#allocation271_spill] sm:$0xff] %v13876_v41  ;;  %v13893_v34 = vrot.slane %v13833_v12, %v16819_v39  ;;  %v869_v38 = vmul.f32 0.01, %v17290_v62  ;;  %v1379_v42 = vmul.f32 %v13863_v17, %v17291_v19  ;;  %v17292_v58 = vld [vmem:[#allocation161_spill] sm:$0xff]  ;;  %v1637_v27 = vadd.f32 %v1605_v55, %v1381_v37 }
 0x5ea   : > { %17282 = vst [vmem:[#allocation122_spill] sm:$0xff] %v13859_v57  ;;  %4050 = vperm.xlu1 %9341, %v17089_v40   ;;  %8976 = vmatmul.mubr.msk.f32.gmra.mrb[32].mxu0 %vm518_vm1, %v7614_v10  ;;  %v1861_v10 = vmul.f32 %v13876_v41, %v17292_v58  ;;  %v1859_v3 = vmul.f32 %v13889_v53, %v17293_v16  ;;  %v17295_v58 = vld [vmem:[#allocation378_spill] sm:$0xff]  ;;  %v17299_v57 = vld [vmem:[#allocation372_spill] sm:$0xff] }
 0x5eb   : > { %v2117_v48 = vmul.f32 %v13870_v28, %v17294_v43  ;;  %v13910_v11 = vrot.slane %v13836_v59, %v16618_v15  ;;  %v13915_v19 = vrot.slane %v13405_v33, %v16771_v50  ;;  %v13921_v55 = vrot.slane %v13836_v59, %v16771_v50  ;;  %v17296_v43 = vld [vmem:[#allocation30_spill] sm:$0xff] }
 0x5ec   : > { %v13895_v25 = vpop.permute.xlu1 %4038  ;;  %v1635_v16 = vadd.f32 %v1603_v60, %v1379_v42  ;;  %v2592_v41 = vrot.slane %v13833_v12, %v16771_v50  ;;  %v1893_v40 = vadd.f32 %v1861_v10, %v1637_v27  ;;  %v17301_v60 = vld [vmem:[#allocation225_spill] sm:$0xff]  ;;  %v13945_v27 = vmax.f32 %v17290_v62, %v869_v38 }
 0x5ed   : > { %17289 = vst [vmem:[#allocation314_spill] sm:$0xff] %v13895_v25  ;;  %v4160_v47 = vmul.f32 %v13775_v7, %v13895_v25  ;;  %v4416_v7 = vmul.f32 %v13880_v29, %v17295_v58  ;;  %v17297_v25 = vld [vmem:[#allocation177_spill] sm:$0xff]  ;;  %v17298_v58 = vld [vmem:[#allocation227_spill] sm:$0xff]  ;;  %v4672_v32 = vmul.f32 %v13915_v19, %v17299_v57  ;;  %v13955_v57 = vrot.slane %v13833_v12, %v16722_v49 }
 0x5ee   : > { %9342 = vset.pattern.permute.xlu1 %v17220_v35  ;;  %v2115_v28 = vmul.f32 %v13893_v34, %v17297_v25  ;;  %v2336_v35 = vrot.slane %v13833_v12, %v16618_v15  ;;  %v2373_v4 = vmul.f32 %v13910_v11, %v17298_v58  ;;  %v13940_v25 = vrot.slane %v13833_v12, %v16623_v26  ;;  %v17307_v12 = vld [vmem:[#allocation273_spill] sm:$0xff] }
 0x5ef   : > { %v4192_v37 = vadd.f32 %v4160_v47, %v13740_v8  ;;  %5058 = vperm.xlu1 %9342, %v17296_v43   ;;  %v1891_v43 = vadd.f32 %v1859_v3, %v1635_v16  ;;  %17302 = vst [vmem:[#allocation319_spill] sm:$0xff] %v13945_v27  ;;  %v2149_v10 = vadd.f32 %v2117_v48, %v1893_v40  ;;  %v17305_v16 = vld [vmem:[#allocation239_spill] sm:$0xff] }
 0x5f0   : > { %v2371_v42 = vmul.f32 %v2336_v35, %v17301_v60  ;;  %v2629_v58 = vmul.f32 %v13921_v55, %v13758_v51  ;;  %v2627_v60 = vmul.f32 %v2592_v41, %v17305_v16  ;;  %v13963_v48 = vrot.slane %v13836_v59, %v16623_v26 }
 0x5f1   : > { %v4448_v8 = vadd.f32 %v4416_v7, %v4192_v37  ;;  %v13935_v47 = vpop.permute.xlu1 %4542  ;;  %v17303_v7 = vmov 7   ;;  %v2147_v3 = vadd.f32 %v2115_v28, %v1891_v43  ;;  %v2405_v40 = vadd.f32 %v2373_v4, %v2149_v10 }
 0x5f2   : > { %17300 = vst [vmem:[#allocation7_spill] sm:$0xff] %v13935_v47  ;;  %v4670_v36 = vmul.f32 %v13795_v24, %v13935_v47  ;;  %v13970_v28 = vmax.f32 %v17285_v44, %v867_v23  ;;  %v2883_v38 = vmul.f32 %v13940_v25, %v17307_v12  ;;  %v17309_v23 = vld [vmem:[#allocation316_spill] sm:$0xff]  ;;  %v17314_v12 = vld [vmem:[#allocation147_spill] sm:$0xff]  ;;  %v17315_v47 = vmov 13  }
 0x5f3   : > { %9343 = vset.pattern.permute.xlu1 %v17303_v7  ;;  %v13950_v37 = vadd.f32 %v4672_v32, %v4448_v8  ;;  %v13967_v32 = vrot.slane %v13836_v59, %v16722_v49  ;;  %v2403_v62 = vadd.f32 %v2371_v42, %v2147_v3  ;;  %v2661_v4 = vadd.f32 %v2629_v58, %v2405_v40  ;;  %v17310_v58 = vld [vmem:[#allocation85_spill] sm:$0xff]  ;;  %v17311_v3 = vld [vmem:[#allocation127_spill] sm:$0xff] }
 0x5f4   : > { %v13958_v24 = vadd.f32 %v4670_v36, %v13752_v9  ;;  %3046 = vperm.xlu1 %9343, %v17224_v1   ;;  %17306 = vst [vmem:[#allocation355_spill] sm:$0xff] %v13970_v28  ;;  %v13978_v9 = vrot.slane %v13945_v27, %v10772_v54  ;;  %v3139_v59 = vmul.f32 %v13955_v57, %v13769_v2 }
 0x5f5   : > { %17304 = vst [vmem:[#allocation126_spill] sm:$0xff] %v13950_v37  ;;  %v2659_v43 = vadd.f32 %v2627_v60, %v2403_v62  ;;  %v13987_v44 = vrot.slane %v13970_v28, %v10772_v54  ;;  %v3141_v42 = vmul.f32 %v13967_v32, %v17309_v23  ;;  %v1380_v7 = vmul.f32 %v13863_v17, %v17310_v58  ;;  %v17312_v62 = vld [vmem:[#allocation36_spill] sm:$0xff] }
 0x5f6   : > { %v13974_v36 = vpop.permute.xlu1 %2778  ;;  %v1604_v60 = vmul.f32 %v13857_v30, %v17311_v3  ;;  %v1860_v16 = vmul.f32 %v13889_v53, %v17314_v12  ;;  %v17329_v3 = vld [vmem:[#allocation164_spill] sm:$0xff] }
 0x5f7   : > { %17308 = vst [vmem:[#allocation172_spill] sm:$0xff] %v13974_v36  ;;  %v2885_v8 = vmul.f32 %v13963_v48, %v13974_v36  ;;  %v2915_v40 = vadd.f32 %v2883_v38, %v2659_v43  ;;  %v3397_v36 = vmul.f32 %v13978_v9, %v17312_v62  ;;  %v17317_v38 = vld [vmem:[#allocation193_spill] sm:$0xff] }
 0x5f8   : > { %9344 = vset.pattern.permute.xlu1 %v17098_v13  ;;  %v1636_v30 = vadd.f32 %v1604_v60, %v1380_v7  ;;  %v2116_v43 = vmul.f32 %v13893_v34, %v17317_v38  ;;  %v17320_v7 = vld [vmem:[#allocation261_spill] sm:$0xff] }
 0x5f9   : > { %v2917_v10 = vadd.f32 %v2885_v8, %v2661_v4  ;;  %4054 = vperm.xlu1 %9344, %v17047_v63   ;;  %v3171_v23 = vadd.f32 %v3139_v59, %v2915_v40  ;;  %v17318_v59 = vld [vmem:[#allocation209_spill] sm:$0xff]  ;;  %v2628_v60 = vmul.f32 %v2592_v41, %v17320_v7 }
 0x5fa   : > { %v1892_v53 = vadd.f32 %v1860_v16, %v1636_v30  ;;  %v2372_v40 = vmul.f32 %v2336_v35, %v17318_v59  ;;  %v17321_v34 = vld [vmem:[#allocation49_spill] sm:$0xff]  ;;  %v14027_v35 = vrot.slane %v17166_v22, %v16623_v26 }
 0x5fb   : > { %v3173_v51 = vadd.f32 %v3141_v42, %v2917_v10  ;;  %v13998_v2 = vpop.permute.xlu1 %3282  ;;  %v8924_v8 = vpop.f32.mrb[22].mxu1 }
 0x5fc   : > { %17313 = vst [vmem:[#allocation267_spill] sm:$0xff] %v13998_v2  ;;  %v3395_v4 = vmul.f32 %v13987_v44, %v13998_v2  ;;  %v5456_v17 = vpop.f32.mrb[23].mxu1 }
 0x5fd   : > { %9345 = vset.pattern.permute.xlu1 %v17315_v47  ;;  %v14005_v58 = vadd.f32 %v3397_v36, %v3173_v51  ;;  %v5457_v10 = vadd.f32 %v13401_v21, %v5456_v17  ;;  %v2148_v36 = vadd.f32 %v2116_v43, %v1892_v53 }
 0x5fe   : > { %v14009_v42 = vadd.f32 %v3395_v4, %v3171_v23  ;;  %4558 = vperm.xlu1 %9345, %v17190_v31   ;;  %v4671_v23 = vmul.f32 %v13915_v19, %v17321_v34  ;;  %v5462_v4 = vadd.f32 %v13401_v21, %v8924_v8  ;;  %v2884_v19 = vmul.f32 %v13940_v25, %v13717_v6  ;;  %v17323_v8 = vld [vmem:[#allocation80_spill] sm:$0xff] }
 0x5ff   : > { %17316 = vst [vmem:[#allocation188_spill] sm:$0xff] %v14005_v58  ;;  %v5567_v62 = vmul.f32 0.01, %v5457_v10 }
 0x600   : > { %v14014_v2 = vpop.permute.xlu1 %4290 }
 0x601   : > { %17319 = vst [vmem:[#allocation72_spill] sm:$0xff] %v14014_v2  ;;  %v4415_v51 = vmul.f32 %v13880_v29, %v14014_v2  ;;  %v5599_v12 = vmax.f32 %v5457_v10, %v5567_v62  ;;  %v2404_v29 = vadd.f32 %v2372_v40, %v2148_v36  ;;  %v17324_v10 = vld [vmem:[#allocation101_spill] sm:$0xff]  ;;  %v3140_v40 = vmul.f32 %v13955_v57, %v13849_v56 }
 0x602   : > { %9346 = vset.pattern.permute.xlu1 %v16493_v52  ;;  %v5568_v36 = vmul.f32 0.01, %v5462_v4 }
 0x603   : > { %v4447_v16 = vadd.f32 %v4415_v51, %v13800_v46  ;;  %3298 = vperm.xlu1 %9346, %v17204_v14   ;;  %v5646_v17 = vrot.slane %v5599_v12, %v10772_v54  ;;  %v5742_v41 = vrot.slane %v5599_v12, %v10774_v18  ;;  %v5870_v62 = vrot.slane %v5599_v12, %v16698_v0 }
 0x604   : > { %v2660_v46 = vadd.f32 %v2628_v60, %v2404_v29  ;;  %v5998_v51 = vrot.slane %v5599_v12, %v16819_v39  ;;  %v6126_v25 = vrot.slane %v5599_v12, %v16618_v15  ;;  %v17326_v60 = vld [vmem:[#allocation114_spill] sm:$0xff]  ;;  %v6254_v2 = vrot.slane %v5599_v12, %v16771_v50 }
 0x605   : > { %v4703_v30 = vadd.f32 %v4671_v23, %v4447_v16  ;;  %v14034_v21 = vpop.permute.xlu1 %4794  ;;  %v5695_v43 = vmul.f32 %v5646_v17, %v17323_v8  ;;  %v5791_v53 = vmul.f32 %v5742_v41, %v17324_v10  ;;  %v17325_v23 = vld [vmem:[#allocation71_spill] sm:$0xff]  ;;  %v5792_v29 = vmul.f32 %v5742_v41, %v17326_v60  ;;  %v17327_v10 = vld [vmem:[#allocation146_spill] sm:$0xff] }
 0x606   : > { %17322 = vst [vmem:[#allocation96_spill] sm:$0xff] %v14034_v21  ;;  %v4925_v7 = vmul.f32 %v14027_v35, %v14034_v21  ;;  %v5696_v16 = vmul.f32 %v5646_v17, %v17325_v23  ;;  %v5919_v6 = vmul.f32 %v5870_v62, %v17327_v10  ;;  %v2916_v59 = vadd.f32 %v2884_v19, %v2660_v46 }
 0x607   : > { %9347 = vset.pattern.permute.xlu1 %v17187_v20  ;;  %v5823_v8 = vadd.f32 %v5791_v53, %v5695_v43  ;;  %v6047_v34 = vmul.f32 %v5998_v51, %v17329_v3  ;;  %v14056_v17 = vmax.f32 %v5462_v4, %v5568_v36  ;;  %v6382_v43 = vrot.slane %v5599_v12, %v16623_v26  ;;  %v17334_v36 = vld [vmem:[#allocation133_spill] sm:$0xff] }
 0x608   : > { %3802 = vperm.xlu1 %9347, %v17276_v45   ;;  %v14050_v57 = vadd.f32 %v4925_v7, %v13822_v5  ;;  %v3172_v21 = vadd.f32 %v3140_v40, %v2916_v59  ;;  %v17330_v5 = vld [vmem:[#allocation212_spill] sm:$0xff]  ;;  %v5824_v46 = vadd.f32 %v5792_v29, %v5696_v16  ;;  %v6510_v4 = vrot.slane %v5599_v12, %v16722_v49  ;;  %v17339_v12 = vld [vmem:[#allocation270_spill] sm:$0xff] }
 0x609   : > { %v5951_v38 = vadd.f32 %v5919_v6, %v5823_v8  ;;  %v6175_v7 = vmul.f32 %v6126_v25, %v17330_v5  ;;  %v14065_v6 = vrot.slane %v13405_v33, %v16623_v26  ;;  %v17332_v59 = vld [vmem:[#allocation32_spill] sm:$0xff]  ;;  %v5920_v23 = vmul.f32 %v5870_v62, %v17334_v36 }
 0x60a   : > { %v14052_v56 = vpop.permute.xlu1 %3286  ;;  %v6638_v16 = vrot.slane %v14056_v17, %v10772_v54  ;;  %v17337_v29 = vld [vmem:[#allocation244_spill] sm:$0xff] }
 0x60b   : > { %17328 = vst [vmem:[#allocation27_spill] sm:$0xff] %v14052_v56  ;;  %v3396_v41 = vmul.f32 %v13987_v44, %v14052_v56  ;;  %v6079_v19 = vadd.f32 %v6047_v34, %v5951_v38  ;;  %17331 = vst [vmem:[#allocation238_spill] sm:$0xff] %v14065_v6  ;;  %v17333_v44 = vld [vmem:[#allocation226_spill] sm:$0xff]  ;;  %v17336_v38 = vld [vmem:[#allocation379_spill] sm:$0xff]  ;;  %v5952_v10 = vadd.f32 %v5920_v23, %v5824_v46 }
 0x60c   : > { %9348 = vset.pattern.permute.xlu1 %v17266_v61  ;;  %v6303_v40 = vmul.f32 %v6254_v2, %v17333_v44  ;;  %v6431_v34 = vmul.f32 %v6382_v43, %v17336_v38  ;;  %v17340_v62 = vld [vmem:[#allocation260_spill] sm:$0xff]  ;;  %v17341_v44 = vld [vmem:[#allocation323_spill] sm:$0xff] }
 0x60d   : > { %v14067_v3 = vadd.f32 %v3396_v41, %v3172_v21  ;;  %4810 = vperm.xlu1 %9348, %v17332_v59   ;;  %v6207_v53 = vadd.f32 %v6175_v7, %v6079_v19  ;;  %v17338_v41 = vld [vmem:[#allocation180_spill] sm:$0xff]  ;;  %v4927_v19 = vmul.f32 %v14065_v6, %v17339_v12  ;;  %v6559_v7 = vmul.f32 %v6510_v4, %v17340_v62  ;;  %v17356_v6 = vld [vmem:[#allocation286_spill] sm:$0xff] }
 0x60e   : > { %v6048_v5 = vmul.f32 %v5998_v51, %v17338_v41  ;;  %v6766_v59 = vrot.slane %v14056_v17, %v10774_v18  ;;  %v17342_v46 = vld [vmem:[#allocation196_spill] sm:$0xff]  ;;  %v6894_v51 = vrot.slane %v14056_v17, %v16698_v0  ;;  %v17345_v41 = vld [vmem:[#allocation393_spill] sm:$0xff]  ;;  %v6688_v33 = vmul.f32 %v6638_v16, %v17356_v6 }
 0x60f   : > { %v14073_v60 = vpop.permute.xlu1 %3790  ;;  %v6335_v8 = vadd.f32 %v6303_v40, %v6207_v53  ;;  %v6176_v40 = vmul.f32 %v6126_v25, %v17342_v46  ;;  %v14094_v23 = vadd.f32 %v4927_v19, %v4703_v30  ;;  %v6687_v62 = vmul.f32 %v6638_v16, %v17345_v41 }
 0x610   : > { %17335 = vst [vmem:[#allocation325_spill] sm:$0xff] %v14073_v60  ;;  %v3906_v21 = vmul.f32 %v17337_v29, %v14073_v60  ;;  %v6080_v53 = vadd.f32 %v6048_v5, %v5952_v10  ;;  %v17346_v60 = vld [vmem:[#allocation245_spill] sm:$0xff]  ;;  %v7022_v25 = vrot.slane %v14056_v17, %v16819_v39  ;;  %v17348_v10 = vmov 12   ;;  %v17349_v5 = vld [vmem:[#allocation15_spill] sm:$0xff] }
 0x611   : > { %9349 = vset.pattern.permute.xlu1 %v16493_v52  ;;  %v6463_v38 = vadd.f32 %v6431_v34, %v6335_v8  ;;  %17343 = vst [vmem:[#allocation248_spill] sm:$0xff] %v14094_v23  ;;  %v6815_v19 = vmul.f32 %v6766_v59, %v17349_v5  ;;  %v7278_v23 = vrot.slane %v14056_v17, %v16771_v50 }
 0x612   : > { %v14088_v36 = vadd.f32 %v3906_v21, %v17341_v44  ;;  %3302 = vperm.xlu1 %9349, %v17224_v1   ;;  %v6208_v56 = vadd.f32 %v6176_v40, %v6080_v53  ;;  %v6304_v21 = vmul.f32 %v6254_v2, %v17346_v60  ;;  %v17347_v44 = vld [vmem:[#allocation122_spill] sm:$0xff]  ;;  %v17351_v53 = vld [vmem:[#allocation333_spill] sm:$0xff] }
 0x613   : > { %v6591_v29 = vadd.f32 %v6559_v7, %v6463_v38  ;;  %v8033_v12 = vrot.slane %v17347_v44, 4  ;;  %v17350_v38 = vld [vmem:[#allocation254_spill] sm:$0xff] }
 0x614   : > { %v14096_v52 = vpop.permute.xlu1 %4798  ;;  %v8965_v8 = vpop.f32.mrb[24].mxu0  ;;  %v6336_v7 = vadd.f32 %v6304_v21, %v6208_v56  ;;  %v6432_v46 = vmul.f32 %v6382_v43, %v17350_v38  ;;  %v17353_v56 = vld [vmem:[#allocation359_spill] sm:$0xff] }
 0x615   : > { %17344 = vst [vmem:[#allocation366_spill] sm:$0xff] %v14096_v52  ;;  %v4926_v34 = vmul.f32 %v14027_v35, %v14096_v52  ;;  %v6719_v30 = vadd.f32 %v6687_v62, %v6591_v29  ;;  %v7823_v40 = vadd.f32 %v8965_v8, %v17351_v53  ;;  %v7817_v2 = vpop.f32.mrb[25].mxu0  ;;  %v17352_v35 = vld [vmem:[#allocation406_spill] sm:$0xff]  ;;  %v7150_v52 = vrot.slane %v14056_v17, %v16618_v15 }
 0x616   : > { %9351 = vset.pattern.permute.xlu1 %v17348_v10  ;;  %v6943_v41 = vmul.f32 %v6894_v51, %v17352_v35  ;;  %v7818_v29 = vadd.f32 %v17351_v53, %v7817_v2  ;;  %v6464_v5 = vadd.f32 %v6432_v46, %v6336_v7  ;;  %v6560_v21 = vmul.f32 %v6510_v4, %v17353_v56 }
 0x617   : > { %v14110_v60 = vadd.f32 %v4926_v34, %v13958_v24  ;;  %4310 = vperm.xlu1 %9351, %v17047_v63   ;;  %v6847_v62 = vadd.f32 %v6815_v19, %v6719_v30  ;;  %v8034_v43 = vadd.f32 %v8033_v12, %v17347_v44  ;;  %v7969_v8 = vmul.f32 0.01, %v7823_v40  ;;  %v17355_v24 = vld [vmem:[#allocation264_spill] sm:$0xff]  ;;  %v17357_v12 = vld [vmem:[#allocation418_spill] sm:$0xff] }
 0x618   : > { %v7071_v34 = vmul.f32 %v7022_v25, %v17355_v24  ;;  %v7968_v35 = vmul.f32 0.01, %v7818_v29  ;;  %v6592_v37 = vadd.f32 %v6560_v21, %v6464_v5  ;;  %v14128_v4 = vrot.slane %v13970_v28, %v10774_v18 }
 0x619   : > { %v14119_v38 = vpop.permute.xlu1 %2530  ;;  %v6975_v58 = vadd.f32 %v6943_v41, %v6847_v62  ;;  %v8001_v2 = vmax.f32 %v7823_v40, %v7969_v8  ;;  %v7199_v44 = vmul.f32 %v7150_v52, %v17357_v12  ;;  %v7406_v30 = vrot.slane %v14056_v17, %v16623_v26  ;;  %v17358_v41 = vld [vmem:[#allocation402_spill] sm:$0xff]  ;;  %v17359_v40 = vld [vmem:[#allocation425_spill] sm:$0xff] }
 0x61a   : > { %17354 = vst [vmem:[#allocation140_spill] sm:$0xff] %v14119_v38  ;;  %v8000_v19 = vmax.f32 %v7818_v29, %v7968_v35  ;;  %v6720_v46 = vadd.f32 %v6688_v33, %v6592_v37  ;;  %v6816_v62 = vmul.f32 %v6766_v59, %v17358_v41  ;;  %v8035_v6 = vrot.slane %v8034_v43, 2  ;;  %v17361_v35 = vld [vmem:[#allocation45_spill] sm:$0xff]  ;;  %v17362_v37 = vld [vmem:[#allocation430_spill] sm:$0xff] }
 0x61b   : > { %9352 = vset.pattern.permute.xlu1 %v17266_v61  ;;  %v7103_v7 = vadd.f32 %v7071_v34, %v6975_v58  ;;  %v8040_v16 = vsel %vm518_vm1, %v8001_v2, 0.0  ;;  %v7327_v5 = vmul.f32 %v7278_v23, %v17359_v40  ;;  %v7534_v56 = vrot.slane %v14056_v17, %v16722_v49  ;;  %v17363_v17 = vld [vmem:[#allocation100_spill] sm:$0xff]  ;;  %v17364_v41 = vld [vmem:[#allocation414_spill] sm:$0xff] }
 0x61c   : > { %4814 = vperm.xlu1 %9352, %v17190_v31   ;;  %v8039_v21 = vsel %vm518_vm1, %v8000_v19, 0.0  ;;  %v6848_v29 = vadd.f32 %v6816_v62, %v6720_v46  ;;  %v6944_v12 = vmul.f32 %v6894_v51, %v17361_v35  ;;  %v14147_v59 = vrot.slane %v17362_v37, %v16819_v39  ;;  %v17365_v62 = vld [vmem:[#allocation280_spill] sm:$0xff] }
 0x61d   : > { %v7231_v24 = vadd.f32 %v7199_v44, %v7103_v7  ;;  %v8041_v58 = vadd.f32 %v8040_v16, %v8039_v21  ;;  %v7455_v2 = vmul.f32 %v7406_v30, %v17363_v17  ;;  %v7072_v40 = vmul.f32 %v7022_v25, %v17364_v41  ;;  %v17366_v35 = vld [vmem:[#allocation272_spill] sm:$0xff]  ;;  %v17372_v41 = vld [vmem:[#allocation315_spill] sm:$0xff] }
 0x61e   : > { %v14140_v8 = vpop.permute.xlu1 %3538  ;;  %v6976_v19 = vadd.f32 %v6944_v12, %v6848_v29  ;;  %v8036_v44 = vadd.f32 %v8035_v6, %v8034_v43  ;;  %v7583_v16 = vmul.f32 %v7534_v56, %v17365_v62  ;;  %v17368_v6 = vld [vmem:[#allocation428_spill] sm:$0xff] }
 0x61f   : > { %17360 = vst [vmem:[#allocation301_spill] sm:$0xff] %v14140_v8  ;;  %v3651_v33 = vmul.f32 %v14128_v4, %v14140_v8  ;;  %v7359_v34 = vadd.f32 %v7327_v5, %v7231_v24  ;;  %v8042_v7 = vrot.slane %v8041_v58, 4  ;;  %v7200_v8 = vmul.f32 %v7150_v52, %v17366_v35 }
 0x620   : > { %9354 = vset.pattern.permute.xlu1 %v17098_v13  ;;  %v7104_v21 = vadd.f32 %v7072_v40, %v6976_v19  ;;  %v7328_v29 = vmul.f32 %v7278_v23, %v17368_v6  ;;  %v7584_v40 = vmul.f32 %v7534_v56, %v17372_v41  ;;  %v17380_v41 = vld [vmem:[#allocation29_spill] sm:$0xff] }
 0x621   : > { %v14153_v51 = vadd.f32 %v3651_v33, %v14009_v42  ;;  %4058 = vperm.xlu1 %9354, %v17276_v45   ;;  %v7487_v46 = vadd.f32 %v7455_v2, %v7359_v34  ;;  %v8043_v38 = vadd.f32 %v8042_v7, %v8041_v58  ;;  %v8037_v42 = vrot.slane %v8036_v44, 1  ;;  %v17369_v34 = vld [vmem:[#allocation156_spill] sm:$0xff]  ;;  %v17370_v58 = vld [vmem:[#allocation33_spill] sm:$0xff]  ;;  %v17371_v2 = vld [vmem:[#allocation302_spill] sm:$0xff] }
 0x622   : > { %v7232_v43 = vadd.f32 %v7200_v8, %v7104_v21  ;;  %v14166_v33 = vrot.slane %v17166_v22, %v16722_v49  ;;  %v7456_v8 = vmul.f32 %v7406_v30, %v17371_v2  ;;  %v17374_v21 = vmov 9   ;;  %v17378_v2 = vld [vmem:[#allocation129_spill] sm:$0xff] }
 0x623   : > { %v14158_v5 = vpop.permute.xlu1 %4042  ;;  %v7615_v25 = vadd.f32 %v7583_v16, %v7487_v46  ;;  %v8044_v12 = vrot.slane %v8043_v38, 2  ;;  %v8038_v46 = vadd.f32 %v8037_v42, %v8036_v44 }
 0x624   : > { %17367 = vst [vmem:[#allocation158_spill] sm:$0xff] %v14158_v5  ;;  %v4161_v24 = vmul.f32 %v14147_v59, %v14158_v5  ;;  %v7360_v17 = vadd.f32 %v7328_v29, %v7232_v43 }
 0x625   : > { %9355 = vset.pattern.permute.xlu1 %v17315_v47  ;;  %8978 = vmatprep.mubr.msk.f32.mxu0 %vm518_vm1, %v7615_v25  ;;  %v8045_v19 = vadd.f32 %v8044_v12, %v8043_v38  ;;  %v8175_v30 = vmul.f32 0.0625, %v8038_v46  ;;  %v17376_v12 = vld [vmem:[#allocation87_spill] sm:$0xff] }
 0x626   : > { %v14169_v52 = vadd.f32 %v4161_v24, %v17369_v34  ;;  %4562 = vperm.xlu1 %9355, %v17370_v58   ;;  %v7488_v23 = vadd.f32 %v7456_v8, %v7360_v17  ;;  %v17377_v34 = vld [vmem:[#allocation296_spill] sm:$0xff]  ;;  %v17379_v8 = vld [vmem:[#allocation361_spill] sm:$0xff] }
 0x627   : > { %v8046_v62 = vrot.slane %v8045_v19, 1  ;;  %v1382_v17 = vmul.f32 %v17377_v34, %v17376_v12 }
 0x628   : > { %v14175_v7 = vpop.permute.xlu1 %5050  ;;  %v7616_v16 = vadd.f32 %v7584_v40, %v7488_v23 }
 0x629   : > { %17373 = vst [vmem:[#allocation308_spill] sm:$0xff] %v14175_v7  ;;  %v5181_v22 = vmul.f32 %v14166_v33, %v14175_v7  ;;  %v8047_v35 = vadd.f32 %v8046_v62, %v8045_v19  ;;  %v1606_v19 = vmul.f32 %v17379_v8, %v17378_v2  ;;  %v14200_v62 = vld [vmem:[%s15392_s5] ss:$0 sm:$0xff]  ;;  %v17387_v2 = vmov 15  }
 0x62a   : > { %9356 = vset.pattern.permute.xlu1 %v17374_v21  ;;  %8979 = vmatmul.mubr.msk.f32.gmra.mrb[34].mxu0 %vm518_vm1, %v7616_v16  ;;  %17381 = vst [vmem:[#allocation206_spill] sm:$0xff] %v14200_v62  ;;  %v17383_v16 = vld [vmem:[#allocation271_spill] sm:$0xff] }
 0x62b   : > { %v5213_v24 = vadd.f32 %v5181_v22, %v14050_v57  ;;  %3558 = vperm.xlu1 %9356, %v17224_v1   ;;  %v8968_v38 = vpop.f32.mrb[26].mxu0  ;;  %v8176_v56 = vmul.f32 0.0625, %v8047_v35 }
 0x62c   : > { %v7833_v44 = vadd.f32 %v8968_v38, %v17351_v53  ;;  %v7827_v25 = vpop.f32.mrb[27].mxu0 }
 0x62d   : > { %v14184_v43 = vpop.permute.xlu1 %2534  ;;  %8934 = vmatprep.mubr.msk.f32.mxu1 %vm518_vm1, %v5213_v24  ;;  %v7828_v6 = vadd.f32 %v17351_v53, %v7827_v25  ;;  %v14189_v29 = vsel %vm8218_vm2, %v8176_v56, %v8175_v30  ;;  %v17385_v25 = vld [vmem:[#allocation195_spill] sm:$0xff] }
 0x62e   : > { %17375 = vst [vmem:[#allocation242_spill] sm:$0xff] %v14184_v43  ;;  %v7971_v57 = vmul.f32 0.01, %v7833_v44  ;;  %v8927_v42 = vpop.f32.mrb[24].mxu1  ;;  %v17398_v43 = vld [vmem:[#allocation334_spill] sm:$0xff] }
 0x62f   : > { %9357 = vset.pattern.permute.xlu1 %v17098_v13  ;;  %v7970_v23 = vmul.f32 0.01, %v7828_v6  ;;  %v5466_v40 = vpop.f32.mrb[25].mxu1  ;;  %v17382_v13 = vld [vmem:[#allocation149_spill] sm:$0xff] }
 0x630   : > { %4062 = vperm.xlu1 %9357, %v17380_v41   ;;  %v8003_v46 = vmax.f32 %v7833_v44, %v7971_v57  ;;  %v5467_v22 = vadd.f32 %v14200_v62, %v5466_v40  ;;  %v1862_v21 = vmul.f32 %v17383_v16, %v17382_v13  ;;  %v1638_v44 = vadd.f32 %v1606_v19, %v1382_v17  ;;  %v17386_v57 = vld [vmem:[#allocation279_spill] sm:$0xff]  ;;  %v17395_v13 = vld [vmem:[#allocation116_spill] sm:$0xff] }
 0x631   : > { %v8002_v35 = vmax.f32 %v7828_v6, %v7970_v23  ;;  %v2118_v34 = vmul.f32 %v17386_v57, %v17385_v25 }
 0x632   : > { %v14205_v24 = vpop.permute.xlu1 %3542  ;;  %v8049_v38 = vsel %vm518_vm1, %v8003_v46, 0.0  ;;  %v5569_v30 = vmul.f32 0.01, %v5467_v22  ;;  %v1894_v23 = vadd.f32 %v1862_v21, %v1638_v44  ;;  %v5472_v46 = vadd.f32 %v14200_v62, %v8927_v42 }
 0x633   : > { %17384 = vst [vmem:[#allocation339_spill] sm:$0xff] %v14205_v24  ;;  %v3652_v56 = vmul.f32 %v14128_v4, %v14205_v24  ;;  %v8048_v8 = vsel %vm518_vm1, %v8002_v35, 0.0 }
 0x634   : > { %9359 = vset.pattern.permute.xlu1 %v17387_v2  ;;  %v8050_v40 = vadd.f32 %v8049_v38, %v8048_v8  ;;  %v5601_v12 = vmax.f32 %v5467_v22, %v5569_v30  ;;  %v2150_v57 = vadd.f32 %v2118_v34, %v1894_v23  ;;  %v17389_v38 = vld [vmem:[#allocation82_spill] sm:$0xff]  ;;  %v3872_v8 = vrot.slane %v13970_v28, %v16698_v0  ;;  %v17392_v23 = vld [vmem:[#allocation148_spill] sm:$0xff] }
 0x635   : > { %v14215_v6 = vadd.f32 %v3652_v56, %v14067_v3  ;;  %5070 = vperm.xlu1 %9359, %v17190_v31   ;;  %v17390_v31 = vld [vmem:[#allocation103_spill] sm:$0xff]  ;;  %v5570_v25 = vmul.f32 0.01, %v5472_v46 }
 0x636   : > { %v8051_v16 = vrot.slane %v8050_v40, 4  ;;  %v5650_v4 = vrot.slane %v5601_v12, %v10772_v54  ;;  %v5746_v17 = vrot.slane %v5601_v12, %v10774_v18  ;;  %v5874_v19 = vrot.slane %v5601_v12, %v16698_v0  ;;  %v17391_v56 = vld [vmem:[#allocation211_spill] sm:$0xff] }
 0x637   : > { %v14222_v35 = vpop.permute.xlu1 %4046  ;;  %v6002_v42 = vrot.slane %v5601_v12, %v16819_v39  ;;  %v2374_v44 = vmul.f32 %v13910_v11, %v17391_v56  ;;  %v17394_v11 = vld [vmem:[#allocation73_spill] sm:$0xff]  ;;  %v14255_v62 = vmul.f32 %v3872_v8, %v17398_v43  ;;  %v14257_v28 = vmax.f32 %v5472_v46, %v5570_v25 }
 0x638   : > { %17388 = vst [vmem:[#allocation200_spill] sm:$0xff] %v14222_v35  ;;  %v4162_v22 = vmul.f32 %v14147_v59, %v14222_v35  ;;  %v8052_v3 = vadd.f32 %v8051_v16, %v8050_v40  ;;  %v5697_v30 = vmul.f32 %v5650_v4, %v17389_v38  ;;  %v5793_v21 = vmul.f32 %v5746_v17, %v17390_v31 }
 0x639   : > { %9360 = vset.pattern.permute.xlu1 %v17187_v20  ;;  %v5921_v16 = vmul.f32 %v5874_v19, %v17392_v23  ;;  %v6130_v38 = vrot.slane %v5601_v12, %v16618_v15  ;;  %v14242_v31 = vrot.slane %v17362_v37, %v16771_v50  ;;  %v5698_v56 = vmul.f32 %v5650_v4, %v17394_v11  ;;  %v17397_v23 = vld [vmem:[#allocation165_spill] sm:$0xff] }
 0x63a   : > { %v14235_v34 = vadd.f32 %v4162_v22, %v14088_v36  ;;  %3810 = vperm.xlu1 %9360, %v17204_v14   ;;  %v8053_v59 = vrot.slane %v8052_v3, 2  ;;  %v5825_v40 = vadd.f32 %v5793_v21, %v5697_v30  ;;  %v5794_v24 = vmul.f32 %v5746_v17, %v17395_v13  ;;  %v17399_v17 = vld [vmem:[#allocation214_spill] sm:$0xff] }
 0x63b   : > { %17393 = vst [vmem:[#allocation21_spill] sm:$0xff] %v14242_v31  ;;  %v6258_v36 = vrot.slane %v5601_v12, %v16771_v50  ;;  %v6049_v5 = vmul.f32 %v6002_v42, %v17397_v23  ;;  %v14252_v7 = vadd.f32 %v2374_v44, %v2150_v57  ;;  %v14270_v25 = vrot.slane %v17362_v37, %v16618_v15 }
 0x63c   : > { %v14246_v35 = vpop.permute.xlu1 %5054  ;;  %v8054_v22 = vadd.f32 %v8053_v59, %v8052_v3  ;;  %v5953_v21 = vadd.f32 %v5921_v16, %v5825_v40  ;;  %v6177_v3 = vmul.f32 %v6130_v38, %v17399_v17  ;;  %v17400_v59 = vld [vmem:[#allocation374_spill] sm:$0xff]  ;;  %v6514_v46 = vrot.slane %v5601_v12, %v16722_v49 }
 0x63d   : > { %17396 = vst [vmem:[#allocation220_spill] sm:$0xff] %v14246_v35  ;;  %v5182_v30 = vmul.f32 %v14166_v33, %v14246_v35  ;;  %v6386_v33 = vrot.slane %v5601_v12, %v16623_v26  ;;  %v14266_v57 = vmul.f32 %v14242_v31, %v17400_v59  ;;  %v5826_v23 = vadd.f32 %v5794_v24, %v5698_v56  ;;  %v17403_v35 = vld [vmem:[#allocation256_spill] sm:$0xff] }
 0x63e   : > { %9361 = vset.pattern.permute.xlu1 %v17266_v61  ;;  %v6081_v4 = vadd.f32 %v6049_v5, %v5953_v21  ;;  %v8055_v44 = vrot.slane %v8054_v22, 1  ;;  %v6642_v43 = vrot.slane %v14257_v28, %v10772_v54  ;;  %v14283_v59 = vrot.slane %v14257_v28, %v10774_v18  ;;  %v17406_v54 = vld [vmem:[#allocation182_spill] sm:$0xff] }
 0x63f   : > { %v5214_v13 = vadd.f32 %v5182_v30, %v14110_v60  ;;  %4818 = vperm.xlu1 %9361, %v17370_v58   ;;  %v8971_v40 = vpop.f32.mrb[28].mxu0  ;;  %v17402_v30 = vld [vmem:[#allocation228_spill] sm:$0xff] }
 0x640   : > { %v7843_v60 = vadd.f32 %v8971_v40, %v17351_v53  ;;  %v7837_v16 = vpop.f32.mrb[29].mxu0  ;;  %v6209_v11 = vadd.f32 %v6177_v3, %v6081_v4  ;;  %v6305_v21 = vmul.f32 %v6258_v36, %v17402_v30  ;;  %v17404_v4 = vld [vmem:[#allocation135_spill] sm:$0xff]  ;;  %v8056_v30 = vadd.f32 %v8055_v44, %v8054_v22  ;;  %v17409_v44 = vld [vmem:[#allocation198_spill] sm:$0xff] }
 0x641   : > { %v14274_v5 = vpop.permute.xlu1 %2786  ;;  %8935 = vmatmul.mubr.msk.f32.gmra.mrb[30].mxu1 %vm518_vm1, %v5214_v13  ;;  %v7838_v17 = vadd.f32 %v17351_v53, %v7837_v16  ;;  %v6433_v13 = vmul.f32 %v6386_v33, %v17403_v35  ;;  %v5922_v3 = vmul.f32 %v5874_v19, %v17404_v4  ;;  %v17405_v53 = vld [vmem:[#allocation387_spill] sm:$0xff]  ;;  %v14292_v16 = vrot.slane %v14257_v28, %v16698_v0  ;;  %v17408_v35 = vld [vmem:[#allocation288_spill] sm:$0xff] }
 0x642   : > { %17401 = vst [vmem:[#allocation74_spill] sm:$0xff] %v14274_v5  ;;  %v7973_v12 = vmul.f32 0.01, %v7843_v60  ;;  %v6337_v40 = vadd.f32 %v6305_v21, %v6209_v11  ;;  %v6561_v56 = vmul.f32 %v6514_v46, %v17405_v53  ;;  %v6689_v19 = vmul.f32 %v6642_v43, %v17408_v35 }
 0x643   : > { %9362 = vset.pattern.permute.xlu1 %v17187_v20  ;;  %v7972_v24 = vmul.f32 0.01, %v7838_v17  ;;  %v5954_v5 = vadd.f32 %v5922_v3, %v5826_v23  ;;  %v6050_v20 = vmul.f32 %v6002_v42, %v17406_v54  ;;  %v14300_v22 = vrot.slane %v14257_v28, %v16819_v39  ;;  %v17410_v42 = vld [vmem:[#allocation412_spill] sm:$0xff] }
 0x644   : > { %3814 = vperm.xlu1 %9362, %v17224_v1   ;;  %v8005_v37 = vmax.f32 %v7843_v60, %v7973_v12  ;;  %v6465_v31 = vadd.f32 %v6433_v13, %v6337_v40  ;;  %v6178_v4 = vmul.f32 %v6130_v38, %v17409_v44  ;;  %v8177_v23 = vmul.f32 0.0625, %v8056_v30  ;;  %v17411_v40 = vld [vmem:[#allocation247_spill] sm:$0xff]  ;;  %v17412_v38 = vld [vmem:[#allocation246_spill] sm:$0xff] }
 0x645   : > { %v8004_v11 = vmax.f32 %v7838_v17, %v7972_v24  ;;  %v6082_v12 = vadd.f32 %v6050_v20, %v5954_v5  ;;  %v6817_v17 = vmul.f32 %v14283_v59, %v17410_v42  ;;  %v6306_v13 = vmul.f32 %v6258_v36, %v17411_v40  ;;  %v17413_v5 = vld [vmem:[#allocation327_spill] sm:$0xff]  ;;  %v17414_v20 = vld [vmem:[#allocation397_spill] sm:$0xff] }
 0x646   : > { %v14295_v21 = vpop.permute.xlu1 %3794  ;;  %v8058_v53 = vsel %vm518_vm1, %v8005_v37, 0.0  ;;  %v6593_v60 = vadd.f32 %v6561_v56, %v6465_v31  ;;  %v2630_v31 = vmul.f32 %v13921_v55, %v17412_v38  ;;  %v6945_v30 = vmul.f32 %v14292_v16, %v17413_v5  ;;  %v17420_v5 = vld [vmem:[#allocation276_spill] sm:$0xff]  ;;  %v17459_v38 = vld [vmem:[#allocation53_spill] sm:$0xff] }
 0x647   : > { %17407 = vst [vmem:[#allocation108_spill] sm:$0xff] %v14295_v21  ;;  %v3907_v1 = vmul.f32 %v3872_v8, %v14295_v21  ;;  %v8057_v54 = vsel %vm518_vm1, %v8004_v11, 0.0  ;;  %v6210_v8 = vadd.f32 %v6178_v4, %v6082_v12  ;;  %v7154_v56 = vrot.slane %v14257_v28, %v16618_v15 }
 0x648   : > { %9363 = vset.pattern.permute.xlu1 %v17266_v61  ;;  %v8059_v3 = vadd.f32 %v8058_v53, %v8057_v54  ;;  %v6721_v37 = vadd.f32 %v6689_v19, %v6593_v60  ;;  %v6434_v11 = vmul.f32 %v6386_v33, %v17414_v20  ;;  %v17416_v19 = vld [vmem:[#allocation424_spill] sm:$0xff]  ;;  %v7282_v4 = vrot.slane %v14257_v28, %v16771_v50  ;;  %v17417_v54 = vld [vmem:[#allocation310_spill] sm:$0xff] }
 0x649   : > { %v14311_v24 = vadd.f32 %v3907_v1, %v14153_v51  ;;  %4822 = vperm.xlu1 %9363, %v17047_v63   ;;  %v6338_v51 = vadd.f32 %v6306_v13, %v6210_v8  ;;  %v14325_v63 = vadd.f32 %v14255_v62, %v14215_v6  ;;  %v7073_v44 = vmul.f32 %v14300_v22, %v17416_v19 }
 0x64a   : > { %v8060_v36 = vrot.slane %v8059_v3, 4  ;;  %v6849_v1 = vadd.f32 %v6817_v17, %v6721_v37  ;;  %v8221_v33 = vsel %vm8220_vm3, %v8177_v23, %v14189_v29  ;;  %v6562_v62 = vmul.f32 %v6514_v46, %v17417_v54  ;;  %v17418_v17 = vld [vmem:[#allocation16_spill] sm:$0xff]  ;;  %v17426_v54 = vld [vmem:[#allocation318_spill] sm:$0xff] }
 0x64b   : > { %v14321_v35 = vpop.permute.xlu1 %4298  ;;  %v6466_v12 = vadd.f32 %v6434_v11, %v6338_v51  ;;  %v2662_v6 = vadd.f32 %v2630_v31, %v14252_v7  ;;  %v7201_v40 = vmul.f32 %v7154_v56, %v17418_v17  ;;  %v7410_v13 = vrot.slane %v14257_v28, %v16623_v26  ;;  %v17422_v7 = vld [vmem:[#allocation269_spill] sm:$0xff]  ;;  %v17423_v51 = vld [vmem:[#allocation344_spill] sm:$0xff] }
 0x64c   : > { %17415 = vst [vmem:[#allocation43_spill] sm:$0xff] %v14321_v35  ;;  %v4417_v55 = vmul.f32 %v14270_v25, %v14321_v35  ;;  %v8061_v53 = vadd.f32 %v8060_v36, %v8059_v3  ;;  %v6977_v60 = vadd.f32 %v6945_v30, %v6849_v1  ;;  %v17419_v3 = vld [vmem:[#allocation408_spill] sm:$0xff]  ;;  %v2886_v30 = vmul.f32 %v13963_v48, %v17420_v5  ;;  %v17424_v48 = vld [vmem:[#allocation265_spill] sm:$0xff] }
 0x64d   : > { %9364 = vset.pattern.permute.xlu1 %v17315_v47  ;;  %v6594_v23 = vadd.f32 %v6562_v62, %v6466_v12  ;;  %v6690_v8 = vmul.f32 %v6642_v43, %v17419_v3  ;;  %v7329_v31 = vmul.f32 %v7282_v4, %v17422_v7  ;;  %v7457_v19 = vmul.f32 %v7410_v13, %v17424_v48  ;;  %v17430_v7 = vld [vmem:[#allocation166_spill] sm:$0xff] }
 0x64e   : > { %v4449_v42 = vadd.f32 %v4417_v55, %v14169_v52  ;;  %4570 = vperm.xlu1 %9364, %v17276_v45   ;;  %v8062_v37 = vrot.slane %v8061_v53, 2  ;;  %v7105_v29 = vadd.f32 %v7073_v44, %v6977_v60  ;;  %v7538_v52 = vrot.slane %v14257_v28, %v16722_v49  ;;  %v17425_v28 = vld [vmem:[#allocation422_spill] sm:$0xff] }
 0x64f   : > { %v6722_v1 = vadd.f32 %v6690_v8, %v6594_v23  ;;  %v6818_v55 = vmul.f32 %v14283_v59, %v17423_v51  ;;  %v2918_v43 = vadd.f32 %v2886_v30, %v2662_v6  ;;  %v3620_v62 = vrot.slane %v13945_v27, %v10774_v18  ;;  %v17427_v59 = vld [vmem:[#allocation136_spill] sm:$0xff]  ;;  %v17432_v51 = vld [vmem:[#allocation10_spill] sm:$0xff] }
 0x650   : > { %v14346_v46 = vpop.permute.xlu1 %2790  ;;  %v14352_v20 = vadd.f32 %v14266_v57, %v4449_v42  ;;  %v8063_v11 = vadd.f32 %v8062_v37, %v8061_v53  ;;  %v7233_v36 = vadd.f32 %v7201_v40, %v7105_v29  ;;  %v6946_v57 = vmul.f32 %v14292_v16, %v17425_v28  ;;  %v17429_v29 = vld [vmem:[#allocation385_spill] sm:$0xff] }
 0x651   : > { %17421 = vst [vmem:[#allocation263_spill] sm:$0xff] %v14346_v46  ;;  %v6850_v12 = vadd.f32 %v6818_v55, %v6722_v1  ;;  %v3142_v53 = vmul.f32 %v13967_v32, %v17426_v54  ;;  %v7585_v6 = vmul.f32 %v7538_v52, %v17427_v59  ;;  %v14372_v23 = vrot.slane %v13945_v27, %v16698_v0 }
 0x652   : > { %9365 = vset.pattern.permute.xlu1 %v17387_v2  ;;  %v8064_v44 = vrot.slane %v8063_v11, 1  ;;  %v7361_v60 = vadd.f32 %v7329_v31, %v7233_v36  ;;  %v7202_v31 = vmul.f32 %v7154_v56, %v17430_v7  ;;  %v7330_v55 = vmul.f32 %v7282_v4, %v17432_v51 }
 0x653   : > { %5074 = vperm.xlu1 %9365, %v17370_v58   ;;  %v6978_v37 = vadd.f32 %v6946_v57, %v6850_v12  ;;  %v7074_v58 = vmul.f32 %v14300_v22, %v17429_v29  ;;  %v3174_v16 = vadd.f32 %v3142_v53, %v2918_v43  ;;  %v17433_v43 = vld [vmem:[#allocation336_spill] sm:$0xff]  ;;  %v17436_v53 = vld [vmem:[#allocation38_spill] sm:$0xff] }
 0x654   : > { %v8065_v42 = vadd.f32 %v8064_v44, %v8063_v11  ;;  %v7489_v40 = vadd.f32 %v7457_v19, %v7361_v60  ;;  %v17431_v11 = vld [vmem:[#allocation356_spill] sm:$0xff]  ;;  %v3910_v48 = vmul.f32 %v14372_v23, %v17433_v43  ;;  %v7586_v59 = vmul.f32 %v7538_v52, %v17436_v53  ;;  %v17441_v52 = vld [vmem:[#allocation126_spill] sm:$0xff] }
 0x655   : > { %v14366_v17 = vpop.permute.xlu1 %3294  ;;  %v7106_v30 = vadd.f32 %v7074_v58, %v6978_v37  ;;  %v3654_v36 = vmul.f32 %v3620_v62, %v17431_v11  ;;  %v17435_v12 = vld [vmem:[#allocation92_spill] sm:$0xff]  ;;  %v17458_v11 = vld [vmem:[#allocation229_spill] sm:$0xff] }
 0x656   : > { %17428 = vst [vmem:[#allocation346_spill] sm:$0xff] %v14366_v17  ;;  %v3398_v32 = vmul.f32 %v13978_v9, %v14366_v17  ;;  %v8178_v3 = vmul.f32 0.0625, %v8065_v42  ;;  %v7617_v8 = vadd.f32 %v7585_v6, %v7489_v40  ;;  %v7458_v28 = vmul.f32 %v7410_v13, %v17435_v12  ;;  %v17437_v6 = vld [vmem:[#allocation63_spill] sm:$0xff]  ;;  %v14402_v40 = vpop.permute.xlu0 %5062 }
 0x657   : > { %9367 = vset.pattern.permute.xlu1 %v17315_v47  ;;  %v7234_v22 = vadd.f32 %v7202_v31, %v7106_v30  ;;  %v5144_v42 = vrot.slane %v17437_v6, %v16722_v49  ;;  %17438 = vst [vmem:[#allocation291_spill] sm:$0xff] %v14402_v40  ;;  %v17444_v30 = vld [vmem:[#allocation355_spill] sm:$0xff]  ;;  %v17445_v31 = vld [vmem:[#allocation188_spill] sm:$0xff] }
 0x658   : > { %v3430_v1 = vadd.f32 %v3398_v32, %v3174_v16  ;;  %4574 = vperm.xlu1 %9367, %v17380_v41   ;;  %8981 = vmatprep.mubr.msk.f32.mxu0 %vm518_vm1, %v7617_v8  ;;  %v14383_v9 = vsel %vm8222_vm4, %v8178_v3, %v8221_v33  ;;  %v17443_v3 = vld [vmem:[#allocation54_spill] sm:$0xff]  ;;  %v4128_v7 = vrot.slane %v17444_v30, %v16819_v39 }
 0x659   : > { %v7362_v60 = vadd.f32 %v7330_v55, %v7234_v22  ;;  %v870_v8 = vmul.f32 0.01, %v17443_v3  ;;  %v14430_v22 = vld [vmem:[%s15392_s5 + $0x1] ss:$0 sm:$0xff] }
 0x65a   : > { %v3686_v19 = vadd.f32 %v3654_v36, %v3430_v1  ;;  %v14387_v44 = vpop.permute.xlu1 %4302  ;;  %v14425_v1 = vrot.slane %v17444_v30, %v16618_v15  ;;  %17446 = vst [vmem:[#allocation216_spill] sm:$0xff] %v14430_v22 }
 0x65b   : > { %17434 = vst [vmem:[#allocation362_spill] sm:$0xff] %v14387_v44  ;;  %v4418_v56 = vmul.f32 %v14270_v25, %v14387_v44  ;;  %v7490_v33 = vadd.f32 %v7458_v28, %v7362_v60  ;;  %v17448_v28 = vld [vmem:[#allocation56_spill] sm:$0xff] }
 0x65c   : > { %9368 = vset.pattern.permute.xlu1 %v17348_v10  ;;  %v14393_v57 = vadd.f32 %v3910_v48, %v3686_v19  ;;  %v17440_v10 = vld [vmem:[#allocation238_spill] sm:$0xff]  ;;  %v902_v48 = vmax.f32 %v17443_v3, %v870_v8  ;;  %v17452_v3 = vld [vmem:[#allocation119_spill] sm:$0xff] }
 0x65d   : > { %v14396_v4 = vadd.f32 %v4418_v56, %v14235_v34  ;;  %4322 = vperm.xlu1 %9368, %v17204_v14   ;;  %v7618_v25 = vadd.f32 %v7586_v59, %v7490_v33  ;;  %v5184_v34 = vmul.f32 %v5144_v42, %v14402_v40  ;;  %v4419_v33 = vmul.f32 %v14425_v1, %v17448_v28  ;;  %v17487_v28 = vld [vmem:[#allocation150_spill] sm:$0xff]  ;;  %v17501_v40 = vld [vmem:[#allocation199_spill] sm:$0xff] }
 0x65e   : > { %v1576_v12 = vrot.slane %v902_v48, %v10774_v18  ;;  %v2856_v54 = vrot.slane %v902_v48, %v16623_v26 }
 0x65f   : > { %v14404_v37 = vpop.permute.xlu1 %4806  ;;  %8982 = vmatmul.mubr.msk.f32.gmra.mrb[36].mxu0 %vm518_vm1, %v7618_v25  ;;  %v17449_v25 = vld [vmem:[#allocation259_spill] sm:$0xff] }
 0x660   : > { %17439 = vst [vmem:[#allocation277_spill] sm:$0xff] %v14404_v37  ;;  %v4928_v13 = vmul.f32 %v17440_v10, %v14404_v37  ;;  %v1352_v10 = vrot.slane %v902_v48, %v17449_v25  ;;  %v1607_v8 = vmul.f32 %v1576_v12, %v17452_v3 }
 0x661   : > { %9369 = vset.pattern.permute.xlu1 %v17266_v61 }
 0x662   : > { %v4960_v29 = vadd.f32 %v4928_v13, %v17441_v52  ;;  %4826 = vperm.xlu1 %9369, %v17276_v45  }
 0x664   : > { %v5216_v58 = vadd.f32 %v5184_v34, %v4960_v29  ;;  %v14413_v16 = vpop.permute.xlu1 %3546 }
 0x665   : > { %17442 = vst [vmem:[#allocation311_spill] sm:$0xff] %v14413_v16  ;;  %v3653_v32 = vmul.f32 %v3620_v62, %v14413_v16 }
 0x666   : > { %4830 = vperm.xlu1 %9369, %v17380_v41   ;;  %v8974_v45 = vpop.f32.mrb[30].mxu0 }
 0x667   : > { %v14421_v36 = vadd.f32 %v3653_v32, %v17445_v31  ;;  %v7853_v62 = vadd.f32 %v14430_v22, %v8974_v45  ;;  %v7847_v51 = vpop.f32.mrb[31].mxu0  ;;  %v17451_v32 = vld [vmem:[#allocation31_spill] sm:$0xff]  ;;  %v2088_v45 = vrot.slane %v902_v48, %v16819_v39 }
 0x668   : > { %v7848_v19 = vadd.f32 %v14430_v22, %v7847_v51  ;;  %v17453_v51 = vld [vmem:[#allocation248_spill] sm:$0xff] }
 0x669   : > { %v14433_v55 = vpop.permute.xlu1 %4050  ;;  %v7975_v60 = vmul.f32 0.01, %v7853_v62 }
 0x66a   : > { %17447 = vst [vmem:[#allocation128_spill] sm:$0xff] %v14433_v55  ;;  %v4163_v56 = vmul.f32 %v4128_v7, %v14433_v55  ;;  %9371 = vset.pattern.permute.xlu1 %v17315_v47  ;;  %v7974_v53 = vmul.f32 0.01, %v7848_v19 }
 0x66b   : > { %4578 = vperm.xlu1 %9371, %v17204_v14   ;;  %v8007_v6 = vmax.f32 %v7853_v62, %v7975_v60 }
 0x66c   : > { %v4195_v59 = vadd.f32 %v4163_v56, %v14311_v24  ;;  %v8006_v13 = vmax.f32 %v7848_v19, %v7974_v53  ;;  %v1832_v24 = vrot.slane %v902_v48, %v16698_v0  ;;  %v17454_v56 = vld [vmem:[#allocation97_spill] sm:$0xff] }
 0x66d   : > { %v8067_v47 = vsel %vm518_vm1, %v8007_v6, 0.0  ;;  %v1383_v60 = vmul.f32 %v1352_v10, %v17454_v56 }
 0x66e   : > { %v14445_v34 = vpop.permute.xlu1 %5058  ;;  %v14447_v52 = vadd.f32 %v4419_v33, %v4195_v59  ;;  %v8066_v31 = vsel %vm518_vm1, %v8006_v13, 0.0  ;;  %v17455_v33 = vld [vmem:[#allocation163_spill] sm:$0xff]  ;;  %v17457_v13 = vld [vmem:[#allocation181_spill] sm:$0xff] }
 0x66f   : > { %17450 = vst [vmem:[#allocation324_spill] sm:$0xff] %v14445_v34  ;;  %v5183_v29 = vmul.f32 %v5144_v42, %v14445_v34  ;;  %4582 = vperm.xlu1 %9371, %v17451_v32   ;;  %v8068_v62 = vadd.f32 %v8067_v47, %v8066_v31  ;;  %v1863_v53 = vmul.f32 %v1832_v24, %v17455_v33 }
 0x670   : > { %v1639_v6 = vadd.f32 %v1607_v8, %v1383_v60  ;;  %v2119_v47 = vmul.f32 %v2088_v45, %v17457_v13  ;;  %v2600_v31 = vrot.slane %v902_v48, %v16771_v50  ;;  %v17461_v8 = vld [vmem:[#allocation140_spill] sm:$0xff] }
 0x671   : > { %v5215_v19 = vadd.f32 %v5183_v29, %v17453_v51  ;;  %v8069_v59 = vrot.slane %v8068_v62, 4  ;;  %v2344_v29 = vrot.slane %v902_v48, %v16618_v15 }
 0x672   : > { %v1895_v43 = vadd.f32 %v1863_v53, %v1639_v6  ;;  %v2631_v60 = vmul.f32 %v2600_v31, %v17461_v8  ;;  %v17462_v53 = vld [vmem:[#allocation74_spill] sm:$0xff] }
 0x673   : > { %9372 = vset.pattern.permute.xlu1 %v17387_v2  ;;  %v14460_v42 = vpop.permute.xlu1 %3046  ;;  %8937 = vmatprep.mubr.msk.f32.mxu1 %vm518_vm1, %v5215_v19  ;;  %v8070_v51 = vadd.f32 %v8069_v59, %v8068_v62  ;;  %v2375_v17 = vmul.f32 %v2344_v29, %v17458_v11  ;;  %v871_v19 = vmul.f32 0.01, %v17459_v38  ;;  %v2887_v59 = vmul.f32 %v2856_v54, %v17462_v53  ;;  %v17475_v8 = vld [vmem:[#allocation358_spill] sm:$0xff] }
 0x674   : > { %17456 = vst [vmem:[#allocation174_spill] sm:$0xff] %v14460_v42  ;;  %5086 = vperm.xlu1 %9372, %v17380_v41   ;;  %8938 = vmatmul.mubr.msk.f32.gmra.mrb[32].mxu1 %vm518_vm1, %v5216_v58  ;;  %v2151_v58 = vadd.f32 %v2119_v47, %v1895_v43 }
 0x675   : > { %v8071_v5 = vrot.slane %v8070_v51, 2  ;;  %v14482_v16 = vmax.f32 %v17459_v38, %v871_v19 }
 0x676   : > { %v2407_v62 = vadd.f32 %v2375_v17, %v2151_v58  ;;  %v17466_v17 = vld [vmem:[#allocation131_spill] sm:$0xff]  ;;  %v17467_v58 = vld [vmem:[#allocation21_spill] sm:$0xff] }
 0x677   : > { %v8072_v13 = vadd.f32 %v8071_v5, %v8070_v51  ;;  %17463 = vst [vmem:[#allocation337_spill] sm:$0xff] %v14482_v16  ;;  %v1608_v51 = vmul.f32 %v1576_v12, %v17466_v17  ;;  %v14504_v12 = vrot.slane %v14482_v16, %v10774_v18 }
 0x678   : > { %9374 = vset.pattern.permute.xlu1 %v17266_v61  ;;  %v14472_v41 = vpop.permute.xlu1 %4054  ;;  %v3112_v61 = vrot.slane %v902_v48, %v16722_v49  ;;  %v2663_v43 = vadd.f32 %v2631_v60, %v2407_v62  ;;  %v14495_v48 = vrot.slane %v14482_v16, %v17449_v25  ;;  %v17517_v16 = vld [vmem:[#allocation22_spill] sm:$0xff] }
 0x679   : > { %17460 = vst [vmem:[#allocation363_spill] sm:$0xff] %v14472_v41  ;;  %v4164_v33 = vmul.f32 %v4128_v7, %v14472_v41  ;;  %4838 = vperm.xlu1 %9374, %v17451_v32   ;;  %v8073_v6 = vrot.slane %v8072_v13, 1  ;;  %v17465_v7 = vld [vmem:[#allocation89_spill] sm:$0xff] }
 0x67a   : > { %v1384_v32 = vmul.f32 %v1352_v10, %v17465_v7  ;;  %v2919_v38 = vadd.f32 %v2887_v59, %v2663_v43  ;;  %v17469_v10 = vld [vmem:[#allocation321_spill] sm:$0xff]  ;;  %v17472_v59 = vmov 0   ;;  %v3144_v3 = vmul.f32 %v3112_v61, %v14460_v42 }
 0x67b   : > { %v14479_v11 = vadd.f32 %v4164_v33, %v14325_v63  ;;  %v8074_v47 = vadd.f32 %v8073_v6, %v8072_v13  ;;  %v17468_v33 = vld [vmem:[#allocation151_spill] sm:$0xff]  ;;  %v3143_v19 = vmul.f32 %v3112_v61, %v17469_v10  ;;  %v17473_v6 = vld [vmem:[#allocation197_spill] sm:$0xff] }
 0x67c   : > { %v1640_v60 = vadd.f32 %v1608_v51, %v1384_v32  ;;  %v17474_v10 = vld [vmem:[#allocation213_spill] sm:$0xff]  ;;  %v17476_v32 = vld [vmem:[#allocation206_spill] sm:$0xff] }
 0x67d   : > { %9375 = vset.pattern.permute.xlu1 %v17387_v2  ;;  %v14486_v5 = vpop.permute.xlu1 %4558  ;;  %v8179_v63 = vmul.f32 0.0625, %v8074_v47  ;;  %v1864_v2 = vmul.f32 %v1832_v24, %v17468_v33  ;;  %v2120_v24 = vmul.f32 %v2088_v45, %v17473_v6  ;;  %v3175_v43 = vadd.f32 %v3143_v19, %v2919_v38 }
 0x67e   : > { %17464 = vst [vmem:[#allocation13_spill] sm:$0xff] %v14486_v5  ;;  %v4674_v53 = vmul.f32 %v17467_v58, %v14486_v5  ;;  %5090 = vperm.xlu1 %9375, %v17204_v14   ;;  %v2376_v33 = vmul.f32 %v2344_v29, %v17474_v10  ;;  %v14531_v29 = vrot.slane %v13945_v27, %v16618_v15  ;;  %v17485_v10 = vld [vmem:[#allocation84_spill] sm:$0xff] }
 0x67f   : > { %v14508_v14 = vsel %vm8224_vm5, %v8179_v63, %v14383_v9  ;;  %v1896_v47 = vadd.f32 %v1864_v2, %v1640_v60  ;;  %v3655_v9 = vmul.f32 %v14504_v12, %v17475_v8  ;;  %v14527_v2 = vrot.slane %v17444_v30, %v16771_v50  ;;  %v14547_v8 = vpop.permute.xlu0 %5066 }
 0x680   : > { %v14499_v13 = vadd.f32 %v4674_v53, %v14396_v4  ;;  %17470 = vst [vmem:[#allocation190_spill] sm:$0xff] %v14508_v14  ;;  %17481 = vst [vmem:[#allocation240_spill] sm:$0xff] %v14547_v8 }
 0x682   : > { %v14510_v62 = vpop.permute.xlu1 %3298  ;;  %9377 = vset.pattern.permute.xlu1 %v17472_v59  ;;  %v8930_v53 = vpop.f32.mrb[26].mxu1  ;;  %v2152_v59 = vadd.f32 %v2120_v24, %v1896_v47 }
 0x683   : > { %17471 = vst [vmem:[#allocation353_spill] sm:$0xff] %v14510_v62  ;;  %v3399_v4 = vmul.f32 %v14495_v48, %v14510_v62  ;;  %v5476_v58 = vpop.f32.mrb[27].mxu1  ;;  %v5482_v17 = vadd.f32 %v17476_v32, %v8930_v53  ;;  %v17480_v53 = vld [vmem:[#allocation430_spill] sm:$0xff] }
 0x684   : > { %v5477_v51 = vadd.f32 %v17476_v32, %v5476_v58  ;;  %v2408_v60 = vadd.f32 %v2376_v33, %v2152_v59  ;;  %v14538_v47 = vrot.slane %v17480_v53, %v16722_v49 }
 0x685   : > { %v3431_v63 = vadd.f32 %v3399_v4, %v3175_v43  ;;  %v17479_v43 = vld [vmem:[#allocation242_spill] sm:$0xff]  ;;  %v5572_v58 = vmul.f32 0.01, %v5482_v17 }
 0x686   : > { %v5571_v7 = vmul.f32 0.01, %v5477_v51  ;;  %v2632_v4 = vmul.f32 %v2600_v31, %v17479_v43 }
 0x687   : > { %v14521_v45 = vpop.permute.xlu1 %3802  ;;  %v14523_v38 = vadd.f32 %v3655_v9, %v3431_v63  ;;  %v14545_v63 = vrot.slane %v17480_v53, %v16623_v26  ;;  %v5604_v56 = vmax.f32 %v5482_v17, %v5572_v58  ;;  %v17491_v17 = vld [vmem:[#allocation167_spill] sm:$0xff] }
 0x688   : > { %17477 = vst [vmem:[#allocation368_spill] sm:$0xff] %v14521_v45  ;;  %v3909_v19 = vmul.f32 %v14372_v23, %v14521_v45  ;;  %v5603_v24 = vmax.f32 %v5477_v51, %v5571_v7  ;;  %v2888_v23 = vmul.f32 %v2856_v54, %v14346_v46  ;;  %v17482_v51 = vld [vmem:[#allocation376_spill] sm:$0xff]  ;;  %v2664_v43 = vadd.f32 %v2632_v4, %v2408_v60  ;;  %v17486_v54 = vld [vmem:[#allocation105_spill] sm:$0xff] }
 0x689   : > { %17478 = vst [vmem:[#allocation305_spill] sm:$0xff] %v14523_v38  ;;  %v14555_v59 = vmul.f32 %v14527_v2, %v17482_v51  ;;  %v5185_v45 = vmul.f32 %v14538_v47, %v14547_v8  ;;  %v14620_v35 = vrot.slane %v5604_v56, %v16771_v50 }
 0x68a   : > { %v14541_v9 = vadd.f32 %v3909_v19, %v14421_v36  ;;  %v5654_v33 = vrot.slane %v5603_v24, %v17449_v25  ;;  %v5750_v31 = vrot.slane %v5603_v24, %v10774_v18  ;;  %v5878_v7 = vrot.slane %v5603_v24, %v16698_v0  ;;  %v17483_v36 = vld [vmem:[#allocation396_spill] sm:$0xff] }
 0x68b   : > { %v14559_v19 = vmul.f32 %v14531_v29, %v17483_v36  ;;  %v6006_v6 = vrot.slane %v5603_v24, %v16819_v39  ;;  %v2920_v36 = vadd.f32 %v2888_v23, %v2664_v43  ;;  %v6134_v60 = vrot.slane %v5603_v24, %v16618_v15 }
 0x68c   : > { %v14561_v53 = vpop.permute.xlu1 %4810  ;;  %v5699_v62 = vmul.f32 %v5654_v33, %v17485_v10  ;;  %v5795_v46 = vmul.f32 %v5750_v31, %v17486_v54  ;;  %v5923_v55 = vmul.f32 %v5878_v7, %v17487_v28  ;;  %v17488_v10 = vld [vmem:[#allocation75_spill] sm:$0xff]  ;;  %v17489_v54 = vld [vmem:[#allocation118_spill] sm:$0xff]  ;;  %v6262_v44 = vrot.slane %v5603_v24, %v16771_v50 }
 0x68d   : > { %17484 = vst [vmem:[#allocation250_spill] sm:$0xff] %v14561_v53  ;;  %v4929_v51 = vmul.f32 %v14545_v63, %v14561_v53  ;;  %v5700_v4 = vmul.f32 %v5654_v33, %v17488_v10  ;;  %v5796_v21 = vmul.f32 %v5750_v31, %v17489_v54  ;;  %v6051_v58 = vmul.f32 %v6006_v6, %v17491_v17  ;;  %v17494_v54 = vld [vmem:[#allocation405_spill] sm:$0xff] }
 0x68e   : > { %v5827_v41 = vadd.f32 %v5795_v46, %v5699_v62  ;;  %v6390_v43 = vrot.slane %v5603_v24, %v16623_v26  ;;  %v14582_v46 = vrot.slane %v5603_v24, %v16722_v49  ;;  %v3176_v28 = vadd.f32 %v3144_v3, %v2920_v36  ;;  %v17493_v3 = vld [vmem:[#allocation230_spill] sm:$0xff] }
 0x68f   : > { %v4961_v5 = vadd.f32 %v4929_v51, %v14352_v20  ;;  %v6646_v33 = vrot.slane %v5604_v56, %v17449_v25  ;;  %v14589_v20 = vrot.slane %v13945_v27, %v16819_v39  ;;  %v14593_v51 = vrot.slane %v5604_v56, %v10774_v18 }
 0x690   : > { %v5955_v61 = vadd.f32 %v5923_v55, %v5827_v41  ;;  %v17492_v55 = vld [vmem:[#allocation215_spill] sm:$0xff]  ;;  %v6435_v17 = vmul.f32 %v6390_v43, %v17494_v54  ;;  %v14611_v53 = vrot.slane %v5604_v56, %v16618_v15  ;;  %v6180_v37 = vmul.f32 %v6134_v60, %v17501_v40 }
 0x691   : > { %v14577_v8 = vpop.permute.xlu1 %3302  ;;  %v5217_v62 = vadd.f32 %v5185_v45, %v4961_v5  ;;  %v6179_v41 = vmul.f32 %v6134_v60, %v17492_v55  ;;  %v6307_v5 = vmul.f32 %v6262_v44, %v17493_v3  ;;  %v5828_v45 = vadd.f32 %v5796_v21, %v5700_v4  ;;  %v17496_v55 = vld [vmem:[#allocation137_spill] sm:$0xff]  ;;  %v17499_v21 = vld [vmem:[#allocation183_spill] sm:$0xff]  ;;  %v17505_v60 = vld [vmem:[#allocation18_spill] sm:$0xff] }
 0x692   : > { %17490 = vst [vmem:[#allocation306_spill] sm:$0xff] %v14577_v8  ;;  %v3400_v23 = vmul.f32 %v14495_v48, %v14577_v8  ;;  %v6083_v31 = vadd.f32 %v6051_v58, %v5955_v61  ;;  %v14600_v48 = vrot.slane %v5604_v56, %v16698_v0  ;;  %v17495_v61 = vld [vmem:[#allocation312_spill] sm:$0xff]  ;;  %v5924_v8 = vmul.f32 %v5878_v7, %v17496_v55  ;;  %v17500_v7 = vld [vmem:[#allocation347_spill] sm:$0xff] }
 0x693   : > { %8940 = vmatprep.mubr.msk.f32.mxu1 %vm518_vm1, %v5217_v62  ;;  %v6563_v58 = vmul.f32 %v14582_v46, %v17495_v61  ;;  %v7030_v3 = vrot.slane %v5604_v56, %v16819_v39  ;;  %v6052_v4 = vmul.f32 %v6006_v6, %v17499_v21  ;;  %v6819_v55 = vmul.f32 %v14593_v51, %v17500_v7 }
 0x694   : > { %v14595_v10 = vadd.f32 %v3400_v23, %v3176_v28  ;;  %v8933_v24 = vpop.f32.mrb[28].mxu1  ;;  %v6211_v36 = vadd.f32 %v6179_v41, %v6083_v31  ;;  %v17498_v23 = vld [vmem:[#allocation417_spill] sm:$0xff]  ;;  %v5956_v61 = vadd.f32 %v5924_v8, %v5828_v45  ;;  %v14634_v7 = vrot.slane %v5604_v56, %v16722_v49 }
 0x695   : > { %v5486_v28 = vpop.f32.mrb[29].mxu1  ;;  %v6691_v62 = vmul.f32 %v6646_v33, %v17498_v23  ;;  %v14623_v23 = vrot.slane %v5604_v56, %v16623_v26  ;;  %v17502_v8 = vld [vmem:[#allocation65_spill] sm:$0xff] }
 0x696   : > { %v14606_v42 = vpop.permute.xlu1 %4310  ;;  %v5487_v41 = vadd.f32 %v17476_v32, %v5486_v28  ;;  %v6339_v54 = vadd.f32 %v6307_v5, %v6211_v36  ;;  %v5492_v5 = vadd.f32 %v17476_v32, %v8933_v24  ;;  %v6947_v45 = vmul.f32 %v14600_v48, %v17502_v8  ;;  %v17503_v36 = vld [vmem:[#allocation17_spill] sm:$0xff] }
 0x697   : > { %17497 = vst [vmem:[#allocation8_spill] sm:$0xff] %v14606_v42  ;;  %v4420_v31 = vmul.f32 %v14425_v1, %v14606_v42  ;;  %v6084_v42 = vadd.f32 %v6052_v4, %v5956_v61  ;;  %v7075_v28 = vmul.f32 %v7030_v3, %v17503_v36  ;;  %v17506_v32 = vld [vmem:[#allocation369_spill] sm:$0xff]  ;;  %v17507_v4 = vld [vmem:[#allocation124_spill] sm:$0xff] }
 0x698   : > { %v5573_v21 = vmul.f32 0.01, %v5487_v41  ;;  %v6467_v1 = vadd.f32 %v6435_v17, %v6339_v54  ;;  %v7331_v24 = vmul.f32 %v14620_v35, %v17506_v32  ;;  %v7459_v54 = vmul.f32 %v14623_v23, %v17507_v4  ;;  %v17508_v61 = vld [vmem:[#allocation249_spill] sm:$0xff] }
 0x699   : > { %v14627_v6 = vadd.f32 %v4420_v31, %v14479_v11  ;;  %v7203_v11 = vmul.f32 %v14611_v53, %v17505_v60  ;;  %v6212_v31 = vadd.f32 %v6180_v37, %v6084_v42  ;;  %v6308_v56 = vmul.f32 %v6262_v44, %v17508_v61  ;;  %v17511_v60 = vld [vmem:[#allocation86_spill] sm:$0xff] }
 0x69a   : > { %v5605_v34 = vmax.f32 %v5487_v41, %v5573_v21  ;;  %v6595_v40 = vadd.f32 %v6563_v58, %v6467_v1  ;;  %v17509_v1 = vld [vmem:[#allocation24_spill] sm:$0xff]  ;;  %v5574_v37 = vmul.f32 0.01, %v5492_v5  ;;  %v17513_v61 = vld [vmem:[#allocation278_spill] sm:$0xff] }
 0x69b   : > { %v14636_v14 = vpop.permute.xlu1 %4814  ;;  %v6436_v8 = vmul.f32 %v6390_v43, %v17509_v1  ;;  %v6340_v36 = vadd.f32 %v6308_v56, %v6212_v31  ;;  %v7587_v27 = vmul.f32 %v14634_v7, %v17513_v61  ;;  %v17514_v43 = vld [vmem:[#allocation413_spill] sm:$0xff]  ;;  %v17516_v31 = vld [vmem:[#allocation152_spill] sm:$0xff] }
 0x69c   : > { %17504 = vst [vmem:[#allocation317_spill] sm:$0xff] %v14636_v14  ;;  %v4930_v17 = vmul.f32 %v14545_v63, %v14636_v14  ;;  %v5658_v41 = vrot.slane %v5605_v34, %v17449_v25  ;;  %v5754_v21 = vrot.slane %v5605_v34, %v10774_v18  ;;  %v5882_v58 = vrot.slane %v5605_v34, %v16698_v0  ;;  %v17512_v14 = vld [vmem:[#allocation107_spill] sm:$0xff] }
 0x69d   : > { %v6723_v63 = vadd.f32 %v6691_v62, %v6595_v40  ;;  %v6010_v44 = vrot.slane %v5605_v34, %v16819_v39  ;;  %v6468_v30 = vadd.f32 %v6436_v8, %v6340_v36  ;;  %v6564_v1 = vmul.f32 %v14582_v46, %v17514_v43  ;;  %v17519_v43 = vld [vmem:[#allocation154_spill] sm:$0xff] }
 0x69e   : > { %v14652_v42 = vadd.f32 %v4930_v17, %v14499_v13  ;;  %v5701_v32 = vmul.f32 %v5658_v41, %v17511_v60  ;;  %v5797_v4 = vmul.f32 %v5754_v21, %v17512_v14  ;;  %v17515_v13 = vld [vmem:[#allocation421_spill] sm:$0xff]  ;;  %v5925_v14 = vmul.f32 %v5882_v58, %v17516_v31 }
 0x69f   : > { %v6851_v38 = vadd.f32 %v6819_v55, %v6723_v63  ;;  %v6692_v17 = vmul.f32 %v6646_v33, %v17515_v13  ;;  %v6138_v56 = vrot.slane %v5605_v34, %v16618_v15  ;;  %v14668_v60 = vmax.f32 %v5492_v5, %v5574_v37  ;;  %v17518_v33 = vld [vmem:[#allocation169_spill] sm:$0xff]  ;;  %v17520_v5 = vld [vmem:[#allocation51_spill] sm:$0xff] }
 0x6a0   : > { %17510 = vst [vmem:[#allocation380_spill] sm:$0xff] %v14652_v42  ;;  %v14659_v22 = vpop.permute.xlu1 %4058  ;;  %v5829_v40 = vadd.f32 %v5797_v4, %v5701_v32  ;;  %v6596_v42 = vadd.f32 %v6564_v1, %v6468_v30  ;;  %v6820_v55 = vmul.f32 %v14593_v51, %v17517_v16  ;;  %v6053_v63 = vmul.f32 %v6010_v44, %v17518_v33  ;;  %v17522_v51 = vld [vmem:[#allocation217_spill] sm:$0xff] }
 0x6a1   : > { %v4165_v62 = vmul.f32 %v14589_v20, %v14659_v22  ;;  %v6979_v61 = vadd.f32 %v6947_v45, %v6851_v38  ;;  %v6266_v36 = vrot.slane %v5605_v34, %v16771_v50  ;;  %v6948_v13 = vmul.f32 %v14600_v48, %v17519_v43  ;;  %v17521_v38 = vld [vmem:[#allocation77_spill] sm:$0xff]  ;;  %v17524_v48 = vld [vmem:[#allocation231_spill] sm:$0xff] }
 0x6a2   : > { %v5957_v46 = vadd.f32 %v5925_v14, %v5829_v40  ;;  %v6724_v4 = vadd.f32 %v6692_v17, %v6596_v42  ;;  %v7076_v37 = vmul.f32 %v7030_v3, %v17520_v5  ;;  %v5702_v30 = vmul.f32 %v5658_v41, %v17521_v38 }
 0x6a3   : > { %v14673_v8 = vadd.f32 %v4165_v62, %v14541_v9  ;;  %v7107_v32 = vadd.f32 %v7075_v28, %v6979_v61  ;;  %v6181_v9 = vmul.f32 %v6138_v56, %v17522_v51  ;;  %v6394_v1 = vrot.slane %v5605_v34, %v16623_v26  ;;  %v17523_v62 = vld [vmem:[#allocation120_spill] sm:$0xff]  ;;  %v17530_v51 = vld [vmem:[#allocation423_spill] sm:$0xff] }
 0x6a4   : > { %v6085_v16 = vadd.f32 %v6053_v63, %v5957_v46  ;;  %v5798_v40 = vmul.f32 %v5754_v21, %v17523_v62  ;;  %v6852_v17 = vadd.f32 %v6820_v55, %v6724_v4  ;;  %v6309_v14 = vmul.f32 %v6266_v36, %v17524_v48  ;;  %v17525_v21 = vld [vmem:[#allocation26_spill] sm:$0xff] }
 0x6a5   : > { %v14681_v45 = vpop.permute.xlu1 %4562  ;;  %v7235_v42 = vadd.f32 %v7203_v11, %v7107_v32  ;;  %v6522_v3 = vrot.slane %v5605_v34, %v16722_v49  ;;  %v14692_v41 = vrot.slane %v14668_v60, %v17449_v25  ;;  %v7204_v63 = vmul.f32 %v14611_v53, %v17525_v21  ;;  %v17527_v32 = vld [vmem:[#allocation416_spill] sm:$0xff]  ;;  %v17536_v21 = vld [vmem:[#allocation282_spill] sm:$0xff] }
 0x6a6   : > { %v4675_v28 = vmul.f32 %v14527_v2, %v14681_v45  ;;  %v6213_v31 = vadd.f32 %v6181_v9, %v6085_v16  ;;  %v6980_v33 = vadd.f32 %v6948_v13, %v6852_v17  ;;  %v17526_v2 = vld [vmem:[#allocation104_spill] sm:$0xff]  ;;  %v6437_v4 = vmul.f32 %v6394_v1, %v17527_v32  ;;  %v17529_v16 = vld [vmem:[#allocation139_spill] sm:$0xff] }
 0x6a7   : > { %v7363_v46 = vadd.f32 %v7331_v24, %v7235_v42  ;;  %v7332_v11 = vmul.f32 %v14620_v35, %v17526_v2  ;;  %v6778_v34 = vrot.slane %v14668_v60, %v10774_v18  ;;  %v5926_v24 = vmul.f32 %v5882_v58, %v17529_v16  ;;  %v17531_v35 = vld [vmem:[#allocation62_spill] sm:$0xff]  ;;  %v17537_v32 = vld [vmem:[#allocation232_spill] sm:$0xff] }
 0x6a8   : > { %v14695_v61 = vadd.f32 %v4675_v28, %v14447_v52  ;;  %v6341_v55 = vadd.f32 %v6309_v14, %v6213_v31  ;;  %v7108_v38 = vadd.f32 %v7076_v37, %v6980_v33  ;;  %v5830_v52 = vadd.f32 %v5798_v40, %v5702_v30  ;;  %v17532_v31 = vld [vmem:[#allocation185_spill] sm:$0xff] }
 0x6a9   : > { %v7491_v5 = vadd.f32 %v7459_v54, %v7363_v46  ;;  %v6565_v9 = vmul.f32 %v6522_v3, %v17530_v51  ;;  %v6693_v62 = vmul.f32 %v14692_v41, %v17531_v35  ;;  %v6054_v48 = vmul.f32 %v6010_v44, %v17532_v31  ;;  %v17533_v40 = vld [vmem:[#allocation285_spill] sm:$0xff]  ;;  %v17535_v44 = vld [vmem:[#allocation398_spill] sm:$0xff] }
 0x6aa   : > { %v14704_v43 = vpop.permute.xlu1 %3558  ;;  %v6469_v53 = vadd.f32 %v6437_v4, %v6341_v55  ;;  %v7236_v42 = vadd.f32 %v7204_v63, %v7108_v38  ;;  %v5958_v17 = vadd.f32 %v5926_v24, %v5830_v52  ;;  %v6906_v58 = vrot.slane %v14668_v60, %v16698_v0  ;;  %v17534_v46 = vld [vmem:[#allocation201_spill] sm:$0xff]  ;;  %v17541_v35 = vld [vmem:[#allocation258_spill] sm:$0xff] }
 0x6ab   : > { %17528 = vst [vmem:[#allocation283_spill] sm:$0xff] %v14704_v43  ;;  %v3656_v13 = vmul.f32 %v14504_v12, %v14704_v43  ;;  %v7619_v28 = vadd.f32 %v7587_v27, %v7491_v5  ;;  %v7034_v12 = vrot.slane %v14668_v60, %v16819_v39  ;;  %v7460_v27 = vmul.f32 %v14623_v23, %v17533_v40  ;;  %v17538_v23 = vld [vmem:[#allocation251_spill] sm:$0xff]  ;;  %v17542_v31 = vld [vmem:[#allocation426_spill] sm:$0xff]  ;;  %v17543_v40 = vld [vmem:[#allocation68_spill] sm:$0xff] }
 0x6ac   : > { %v6597_v37 = vadd.f32 %v6565_v9, %v6469_v53  ;;  %v7364_v30 = vadd.f32 %v7332_v11, %v7236_v42  ;;  %v6086_v14 = vadd.f32 %v6054_v48, %v5958_v17  ;;  %v6182_v33 = vmul.f32 %v6138_v56, %v17534_v46  ;;  %v17539_v56 = vld [vmem:[#allocation326_spill] sm:$0xff] }
 0x6ad   : > { %v14714_v54 = vadd.f32 %v3656_v13, %v14595_v10  ;;  %8984 = vmatprep.mubr.msk.f32.mxu0 %vm518_vm1, %v7619_v28  ;;  %v4422_v10 = vmul.f32 %v14531_v29, %v17535_v44  ;;  %v7588_v63 = vmul.f32 %v14634_v7, %v17536_v21  ;;  %v6821_v4 = vmul.f32 %v6778_v34, %v17537_v32  ;;  %v17540_v13 = vld [vmem:[#allocation102_spill] sm:$0xff]  ;;  %v17547_v21 = vld [vmem:[#allocation19_spill] sm:$0xff] }
 0x6ae   : > { %v6725_v55 = vadd.f32 %v6693_v62, %v6597_v37  ;;  %v7492_v5 = vadd.f32 %v7460_v27, %v7364_v30  ;;  %v6214_v38 = vadd.f32 %v6182_v33, %v6086_v14  ;;  %v6310_v52 = vmul.f32 %v6266_v36, %v17538_v23  ;;  %v17545_v14 = vld [vmem:[#allocation290_spill] sm:$0xff]  ;;  %v17546_v33 = vld [vmem:[#allocation380_spill] sm:$0xff] }
 0x6af   : > { %v14728_v2 = vpop.permute.xlu1 %4062  ;;  %v6949_v24 = vmul.f32 %v6906_v58, %v17539_v56  ;;  %v7077_v29 = vmul.f32 %v7034_v12, %v17540_v13  ;;  %v7162_v7 = vrot.slane %v14668_v60, %v16618_v15  ;;  %v6438_v62 = vmul.f32 %v6394_v1, %v17541_v35  ;;  %v17550_v56 = vld [vmem:[#allocation329_spill] sm:$0xff] }
 0x6b0   : > { %v4166_v11 = vmul.f32 %v14589_v20, %v14728_v2  ;;  %v6853_v16 = vadd.f32 %v6821_v4, %v6725_v55  ;;  %v7620_v53 = vadd.f32 %v7588_v63, %v7492_v5  ;;  %v6342_v9 = vadd.f32 %v6310_v52, %v6214_v38  ;;  %v17548_v4 = vld [vmem:[#allocation322_spill] sm:$0xff]  ;;  %v17554_v35 = vld [vmem:[#allocation305_spill] sm:$0xff] }
 0x6b1   : > { %v7290_v20 = vrot.slane %v14668_v60, %v16771_v50  ;;  %v14744_v36 = vadd.f32 %v14555_v59, %v14627_v6  ;;  %v14748_v42 = vadd.f32 %v14559_v19, %v14673_v8  ;;  %v6566_v48 = vmul.f32 %v6522_v3, %v17542_v31  ;;  %v17544_v19 = vld [vmem:[#allocation337_spill] sm:$0xff] }
 0x6b2   : > { %v4198_v51 = vadd.f32 %v4166_v11, %v14393_v57  ;;  %v6981_v28 = vadd.f32 %v6949_v24, %v6853_v16  ;;  %8985 = vmatmul.mubr.msk.f32.gmra.mrb[38].mxu0 %vm518_vm1, %v7620_v53  ;;  %v6470_v57 = vadd.f32 %v6438_v62, %v6342_v9  ;;  %v7205_v59 = vmul.f32 %v7162_v7, %v17543_v40  ;;  %v17552_v53 = vld [vmem:[#allocation304_spill] sm:$0xff] }
 0x6b3   : > { %v7418_v6 = vrot.slane %v14668_v60, %v16623_v26  ;;  %v3880_v8 = vrot.slane %v17544_v19, %v16698_v0  ;;  %v6694_v46 = vmul.f32 %v14692_v41, %v17545_v14  ;;  %v7333_v63 = vmul.f32 %v7290_v20, %v17547_v21  ;;  %v17549_v41 = vld [vmem:[#allocation371_spill] sm:$0xff]  ;;  %v17553_v9 = vld [vmem:[#allocation388_spill] sm:$0xff] }
 0x6b4   : > { %v14751_v17 = vpop.permute.xlu1 %5070  ;;  %v14754_v1 = vadd.f32 %v4422_v10, %v4198_v51  ;;  %v7109_v30 = vadd.f32 %v7077_v29, %v6981_v28  ;;  %v6598_v27 = vadd.f32 %v6566_v48, %v6470_v57  ;;  %v4136_v55 = vrot.slane %v17544_v19, %v16819_v39  ;;  %v17555_v57 = vld [vmem:[#allocation66_spill] sm:$0xff]  ;;  %v17557_v14 = vld [vmem:[#allocation216_spill] sm:$0xff] }
 0x6b5   : > { %v5186_v37 = vmul.f32 %v14538_v47, %v14751_v17  ;;  %v7546_v47 = vrot.slane %v14668_v60, %v16722_v49  ;;  %v6822_v5 = vmul.f32 %v6778_v34, %v17548_v4  ;;  %v7461_v23 = vmul.f32 %v7418_v6, %v17549_v41  ;;  %v17551_v60 = vld [vmem:[#allocation355_spill] sm:$0xff]  ;;  %v17559_v41 = vld [vmem:[#allocation266_spill] sm:$0xff] }
 0x6b6   : > { %v7237_v10 = vadd.f32 %v7205_v59, %v7109_v30  ;;  %v6726_v32 = vadd.f32 %v6694_v46, %v6598_v27  ;;  %v6950_v24 = vmul.f32 %v6906_v58, %v17550_v56  ;;  %v4896_v13 = vrot.slane %v17551_v60, %v16623_v26  ;;  %v17556_v59 = vld [vmem:[#allocation391_spill] sm:$0xff] }
 0x6b7   : > { %v5218_v3 = vadd.f32 %v5186_v37, %v17546_v33  ;;  %v7589_v51 = vmul.f32 %v7546_v47, %v17552_v53  ;;  %v4167_v34 = vmul.f32 %v4136_v55, %v17553_v9  ;;  %v7078_v31 = vmul.f32 %v7034_v12, %v17555_v57 }
 0x6b8   : > { %v7365_v38 = vadd.f32 %v7333_v63, %v7237_v10  ;;  %v6854_v16 = vadd.f32 %v6822_v5, %v6726_v32  ;;  %v7206_v58 = vmul.f32 %v7162_v7, %v17556_v59  ;;  %v17558_v63 = vld [vmem:[#allocation236_spill] sm:$0xff]  ;;  %v7462_v7 = vmul.f32 %v7418_v6, %v17559_v41  ;;  %v17564_v59 = vld [vmem:[#allocation319_spill] sm:$0xff] }
 0x6b9   : > { %v14772_v11 = vpop.permute.xlu1 %3810  ;;  %8941 = vmatmul.mubr.msk.f32.gmra.mrb[34].mxu1 %vm518_vm1, %v5218_v3  ;;  %v7334_v12 = vmul.f32 %v7290_v20, %v17558_v63 }
 0x6ba   : > { %v3911_v52 = vmul.f32 %v3880_v8, %v14772_v11  ;;  %v7493_v29 = vadd.f32 %v7461_v23, %v7365_v38  ;;  %v6982_v28 = vadd.f32 %v6950_v24, %v6854_v16  ;;  %v4392_v23 = vrot.slane %v17544_v19, %v16618_v15 }
 0x6bc   : > { %v3943_v62 = vadd.f32 %v3911_v52, %v17554_v35  ;;  %v7621_v48 = vadd.f32 %v7589_v51, %v7493_v29  ;;  %v7110_v40 = vadd.f32 %v7078_v31, %v6982_v28  ;;  %v17561_v29 = vld [vmem:[#allocation390_spill] sm:$0xff]  ;;  %v5152_v28 = vrot.slane %v17551_v60, %v16722_v49  ;;  %v17563_v31 = vld [vmem:[#allocation399_spill] sm:$0xff] }
 0x6bd   : > { %v8977_v37 = vpop.f32.mrb[32].mxu0  ;;  %v7590_v53 = vmul.f32 %v7546_v47, %v17561_v29 }
 0x6be   : > { %v14784_v30 = vpop.permute.xlu1 %4818  ;;  %v4199_v27 = vadd.f32 %v4167_v34, %v3943_v62  ;;  %v7863_v46 = vadd.f32 %v17557_v14, %v8977_v37  ;;  %v7857_v33 = vpop.f32.mrb[33].mxu0  ;;  %8987 = vmatprep.mubr.msk.f32.mxu0 %vm518_vm1, %v7621_v48  ;;  %v7238_v21 = vadd.f32 %v7206_v58, %v7110_v40  ;;  %v17562_v34 = vld [vmem:[#allocation389_spill] sm:$0xff]  ;;  %v4424_v48 = vmul.f32 %v4392_v23, %v17563_v31 }
 0x6bf   : > { %v4931_v3 = vmul.f32 %v4896_v13, %v14784_v30  ;;  %v7858_v10 = vadd.f32 %v17557_v14, %v7857_v33  ;;  %v14807_v37 = vpop.permute.xlu0 %5078  ;;  %v4644_v58 = vrot.slane %v17564_v59, %v16771_v50 }
 0x6c0   : > { %v7977_v32 = vmul.f32 0.01, %v7863_v46  ;;  %v7366_v38 = vadd.f32 %v7334_v12, %v7238_v21 }
 0x6c1   : > { %v4963_v4 = vadd.f32 %v4931_v3, %v14695_v61  ;;  %v7976_v5 = vmul.f32 0.01, %v7858_v10  ;;  %v4168_v61 = vmul.f32 %v4136_v55, %v17562_v34 }
 0x6c2   : > { %v8009_v52 = vmax.f32 %v7863_v46, %v7977_v32  ;;  %v7494_v24 = vadd.f32 %v7462_v7, %v7366_v38  ;;  %v5188_v46 = vmul.f32 %v5152_v28, %v14807_v37 }
 0x6c3   : > { %v14796_v16 = vpop.permute.xlu1 %3814  ;;  %v8008_v56 = vmax.f32 %v7858_v10, %v7976_v5 }
 0x6c4   : > { %17560 = vst [vmem:[#allocation47_spill] sm:$0xff] %v14796_v16  ;;  %v3912_v51 = vmul.f32 %v3880_v8, %v14796_v16  ;;  %v8076_v20 = vsel %vm518_vm1, %v8009_v52, 0.0  ;;  %v7622_v62 = vadd.f32 %v7590_v53, %v7494_v24 }
 0x6c5   : > { %v8075_v35 = vsel %vm518_vm1, %v8008_v56, 0.0 }
 0x6c6   : > { %v3944_v6 = vadd.f32 %v3912_v51, %v14714_v54  ;;  %v8077_v57 = vadd.f32 %v8076_v20, %v8075_v35  ;;  %8988 = vmatmul.mubr.msk.f32.gmra.mrb[40].mxu0 %vm518_vm1, %v7622_v62  ;;  %v14841_v35 = vpop.permute.xlu0 %5082 }
 0x6c8   : > { %v4200_v8 = vadd.f32 %v4168_v61, %v3944_v6  ;;  %v14810_v47 = vpop.permute.xlu1 %4822  ;;  %v8078_v40 = vrot.slane %v8077_v57, 4  ;;  %v4900_v61 = vrot.slane %v17564_v59, %v16623_v26 }
 0x6c9   : > { %v4932_v55 = vmul.f32 %v4896_v13, %v14810_v47 }
 0x6ca   : > { %v4456_v54 = vadd.f32 %v4424_v48, %v4200_v8  ;;  %v8079_v60 = vadd.f32 %v8078_v40, %v8077_v57  ;;  %v4904_v8 = vrot.slane %v17544_v19, %v16623_v26  ;;  %v4648_v40 = vrot.slane %v17544_v19, %v16771_v50 }
 0x6cb   : > { %v4964_v33 = vadd.f32 %v4932_v55, %v14744_v36  ;;  %v17565_v36 = vld [vmem:[#allocation190_spill] sm:$0xff]  ;;  %v14855_v55 = vpop.permute.xlu0 %4834 }
 0x6cc   : > { %v8080_v3 = vrot.slane %v8079_v60, 2  ;;  %17566 = vst [vmem:[#allocation370_spill] sm:$0xff] %v14855_v55 }
 0x6cd   : > { %v5220_v10 = vadd.f32 %v5188_v46, %v4964_v33  ;;  %v14817_v21 = vpop.permute.xlu1 %4570  ;;  %v4935_v46 = vmul.f32 %v4904_v8, %v14855_v55  ;;  %v17662_v55 = vld [vmem:[#allocation240_spill] sm:$0xff] }
 0x6ce   : > { %v4677_v63 = vmul.f32 %v4644_v58, %v14817_v21  ;;  %v8081_v12 = vadd.f32 %v8080_v3, %v8079_v60 }
 0x6d0   : > { %v4709_v32 = vadd.f32 %v4677_v63, %v14748_v42  ;;  %v8082_v5 = vrot.slane %v8081_v12, 1 }
 0x6d2   : > { %v14821_v13 = vpop.permute.xlu1 %5074  ;;  %v8083_v38 = vadd.f32 %v8082_v5, %v8081_v12 }
 0x6d3   : > { %v5187_v41 = vmul.f32 %v5152_v28, %v14821_v13 }
 0x6d4   : > { %v8180_v7 = vmul.f32 0.0625, %v8083_v38  ;;  %v5160_v38 = vrot.slane %v17544_v19, %v16722_v49 }
 0x6d5   : > { %v5219_v52 = vadd.f32 %v5187_v41, %v4963_v4  ;;  %v5156_v4 = vrot.slane %v17564_v59, %v16722_v49  ;;  %v14869_v41 = vpop.permute.xlu0 %5094 }
 0x6d6   : > { %v14829_v24 = vsel %vm8226_vm6, %v8180_v7, %v17565_v36  ;;  %17568 = vst [vmem:[#allocation281_spill] sm:$0xff] %v14869_v41  ;;  %v5192_v36 = vmul.f32 %v5160_v38, %v14869_v41 }
 0x6d7   : > { %v14824_v56 = vpop.permute.xlu1 %4574  ;;  %8943 = vmatprep.mubr.msk.f32.mxu1 %vm518_vm1, %v5219_v52  ;;  %v5189_v28 = vmul.f32 %v5156_v4, %v14841_v35 }
 0x6d8   : > { %v4678_v29 = vmul.f32 %v4644_v58, %v14824_v56  ;;  %8944 = vmatmul.mubr.msk.f32.gmra.mrb[36].mxu1 %vm518_vm1, %v5220_v10 }
 0x6da   : > { %v4710_v42 = vadd.f32 %v4678_v29, %v14754_v1 }
 0x6dc   : > { %v14834_v53 = vpop.permute.xlu1 %4322 }
 0x6dd   : > { %v4423_v51 = vmul.f32 %v4392_v23, %v14834_v53 }
 0x6df   : > { %v4455_v20 = vadd.f32 %v4423_v51, %v4199_v27 }
 0x6e1   : > { %v14843_v62 = vpop.permute.xlu1 %4826 }
 0x6e2   : > { %v4933_v6 = vmul.f32 %v4900_v61, %v14843_v62 }
 0x6e4   : > { %v4965_v1 = vadd.f32 %v4933_v6, %v4709_v32 }
 0x6e5   : > { %v14847_v57 = vpop.permute.xlu1 %4830 }
 0x6e6   : > { %v5221_v48 = vadd.f32 %v5189_v28, %v4965_v1  ;;  %v4934_v27 = vmul.f32 %v4900_v61, %v14847_v57 }
 0x6e8   : > { %v4966_v23 = vadd.f32 %v4934_v27, %v4710_v42  ;;  %8946 = vmatprep.mubr.msk.f32.mxu1 %vm518_vm1, %v5221_v48 }
 0x6ea   : > { %v14857_v59 = vpop.permute.xlu1 %4578 }
 0x6eb   : > { %v4679_v58 = vmul.f32 %v4648_v40, %v14857_v59 }
 0x6ed   : > { %v4711_v60 = vadd.f32 %v4679_v58, %v4455_v20 }
 0x6ee   : > { %v14861_v33 = vpop.permute.xlu1 %4582 }
 0x6ef   : > { %17567 = vst [vmem:[#allocation275_spill] sm:$0xff] %v14861_v33  ;;  %v4680_v3 = vmul.f32 %v4648_v40, %v14861_v33  ;;  %v4967_v10 = vadd.f32 %v4935_v46, %v4711_v60 }
 0x6f1   : > { %v4712_v63 = vadd.f32 %v4680_v3, %v4456_v54 }
 0x6f3   : > { %v14864_v12 = vpop.permute.xlu1 %5086 }
 0x6f4   : > { %v5190_v32 = vmul.f32 %v5156_v4, %v14864_v12 }
 0x6f6   : > { %v5222_v5 = vadd.f32 %v5190_v32, %v4966_v23 }
 0x6f8   : > { %v14871_v7 = vpop.permute.xlu1 %4838  ;;  %8947 = vmatmul.mubr.msk.f32.gmra.mrb[38].mxu1 %vm518_vm1, %v5222_v5 }
 0x6f9   : > { %17569 = vst [vmem:[#allocation395_spill] sm:$0xff] %v14871_v7  ;;  %v4936_v52 = vmul.f32 %v4904_v8, %v14871_v7  ;;  %v17578_v7 = vld [vmem:[#allocation219_spill] sm:$0xff] }
 0x6fb   : > { %v4968_v29 = vadd.f32 %v4936_v52, %v4712_v63 }
 0x6fd   : > { %v5224_v54 = vadd.f32 %v5192_v36, %v4968_v29  ;;  %v14876_v42 = vpop.permute.xlu1 %5090  ;;  %v8980_v20 = vpop.f32.mrb[34].mxu0 }
 0x6fe   : > { %17570 = vst [vmem:[#allocation12_spill] sm:$0xff] %v14876_v42  ;;  %v5191_v51 = vmul.f32 %v5160_v38, %v14876_v42  ;;  %v7873_v4 = vadd.f32 %v17557_v14, %v8980_v20  ;;  %v7867_v19 = vpop.f32.mrb[35].mxu0  ;;  %v14888_v38 = vld [vmem:[%s15392_s5] ss:$0 sm:$0xff]  ;;  %v17661_v42 = vld [vmem:[#allocation250_spill] sm:$0xff] }
 0x6ff   : > { %v7868_v6 = vadd.f32 %v17557_v14, %v7867_v19 }
 0x700   : > { %v5223_v61 = vadd.f32 %v5191_v51, %v4967_v10  ;;  %v7979_v28 = vmul.f32 0.01, %v7873_v4 }
 0x701   : > { %v7978_v1 = vmul.f32 0.01, %v7868_v6 }
 0x702   : > { %8949 = vmatprep.mubr.msk.f32.mxu1 %vm518_vm1, %v5223_v61  ;;  %v8011_v48 = vmax.f32 %v7873_v4, %v7979_v28 }
 0x703   : > { %8950 = vmatmul.mubr.msk.f32.gmra.mrb[40].mxu1 %vm518_vm1, %v5224_v54  ;;  %v8010_v27 = vmax.f32 %v7868_v6, %v7978_v1  ;;  %v17571_v6 = vld [vmem:[#allocation88_spill] sm:$0xff]  ;;  %v17572_v1 = vld [vmem:[#allocation109_spill] sm:$0xff] }
 0x704   : > { %v8085_v23 = vsel %vm518_vm1, %v8011_v48, 0.0 }
 0x705   : > { %v8084_v8 = vsel %vm518_vm1, %v8010_v27, 0.0 }
 0x706   : > { %v8086_v40 = vadd.f32 %v8085_v23, %v8084_v8  ;;  %v17573_v23 = vld [vmem:[#allocation79_spill] sm:$0xff] }
 0x708   : > { %v8087_v58 = vrot.slane %v8086_v40, 4 }
 0x70a   : > { %v8088_v46 = vadd.f32 %v8087_v58, %v8086_v40  ;;  %v17574_v40 = vld [vmem:[#allocation121_spill] sm:$0xff] }
 0x70c   : > { %v8089_v60 = vrot.slane %v8088_v46, 2 }
 0x70e   : > { %v8090_v3 = vadd.f32 %v8089_v60, %v8088_v46  ;;  %v17575_v60 = vld [vmem:[#allocation153_spill] sm:$0xff] }
 0x710   : > { %v8091_v10 = vrot.slane %v8090_v3, 1 }
 0x712   : > { %v8092_v32 = vadd.f32 %v8091_v10, %v8090_v3 }
 0x714   : > { %v8936_v63 = vpop.f32.mrb[30].mxu1  ;;  %v8181_v36 = vmul.f32 0.0625, %v8092_v32  ;;  %v17576_v32 = vld [vmem:[#allocation171_spill] sm:$0xff] }
 0x715   : > { %v5496_v5 = vpop.f32.mrb[31].mxu1  ;;  %v5502_v20 = vadd.f32 %v14888_v38, %v8936_v63 }
 0x716   : > { %v5497_v52 = vadd.f32 %v14888_v38, %v5496_v5  ;;  %v14893_v54 = vsel %vm8228_vm7, %v8181_v36, %v14829_v24 }
 0x717   : > { %v5576_v58 = vmul.f32 0.01, %v5502_v20 }
 0x718   : > { %v5575_v29 = vmul.f32 0.01, %v5497_v52 }
 0x71a   : > { %v5607_v51 = vmax.f32 %v5497_v52, %v5575_v29  ;;  %v17577_v29 = vld [vmem:[#allocation141_spill] sm:$0xff] }
 0x71c   : > { %v5662_v4 = vrot.slane %v5607_v51, %v17449_v25  ;;  %v5758_v19 = vrot.slane %v5607_v51, %v10774_v18  ;;  %v5886_v61 = vrot.slane %v5607_v51, %v16698_v0  ;;  %v6014_v27 = vrot.slane %v5607_v51, %v16819_v39 }
 0x71d   : > { %v6142_v10 = vrot.slane %v5607_v51, %v16618_v15  ;;  %v6270_v52 = vrot.slane %v5607_v51, %v16771_v50 }
 0x71e   : > { %v5703_v28 = vmul.f32 %v5662_v4, %v17571_v6  ;;  %v5799_v48 = vmul.f32 %v5758_v19, %v17572_v1  ;;  %v5704_v8 = vmul.f32 %v5662_v4, %v17573_v23  ;;  %v5800_v24 = vmul.f32 %v5758_v19, %v17574_v40 }
 0x71f   : > { %v5927_v3 = vmul.f32 %v5886_v61, %v17575_v60  ;;  %v6055_v5 = vmul.f32 %v6014_v27, %v17576_v32  ;;  %v5928_v6 = vmul.f32 %v5886_v61, %v17577_v29  ;;  %v5608_v1 = vmax.f32 %v5502_v20, %v5576_v58  ;;  %v17580_v60 = vld [vmem:[#allocation233_spill] sm:$0xff]  ;;  %v17581_v32 = vld [vmem:[#allocation203_spill] sm:$0xff] }
 0x720   : > { %v5831_v46 = vadd.f32 %v5799_v48, %v5703_v28  ;;  %v5832_v36 = vadd.f32 %v5800_v24, %v5704_v8  ;;  %v6183_v4 = vmul.f32 %v6142_v10, %v17578_v7  ;;  %v6398_v19 = vrot.slane %v5607_v51, %v16623_v26  ;;  %v17579_v28 = vld [vmem:[#allocation187_spill] sm:$0xff]  ;;  %v17582_v24 = vld [vmem:[#allocation262_spill] sm:$0xff]  ;;  %v17583_v7 = vld [vmem:[#allocation253_spill] sm:$0xff] }
 0x721   : > { %v6056_v48 = vmul.f32 %v6014_v27, %v17579_v28  ;;  %v6311_v33 = vmul.f32 %v6270_v52, %v17580_v60  ;;  %v6184_v31 = vmul.f32 %v6142_v10, %v17581_v32  ;;  %v6654_v20 = vrot.slane %v5608_v1, %v17449_v25 }
 0x722   : > { %v5959_v63 = vadd.f32 %v5927_v3, %v5831_v46  ;;  %v5960_v23 = vadd.f32 %v5928_v6, %v5832_v36  ;;  %v6526_v46 = vrot.slane %v5607_v51, %v16722_v49  ;;  %v6439_v61 = vmul.f32 %v6398_v19, %v17582_v24  ;;  %v17584_v36 = vld [vmem:[#allocation184_spill] sm:$0xff]  ;;  %v17585_v6 = vld [vmem:[#allocation134_spill] sm:$0xff] }
 0x724   : > { %v6087_v41 = vadd.f32 %v6055_v5, %v5959_v63  ;;  %v6088_v3 = vadd.f32 %v6056_v48, %v5960_v23  ;;  %v6312_v63 = vmul.f32 %v6270_v52, %v17583_v7  ;;  %v6567_v29 = vmul.f32 %v6526_v46, %v17584_v36  ;;  %v17586_v23 = vld [vmem:[#allocation292_spill] sm:$0xff]  ;;  %v17587_v48 = vld [vmem:[#allocation313_spill] sm:$0xff] }
 0x725   : > { %v6695_v28 = vmul.f32 %v6654_v20, %v17586_v23  ;;  %v7038_v52 = vrot.slane %v5608_v1, %v16819_v39 }
 0x726   : > { %v6215_v40 = vadd.f32 %v6183_v4, %v6087_v41  ;;  %v6216_v58 = vadd.f32 %v6184_v31, %v6088_v3  ;;  %v6782_v41 = vrot.slane %v5608_v1, %v10774_v18  ;;  %v6440_v4 = vmul.f32 %v6398_v19, %v17585_v6  ;;  %v17588_v31 = vld [vmem:[#allocation64_spill] sm:$0xff] }
 0x727   : > { %v7166_v19 = vrot.slane %v5608_v1, %v16618_v15 }
 0x728   : > { %v6343_v8 = vadd.f32 %v6311_v33, %v6215_v40  ;;  %v6344_v27 = vadd.f32 %v6312_v63, %v6216_v58  ;;  %v6910_v33 = vrot.slane %v5608_v1, %v16698_v0  ;;  %v6568_v40 = vmul.f32 %v6526_v46, %v17587_v48  ;;  %v17590_v58 = vld [vmem:[#allocation330_spill] sm:$0xff]  ;;  %v17594_v48 = vld [vmem:[#allocation392_spill] sm:$0xff] }
 0x729   : > { %v6823_v3 = vmul.f32 %v6782_v41, %v17588_v31  ;;  %v7294_v46 = vrot.slane %v5608_v1, %v16771_v50 }
 0x72a   : > { %v6471_v5 = vadd.f32 %v6439_v61, %v6343_v8  ;;  %v6472_v10 = vadd.f32 %v6440_v4, %v6344_v27  ;;  %v17589_v8 = vld [vmem:[#allocation348_spill] sm:$0xff]  ;;  %v6951_v7 = vmul.f32 %v6910_v33, %v17590_v58  ;;  %v17592_v27 = vld [vmem:[#allocation106_spill] sm:$0xff] }
 0x72b   : > { %v6696_v24 = vmul.f32 %v6654_v20, %v17589_v8  ;;  %v7079_v6 = vmul.f32 %v7038_v52, %v17592_v27  ;;  %v7207_v20 = vmul.f32 %v7166_v19, %v17594_v48 }
 0x72c   : > { %v6599_v51 = vadd.f32 %v6567_v29, %v6471_v5  ;;  %v6600_v32 = vadd.f32 %v6568_v40, %v6472_v10  ;;  %v17591_v5 = vld [vmem:[#allocation349_spill] sm:$0xff]  ;;  %v7422_v40 = vrot.slane %v5608_v1, %v16623_v26 }
 0x72d   : > { %v6824_v36 = vmul.f32 %v6782_v41, %v17591_v5  ;;  %v17597_v5 = vld [vmem:[#allocation295_spill] sm:$0xff] }
 0x72e   : > { %v6727_v60 = vadd.f32 %v6695_v28, %v6599_v51  ;;  %v6728_v63 = vadd.f32 %v6696_v24, %v6600_v32  ;;  %v17593_v51 = vld [vmem:[#allocation94_spill] sm:$0xff]  ;;  %v17595_v32 = vld [vmem:[#allocation52_spill] sm:$0xff] }
 0x72f   : > { %v6952_v23 = vmul.f32 %v6910_v33, %v17593_v51  ;;  %v7080_v41 = vmul.f32 %v7038_v52, %v17595_v32 }
 0x730   : > { %v6855_v61 = vadd.f32 %v6823_v3, %v6727_v60  ;;  %v6856_v4 = vadd.f32 %v6824_v36, %v6728_v63  ;;  %v7208_v36 = vmul.f32 %v7166_v19, %v17597_v5 }
 0x732   : > { %v6983_v29 = vadd.f32 %v6951_v7, %v6855_v61  ;;  %v8983_v28 = vpop.f32.mrb[36].mxu0  ;;  %v6984_v3 = vadd.f32 %v6952_v23, %v6856_v4  ;;  %v17596_v61 = vld [vmem:[#allocation320_spill] sm:$0xff]  ;;  %v7550_v7 = vrot.slane %v5608_v1, %v16722_v49  ;;  %v17599_v4 = vld [vmem:[#allocation7_spill] sm:$0xff]  ;;  %v17601_v1 = vld [vmem:[#allocation366_spill] sm:$0xff] }
 0x733   : > { %v7883_v60 = vadd.f32 %v17557_v14, %v8983_v28  ;;  %v7877_v31 = vpop.f32.mrb[37].mxu0  ;;  %v7335_v58 = vmul.f32 %v7294_v46, %v17596_v61  ;;  %v7336_v23 = vmul.f32 %v7294_v46, %v17599_v4  ;;  %v7464_v61 = vmul.f32 %v7422_v40, %v17601_v1 }
 0x734   : > { %v7111_v10 = vadd.f32 %v7079_v6, %v6983_v29  ;;  %v7878_v8 = vadd.f32 %v17557_v14, %v7877_v31  ;;  %v7112_v63 = vadd.f32 %v7080_v41, %v6984_v3  ;;  %v17598_v6 = vld [vmem:[#allocation96_spill] sm:$0xff] }
 0x735   : > { %v7981_v33 = vmul.f32 0.01, %v7883_v60  ;;  %v7463_v51 = vmul.f32 %v7422_v40, %v17598_v6  ;;  %v17600_v14 = vld [vmem:[#allocation308_spill] sm:$0xff] }
 0x736   : > { %v7239_v24 = vadd.f32 %v7207_v20, %v7111_v10  ;;  %v7980_v29 = vmul.f32 0.01, %v7878_v8  ;;  %v7240_v48 = vadd.f32 %v7208_v36, %v7112_v63  ;;  %v7591_v10 = vmul.f32 %v7550_v7, %v17600_v14  ;;  %v17603_v14 = vld [vmem:[#allocation90_spill] sm:$0xff] }
 0x737   : > { %v8013_v28 = vmax.f32 %v7883_v60, %v7981_v33 }
 0x738   : > { %v7367_v27 = vadd.f32 %v7335_v58, %v7239_v24  ;;  %v8012_v52 = vmax.f32 %v7878_v8, %v7980_v29  ;;  %v7368_v31 = vadd.f32 %v7336_v23, %v7240_v48  ;;  %v17602_v58 = vld [vmem:[#allocation220_spill] sm:$0xff] }
 0x739   : > { %v8094_v20 = vsel %vm518_vm1, %v8013_v28, 0.0  ;;  %v7592_v5 = vmul.f32 %v7550_v7, %v17602_v58  ;;  %v17607_v58 = vld [vmem:[#allocation155_spill] sm:$0xff] }
 0x73a   : > { %v7495_v32 = vadd.f32 %v7463_v51, %v7367_v27  ;;  %v8093_v3 = vsel %vm518_vm1, %v8012_v52, 0.0  ;;  %v7496_v24 = vadd.f32 %v7464_v61, %v7368_v31  ;;  %v17605_v61 = vld [vmem:[#allocation81_spill] sm:$0xff] }
 0x73b   : > { %v8095_v41 = vadd.f32 %v8094_v20, %v8093_v3  ;;  %v17604_v20 = vld [vmem:[#allocation111_spill] sm:$0xff] }
 0x73c   : > { %v7623_v19 = vadd.f32 %v7591_v10, %v7495_v32  ;;  %v7624_v46 = vadd.f32 %v7592_v5, %v7496_v24 }
 0x73d   : > { %v8096_v60 = vrot.slane %v8095_v41, 4 }
 0x73e   : > { %8990 = vmatprep.mubr.msk.f32.mxu0 %vm518_vm1, %v7623_v19 }
 0x73f   : > { %v8097_v8 = vadd.f32 %v8096_v60, %v8095_v41  ;;  %8991 = vmatmul.mubr.msk.f32.gmra.mrb[42].mxu0 %vm518_vm1, %v7624_v46 }
 0x741   : > { %v8098_v33 = vrot.slane %v8097_v8, 2 }
 0x743   : > { %v8099_v63 = vadd.f32 %v8098_v33, %v8097_v8  ;;  %v17608_v8 = vld [vmem:[#allocation173_spill] sm:$0xff] }
 0x745   : > { %v8100_v29 = vrot.slane %v8099_v63, 1 }
 0x747   : > { %v8939_v36 = vpop.f32.mrb[32].mxu1  ;;  %v8101_v40 = vadd.f32 %v8100_v29, %v8099_v63  ;;  %v17609_v29 = vld [vmem:[#allocation143_spill] sm:$0xff] }
 0x748   : > { %v5506_v27 = vpop.f32.mrb[33].mxu1  ;;  %v5512_v4 = vadd.f32 %v14888_v38, %v8939_v36 }
 0x749   : > { %v5507_v6 = vadd.f32 %v14888_v38, %v5506_v27  ;;  %v8182_v51 = vmul.f32 0.0625, %v8101_v40 }
 0x74a   : > { %v5578_v41 = vmul.f32 0.01, %v5512_v4 }
 0x74b   : > { %v5577_v28 = vmul.f32 0.01, %v5507_v6  ;;  %v8231_v7 = vsel %vm8230_vm8, %v8182_v51, %v14893_v54  ;;  %v17606_v54 = vld [vmem:[#allocation123_spill] sm:$0xff]  ;;  %v17610_v51 = vld [vmem:[#allocation221_spill] sm:$0xff] }
 0x74c   : > { %9016 = vmatprep.mubr.msk.f32.mxu1 %vm518_vm1, %v8231_v7  ;;  %v5610_v40 = vmax.f32 %v5512_v4, %v5578_v41 }
 0x74d   : > { %v5609_v48 = vmax.f32 %v5507_v6, %v5577_v28 }
 0x74e   : > { %v6658_v4 = vrot.slane %v5610_v40, %v17449_v25 }
 0x74f   : > { %v5666_v23 = vrot.slane %v5609_v48, %v17449_v25  ;;  %v5762_v52 = vrot.slane %v5609_v48, %v10774_v18  ;;  %v5890_v32 = vrot.slane %v5609_v48, %v16698_v0  ;;  %v6018_v1 = vrot.slane %v5609_v48, %v16819_v39 }
 0x750   : > { %v6146_v60 = vrot.slane %v5609_v48, %v16618_v15  ;;  %v6274_v63 = vrot.slane %v5609_v48, %v16771_v50  ;;  %v6402_v7 = vrot.slane %v5609_v48, %v16623_v26 }
 0x751   : > { %v5705_v10 = vmul.f32 %v5666_v23, %v17603_v14  ;;  %v5801_v31 = vmul.f32 %v5762_v52, %v17604_v20  ;;  %v5706_v3 = vmul.f32 %v5666_v23, %v17605_v61  ;;  %v5802_v19 = vmul.f32 %v5762_v52, %v17606_v54  ;;  %v17611_v52 = vld [vmem:[#allocation189_spill] sm:$0xff]  ;;  %v17612_v20 = vld [vmem:[#allocation235_spill] sm:$0xff] }
 0x752   : > { %v5929_v5 = vmul.f32 %v5890_v32, %v17607_v58  ;;  %v6057_v33 = vmul.f32 %v6018_v1, %v17608_v8  ;;  %v5930_v27 = vmul.f32 %v5890_v32, %v17609_v29  ;;  %v6185_v28 = vmul.f32 %v6146_v60, %v17610_v51  ;;  %v17618_v51 = vld [vmem:[#allocation234_spill] sm:$0xff] }
 0x753   : > { %v5833_v24 = vadd.f32 %v5801_v31, %v5705_v10  ;;  %v5834_v36 = vadd.f32 %v5802_v19, %v5706_v3  ;;  %v6058_v14 = vmul.f32 %v6018_v1, %v17611_v52  ;;  %v6313_v31 = vmul.f32 %v6274_v63, %v17612_v20  ;;  %v17614_v19 = vld [vmem:[#allocation14_spill] sm:$0xff]  ;;  %v17619_v52 = vld [vmem:[#allocation168_spill] sm:$0xff] }
 0x754   : > { %v6530_v61 = vrot.slane %v5609_v48, %v16722_v49  ;;  %v6441_v32 = vmul.f32 %v6402_v7, %v17614_v19  ;;  %v6786_v1 = vrot.slane %v5610_v40, %v10774_v18  ;;  %v17620_v20 = vld [vmem:[#allocation350_spill] sm:$0xff]  ;;  %v17622_v19 = vld [vmem:[#allocation297_spill] sm:$0xff] }
 0x755   : > { %v5961_v46 = vadd.f32 %v5929_v5, %v5833_v24  ;;  %v5962_v23 = vadd.f32 %v5930_v27, %v5834_v36  ;;  %v17613_v24 = vld [vmem:[#allocation205_spill] sm:$0xff]  ;;  %v17615_v5 = vld [vmem:[#allocation255_spill] sm:$0xff] }
 0x756   : > { %v6186_v58 = vmul.f32 %v6146_v60, %v17613_v24  ;;  %v17617_v27 = vld [vmem:[#allocation341_spill] sm:$0xff]  ;;  %v6914_v60 = vrot.slane %v5610_v40, %v16698_v0  ;;  %v17621_v24 = vld [vmem:[#allocation70_spill] sm:$0xff] }
 0x757   : > { %v6089_v6 = vadd.f32 %v6057_v33, %v5961_v46  ;;  %v6090_v54 = vadd.f32 %v6058_v14, %v5962_v23  ;;  %v6314_v46 = vmul.f32 %v6274_v63, %v17615_v5  ;;  %v17616_v33 = vld [vmem:[#allocation39_spill] sm:$0xff]  ;;  %v6570_v14 = vmul.f32 %v6530_v61, %v17619_v52  ;;  %v17627_v52 = vld [vmem:[#allocation314_spill] sm:$0xff] }
 0x758   : > { %v6569_v36 = vmul.f32 %v6530_v61, %v17616_v33  ;;  %v7042_v63 = vrot.slane %v5610_v40, %v16819_v39  ;;  %v17623_v5 = vld [vmem:[#allocation299_spill] sm:$0xff]  ;;  %v17624_v33 = vld [vmem:[#allocation40_spill] sm:$0xff]  ;;  %v7298_v61 = vrot.slane %v5610_v40, %v16771_v50 }
 0x759   : > { %v6217_v10 = vadd.f32 %v6185_v28, %v6089_v6  ;;  %v6218_v41 = vadd.f32 %v6186_v58, %v6090_v54  ;;  %v6442_v6 = vmul.f32 %v6402_v7, %v17617_v27  ;;  %v6697_v28 = vmul.f32 %v6658_v4, %v17618_v51  ;;  %v17625_v27 = vld [vmem:[#allocation204_spill] sm:$0xff] }
 0x75a   : > { %v6698_v58 = vmul.f32 %v6658_v4, %v17621_v24  ;;  %v7170_v7 = vrot.slane %v5610_v40, %v16618_v15  ;;  %v17626_v51 = vld [vmem:[#allocation72_spill] sm:$0xff]  ;;  %v7426_v4 = vrot.slane %v5610_v40, %v16623_v26  ;;  %v17629_v24 = vld [vmem:[#allocation378_spill] sm:$0xff] }
 0x75b   : > { %v6345_v3 = vadd.f32 %v6313_v31, %v6217_v10  ;;  %v6346_v29 = vadd.f32 %v6314_v46, %v6218_v41  ;;  %v6825_v31 = vmul.f32 %v6786_v1, %v17620_v20  ;;  %v6826_v46 = vmul.f32 %v6786_v1, %v17623_v5  ;;  %v17628_v20 = vld [vmem:[#allocation49_spill] sm:$0xff] }
 0x75c   : > { %v7554_v1 = vrot.slane %v5610_v40, %v16722_v49 }
 0x75d   : > { %v6473_v8 = vadd.f32 %v6441_v32, %v6345_v3  ;;  %v6474_v23 = vadd.f32 %v6442_v6, %v6346_v29  ;;  %v6953_v32 = vmul.f32 %v6914_v60, %v17622_v19  ;;  %v6954_v6 = vmul.f32 %v6914_v60, %v17625_v27  ;;  %v17630_v19 = vld [vmem:[#allocation270_spill] sm:$0xff] }
 0x75f   : > { %v6601_v48 = vadd.f32 %v6569_v36, %v6473_v8  ;;  %v6602_v54 = vadd.f32 %v6570_v14, %v6474_v23  ;;  %v7081_v36 = vmul.f32 %v7042_v63, %v17624_v33  ;;  %v7082_v14 = vmul.f32 %v7042_v63, %v17627_v52 }
 0x761   : > { %v6729_v10 = vadd.f32 %v6697_v28, %v6601_v48  ;;  %v6730_v41 = vadd.f32 %v6698_v58, %v6602_v54  ;;  %v7209_v28 = vmul.f32 %v7170_v7, %v17626_v51  ;;  %v7210_v58 = vmul.f32 %v7170_v7, %v17629_v24 }
 0x763   : > { %v6857_v3 = vadd.f32 %v6825_v31, %v6729_v10  ;;  %v6858_v29 = vadd.f32 %v6826_v46, %v6730_v41  ;;  %v7337_v31 = vmul.f32 %v7298_v61, %v17628_v20  ;;  %v17631_v41 = vld [vmem:[#allocation372_spill] sm:$0xff] }
 0x764   : > { %v7338_v5 = vmul.f32 %v7298_v61, %v17631_v41  ;;  %v15008_v61 = vld [vmem:[%s15392_s5 + $0x1] ss:$0 sm:$0xff] }
 0x765   : > { %v6985_v8 = vadd.f32 %v6953_v32, %v6857_v3  ;;  %v6986_v23 = vadd.f32 %v6954_v6, %v6858_v29  ;;  %v7465_v32 = vmul.f32 %v7426_v4, %v17630_v19  ;;  %v17633_v29 = vld [vmem:[#allocation277_spill] sm:$0xff]  ;;  %17635 = vst [vmem:[#allocation343_spill] sm:$0xff] %v15008_v61 }
 0x766   : > { %v7466_v63 = vmul.f32 %v7426_v4, %v17633_v29 }
 0x767   : > { %v7113_v48 = vadd.f32 %v7081_v36, %v6985_v8  ;;  %v7114_v54 = vadd.f32 %v7082_v14, %v6986_v23  ;;  %v17632_v8 = vld [vmem:[#allocation324_spill] sm:$0xff] }
 0x768   : > { %v7593_v33 = vmul.f32 %v7554_v1, %v17632_v8  ;;  %v17636_v8 = vld [vmem:[#allocation91_spill] sm:$0xff] }
 0x769   : > { %v7241_v10 = vadd.f32 %v7209_v28, %v7113_v48  ;;  %v7242_v60 = vadd.f32 %v7210_v58, %v7114_v54  ;;  %v17634_v48 = vld [vmem:[#allocation291_spill] sm:$0xff] }
 0x76a   : > { %v7594_v51 = vmul.f32 %v7554_v1, %v17634_v48  ;;  %v17638_v48 = vld [vmem:[#allocation157_spill] sm:$0xff] }
 0x76b   : > { %v7369_v3 = vadd.f32 %v7337_v31, %v7241_v10  ;;  %v7370_v36 = vadd.f32 %v7338_v5, %v7242_v60 }
 0x76d   : > { %v7497_v46 = vadd.f32 %v7465_v32, %v7369_v3  ;;  %v7498_v6 = vadd.f32 %v7466_v63, %v7370_v36  ;;  %v17637_v36 = vld [vmem:[#allocation113_spill] sm:$0xff] }
 0x76f   : > { %v7625_v27 = vadd.f32 %v7593_v33, %v7497_v46  ;;  %v7626_v40 = vadd.f32 %v7594_v51, %v7498_v6 }
 0x771   : > { %8993 = vmatprep.mubr.msk.f32.mxu0 %vm518_vm1, %v7625_v27 }
 0x772   : > { %8994 = vmatmul.mubr.msk.f32.gmra.mrb[44].mxu0 %vm518_vm1, %v7626_v40 }
 0x785   : > { %v8986_v7 = vpop.f32.mrb[38].mxu0 }
 0x786   : > { %v7893_v28 = vadd.f32 %v15008_v61, %v8986_v7  ;;  %v7887_v23 = vpop.f32.mrb[39].mxu0 }
 0x787   : > { %v7888_v4 = vadd.f32 %v15008_v61, %v7887_v23  ;;  %v17639_v23 = vld [vmem:[#allocation83_spill] sm:$0xff] }
 0x788   : > { %v7983_v52 = vmul.f32 0.01, %v7893_v28 }
 0x789   : > { %v7982_v14 = vmul.f32 0.01, %v7888_v4 }
 0x78a   : > { %v8015_v10 = vmax.f32 %v7893_v28, %v7983_v52  ;;  %v17640_v52 = vld [vmem:[#allocation125_spill] sm:$0xff] }
 0x78b   : > { %v8014_v31 = vmax.f32 %v7888_v4, %v7982_v14 }
 0x78c   : > { %v8942_v20 = vpop.f32.mrb[34].mxu1  ;;  %v8103_v54 = vsel %vm518_vm1, %v8015_v10, 0.0 }
 0x78d   : > { %v5516_v1 = vpop.f32.mrb[35].mxu1  ;;  %v8102_v58 = vsel %vm518_vm1, %v8014_v31, 0.0  ;;  %v5522_v60 = vadd.f32 %v14888_v38, %v8942_v20  ;;  %v17641_v20 = vld [vmem:[#allocation175_spill] sm:$0xff] }
 0x78e   : > { %v5517_v24 = vadd.f32 %v14888_v38, %v5516_v1  ;;  %v8104_v3 = vadd.f32 %v8103_v54, %v8102_v58 }
 0x78f   : > { %v5580_v27 = vmul.f32 0.01, %v5522_v60 }
 0x790   : > { %v5579_v19 = vmul.f32 0.01, %v5517_v24  ;;  %v8105_v7 = vrot.slane %v8104_v3, 4 }
 0x791   : > { %v15028_v1 = vmax.f32 %v5522_v60, %v5580_v27 }
 0x792   : > { %v5611_v32 = vmax.f32 %v5517_v24, %v5579_v19 }
 0x794   : > { %v5670_v41 = vrot.slane %v5611_v32, %v17449_v25  ;;  %v5766_v5 = vrot.slane %v5611_v32, %v10774_v18  ;;  %v5894_v46 = vrot.slane %v5611_v32, %v16698_v0  ;;  %v6022_v63 = vrot.slane %v5611_v32, %v16819_v39 }
 0x795   : > { %v6150_v40 = vrot.slane %v5611_v32, %v16618_v15  ;;  %v6278_v28 = vrot.slane %v5611_v32, %v16771_v50 }
 0x796   : > { %v5707_v33 = vmul.f32 %v5670_v41, %v17636_v8  ;;  %v5803_v29 = vmul.f32 %v5766_v5, %v17637_v36  ;;  %v5931_v51 = vmul.f32 %v5894_v46, %v17638_v48  ;;  %v5708_v4 = vmul.f32 %v5670_v41, %v17639_v23  ;;  %v17642_v8 = vld [vmem:[#allocation223_spill] sm:$0xff]  ;;  %v17643_v41 = vld [vmem:[#allocation237_spill] sm:$0xff] }
 0x797   : > { %v5804_v14 = vmul.f32 %v5766_v5, %v17640_v52  ;;  %v6059_v31 = vmul.f32 %v6022_v63, %v17641_v20  ;;  %v6406_v36 = vrot.slane %v5611_v32, %v16623_v26  ;;  %v6315_v23 = vmul.f32 %v6278_v28, %v17643_v41  ;;  %v17644_v52 = vld [vmem:[#allocation145_spill] sm:$0xff] }
 0x798   : > { %v5835_v6 = vadd.f32 %v5803_v29, %v5707_v33  ;;  %v6187_v33 = vmul.f32 %v6150_v40, %v17642_v8  ;;  %v8106_v29 = vadd.f32 %v8105_v7, %v8104_v3  ;;  %v5932_v20 = vmul.f32 %v5894_v46, %v17644_v52 }
 0x799   : > { %v8989_v54 = vpop.f32.mrb[40].mxu0  ;;  %v5836_v60 = vadd.f32 %v5804_v14, %v5708_v4  ;;  %v6662_v8 = vrot.slane %v15028_v1, %v17449_v25  ;;  %v6790_v46 = vrot.slane %v15028_v1, %v10774_v18 }
 0x79a   : > { %v5963_v10 = vadd.f32 %v5931_v51, %v5835_v6  ;;  %v7903_v24 = vadd.f32 %v15008_v61, %v8989_v54  ;;  %v7897_v58 = vpop.f32.mrb[41].mxu0  ;;  %v6534_v51 = vrot.slane %v5611_v32, %v16722_v49  ;;  %v8107_v3 = vrot.slane %v8106_v29, 2  ;;  %v17647_v32 = vld [vmem:[#allocation170_spill] sm:$0xff] }
 0x79b   : > { %v7898_v48 = vadd.f32 %v15008_v61, %v7897_v58  ;;  %v5964_v58 = vadd.f32 %v5932_v20, %v5836_v60  ;;  %v17646_v61 = vld [vmem:[#allocation191_spill] sm:$0xff] }
 0x79c   : > { %v6091_v19 = vadd.f32 %v6059_v31, %v5963_v10  ;;  %v7985_v5 = vmul.f32 0.01, %v7903_v24  ;;  %v17645_v10 = vld [vmem:[#allocation202_spill] sm:$0xff]  ;;  %v6060_v41 = vmul.f32 %v6022_v63, %v17646_v61  ;;  %v6571_v4 = vmul.f32 %v6534_v51, %v17647_v32 }
 0x79d   : > { %v7984_v27 = vmul.f32 0.01, %v7898_v48  ;;  %v6443_v31 = vmul.f32 %v6406_v36, %v17645_v10  ;;  %v17649_v10 = vld [vmem:[#allocation138_spill] sm:$0xff]  ;;  %v6918_v61 = vrot.slane %v15028_v1, %v16698_v0  ;;  %v8108_v63 = vadd.f32 %v8107_v3, %v8106_v29 }
 0x79e   : > { %v6219_v6 = vadd.f32 %v6187_v33, %v6091_v19  ;;  %v8017_v54 = vmax.f32 %v7903_v24, %v7985_v5  ;;  %v6092_v24 = vadd.f32 %v6060_v41, %v5964_v58  ;;  %v7174_v29 = vrot.slane %v15028_v1, %v16618_v15 }
 0x79f   : > { %v8016_v7 = vmax.f32 %v7898_v48, %v7984_v27  ;;  %v6699_v48 = vmul.f32 %v6662_v8, %v17649_v10  ;;  %v8109_v3 = vrot.slane %v8108_v63, 1  ;;  %v17655_v10 = vld [vmem:[#allocation158_spill] sm:$0xff] }
 0x7a0   : > { %v6347_v34 = vadd.f32 %v6315_v23, %v6219_v6  ;;  %v8112_v19 = vsel %vm518_vm1, %v8017_v54, 0.0  ;;  %v17648_v23 = vld [vmem:[#allocation207_spill] sm:$0xff] }
 0x7a1   : > { %v8111_v14 = vsel %vm518_vm1, %v8016_v7, 0.0  ;;  %v6188_v5 = vmul.f32 %v6150_v40, %v17648_v23  ;;  %v7046_v7 = vrot.slane %v15028_v1, %v16819_v39  ;;  %v17652_v40 = vld [vmem:[#allocation268_spill] sm:$0xff] }
 0x7a2   : > { %v6475_v33 = vadd.f32 %v6443_v31, %v6347_v34  ;;  %v8113_v6 = vadd.f32 %v8112_v19, %v8111_v14  ;;  %v17650_v34 = vld [vmem:[#allocation257_spill] sm:$0xff]  ;;  %v17651_v31 = vld [vmem:[#allocation352_spill] sm:$0xff]  ;;  %v6444_v41 = vmul.f32 %v6406_v36, %v17652_v40 }
 0x7a3   : > { %v6220_v60 = vadd.f32 %v6188_v5, %v6092_v24  ;;  %v6316_v27 = vmul.f32 %v6278_v28, %v17650_v34  ;;  %v6827_v32 = vmul.f32 %v6790_v46, %v17651_v31  ;;  %v17654_v28 = vld [vmem:[#allocation186_spill] sm:$0xff] }
 0x7a4   : > { %v6603_v52 = vadd.f32 %v6571_v4, %v6475_v33  ;;  %v8114_v20 = vrot.slane %v8113_v6, 4  ;;  %v17653_v4 = vld [vmem:[#allocation332_spill] sm:$0xff]  ;;  %v6572_v23 = vmul.f32 %v6534_v51, %v17654_v28  ;;  %v8110_v28 = vadd.f32 %v8109_v3, %v8108_v63 }
 0x7a5   : > { %v6348_v58 = vadd.f32 %v6316_v27, %v6220_v60  ;;  %v6955_v14 = vmul.f32 %v6918_v61, %v17653_v4  ;;  %v7302_v60 = vrot.slane %v15028_v1, %v16771_v50  ;;  %v17658_v4 = vld [vmem:[#allocation354_spill] sm:$0xff]  ;;  %v17663_v63 = vld [vmem:[#allocation200_spill] sm:$0xff] }
 0x7a6   : > { %v6731_v54 = vadd.f32 %v6699_v48, %v6603_v52  ;;  %v8115_v19 = vadd.f32 %v8114_v20, %v8113_v6  ;;  %v7083_v48 = vmul.f32 %v7046_v7, %v17655_v10  ;;  %v17656_v6 = vld [vmem:[#allocation294_spill] sm:$0xff]  ;;  %v17660_v10 = vld [vmem:[#allocation325_spill] sm:$0xff]  ;;  %v7084_v3 = vmul.f32 %v7046_v7, %v17663_v63 }
 0x7a7   : > { %v6476_v24 = vadd.f32 %v6444_v41, %v6348_v58  ;;  %v6700_v27 = vmul.f32 %v6662_v8, %v17656_v6  ;;  %v7430_v58 = vrot.slane %v15028_v1, %v16623_v26  ;;  %v7558_v41 = vrot.slane %v15028_v1, %v16722_v49  ;;  %v17659_v8 = vld [vmem:[#allocation374_spill] sm:$0xff]  ;;  %v17672_v63 = vld [vmem:[#allocation177_spill] sm:$0xff] }
 0x7a8   : > { %v6859_v33 = vadd.f32 %v6827_v32, %v6731_v54  ;;  %v8116_v5 = vrot.slane %v8115_v19, 2  ;;  %v17657_v32 = vld [vmem:[#allocation43_spill] sm:$0xff] }
 0x7a9   : > { %v6604_v36 = vadd.f32 %v6572_v23, %v6476_v24  ;;  %v7211_v40 = vmul.f32 %v7174_v29, %v17657_v32  ;;  %v7467_v16 = vmul.f32 %v7430_v58, %v17661_v42  ;;  %v7595_v43 = vmul.f32 %v7558_v41, %v17662_v55  ;;  %v17664_v55 = vld [vmem:[#allocation362_spill] sm:$0xff] }
 0x7aa   : > { %v6987_v52 = vadd.f32 %v6955_v14, %v6859_v33  ;;  %v8117_v20 = vadd.f32 %v8116_v5, %v8115_v19  ;;  %v6828_v14 = vmul.f32 %v6790_v46, %v17658_v4  ;;  %v7339_v19 = vmul.f32 %v7302_v60, %v17659_v8 }
 0x7ab   : > { %v8945_v34 = vpop.f32.mrb[36].mxu1  ;;  %v6732_v33 = vadd.f32 %v6700_v27, %v6604_v36  ;;  %v8183_v36 = vmul.f32 0.0625, %v8110_v28  ;;  %v7212_v4 = vmul.f32 %v7174_v29, %v17664_v55  ;;  %v17670_v29 = vld [vmem:[#allocation127_spill] sm:$0xff] }
 0x7ac   : > { %v5526_v54 = vpop.f32.mrb[37].mxu1  ;;  %v7115_v31 = vadd.f32 %v7083_v48, %v6987_v52  ;;  %v8118_v24 = vrot.slane %v8117_v20, 1  ;;  %v6956_v48 = vmul.f32 %v6918_v61, %v17660_v10 }
 0x7ad   : > { %v5527_v51 = vadd.f32 %v14888_v38, %v5526_v54  ;;  %v6860_v52 = vadd.f32 %v6828_v14, %v6732_v33  ;;  %v17665_v14 = vld [vmem:[#allocation93_spill] sm:$0xff] }
 0x7ae   : > { %v7243_v23 = vadd.f32 %v7211_v40, %v7115_v31  ;;  %v8119_v6 = vadd.f32 %v8118_v24, %v8117_v20  ;;  %v5532_v31 = vadd.f32 %v14888_v38, %v8945_v34 }
 0x7af   : > { %v5581_v5 = vmul.f32 0.01, %v5527_v51  ;;  %v6988_v1 = vadd.f32 %v6956_v48, %v6860_v52  ;;  %v17668_v52 = vld [vmem:[#allocation159_spill] sm:$0xff]  ;;  %v17669_v48 = vld [vmem:[#allocation85_spill] sm:$0xff] }
 0x7b0   : > { %v7371_v32 = vadd.f32 %v7339_v19, %v7243_v23  ;;  %v8184_v27 = vmul.f32 0.0625, %v8119_v6  ;;  %v17667_v23 = vld [vmem:[#allocation13_spill] sm:$0xff]  ;;  %v5582_v19 = vmul.f32 0.01, %v5532_v31 }
 0x7b1   : > { %v5613_v54 = vmax.f32 %v5527_v51, %v5581_v5  ;;  %v7116_v51 = vadd.f32 %v7084_v3, %v6988_v1  ;;  %v7340_v8 = vmul.f32 %v7302_v60, %v17667_v23  ;;  %v7596_v60 = vmul.f32 %v7558_v41, %v14751_v17 }
 0x7b2   : > { %v7499_v46 = vadd.f32 %v7467_v16, %v7371_v32  ;;  %v15080_v20 = vsel %vm8218_vm2, %v8184_v27, %v8183_v36  ;;  %v17666_v16 = vld [vmem:[#allocation115_spill] sm:$0xff]  ;;  %v17671_v36 = vld [vmem:[#allocation317_spill] sm:$0xff]  ;;  %v5614_v55 = vmax.f32 %v5532_v31, %v5582_v19 }
 0x7b3   : > { %v5674_v40 = vrot.slane %v5613_v54, %v17449_v25  ;;  %v5770_v33 = vrot.slane %v5613_v54, %v10774_v18  ;;  %v5898_v61 = vrot.slane %v5613_v54, %v16698_v0  ;;  %v6026_v7 = vrot.slane %v5613_v54, %v16819_v39  ;;  %v17677_v19 = vld [vmem:[#allocation193_spill] sm:$0xff] }
 0x7b4   : > { %v7627_v42 = vadd.f32 %v7595_v43, %v7499_v46  ;;  %v7244_v34 = vadd.f32 %v7212_v4, %v7116_v51  ;;  %v6154_v43 = vrot.slane %v5613_v54, %v16618_v15  ;;  %v7468_v27 = vmul.f32 %v7430_v58, %v17671_v36 }
 0x7b5   : > { %v5709_v28 = vmul.f32 %v5674_v40, %v17665_v14  ;;  %v5805_v24 = vmul.f32 %v5770_v33, %v17666_v16  ;;  %v5933_v10 = vmul.f32 %v5898_v61, %v17668_v52  ;;  %v5710_v6 = vmul.f32 %v5674_v40, %v17669_v48  ;;  %v17673_v14 = vld [vmem:[#allocation225_spill] sm:$0xff] }
 0x7b6   : > { %8996 = vmatprep.mubr.msk.f32.mxu0 %vm518_vm1, %v7627_v42  ;;  %v5806_v32 = vmul.f32 %v5770_v33, %v17670_v29  ;;  %v7372_v1 = vadd.f32 %v7340_v8, %v7244_v34  ;;  %v6061_v3 = vmul.f32 %v6026_v7, %v17672_v63  ;;  %v6282_v42 = vrot.slane %v5613_v54, %v16771_v50  ;;  %v17674_v34 = vld [vmem:[#allocation239_spill] sm:$0xff] }
 0x7b7   : > { %v5837_v5 = vadd.f32 %v5805_v24, %v5709_v28  ;;  %v6189_v28 = vmul.f32 %v6154_v43, %v17673_v14  ;;  %v6410_v16 = vrot.slane %v5613_v54, %v16623_v26  ;;  %v6538_v58 = vrot.slane %v5613_v54, %v16722_v49  ;;  %v17675_v8 = vld [vmem:[#allocation147_spill] sm:$0xff] }
 0x7b8   : > { %v7500_v51 = vadd.f32 %v7468_v27, %v7372_v1  ;;  %v5838_v24 = vadd.f32 %v5806_v32, %v5710_v6  ;;  %v6317_v23 = vmul.f32 %v6282_v42, %v17674_v34  ;;  %v6666_v41 = vrot.slane %v5614_v55, %v17449_v25  ;;  %v17678_v1 = vld [vmem:[#allocation218_spill] sm:$0xff]  ;;  %v17679_v27 = vld [vmem:[#allocation209_spill] sm:$0xff]  ;;  %v17680_v63 = vld [vmem:[#allocation267_spill] sm:$0xff] }
 0x7b9   : > { %v5965_v46 = vadd.f32 %v5933_v10, %v5837_v5  ;;  %v5934_v5 = vmul.f32 %v5898_v61, %v17675_v8  ;;  %v17676_v10 = vld [vmem:[#allocation273_spill] sm:$0xff]  ;;  %v6062_v48 = vmul.f32 %v6026_v7, %v17677_v19  ;;  %v6573_v6 = vmul.f32 %v6538_v58, %v17678_v1  ;;  %v17684_v8 = vld [vmem:[#allocation108_spill] sm:$0xff]  ;;  %v17687_v1 = vld [vmem:[#allocation27_spill] sm:$0xff] }
 0x7ba   : > { %v7628_v40 = vadd.f32 %v7596_v60, %v7500_v51  ;;  %v6445_v17 = vmul.f32 %v6410_v16, %v17676_v10  ;;  %v6794_v32 = vrot.slane %v5614_v55, %v10774_v18  ;;  %v6190_v54 = vmul.f32 %v6154_v43, %v17679_v27  ;;  %v17681_v60 = vld [vmem:[#allocation261_spill] sm:$0xff]  ;;  %v17686_v19 = vld [vmem:[#allocation128_spill] sm:$0xff] }
 0x7bb   : > { %v6093_v4 = vadd.f32 %v6061_v3, %v5965_v46  ;;  %v5966_v31 = vadd.f32 %v5934_v5, %v5838_v24  ;;  %v6701_v3 = vmul.f32 %v6666_v41, %v17680_v63  ;;  %v6922_v61 = vrot.slane %v5614_v55, %v16698_v0  ;;  %v17685_v10 = vld [vmem:[#allocation365_spill] sm:$0xff] }
 0x7bc   : > { %8997 = vmatmul.mubr.msk.f32.gmra.mrb[46].mxu0 %vm518_vm1, %v7628_v40  ;;  %v7050_v7 = vrot.slane %v5614_v55, %v16819_v39  ;;  %v7178_v43 = vrot.slane %v5614_v55, %v16618_v15 }
 0x7bd   : > { %v6221_v33 = vadd.f32 %v6189_v28, %v6093_v4  ;;  %v6094_v36 = vadd.f32 %v6062_v48, %v5966_v31  ;;  %v6318_v4 = vmul.f32 %v6282_v42, %v17681_v60  ;;  %v17682_v28 = vld [vmem:[#allocation301_spill] sm:$0xff]  ;;  %v6957_v5 = vmul.f32 %v6922_v61, %v17684_v8 }
 0x7be   : > { %v6829_v40 = vmul.f32 %v6794_v32, %v17682_v28  ;;  %v7085_v48 = vmul.f32 %v7050_v7, %v17686_v19  ;;  %v7306_v42 = vrot.slane %v5614_v55, %v16771_v50  ;;  %v7562_v28 = vrot.slane %v5614_v55, %v16722_v49 }
 0x7bf   : > { %v6349_v52 = vadd.f32 %v6317_v23, %v6221_v33  ;;  %v6222_v51 = vadd.f32 %v6190_v54, %v6094_v36  ;;  %v17683_v33 = vld [vmem:[#allocation287_spill] sm:$0xff]  ;;  %v17688_v54 = vld [vmem:[#allocation56_spill] sm:$0xff] }
 0x7c0   : > { %v6446_v34 = vmul.f32 %v6410_v16, %v17683_v33  ;;  %v7213_v16 = vmul.f32 %v7178_v43, %v17688_v54  ;;  %v17694_v54 = vld [vmem:[#allocation95_spill] sm:$0xff] }
 0x7c1   : > { %v6477_v29 = vadd.f32 %v6445_v17, %v6349_v52  ;;  %v6350_v24 = vadd.f32 %v6318_v4, %v6222_v51  ;;  %v6574_v17 = vmul.f32 %v6538_v58, %v17685_v10  ;;  %v17689_v51 = vld [vmem:[#allocation339_spill] sm:$0xff] }
 0x7c2   : > { %v6830_v60 = vmul.f32 %v6794_v32, %v17689_v51 }
 0x7c3   : > { %v6605_v46 = vadd.f32 %v6573_v6, %v6477_v29  ;;  %v6478_v52 = vadd.f32 %v6446_v34, %v6350_v24  ;;  %v6702_v6 = vmul.f32 %v6666_v41, %v17687_v1  ;;  %v17690_v24 = vld [vmem:[#allocation334_spill] sm:$0xff] }
 0x7c4   : > { %v6958_v41 = vmul.f32 %v6922_v61, %v17690_v24  ;;  %v7598_v24 = vmul.f32 %v7562_v28, %v14807_v37 }
 0x7c5   : > { %v6733_v14 = vadd.f32 %v6701_v3, %v6605_v46  ;;  %v6606_v29 = vadd.f32 %v6574_v17, %v6478_v52  ;;  %v7434_v46 = vrot.slane %v5614_v55, %v16623_v26 }
 0x7c7   : > { %v6861_v23 = vadd.f32 %v6829_v40, %v6733_v14  ;;  %v6734_v3 = vadd.f32 %v6702_v6, %v6606_v29  ;;  %v7341_v14 = vmul.f32 %v7306_v42, %v14681_v45  ;;  %v17692_v45 = vld [vmem:[#allocation8_spill] sm:$0xff]  ;;  %v7470_v51 = vmul.f32 %v7434_v46, %v14810_v47 }
 0x7c8   : > { %v17693_v6 = vld [vmem:[#allocation376_spill] sm:$0xff] }
 0x7c9   : > { %v6989_v31 = vadd.f32 %v6957_v5, %v6861_v23  ;;  %v6862_v40 = vadd.f32 %v6830_v60, %v6734_v3  ;;  %v7469_v23 = vmul.f32 %v7434_v46, %v14784_v30  ;;  %v17691_v5 = vld [vmem:[#allocation363_spill] sm:$0xff] }
 0x7ca   : > { %v7086_v52 = vmul.f32 %v7050_v7, %v17691_v5 }
 0x7cb   : > { %v8948_v36 = vpop.f32.mrb[38].mxu1  ;;  %v7117_v27 = vadd.f32 %v7085_v48, %v6989_v31  ;;  %v6990_v8 = vadd.f32 %v6958_v41, %v6862_v40  ;;  %v7597_v31 = vmul.f32 %v7562_v28, %v14821_v13  ;;  %v7214_v48 = vmul.f32 %v7178_v43, %v17692_v45 }
 0x7cc   : > { %v5536_v63 = vpop.f32.mrb[39].mxu1  ;;  %v5542_v10 = vadd.f32 %v14888_v38, %v8948_v36 }
 0x7cd   : > { %v5537_v58 = vadd.f32 %v14888_v38, %v5536_v63  ;;  %v7245_v4 = vadd.f32 %v7213_v16, %v7117_v27  ;;  %v7118_v19 = vadd.f32 %v7086_v52, %v6990_v8  ;;  %v7342_v27 = vmul.f32 %v7306_v42, %v17693_v6  ;;  %v17695_v16 = vld [vmem:[#allocation117_spill] sm:$0xff]  ;;  %v17698_v52 = vld [vmem:[#allocation87_spill] sm:$0xff] }
 0x7ce   : > { %v5584_v7 = vmul.f32 0.01, %v5542_v10 }
 0x7cf   : > { %v5583_v33 = vmul.f32 0.01, %v5537_v58  ;;  %v7373_v34 = vadd.f32 %v7341_v14, %v7245_v4  ;;  %v7246_v30 = vadd.f32 %v7214_v48, %v7118_v19  ;;  %v17696_v4 = vld [vmem:[#allocation161_spill] sm:$0xff]  ;;  %v17700_v48 = vld [vmem:[#allocation227_spill] sm:$0xff] }
 0x7d1   : > { %v5615_v32 = vmax.f32 %v5537_v58, %v5583_v33  ;;  %v7501_v17 = vadd.f32 %v7469_v23, %v7373_v34  ;;  %v7374_v3 = vadd.f32 %v7342_v27, %v7246_v30  ;;  %v5616_v33 = vmax.f32 %v5542_v10, %v5584_v7  ;;  %v17697_v23 = vld [vmem:[#allocation179_spill] sm:$0xff] }
 0x7d2   : > { %v17701_v27 = vld [vmem:[#allocation303_spill] sm:$0xff] }
 0x7d3   : > { %v5678_v55 = vrot.slane %v5615_v32, %v17449_v25  ;;  %v5774_v61 = vrot.slane %v5615_v32, %v10774_v18  ;;  %v5902_v29 = vrot.slane %v5615_v32, %v16698_v0  ;;  %v7629_v1 = vadd.f32 %v7597_v31, %v7501_v17  ;;  %v17699_v31 = vld [vmem:[#allocation129_spill] sm:$0xff] }
 0x7d4   : > { %v6030_v13 = vrot.slane %v5615_v32, %v16819_v39  ;;  %v6158_v40 = vrot.slane %v5615_v32, %v16618_v15  ;;  %v7502_v42 = vadd.f32 %v7470_v51, %v7374_v3  ;;  %v6286_v5 = vrot.slane %v5615_v32, %v16771_v50 }
 0x7d5   : > { %v5711_v36 = vmul.f32 %v5678_v55, %v17694_v54  ;;  %v5807_v63 = vmul.f32 %v5774_v61, %v17695_v16  ;;  %8999 = vmatprep.mubr.msk.f32.mxu0 %vm518_vm1, %v7629_v1  ;;  %v5935_v14 = vmul.f32 %v5902_v29, %v17696_v4  ;;  %v5712_v17 = vmul.f32 %v5678_v55, %v17698_v52 }
 0x7d6   : > { %v8951_v43 = vpop.f32.mrb[40].mxu1  ;;  %v6063_v8 = vmul.f32 %v6030_v13, %v17697_v23  ;;  %v7630_v47 = vadd.f32 %v7598_v24, %v7502_v42  ;;  %v5808_v19 = vmul.f32 %v5774_v61, %v17699_v31  ;;  %v6191_v1 = vmul.f32 %v6158_v40, %v17700_v48  ;;  %v17709_v31 = vld [vmem:[#allocation368_spill] sm:$0xff] }
 0x7d7   : > { %v5546_v60 = vpop.f32.mrb[41].mxu1  ;;  %v5839_v58 = vadd.f32 %v5807_v63, %v5711_v36  ;;  %v6414_v30 = vrot.slane %v5615_v32, %v16623_v26  ;;  %v5552_v37 = vadd.f32 %v14888_v38, %v8951_v43  ;;  %v6542_v10 = vrot.slane %v5615_v32, %v16722_v49  ;;  %v17702_v63 = vld [vmem:[#allocation172_spill] sm:$0xff] }
 0x7d8   : > { %v5547_v41 = vadd.f32 %v14888_v38, %v5546_v60  ;;  %9000 = vmatmul.mubr.msk.f32.gmra.mrb[48].mxu0 %vm518_vm1, %v7630_v47  ;;  %v6319_v7 = vmul.f32 %v6286_v5, %v17701_v27  ;;  %v6670_v55 = vrot.slane %v5616_v33, %v17449_v25  ;;  %v6798_v36 = vrot.slane %v5616_v33, %v10774_v18  ;;  %v17703_v32 = vld [vmem:[#allocation316_spill] sm:$0xff]  ;;  %v17708_v47 = vld [vmem:[#allocation311_spill] sm:$0xff] }
 0x7d9   : > { %v5967_v34 = vadd.f32 %v5935_v14, %v5839_v58  ;;  %v15160_v16 = vrot.slane %v5616_v33, %v16698_v0  ;;  %v6447_v43 = vmul.f32 %v6414_v30, %v17702_v63  ;;  %v5840_v3 = vadd.f32 %v5808_v19, %v5712_v17  ;;  %v17704_v58 = vld [vmem:[#allocation97_spill] sm:$0xff]  ;;  %v17705_v14 = vld [vmem:[#allocation119_spill] sm:$0xff] }
 0x7da   : > { %v5585_v46 = vmul.f32 0.01, %v5547_v41  ;;  %v5586_v51 = vmul.f32 0.01, %v5552_v37  ;;  %v6575_v60 = vmul.f32 %v6542_v10, %v17703_v32  ;;  %v7054_v19 = vrot.slane %v5616_v33, %v16819_v39  ;;  %v17711_v32 = vld [vmem:[#allocation211_spill] sm:$0xff] }
 0x7db   : > { %v6095_v45 = vadd.f32 %v6063_v8, %v5967_v34  ;;  %v17707_v8 = vld [vmem:[#allocation36_spill] sm:$0xff] }
 0x7dc   : > { %v5617_v28 = vmax.f32 %v5547_v41, %v5585_v46  ;;  %v17706_v41 = vld [vmem:[#allocation149_spill] sm:$0xff]  ;;  %v6703_v52 = vmul.f32 %v6670_v55, %v17707_v8  ;;  %v6831_v46 = vmul.f32 %v6798_v36, %v17708_v47  ;;  %v15174_v27 = vmax.f32 %v5552_v37, %v5586_v51  ;;  %v17712_v37 = vld [vmem:[#allocation163_spill] sm:$0xff]  ;;  %v17713_v8 = vld [vmem:[#allocation246_spill] sm:$0xff] }
 0x7dd   : > { %v6223_v6 = vadd.f32 %v6191_v1, %v6095_v45  ;;  %v5936_v34 = vmul.f32 %v5902_v29, %v17706_v41  ;;  %v6959_v45 = vmul.f32 %v15160_v16, %v17709_v31  ;;  %v17710_v1 = vld [vmem:[#allocation195_spill] sm:$0xff]  ;;  %v15178_v29 = vrot.slane %v5616_v33, %v16618_v15  ;;  %v17714_v47 = vld [vmem:[#allocation396_spill] sm:$0xff] }
 0x7de   : > { %v5682_v54 = vrot.slane %v5617_v28, %v17449_v25  ;;  %v5778_v61 = vrot.slane %v5617_v28, %v10774_v18  ;;  %v5906_v23 = vrot.slane %v5617_v28, %v16698_v0  ;;  %v6162_v51 = vrot.slane %v5617_v28, %v16618_v15 }
 0x7df   : > { %v6351_v38 = vadd.f32 %v6319_v7, %v6223_v6  ;;  %v5968_v48 = vadd.f32 %v5936_v34, %v5840_v3  ;;  %v6064_v6 = vmul.f32 %v6030_v13, %v17710_v1  ;;  %v6034_v7 = vrot.slane %v5617_v28, %v16819_v39 }
 0x7e0   : > { %v5713_v4 = vmul.f32 %v5682_v54, %v17704_v58  ;;  %v5809_v42 = vmul.f32 %v5778_v61, %v17705_v14  ;;  %v6192_v58 = vmul.f32 %v6158_v40, %v17711_v32  ;;  %v15185_v14 = vrot.slane %v5616_v33, %v16623_v26  ;;  %v17718_v32 = vld [vmem:[#allocation229_spill] sm:$0xff] }
 0x7e1   : > { %v6479_v24 = vadd.f32 %v6447_v43, %v6351_v38  ;;  %v15181_v38 = vrot.slane %v5616_v33, %v16771_v50  ;;  %v6096_v43 = vadd.f32 %v6064_v6, %v5968_v48  ;;  %v15188_v13 = vrot.slane %v5616_v33, %v16722_v49  ;;  %v17716_v6 = vld [vmem:[#allocation276_spill] sm:$0xff] }
 0x7e2   : > { %v5937_v3 = vmul.f32 %v5906_v23, %v17712_v37  ;;  %v7087_v41 = vmul.f32 %v7054_v19, %v14659_v22  ;;  %v7215_v40 = vmul.f32 %v15178_v29, %v17714_v47  ;;  %v17719_v37 = vld [vmem:[#allocation131_spill] sm:$0xff]  ;;  %v17720_v47 = vld [vmem:[#allocation318_spill] sm:$0xff] }
 0x7e3   : > { %v6607_v17 = vadd.f32 %v6575_v60, %v6479_v24  ;;  %v5841_v60 = vadd.f32 %v5809_v42, %v5713_v4  ;;  %v6224_v34 = vadd.f32 %v6192_v58, %v6096_v43  ;;  %v17715_v42 = vld [vmem:[#allocation181_spill] sm:$0xff]  ;;  %v7343_v48 = vmul.f32 %v15181_v38, %v14817_v21 }
 0x7e4   : > { %v6065_v31 = vmul.f32 %v6034_v7, %v17715_v42  ;;  %v6418_v58 = vrot.slane %v5617_v28, %v16623_v26  ;;  %v6576_v42 = vmul.f32 %v6542_v10, %v17720_v47 }
 0x7e5   : > { %v6735_v63 = vadd.f32 %v6703_v52, %v6607_v17  ;;  %v6320_v52 = vmul.f32 %v6286_v5, %v17713_v8  ;;  %v5969_v4 = vadd.f32 %v5937_v3, %v5841_v60  ;;  %v6290_v17 = vrot.slane %v5617_v28, %v16771_v50 }
 0x7e6   : > { %v6193_v5 = vmul.f32 %v6162_v51, %v17718_v32  ;;  %v5810_v60 = vmul.f32 %v5778_v61, %v17719_v37  ;;  %v17723_v61 = vld [vmem:[#allocation356_spill] sm:$0xff]  ;;  %v17725_v32 = vld [vmem:[#allocation151_spill] sm:$0xff]  ;;  %v17727_v37 = vld [vmem:[#allocation321_spill] sm:$0xff] }
 0x7e7   : > { %v6863_v24 = vadd.f32 %v6831_v46, %v6735_v63  ;;  %v6352_v1 = vadd.f32 %v6320_v52, %v6224_v34  ;;  %v6448_v46 = vmul.f32 %v6414_v30, %v17716_v6  ;;  %v17717_v63 = vld [vmem:[#allocation89_spill] sm:$0xff]  ;;  %v6097_v43 = vadd.f32 %v6065_v31, %v5969_v4  ;;  %v17722_v31 = vld [vmem:[#allocation346_spill] sm:$0xff] }
 0x7e8   : > { %v5714_v22 = vmul.f32 %v5682_v54, %v17717_v63  ;;  %v6546_v30 = vrot.slane %v5617_v28, %v16722_v49  ;;  %v7599_v52 = vmul.f32 %v15188_v13, %v14841_v35  ;;  %v6704_v6 = vmul.f32 %v6670_v55, %v17722_v31 }
 0x7e9   : > { %v6991_v33 = vadd.f32 %v6959_v45, %v6863_v24  ;;  %v6480_v8 = vadd.f32 %v6448_v46, %v6352_v1  ;;  %v7471_v45 = vmul.f32 %v15185_v14, %v14843_v62  ;;  %v6225_v21 = vadd.f32 %v6193_v5, %v6097_v43  ;;  %v17721_v24 = vld [vmem:[#allocation140_spill] sm:$0xff]  ;;  %v17724_v1 = vld [vmem:[#allocation74_spill] sm:$0xff] }
 0x7ea   : > { %v6321_v34 = vmul.f32 %v6290_v17, %v17721_v24  ;;  %v6449_v10 = vmul.f32 %v6418_v58, %v17724_v1  ;;  %v6674_v62 = vrot.slane %v15174_v27, %v17449_v25  ;;  %v5842_v43 = vadd.f32 %v5810_v60, %v5714_v22  ;;  %v17729_v22 = vld [vmem:[#allocation353_spill] sm:$0xff] }
 0x7eb   : > { %v7119_v3 = vadd.f32 %v7087_v41, %v6991_v33  ;;  %v6608_v4 = vadd.f32 %v6576_v42, %v6480_v8  ;;  %v6832_v41 = vmul.f32 %v6798_v36, %v17723_v61  ;;  %v5938_v28 = vmul.f32 %v5906_v23, %v17725_v32  ;;  %v17728_v42 = vld [vmem:[#allocation197_spill] sm:$0xff] }
 0x7ec   : > { %v6353_v33 = vadd.f32 %v6321_v34, %v6225_v21  ;;  %v6802_v55 = vrot.slane %v15174_v27, %v10774_v18  ;;  %v6066_v21 = vmul.f32 %v6034_v7, %v17728_v42  ;;  %v6705_v60 = vmul.f32 %v6674_v62, %v17729_v22  ;;  %v17731_v18 = vld [vmem:[#allocation358_spill] sm:$0xff] }
 0x7ed   : > { %v7247_v54 = vadd.f32 %v7215_v40, %v7119_v3  ;;  %v6736_v63 = vadd.f32 %v6704_v6, %v6608_v4  ;;  %v17726_v40 = vld [vmem:[#allocation336_spill] sm:$0xff]  ;;  %v6577_v3 = vmul.f32 %v6546_v30, %v17727_v37  ;;  %v5970_v47 = vadd.f32 %v5938_v28, %v5842_v43  ;;  %v17730_v4 = vld [vmem:[#allocation213_spill] sm:$0xff]  ;;  %v17734_v28 = vld [vmem:[#allocation174_spill] sm:$0xff] }
 0x7ee   : > { %v6960_v5 = vmul.f32 %v15160_v16, %v17726_v40  ;;  %v6481_v35 = vadd.f32 %v6449_v10, %v6353_v33  ;;  %v6930_v23 = vrot.slane %v15174_v27, %v16698_v0  ;;  %v6194_v31 = vmul.f32 %v6162_v51, %v17730_v4 }
 0x7ef   : > { %v7375_v46 = vadd.f32 %v7343_v48, %v7247_v54  ;;  %v6864_v8 = vadd.f32 %v6832_v41, %v6736_v63  ;;  %v7088_v48 = vmul.f32 %v7054_v19, %v14728_v2  ;;  %v6098_v54 = vadd.f32 %v6066_v21, %v5970_v47  ;;  %v17732_v41 = vld [vmem:[#allocation242_spill] sm:$0xff] }
 0x7f0   : > { %v6609_v24 = vadd.f32 %v6577_v3, %v6481_v35  ;;  %v7058_v61 = vrot.slane %v15174_v27, %v16819_v39  ;;  %v7216_v19 = vmul.f32 %v15178_v29, %v17535_v44  ;;  %v6322_v0 = vmul.f32 %v6290_v17, %v17732_v41  ;;  %v17735_v35 = vld [vmem:[#allocation306_spill] sm:$0xff] }
 0x7f1   : > { %v7503_v36 = vadd.f32 %v7471_v45, %v7375_v46  ;;  %v6992_v34 = vadd.f32 %v6960_v5, %v6864_v8  ;;  %v6833_v45 = vmul.f32 %v6802_v55, %v17731_v18  ;;  %v6226_v7 = vadd.f32 %v6194_v31, %v6098_v54  ;;  %v17733_v46 = vld [vmem:[#allocation263_spill] sm:$0xff]  ;;  %v17737_v47 = vld [vmem:[#allocation370_spill] sm:$0xff] }
 0x7f2   : > { %v6737_v6 = vadd.f32 %v6705_v60, %v6609_v24  ;;  %v6961_v33 = vmul.f32 %v6930_v23, %v14772_v11  ;;  %v7186_v51 = vrot.slane %v15174_v27, %v16618_v15  ;;  %v7344_v10 = vmul.f32 %v15181_v38, %v14824_v56  ;;  %v17743_v31 = vld [vmem:[#allocation395_spill] sm:$0xff] }
 0x7f3   : > { %v7631_v16 = vadd.f32 %v7599_v52, %v7503_v36  ;;  %v7120_v2 = vadd.f32 %v7088_v48, %v6992_v34  ;;  %v6354_v39 = vadd.f32 %v6322_v0, %v6226_v7  ;;  %v6450_v63 = vmul.f32 %v6418_v58, %v17733_v46  ;;  %v17736_v36 = vld [vmem:[#allocation283_spill] sm:$0xff] }
 0x7f4   : > { %v6865_v52 = vadd.f32 %v6833_v45, %v6737_v6  ;;  %v7089_v32 = vmul.f32 %v7058_v61, %v17553_v9  ;;  %v7314_v44 = vrot.slane %v15174_v27, %v16771_v50  ;;  %v7472_v11 = vmul.f32 %v15185_v14, %v14847_v57  ;;  %v17742_v34 = vld [vmem:[#allocation275_spill] sm:$0xff] }
 0x7f5   : > { %9002 = vmatprep.mubr.msk.f32.mxu0 %vm518_vm1, %v7631_v16  ;;  %v7248_v1 = vadd.f32 %v7216_v19, %v7120_v2  ;;  %v6482_v17 = vadd.f32 %v6450_v63, %v6354_v39  ;;  %v6578_v15 = vmul.f32 %v6546_v30, %v17734_v28  ;;  %v7217_v5 = vmul.f32 %v7186_v51, %v14834_v53 }
 0x7f6   : > { %v6993_v43 = vadd.f32 %v6961_v33, %v6865_v52  ;;  %v7442_v56 = vrot.slane %v15174_v27, %v16623_v26  ;;  %v7600_v9 = vmul.f32 %v15188_v13, %v14864_v12  ;;  %v6706_v50 = vmul.f32 %v6674_v62, %v17735_v35  ;;  %v17738_v12 = vld [vmem:[#allocation47_spill] sm:$0xff]  ;;  %v17739_v62 = vld [vmem:[#allocation12_spill] sm:$0xff] }
 0x7f7   : > { %v7376_v29 = vadd.f32 %v7344_v10, %v7248_v1  ;;  %v6610_v58 = vadd.f32 %v6578_v15, %v6482_v17  ;;  %v7345_v3 = vmul.f32 %v7314_v44, %v14857_v59  ;;  %v7570_v57 = vrot.slane %v15174_v27, %v16722_v49  ;;  %v17740_v59 = vld [vmem:[#allocation389_spill] sm:$0xff]  ;;  %v17741_v27 = vld [vmem:[#allocation399_spill] sm:$0xff] }
 0x7f8   : > { %v7121_v40 = vadd.f32 %v7089_v32, %v6993_v43  ;;  %v6834_v53 = vmul.f32 %v6802_v55, %v17736_v36  ;;  %v7473_v26 = vmul.f32 %v7442_v56, %v17737_v47  ;;  %v6962_v13 = vmul.f32 %v6930_v23, %v17738_v12  ;;  %v17744_v23 = vld [vmem:[#allocation281_spill] sm:$0xff] }
 0x7f9   : > { %v7504_v38 = vadd.f32 %v7472_v11, %v7376_v29  ;;  %v6738_v30 = vadd.f32 %v6706_v50, %v6610_v58  ;;  %v7601_v48 = vmul.f32 %v7570_v57, %v17739_v62  ;;  %v7090_v22 = vmul.f32 %v7058_v61, %v17740_v59  ;;  %v17745_v61 = vld [vmem:[#allocation343_spill] sm:$0xff]  ;;  %v8191_v15 = vld [vmem:[%s15393_s6] sm:$0xff] }
 0x7fa   : > { %v7249_v37 = vadd.f32 %v7217_v5, %v7121_v40  ;;  %v7218_v16 = vmul.f32 %v7186_v51, %v17741_v27  ;;  %v7346_v54 = vmul.f32 %v7314_v44, %v17742_v34  ;;  %v7474_v6 = vmul.f32 %v7442_v56, %v17743_v31  ;;  %v8192_v40 = vld [vmem:[%s15393_s6 + $0x8] sm:$0xff] }
 0x7fb   : > { %v7632_v14 = vadd.f32 %v7600_v9, %v7504_v38  ;;  %v6866_v42 = vadd.f32 %v6834_v53, %v6738_v30  ;;  %v7602_v45 = vmul.f32 %v7570_v57, %v17744_v23  ;;  %v9061_v56 = vpack.c.bf16 %v8192_v40, %v8191_v15 }
 0x7fc   : > { %v7377_v8 = vadd.f32 %v7345_v3, %v7249_v37 }
 0x7fd   : > { %9003 = vmatmul.mubr.msk.f32.gmra.mrb[50].mxu0 %vm518_vm1, %v7632_v14  ;;  %v6994_v24 = vadd.f32 %v6962_v13, %v6866_v42  ;;  %9062 = vmatprep.subr.bf16.mxu1 %v9061_v56  ;;  %v8193_v13 = vld [vmem:[%s15393_s6 + $0x10] sm:$0xff] }
 0x7fe   : > { %v7505_v21 = vadd.f32 %v7473_v26, %v7377_v8  ;;  %9064 = vmatpush3.bf16.msra.mxu1 %v9061_v56 }
 0x7ff   : > { %v7122_v49 = vadd.f32 %v7090_v22, %v6994_v24 }
 0x800   : > { %v7633_v60 = vadd.f32 %v7601_v48, %v7505_v21  ;;  %v8194_v21 = vld [vmem:[%s15393_s6 + $0x18] sm:$0xff] }
 0x801   : > { %v7250_v55 = vadd.f32 %v7218_v16, %v7122_v49  ;;  %v9065_v62 = vpack.c.bf16 %v8194_v21, %v8193_v13 }
 0x802   : > { %9005 = vmatprep.mubr.msk.f32.mxu0 %vm518_vm1, %v7633_v60 }
 0x803   : > { %v7378_v4 = vadd.f32 %v7346_v54, %v7250_v55  ;;  %9066 = vmatprep.subr.bf16.mxu1 %v9065_v62 }
 0x804   : > { %9068 = vmatpush3.bf16.msra.mxu1 %v9065_v62 }
 0x805   : > { %v7506_v18 = vadd.f32 %v7474_v6, %v7378_v4 }
 0x807   : > { %v7634_v2 = vadd.f32 %v7602_v45, %v7506_v18 }
 0x809   : > { %9006 = vmatmul.mubr.msk.f32.gmra.mrb[52].mxu0 %vm518_vm1, %v7634_v2 }
 0x812   : > { %v8992_v19 = vpop.f32.mrb[42].mxu0 }
 0x813   : > { %v7913_v7 = vadd.f32 %v17745_v61, %v8992_v19  ;;  %v7907_v41 = vpop.f32.mrb[43].mxu0 }
 0x814   : > { %v7908_v0 = vadd.f32 %v17745_v61, %v7907_v41 }
 0x815   : > { %v7987_v52 = vmul.f32 0.01, %v7913_v7 }
 0x816   : > { %v7986_v33 = vmul.f32 0.01, %v7908_v0 }
 0x817   : > { %v8019_v51 = vmax.f32 %v7913_v7, %v7987_v52 }
 0x818   : > { %v8018_v1 = vmax.f32 %v7908_v0, %v7986_v33 }
 0x819   : > { %v8121_v10 = vsel %vm518_vm1, %v8019_v51, 0.0 }
 0x81a   : > { %v8120_v39 = vsel %vm518_vm1, %v8018_v1, 0.0 }
 0x81b   : > { %v8122_v46 = vadd.f32 %v8121_v10, %v8120_v39 }
 0x81d   : > { %v8123_v63 = vrot.slane %v8122_v46, 4 }
 0x81f   : > { %v8124_v43 = vadd.f32 %v8123_v63, %v8122_v46 }
 0x821   : > { %v8125_v32 = vrot.slane %v8124_v43, 2 }
 0x823   : > { %v8126_v44 = vadd.f32 %v8125_v32, %v8124_v43 }
 0x825   : > { %v8127_v29 = vrot.slane %v8126_v44, 1 }
 0x827   : > { %v8128_v11 = vadd.f32 %v8127_v29, %v8126_v44 }
 0x829   : > { %v8185_v17 = vmul.f32 0.0625, %v8128_v11 }
 0x82b   : > { %v8233_v28 = vsel %vm8220_vm3, %v8185_v17, %v15080_v20 }
 0x845   : > { %v8995_v5 = vpop.f32.mrb[44].mxu0 }
 0x846   : > { %v7923_v38 = vadd.f32 %v17745_v61, %v8995_v5  ;;  %v7917_v9 = vpop.f32.mrb[45].mxu0 }
 0x847   : > { %v7918_v58 = vadd.f32 %v17745_v61, %v7917_v9 }
 0x848   : > { %v7989_v35 = vmul.f32 0.01, %v7923_v38 }
 0x849   : > { %v7988_v50 = vmul.f32 0.01, %v7918_v58 }
 0x84a   : > { %v8021_v20 = vmax.f32 %v7923_v38, %v7989_v35 }
 0x84b   : > { %v8020_v37 = vmax.f32 %v7918_v58, %v7988_v50 }
 0x84c   : > { %v8130_v3 = vsel %vm518_vm1, %v8021_v20, 0.0 }
 0x84d   : > { %v8129_v57 = vsel %vm518_vm1, %v8020_v37, 0.0 }
 0x84e   : > { %v8131_v14 = vadd.f32 %v8130_v3, %v8129_v57 }
 0x850   : > { %v8132_v30 = vrot.slane %v8131_v14, 4 }
 0x852   : > { %v8133_v36 = vadd.f32 %v8132_v30, %v8131_v14 }
 0x854   : > { %v8134_v53 = vrot.slane %v8133_v36, 2 }
 0x856   : > { %v8135_v8 = vadd.f32 %v8134_v53, %v8133_v36 }
 0x858   : > { %v8136_v47 = vrot.slane %v8135_v8, 1 }
 0x85a   : > { %v8137_v26 = vadd.f32 %v8136_v47, %v8135_v8 }
 0x85c   : > { %v8186_v42 = vmul.f32 0.0625, %v8137_v26 }
 0x85e   : > { %v8234_v12 = vsel %vm8222_vm4, %v8186_v42, %v8233_v28 }
 0x88f   : > { %v8998_v48 = vpop.f32.mrb[46].mxu0 }
 0x890   : > { %v7933_v24 = vadd.f32 %v17745_v61, %v8998_v48  ;;  %v7927_v59 = vpop.f32.mrb[47].mxu0 }
 0x891   : > { %v7928_v22 = vadd.f32 %v17745_v61, %v7927_v59 }
 0x892   : > { %v7991_v60 = vmul.f32 0.01, %v7933_v24 }
 0x893   : > { %v7990_v49 = vmul.f32 0.01, %v7928_v22 }
 0x894   : > { %v8023_v27 = vmax.f32 %v7933_v24, %v7991_v60 }
 0x895   : > { %v8022_v16 = vmax.f32 %v7928_v22, %v7990_v49 }
 0x896   : > { %v8139_v55 = vsel %vm518_vm1, %v8023_v27, 0.0 }
 0x897   : > { %v8138_v34 = vsel %vm518_vm1, %v8022_v16, 0.0 }
 0x898   : > { %v8140_v54 = vadd.f32 %v8139_v55, %v8138_v34 }
 0x89a   : > { %v8141_v4 = vrot.slane %v8140_v54, 4 }
 0x89c   : > { %v8142_v31 = vadd.f32 %v8141_v4, %v8140_v54 }
 0x89e   : > { %v8143_v6 = vrot.slane %v8142_v31, 2 }
 0x8a0   : > { %v8144_v18 = vadd.f32 %v8143_v6, %v8142_v31  ;;  %v8322_v6 = vld [vmem:[%s15395_s8] sm:$0xff] }
 0x8a2   : > { %v8145_v23 = vrot.slane %v8144_v18, 1 }
 0x8a4   : > { %v8146_v45 = vadd.f32 %v8145_v23, %v8144_v18  ;;  %v8323_v18 = vld [vmem:[%s15395_s8 + $0x8] sm:$0xff]  ;;  %v8324_v23 = vld [vmem:[%s15395_s8 + $0x10] sm:$0xff] }
 0x8a6   : > { %v8187_v2 = vmul.f32 0.0625, %v8146_v45  ;;  %v9069_v45 = vpack.c.bf16 %v8323_v18, %v8322_v6 }
 0x8a8   : > { %v8235_v19 = vsel %vm8224_vm5, %v8187_v2, %v8234_v12  ;;  %v8325_v2 = vld [vmem:[%s15395_s8 + $0x18] sm:$0xff]  ;;  %9070 = vmatprep.subr.bf16.mxu1 %v9069_v45 }
 0x8ab   : > { %v9001_v7 = vpop.f32.mrb[48].mxu0 }
 0x8ac   : > { %v7943_v41 = vadd.f32 %v17745_v61, %v9001_v7  ;;  %v7937_v0 = vpop.f32.mrb[49].mxu0  ;;  %v8703_v7 = vld [vmem:[%s15394_s7] ss:$0 sm:$0xff] }
 0x8ad   : > { %v7938_v52 = vadd.f32 %v17745_v61, %v7937_v0 }
 0x8ae   : > { %v7993_v33 = vmul.f32 0.01, %v7943_v41 }
 0x8af   : > { %v7992_v51 = vmul.f32 0.01, %v7938_v52 }
 0x8b0   : > { %v8025_v1 = vmax.f32 %v7943_v41, %v7993_v33 }
 0x8b1   : > { %v8024_v10 = vmax.f32 %v7938_v52, %v7992_v51 }
 0x8b2   : > { %v8148_v39 = vsel %vm518_vm1, %v8025_v1, 0.0 }
 0x8b3   : > { %v8147_v46 = vsel %vm518_vm1, %v8024_v10, 0.0 }
 0x8b4   : > { %v8149_v63 = vadd.f32 %v8148_v39, %v8147_v46  ;;  %v9529_v46 = vmov 0.0|0.0  }
 0x8b6   : > { %v8150_v43 = vrot.slane %v8149_v63, 4 }
 0x8b8   : > { %v8151_v32 = vadd.f32 %v8150_v43, %v8149_v63  ;;  %v9531_v63 = vmov 0.0   ;;  %v8419_v43 = vld [vmem:[#allocation2] sm:$0x1] }
 0x8b9   : > { %8422 = vperm.xlu1 %9377, %v8419_v43  }
 0x8ba   : > { %v8152_v44 = vrot.slane %v8151_v32, 2 }
 0x8bc   : > { %v8153_v29 = vadd.f32 %v8152_v44, %v8151_v32  ;;  %v8706_v32 = vld [vmem:[%s15396_s9] ss:$0 sm:$0xff] }
 0x8be   : > { %v8154_v11 = vrot.slane %v8153_v29, 1 }
 0x8c0   : > { %v8155_v17 = vadd.f32 %v8154_v11, %v8153_v29 }
 0x8c2   : > { %v8188_v28 = vmul.f32 0.0625, %v8155_v17 }
 0x8c4   : > { %v8236_v15 = vsel %vm8226_vm6, %v8188_v28, %v8235_v19  ;;  %v9073_v19 = vpack.c.bf16 %v8325_v2, %v8324_v23 }
 0x8d0   : > { %v9004_v40 = vpop.f32.mrb[50].mxu0 }
 0x8d1   : > { %v7953_v5 = vadd.f32 %v17745_v61, %v9004_v40  ;;  %v7947_v56 = vpop.f32.mrb[51].mxu0 }
 0x8d2   : > { %v7948_v38 = vadd.f32 %v17745_v61, %v7947_v56 }
 0x8d3   : > { %v7995_v9 = vmul.f32 0.01, %v7953_v5 }
 0x8d4   : > { %v7994_v58 = vmul.f32 0.01, %v7948_v38 }
 0x8d5   : > { %v8027_v35 = vmax.f32 %v7953_v5, %v7995_v9 }
 0x8d6   : > { %v8026_v50 = vmax.f32 %v7948_v38, %v7994_v58  ;;  %v8418_v38 = vld [vmem:[%s15397_s10] sm:$0x1] }
 0x8d7   : > { %v8157_v20 = vsel %vm518_vm1, %v8027_v35, 0.0 }
 0x8d8   : > { %v8156_v37 = vsel %vm518_vm1, %v8026_v50, 0.0 }
 0x8d9   : > { %v8158_v3 = vadd.f32 %v8157_v20, %v8156_v37 }
 0x8db   : > { %v8159_v57 = vrot.slane %v8158_v3, 4 }
 0x8dc   : > { %v9007_v30 = vpop.f32.mrb[52].mxu0 }
 0x8dd   : > { %v8160_v14 = vadd.f32 %v8159_v57, %v8158_v3  ;;  %v7963_v53 = vadd.f32 %v17745_v61, %v9007_v30  ;;  %v7957_v8 = vpop.f32.mrb[53].mxu0 }
 0x8de   : > { %v7958_v47 = vadd.f32 %v17745_v61, %v7957_v8 }
 0x8df   : > { %v8161_v36 = vrot.slane %v8160_v14, 2  ;;  %v7997_v42 = vmul.f32 0.01, %v7963_v53 }
 0x8e0   : > { %v7996_v12 = vmul.f32 0.01, %v7958_v47 }
 0x8e1   : > { %v8162_v26 = vadd.f32 %v8161_v36, %v8160_v14  ;;  %v8029_v21 = vmax.f32 %v7963_v53, %v7997_v42 }
 0x8e2   : > { %v8028_v62 = vmax.f32 %v7958_v47, %v7996_v12 }
 0x8e3   : > { %v8163_v13 = vrot.slane %v8162_v26, 1  ;;  %v8166_v24 = vsel %vm518_vm1, %v8029_v21, 0.0 }
 0x8e4   : > { %v8165_v59 = vsel %vm518_vm1, %v8028_v62, 0.0 }
 0x8e5   : > { %v8164_v48 = vadd.f32 %v8163_v13, %v8162_v26  ;;  %v8167_v60 = vadd.f32 %v8166_v24, %v8165_v59 }
 0x8e7   : > { %v8189_v22 = vmul.f32 0.0625, %v8164_v48  ;;  %v8168_v49 = vrot.slane %v8167_v60, 4 }
 0x8e9   : > { %v8237_v27 = vsel %vm8228_vm7, %v8189_v22, %v8236_v15  ;;  %v8169_v16 = vadd.f32 %v8168_v49, %v8167_v60 }
 0x8eb   : > { %v8170_v55 = vrot.slane %v8169_v16, 2 }
 0x8ed   : > { %v8171_v34 = vadd.f32 %v8170_v55, %v8169_v16 }
 0x8ef   : > { %v8172_v61 = vrot.slane %v8171_v34, 1 }
 0x8f1   : > { %v8173_v54 = vadd.f32 %v8172_v61, %v8171_v34 }
 0x8f3   : > { %v8190_v4 = vmul.f32 0.0625, %v8173_v54 }
 0x8f5   : > { %v8238_v31 = vsel %vm8230_vm8, %v8190_v4, %v8237_v27 }
 0x8f6   : > { %9017 = vmatmul.mubr.msk.f32.vlgmr.msra.gmra.mrb[42].mxu1 %vm518_vm1, %v8238_v31 }
 0x8f7   : > { %9072 = vmatpush3.bf16.msra.mxu1 %v9069_v45 }
 0x8f8   : > { %9074 = vmatprep.subr.bf16.mxu1 %v9073_v19 }
 0x8fb   : > { %9076 = vmatpush3.bf16.msra.mxu1 %v9073_v19 }
 0x8fc   : > { %9077 = vmatprep.subr.bf16.mxu1 %v9529_v46 }
 0x938   : > { %v8423_v9 = vpop.permute.xlu1 %8422 }
 0x939   : > { %v8428_v58 = vrot.slane %v8423_v9, %v17449_v25 }
 0x9c9   : > { %v9018_v41 = vpop.f32.mrb[42].mxu1 }
 0x9ca   : > { %v8315_v0 = vadd.f32 %v9018_v41, %v8703_v7  ;;  %v8309_v52 = vpop.f32.mrb[43].mxu1 }
 0x9cb   : > { %v8310_v33 = vadd.f32 %v8703_v7, %v8309_v52 }
 0x9cc   : > { %v8319_v51 = vmul.f32 0.01, %v8315_v0 }
 0x9cd   : > { %v8318_v1 = vmul.f32 0.01, %v8310_v33 }
 0x9ce   : > { %v8321_v39 = vmax.f32 %v8315_v0, %v8319_v51 }
 0x9cf   : > { %v8320_v10 = vmax.f32 %v8310_v33, %v8318_v1 }
 0x9d1   : > { %9027 = vmatprep.mubr.msk.f32.mxu1 %vm518_vm1, %v8320_v10 }
 0x9d2   : > { %9028 = vmatmul.mubr.msk.f32.vlgmr.msra.gmra.mrb[44].mxu1 %vm518_vm1, %v8321_v39 }
 0x9d3   : > { %9034 = vmatprep.mubr.msk.f32.mxu1 %vm9530_vm9, %v9531_v63 }
 0xaa5   : > { %v9029_v44 = vpop.f32.mrb[44].mxu1 }
 0xaa6   : > { %v8411_v29 = vadd.f32 %v9029_v44, %v8706_v32  ;;  %v8405_v11 = vpop.f32.mrb[45].mxu1 }
 0xaa7   : > { %v8406_v17 = vadd.f32 %v8706_v32, %v8405_v11 }
 0xaa8   : > { %v8415_v28 = vmul.f32 0.01, %v8411_v29 }
 0xaa9   : > { %v8414_v15 = vmul.f32 0.01, %v8406_v17 }
 0xaaa   : > { %v8417_v40 = vmax.f32 %v8411_v29, %v8415_v28 }
 0xaab   : > { %v8416_v5 = vmax.f32 %v8406_v17, %v8414_v15 }
 0xaad   : > { %v9078_v56 = vpack.c.bf16 %v8417_v40, %v8416_v5 }
 0xaaf   : > { %9080 = vmatpush3.bf16.xpose.msk.msra.mxu1 %vm9079_vm10, %v9078_v56 }
 0xab6   : > { %9035 = vmatmul.mubr.msk.f32.vlgmr.msra.gmra.mrb[46].mxu1 %vm518_vm1, %v8418_v38 }
 0xb89   : > { %v8504_v35 = vpop.f32.mrb[46].mxu1 }
 0xb8a   : > { %v8505_v50 = vadd.f32 %v8504_v35, %v8428_v58  ;;  %v9036_v20 = vpop.f32.mrb[47].mxu1 }
 0xb8c   : > { %8509 = vst.msk [vmem:[%s428_s20] sm:$0x1] %vm8508_vm11, %v8505_v50 }
 0xb8d   : > { %9462 = shalt.err (!%p9459_p3)
}
 0xb8e   : > { %s9463_s16 = scalar_lea.hbm %s15345_s29, 16  ;;  %s9467_s22 = scalar_lea.hbm %s15399_s12, 32 }
 0xb8f   : > { %p9464_p4 = scmp.ne.s32.totalorder %s15345_s29, %s9463_s16  ;;  %p9468_p9 = scmp.lt.u32.totalorder %s15345_s29, %s15399_s12 }
 0xb90   : > { %p9469_p10 = scmp.lt.u32.totalorder %s9467_s22, %s9463_s16  ;;  %p9471_p12 = scmp.lt.u32.totalorder %s9463_s16, %s15345_s29 }
 0xb91   : > { %p9465_p7 = pnand %p9464_p4, %p9636_p5 }
 0xb92   : > { %p9470_p11 = por %p9469_p10, %p9468_p9 }
 0xb93   : > { %p9466_p8 = pneg %p9465_p7 }
 0xb94   : > { %p9472_p13 = por %p9471_p12, %p9470_p11 }
 0xb96   : > { %p9473_p0 = pnand %p9472_p13, %p9466_p8 }
 0xb98   : > { %9476 = shalt.err (!%p9473_p0)
}
 0xb99   : > { %9085 = dma.vmem_to_hbm [thread:$0]  (%p9636_p5), %s15347_s21, 16, %s15345_s29, %s8511_s11  }
 0xb9a PF: > { %p9091_p1 = scmp.ge.s32.totalorder %s9511_s26, 2  ;;  %s8535_s0 = sand.u32 1, %s9499_s23  }
 0xb9b   : > { %s8536_s30 = scalar_lea.sflag [#allocation4], %s8535_s0 }
 0xb9c   : > { %p9088_p2 = pnand %p9091_p1, %p9640_p6 }
 0xb9e   : > { %9494 = dma.done.wait (!%p9088_p2), %s8536_s30, 16  }
 0xb9f   : > { %9496 = vsyncadd (!%p9088_p2), %s8536_s30, 4294967280  ;;  %p24_p3 = scmp.ge.s32.totalorder %s9624_s28, 4   ;;  %s17746_s23 = smov %s9503_s24 }
 0xba0   : > { %s17747_s24 = smov %s9507_s25  ;;  %s17748_s25 = smov %s9634_s13 }
 0xba1   : > { %s17749_s26 = smov %s9624_s28  ;;  %26 = sbr.rel (!%p24_p3) target bundleno = 6 (0x6), region = 107 }
 0xba8   :  { %8540 = vsyncpa [#allocation4], 1 }
 0xba9   :  { %8542 = vsyncpa [#allocation4 + $0x1], 1 }

</bundles_post_ra>
